<compile_context>
chip_gen: v7x
topology: tpu7x:2x2x1
jax: 0.10.0
libtpu: 0.0.40
codegen_flags: <defaults>
</compile_context>

<pallas_src>
import functools

import numpy as np
import jax
import jax.numpy as jnp
from jax.experimental import pallas as pl
from jax.experimental.pallas import tpu as pltpu


# ----------------------------------------------------------------------------
# helpers
# ----------------------------------------------------------------------------
def _round_up(v, m):
    return ((v + m - 1) // m) * m


def _pick_tile_h(H, max_tile=32):
    for t in range(min(H, max_tile), 1, -1):
        if H % t == 0:
            return t
    return H


def _build_halo(x, tile_h):
    """Gather the 2 rows above / below every row-tile (zeros at the image border).

    Only 4 rows per tile are touched; the full activation is never re-padded in HBM.
    Returns (N, n_h, 4, W, C)."""
    N, H, W, C = x.shape
    n_h = H // tile_h
    xt = x.reshape(N, n_h, tile_h, W, C)
    zrow = jnp.zeros((N, 1, 2, W, C), x.dtype)
    top = jnp.concatenate([zrow, xt[:, :-1, tile_h - 2:tile_h]], axis=1)
    bot = jnp.concatenate([xt[:, 1:, 0:2], zrow], axis=1)
    return jnp.concatenate([top, bot], axis=2)


def _cast_block_weights(blk, compute_dtype):
    """Pre-cast MXU operands to bf16 once (outside the kernel); biases stay f32."""
    return {
        "w1": blk["w1"].astype(compute_dtype), "b1": blk["b1"],
        "w2": blk["w2"].astype(compute_dtype), "b2": blk["b2"],
        "v1": blk["v1"].astype(compute_dtype), "c1": blk["c1"],
        "v2": blk["v2"].astype(compute_dtype), "c2": blk["c2"],
    }


# ----------------------------------------------------------------------------
# Pallas kernels
# ----------------------------------------------------------------------------
def make_ssb_body_kernel(res_scale, w_valid, fuse_prev, compute_dtype=jnp.bfloat16):
    """Fused SSB body for one (batch, row-tile) grid cell.

    Computes in VMEM:
      [fuse_prev] x = u_prev + rs * (z_prev * s_prev)     (previous block's spc residual)
      u = x + rs * conv3x3(ReLU(conv3x3(x)))              (spatial residual block)
      z = conv1x1(ReLU(conv1x1(u)))                       (spectral block body)
    and accumulates the global-average-pool partial sums of z over the row-tile grid
    axis (output-accumulator pattern, pl.when init at h == 0)."""
    rs = res_scale
    wv = w_valid

    def _body(x_tile, halo, w1_ref, b1_ref, w2_ref, b2_ref,
              v1_ref, c1_ref, v2_ref, c2_ref,
              u_ref, z_ref, pool_ref, xpad_ref, y1pad_ref):
        th, Wk, C = x_tile.shape
        h_id = pl.program_id(1)
        n_h = pl.num_programs(1)

        # ---- assemble the zero-padded input tile (th+4, Wk+2, C) in bf16 VMEM -----
        xpad_ref[...] = jnp.zeros_like(xpad_ref)
        xpad_ref[0:2, 1:Wk + 1, :] = halo[0:2].astype(xpad_ref.dtype)
        xpad_ref[th + 2:th + 4, 1:Wk + 1, :] = halo[2:4].astype(xpad_ref.dtype)
        xpad_ref[2:th + 2, 1:Wk + 1, :] = x_tile.astype(xpad_ref.dtype)

        # ---- conv1 (3x3 'SAME'): evaluated on th+2 rows (1-row ring for conv2) ----
        L1 = (th + 2) * Wk
        acc1 = jnp.zeros((L1, C), jnp.float32)
        for ky in range(3):
            for kx in range(3):
                xs = xpad_ref[ky:ky + th + 2, kx:kx + Wk, :].reshape(L1, C)
                acc1 = acc1 + jnp.dot(xs, w1_ref[ky, kx],
                                      preferred_element_type=jnp.float32)
        y1 = jnp.maximum(acc1 + b1_ref[...], 0.0).reshape(th + 2, Wk, C)

        # ---- re-zero-pad conv2's input; ring rows outside the image stay zero -----
        y1pad_ref[...] = jnp.zeros_like(y1pad_ref)
        y1pad_ref[1:th + 1, 1:wv + 1, :] = y1[1:th + 1, 0:wv, :].astype(y1pad_ref.dtype)

        @pl.when(h_id > 0)
        def _():
            y1pad_ref[0:1, 1:wv + 1, :] = y1[0:1, 0:wv, :].astype(y1pad_ref.dtype)

        @pl.when(h_id < n_h - 1)
        def _():
            y1pad_ref[th + 1:th + 2, 1:wv + 1, :] = (
                y1[th + 1:th + 2, 0:wv, :].astype(y1pad_ref.dtype))

        # ---- conv2 (3x3 'SAME') + spatial residual --------------------------------
        L2 = th * Wk
        acc2 = jnp.zeros((L2, C), jnp.float32)
        for ky in range(3):
            for kx in range(3):
                ys = y1pad_ref[ky:ky + th, kx:kx + Wk, :].reshape(L2, C)
                acc2 = acc2 + jnp.dot(ys, w2_ref[ky, kx],
                                      preferred_element_type=jnp.float32)
        y2 = acc2 + b2_ref[...]

        x_flat = x_tile.reshape(L2, C)                   # f32 residual stream
        u = x_flat + rs * y2                             # spa output

        # ---- spc body: 1x1 conv -> ReLU -> 1x1 conv (channel matmuls on MXU) ------
        z1 = jnp.maximum(
            jnp.dot(u.astype(compute_dtype), v1_ref[...],
                    preferred_element_type=jnp.float32) + c1_ref[...], 0.0)
        z = jnp.dot(z1.astype(compute_dtype), v2_ref[...],
                    preferred_element_type=jnp.float32) + c2_ref[...]

        u3 = u.reshape(1, th, Wk, C)
        z3 = z.reshape(1, th, Wk, C)
        if wv == Wk:
            u_ref[...] = u3.astype(u_ref.dtype)
            z_ref[...] = z3.astype(z_ref.dtype)
            pool_part = jnp.sum(z, axis=0, keepdims=True).reshape(1, 1, C)
        else:
            # Width was padded up to a sublane multiple: keep the pad columns exactly
            # zero so they behave like 'SAME' zero padding for the following block.
            u_ref[...] = jnp.zeros_like(u_ref)
            z_ref[...] = jnp.zeros_like(z_ref)
            u_ref[0:1, :, 0:wv, :] = u3[:, :, 0:wv, :].astype(u_ref.dtype)
            z_ref[0:1, :, 0:wv, :] = z3[:, :, 0:wv, :].astype(z_ref.dtype)
            pool_part = jnp.sum(z3[0, :, 0:wv, :], axis=(0, 1), keepdims=True)
            pool_part = pool_part.reshape(1, 1, C)

        # ---- global-average-pool partial sums (accumulated over the h grid axis) --
        @pl.when(h_id == 0)
        def _():
            pool_ref[...] = jnp.zeros_like(pool_ref)

        pool_ref[...] += pool_part

    if fuse_prev:
        def kernel(up_ref, zp_ref, uh_ref, zh_ref, s_ref,
                   w1_ref, b1_ref, w2_ref, b2_ref,
                   v1_ref, c1_ref, v2_ref, c2_ref,
                   u_ref, z_ref, pool_ref, xpad_ref, y1pad_ref):
            _, th, Wk, C = up_ref.shape
            s = s_ref[...].reshape(1, 1, C).astype(jnp.float32)
            x_tile = (up_ref[...].reshape(th, Wk, C).astype(jnp.float32)
                      + rs * (zp_ref[...].reshape(th, Wk, C).astype(jnp.float32) * s))
            halo = (uh_ref[...].reshape(4, Wk, C).astype(jnp.float32)
                    + rs * (zh_ref[...].reshape(4, Wk, C).astype(jnp.float32) * s))
            _body(x_tile, halo, w1_ref, b1_ref, w2_ref, b2_ref,
                  v1_ref, c1_ref, v2_ref, c2_ref,
                  u_ref, z_ref, pool_ref, xpad_ref, y1pad_ref)
    else:
        def kernel(x_ref, halo_ref,
                   w1_ref, b1_ref, w2_ref, b2_ref,
                   v1_ref, c1_ref, v2_ref, c2_ref,
                   u_ref, z_ref, pool_ref, xpad_ref, y1pad_ref):
            _, th, Wk, C = x_ref.shape
            _body(x_ref[...].reshape(th, Wk, C).astype(jnp.float32),
                  halo_ref[...].reshape(4, Wk, C).astype(jnp.float32),
                  w1_ref, b1_ref, w2_ref, b2_ref,
                  v1_ref, c1_ref, v2_ref, c2_ref,
                  u_ref, z_ref, pool_ref, xpad_ref, y1pad_ref)

    return kernel


def make_final_scale_kernel(res_scale):
    """out = u + res_scale * (z * attention_scale) + SSPN global skip."""

    def kernel(u_ref, z_ref, s_ref, x0_ref, o_ref):
        s = s_ref[...].reshape(1, 1, 1, s_ref.shape[-1])
        o_ref[...] = (u_ref[...] + res_scale * (z_ref[...] * s)
                      + x0_ref[...]).astype(o_ref.dtype)

    return kernel


# ----------------------------------------------------------------------------
# pallas_call wrappers
# ----------------------------------------------------------------------------
def _ssb_body(blk_w, *, res_scale, tile_h, w_valid, compute_dtype, vmem_limit,
              x=None, u_prev=None, z_prev=None, s_prev=None):
    """One SSB body (spa + spc-pre-attention) on NHWC activations of shape (N,H,Wk,C).

    When x is None, the previous block's channel-attention apply is fused in:
    the kernel is fed (u_prev, z_prev, s_prev) and rebuilds its input in VMEM."""
    fuse_prev = x is None
    ref = u_prev if fuse_prev else x
    N, H, Wk, C = ref.shape
    n_h = H // tile_h

    tile_spec = pl.BlockSpec((1, tile_h, Wk, C), lambda n, h: (n, h, 0, 0))
    halo_spec = pl.BlockSpec((1, 1, 4, Wk, C), lambda n, h: (n, h, 0, 0, 0))
    vec_spec = pl.BlockSpec((1, C), lambda n, h: (0, 0))
    conv_w_spec = pl.BlockSpec((3, 3, C, C), lambda n, h: (0, 0, 0, 0))
    mat_spec = pl.BlockSpec((C, C), lambda n, h: (0, 0))
    scale_spec = pl.BlockSpec((1, 1, C), lambda n, h: (n, 0, 0))

    weight_specs = [conv_w_spec, vec_spec, conv_w_spec, vec_spec,
                    mat_spec, vec_spec, mat_spec, vec_spec]
    weight_args = [blk_w["w1"], blk_w["b1"], blk_w["w2"], blk_w["b2"],
                   blk_w["v1"], blk_w["c1"], blk_w["v2"], blk_w["c2"]]

    if fuse_prev:
        uh = _build_halo(u_prev, tile_h)                # (N, n_h, 4, Wk, C)
        zh = _build_halo(z_prev, tile_h)
        in_specs = [tile_spec, tile_spec, halo_spec, halo_spec, scale_spec] + weight_specs
        args = [u_prev, z_prev, uh, zh, s_prev] + weight_args
    else:
        halo = _build_halo(x, tile_h)
        in_specs = [tile_spec, halo_spec] + weight_specs
        args = [x, halo] + weight_args

    kernel = make_ssb_body_kernel(res_scale, w_valid, fuse_prev, compute_dtype)
    u, z, pooled = pl.pallas_call(
        kernel,
        out_shape=(
            jax.ShapeDtypeStruct((N, H, Wk, C), ref.dtype),
            jax.ShapeDtypeStruct((N, H, Wk, C), ref.dtype),
            jax.ShapeDtypeStruct((N, 1, C), jnp.float32),
        ),
        grid=(N, n_h),
        in_specs=in_specs,
        out_specs=(tile_spec, tile_spec, scale_spec),
        scratch_shapes=[
            pltpu.VMEM((tile_h + 4, Wk + 2, C), compute_dtype),   # zero-padded input
            pltpu.VMEM((tile_h + 2, Wk + 2, C), compute_dtype),   # zero-padded conv2 in
        ],
        compiler_params=pltpu.CompilerParams(
            dimension_semantics=("parallel", "arbitrary"),
            vmem_limit_bytes=vmem_limit),
    )(*args)
    return u, z, pooled


def _channel_attention(pooled, blk, H, w_valid):
    """CALayer squeeze/excite on the pooled means: tiny (N, C) GEMMs, plain XLA."""
    p = pooled[:, 0, :] / float(H * w_valid)
    hid = jax.nn.relu(p @ blk["wd"] + blk["bd"])
    s = jax.nn.sigmoid(hid @ blk["wu"] + blk["bu"]).astype(jnp.float32)
    return s[:, None, :]                                 # (N, 1, C)


def sspn_forward(x_nchw, params, *, res_scale=0.1, tile_h=None,
                 compute_dtype=jnp.bfloat16, vmem_limit=48 * 1024 * 1024):
    x = jnp.transpose(x_nchw, (0, 2, 3, 1))              # NCHW -> NHWC (lane dim = C)
    N, H, W, C = x.shape

    Wk = _round_up(max(W, 8), 8)
    if Wk != W:
        # Pad W to a sublane multiple; the kernels keep the pad columns exactly zero.
        x = jnp.pad(x, ((0, 0), (0, 0), (0, Wk - W), (0, 0)))

    if tile_h is None or tile_h < 2 or H % tile_h != 0:
        tile_h = _pick_tile_h(H)
    tile_h = min(tile_h, H)

    u = z = s = None
    for i, blk in enumerate(params["blocks"]):
        blk_w = _cast_block_weights(blk, compute_dtype)
        if i == 0:
            u, z, pooled = _ssb_body(
                blk_w, x=x, res_scale=res_scale, tile_h=tile_h, w_valid=W,
                compute_dtype=compute_dtype, vmem_limit=vmem_limit)
        else:
            u, z, pooled = _ssb_body(
                blk_w, u_prev=u, z_prev=z, s_prev=s,
                res_scale=res_scale, tile_h=tile_h, w_valid=W,
                compute_dtype=compute_dtype, vmem_limit=vmem_limit)
        s = _channel_attention(pooled, blk, H, W)

    # Final pass: last block's attention apply + its residual + SSPN global skip.
    n_h = H // tile_h
    tile_spec = pl.BlockSpec((1, tile_h, Wk, C), lambda n, h: (n, h, 0, 0))
    out = pl.pallas_call(
        make_final_scale_kernel(res_scale),
        out_shape=jax.ShapeDtypeStruct((N, H, Wk, C), x.dtype),
        grid=(N, n_h),
        in_specs=[tile_spec, tile_spec,
                  pl.BlockSpec((1, 1, C), lambda n, h: (n, 0, 0)),
                  tile_spec],
        out_specs=tile_spec,
        compiler_params=pltpu.CompilerParams(
            dimension_semantics=("parallel", "parallel"),
            vmem_limit_bytes=vmem_limit),
    )(u, z, s, x)

    if Wk != W:
        out = out[:, :, :W, :]
    # TODO(synk): the entry/exit NCHW<->NHWC transposes are left to XLA (two passes for
    # the whole network); folding them into the first/last kernel was not worth the
    # extra in-kernel transposes here.
    return jnp.transpose(out, (0, 3, 1, 2))              # NHWC -> NCHW


# ----------------------------------------------------------------------------
# deterministic synthetic parameters (shapes implied by SSPN/SSB)
# ----------------------------------------------------------------------------
def init_params(key, nf, n_blocks, reduction=16):
    c_red = max(nf // reduction, 1)
    conv_std = (2.0 / (9.0 * nf)) ** 0.5
    blocks = []
    for kb in jax.random.split(key, n_blocks):
        k = jax.random.split(kb, 6)
        blk = {
            "w1": conv_std * jax.random.normal(k[0], (3, 3, nf, nf), jnp.float32),
            "b1": 0.02 * jnp.cos(jnp.arange(nf, dtype=jnp.float32)).reshape(1, nf),
            "w2": conv_std * jax.random.normal(k[1], (3, 3, nf, nf), jnp.float32),
            "b2": 0.02 * jnp.sin(jnp.arange(nf, dtype=jnp.float32)).reshape(1, nf),
            "v1": 0.1 * jax.random.normal(k[2], (nf, nf), jnp.float32),
            "c1": 0.02 * jnp.cos(1.0 + jnp.arange(nf, dtype=jnp.float32)).reshape(1, nf),
            "v2": 0.1 * jax.random.normal(k[3], (nf, nf), jnp.float32),
            "c2": 0.02 * jnp.sin(1.0 + jnp.arange(nf, dtype=jnp.float32)).reshape(1, nf),
            "wd": 0.2 * jax.random.normal(k[4], (nf, c_red), jnp.float32),
            "bd": 0.01 * jnp.ones((c_red,), jnp.float32),
            "wu": 0.2 * jax.random.normal(k[5], (c_red, nf), jnp.float32),
            "bu": 0.01 * jnp.ones((nf,), jnp.float32),
        }
        blocks.append(blk)
    return {"blocks": blocks}


# ----------------------------------------------------------------------------
# pure-JAX reference (f32, HIGHEST precision) for the correctness check
# ----------------------------------------------------------------------------
def ref_forward(x_nchw, params, res_scale):
    HI = jax.lax.Precision.HIGHEST
    x = jnp.transpose(x_nchw, (0, 2, 3, 1))
    y = x
    for blk in params["blocks"]:
        # spa: ResidualBlock_noBN
        t = jax.lax.conv_general_dilated(
            y, blk["w1"], (1, 1), "SAME",
            dimension_numbers=("NHWC", "HWIO", "NHWC"), precision=HI) + blk["b1"]
        t = jax.nn.relu(t)
        t = jax.lax.conv_general_dilated(
            t, blk["w2"], (1, 1), "SAME",
            dimension_numbers=("NHWC", "HWIO", "NHWC"), precision=HI) + blk["b2"]
        u = y + res_scale * t
        # spc: ResAttentionBlock (1x1 convs + channel attention)
        z = jax.nn.relu(jnp.einsum("nhwc,cd->nhwd", u, blk["v1"], precision=HI)
                        + blk["c1"])
        z = jnp.einsum("nhwc,cd->nhwd", z, blk["v2"], precision=HI) + blk["c2"]
        p = jnp.mean(z, axis=(1, 2))
        s = jax.nn.sigmoid(jax.nn.relu(p @ blk["wd"] + blk["bd"]) @ blk["wu"] + blk["bu"])
        y = u + res_scale * (z * s[:, None, None, :])
    out = y + x                                          # SSPN global residual
    return jnp.transpose(out, (0, 3, 1, 2))


# ----------------------------------------------------------------------------
if __name__ == "__main__":
    key = jax.random.PRNGKey(0)
    kx, kp = jax.random.split(key)

    N, NF, H, W = 2, 64, 16, 16                  # small spatial, n_feats = 64
    N_BLOCKS, RES_SCALE = 2, 0.1
    x = jax.random.normal(kx, (N, NF, H, W), jnp.float32)     # NCHW, as in PyTorch
    params = init_params(kp, NF, N_BLOCKS)

    fwd = jax.jit(functools.partial(sspn_forward, res_scale=RES_SCALE, tile_h=8))
    out = jax.block_until_ready(fwd(x, params))
    assert out.shape == (N, NF, H, W)

    ref = jax.block_until_ready(ref_forward(x, params, RES_SCALE))
    np.testing.assert_allclose(np.asarray(out), np.asarray(ref), rtol=2e-2, atol=3e-2)

    print("KERNEL_OK")
</pallas_src>

<mosaic_0001>
module attributes {stable_mosaic.version = 11 : i64} {
  func.func @kernel(%arg0: i32, %arg1: i32, %arg2: memref<1x8x16x64xf32, #tpu.memory_space<vmem>>, %arg3: memref<1x1x4x16x64xf32, #tpu.memory_space<vmem>>, %arg4: memref<3x3x64x64xbf16, #tpu.memory_space<vmem>>, %arg5: memref<1x64xf32, #tpu.memory_space<vmem>>, %arg6: memref<3x3x64x64xbf16, #tpu.memory_space<vmem>>, %arg7: memref<1x64xf32, #tpu.memory_space<vmem>>, %arg8: memref<64x64xbf16, #tpu.memory_space<vmem>>, %arg9: memref<1x64xf32, #tpu.memory_space<vmem>>, %arg10: memref<64x64xbf16, #tpu.memory_space<vmem>>, %arg11: memref<1x64xf32, #tpu.memory_space<vmem>>, %arg12: memref<1x8x16x64xf32, #tpu.memory_space<vmem>>, %arg13: memref<1x8x16x64xf32, #tpu.memory_space<vmem>>, %arg14: memref<1x1x64xf32, #tpu.memory_space<vmem>>, %arg15: memref<12x18x64xbf16, #tpu.memory_space<vmem>>, %arg16: memref<10x18x64xbf16, #tpu.memory_space<vmem>>) attributes {dimension_semantics = [#tpu.dimension_semantics<parallel>, #tpu.dimension_semantics<arbitrary>], iteration_bounds = array<i64: 2, 2>, scalar_prefetch = 0 : i64, scratch_operands = 2 : i64, tpu.core_type = #tpu.core_type<tc>, window_params = [{transform_indices = @transform_0, window_bounds = array<i64: 1, 8, 16, 64>}, {transform_indices = @transform_1, window_bounds = array<i64: 1, 1, 4, 16, 64>}, {pipeline_mode = #tpu.pipeline_mode<synchronous>, transform_indices = @transform_2, window_bounds = array<i64: 3, 3, 64, 64>}, {pipeline_mode = #tpu.pipeline_mode<synchronous>, transform_indices = @transform_3, window_bounds = array<i64: 1, 64>}, {pipeline_mode = #tpu.pipeline_mode<synchronous>, transform_indices = @transform_4, window_bounds = array<i64: 3, 3, 64, 64>}, {pipeline_mode = #tpu.pipeline_mode<synchronous>, transform_indices = @transform_5, window_bounds = array<i64: 1, 64>}, {pipeline_mode = #tpu.pipeline_mode<synchronous>, transform_indices = @transform_6, window_bounds = array<i64: 64, 64>}, {pipeline_mode = #tpu.pipeline_mode<synchronous>, transform_indices = @transform_7, window_bounds = array<i64: 1, 64>}, {pipeline_mode = #tpu.pipeline_mode<synchronous>, transform_indices = @transform_8, window_bounds = array<i64: 64, 64>}, {pipeline_mode = #tpu.pipeline_mode<synchronous>, transform_indices = @transform_9, window_bounds = array<i64: 1, 64>}, {transform_indices = @transform_10, window_bounds = array<i64: 1, 8, 16, 64>}, {transform_indices = @transform_11, window_bounds = array<i64: 1, 8, 16, 64>}, {transform_indices = @transform_12, window_bounds = array<i64: 1, 1, 64>}]} {
    %c0 = arith.constant 0 : index
    %c0_0 = arith.constant 0 : index
    %c0_1 = arith.constant 0 : index
    %c0_2 = arith.constant 0 : index
    %0 = vector.load %arg2[%c0, %c0_0, %c0_1, %c0_2] : memref<1x8x16x64xf32, #tpu.memory_space<vmem>>, vector<1x8x16x64xf32>
    %1 = vector.shape_cast %0 : vector<1x8x16x64xf32> to vector<8x16x64xf32>
    %c0_3 = arith.constant 0 : index
    %c0_4 = arith.constant 0 : index
    %c0_5 = arith.constant 0 : index
    %c0_6 = arith.constant 0 : index
    %c0_7 = arith.constant 0 : index
    %2 = vector.load %arg3[%c0_3, %c0_4, %c0_5, %c0_6, %c0_7] : memref<1x1x4x16x64xf32, #tpu.memory_space<vmem>>, vector<1x1x4x16x64xf32>
    %3 = vector.shape_cast %2 : vector<1x1x4x16x64xf32> to vector<4x16x64xf32>
    %cst = arith.constant 0.000000e+00 : bf16
    %4 = vector.broadcast %cst : bf16 to vector<12x18x64xbf16>
    %c0_8 = arith.constant 0 : index
    %c0_9 = arith.constant 0 : index
    %c0_10 = arith.constant 0 : index
    %5 = vector.load %arg15[%c0_8, %c0_9, %c0_10] : memref<12x18x64xbf16, #tpu.memory_space<vmem>>, vector<12x18x64xbf16>
    tpu.vector_store %arg15[%c0_8, %c0_9, %c0_10], %4 {strides = array<i32>} : memref<12x18x64xbf16, #tpu.memory_space<vmem>>, vector<12x18x64xbf16>,
    %6 = vector.extract_strided_slice %3 {offsets = [0, 0, 0], sizes = [2, 16, 64], strides = [1, 1, 1]} : vector<4x16x64xf32> to vector<2x16x64xf32>
    %7 = arith.truncf %6 : vector<2x16x64xf32> to vector<2x16x64xbf16>
    %c0_11 = arith.constant 0 : index
    %c1 = arith.constant 1 : index
    %c0_12 = arith.constant 0 : index
    %8 = vector.load %arg15[%c0_11, %c1, %c0_12] : memref<12x18x64xbf16, #tpu.memory_space<vmem>>, vector<2x16x64xbf16>
    tpu.vector_store %arg15[%c0_11, %c1, %c0_12], %7 {strides = array<i32>} : memref<12x18x64xbf16, #tpu.memory_space<vmem>>, vector<2x16x64xbf16>,
    %9 = vector.extract_strided_slice %3 {offsets = [2, 0, 0], sizes = [2, 16, 64], strides = [1, 1, 1]} : vector<4x16x64xf32> to vector<2x16x64xf32>
    %10 = arith.truncf %9 : vector<2x16x64xf32> to vector<2x16x64xbf16>
    %c10 = arith.constant 10 : index
    %c1_13 = arith.constant 1 : index
    %c0_14 = arith.constant 0 : index
    %11 = vector.load %arg15[%c10, %c1_13, %c0_14] : memref<12x18x64xbf16, #tpu.memory_space<vmem>>, vector<2x16x64xbf16>
    tpu.vector_store %arg15[%c10, %c1_13, %c0_14], %10 {strides = array<i32>} : memref<12x18x64xbf16, #tpu.memory_space<vmem>>, vector<2x16x64xbf16>,
    %12 = arith.truncf %1 : vector<8x16x64xf32> to vector<8x16x64xbf16>
    %c2 = arith.constant 2 : index
    %c1_15 = arith.constant 1 : index
    %c0_16 = arith.constant 0 : index
    %13 = vector.load %arg15[%c2, %c1_15, %c0_16] : memref<12x18x64xbf16, #tpu.memory_space<vmem>>, vector<8x16x64xbf16>
    tpu.vector_store %arg15[%c2, %c1_15, %c0_16], %12 {strides = array<i32>} : memref<12x18x64xbf16, #tpu.memory_space<vmem>>, vector<8x16x64xbf16>,
    %cst_17 = arith.constant 0.000000e+00 : f32
    %14 = vector.broadcast %cst_17 : f32 to vector<160x64xf32>
    %c0_18 = arith.constant 0 : index
    %c0_19 = arith.constant 0 : index
    %c0_20 = arith.constant 0 : index
    %15 = vector.load %arg15[%c0_18, %c0_19, %c0_20] : memref<12x18x64xbf16, #tpu.memory_space<vmem>>, vector<10x16x64xbf16>
    %16 = vector.shape_cast %15 : vector<10x16x64xbf16> to vector<160x64xbf16>
    %c0_21 = arith.constant 0 : index
    %c0_22 = arith.constant 0 : index
    %c0_23 = arith.constant 0 : index
    %c0_24 = arith.constant 0 : index
    %17 = vector.load %arg4[%c0_21, %c0_22, %c0_23, %c0_24] : memref<3x3x64x64xbf16, #tpu.memory_space<vmem>>, vector<1x1x64x64xbf16>
    %18 = vector.shape_cast %17 : vector<1x1x64x64xbf16> to vector<64x64xbf16>
    %cst_25 = arith.constant dense<0.000000e+00> : vector<160x64xf32>
    %19 = tpu.matmul %16, %18, %cst_25 {dimension_numbers = #tpu.dot_dimension_numbers<[1], [0], [0], [1], [0, 0, 1, 1], [], []>} : vector<160x64xbf16>, vector<64x64xbf16>, vector<160x64xf32> -> vector<160x64xf32>
    %20 = arith.addf %14, %19 : vector<160x64xf32>
    %c0_26 = arith.constant 0 : index
    %c1_27 = arith.constant 1 : index
    %c0_28 = arith.constant 0 : index
    %21 = vector.load %arg15[%c0_26, %c1_27, %c0_28] : memref<12x18x64xbf16, #tpu.memory_space<vmem>>, vector<10x16x64xbf16>
    %22 = vector.shape_cast %21 : vector<10x16x64xbf16> to vector<160x64xbf16>
    %c0_29 = arith.constant 0 : index
    %c1_30 = arith.constant 1 : index
    %c0_31 = arith.constant 0 : index
    %c0_32 = arith.constant 0 : index
    %23 = vector.load %arg4[%c0_29, %c1_30, %c0_31, %c0_32] : memref<3x3x64x64xbf16, #tpu.memory_space<vmem>>, vector<1x1x64x64xbf16>
    %24 = vector.shape_cast %23 : vector<1x1x64x64xbf16> to vector<64x64xbf16>
    %cst_33 = arith.constant dense<0.000000e+00> : vector<160x64xf32>
    %25 = tpu.matmul %22, %24, %cst_33 {dimension_numbers = #tpu.dot_dimension_numbers<[1], [0], [0], [1], [0, 0, 1, 1], [], []>} : vector<160x64xbf16>, vector<64x64xbf16>, vector<160x64xf32> -> vector<160x64xf32>
    %26 = arith.addf %20, %25 : vector<160x64xf32>
    %c0_34 = arith.constant 0 : index
    %c2_35 = arith.constant 2 : index
    %c0_36 = arith.constant 0 : index
    %27 = vector.load %arg15[%c0_34, %c2_35, %c0_36] : memref<12x18x64xbf16, #tpu.memory_space<vmem>>, vector<10x16x64xbf16>
    %28 = vector.shape_cast %27 : vector<10x16x64xbf16> to vector<160x64xbf16>
    %c0_37 = arith.constant 0 : index
    %c2_38 = arith.constant 2 : index
    %c0_39 = arith.constant 0 : index
    %c0_40 = arith.constant 0 : index
    %29 = vector.load %arg4[%c0_37, %c2_38, %c0_39, %c0_40] : memref<3x3x64x64xbf16, #tpu.memory_space<vmem>>, vector<1x1x64x64xbf16>
    %30 = vector.shape_cast %29 : vector<1x1x64x64xbf16> to vector<64x64xbf16>
    %cst_41 = arith.constant dense<0.000000e+00> : vector<160x64xf32>
    %31 = tpu.matmul %28, %30, %cst_41 {dimension_numbers = #tpu.dot_dimension_numbers<[1], [0], [0], [1], [0, 0, 1, 1], [], []>} : vector<160x64xbf16>, vector<64x64xbf16>, vector<160x64xf32> -> vector<160x64xf32>
    %32 = arith.addf %26, %31 : vector<160x64xf32>
    %c1_42 = arith.constant 1 : index
    %c0_43 = arith.constant 0 : index
    %c0_44 = arith.constant 0 : index
    %33 = vector.load %arg15[%c1_42, %c0_43, %c0_44] : memref<12x18x64xbf16, #tpu.memory_space<vmem>>, vector<10x16x64xbf16>
    %34 = vector.shape_cast %33 : vector<10x16x64xbf16> to vector<160x64xbf16>
    %c1_45 = arith.constant 1 : index
    %c0_46 = arith.constant 0 : index
    %c0_47 = arith.constant 0 : index
    %c0_48 = arith.constant 0 : index
    %35 = vector.load %arg4[%c1_45, %c0_46, %c0_47, %c0_48] : memref<3x3x64x64xbf16, #tpu.memory_space<vmem>>, vector<1x1x64x64xbf16>
    %36 = vector.shape_cast %35 : vector<1x1x64x64xbf16> to vector<64x64xbf16>
    %cst_49 = arith.constant dense<0.000000e+00> : vector<160x64xf32>
    %37 = tpu.matmul %34, %36, %cst_49 {dimension_numbers = #tpu.dot_dimension_numbers<[1], [0], [0], [1], [0, 0, 1, 1], [], []>} : vector<160x64xbf16>, vector<64x64xbf16>, vector<160x64xf32> -> vector<160x64xf32>
    %38 = arith.addf %32, %37 : vector<160x64xf32>
    %c1_50 = arith.constant 1 : index
    %c1_51 = arith.constant 1 : index
    %c0_52 = arith.constant 0 : index
    %39 = vector.load %arg15[%c1_50, %c1_51, %c0_52] : memref<12x18x64xbf16, #tpu.memory_space<vmem>>, vector<10x16x64xbf16>
    %40 = vector.shape_cast %39 : vector<10x16x64xbf16> to vector<160x64xbf16>
    %c1_53 = arith.constant 1 : index
    %c1_54 = arith.constant 1 : index
    %c0_55 = arith.constant 0 : index
    %c0_56 = arith.constant 0 : index
    %41 = vector.load %arg4[%c1_53, %c1_54, %c0_55, %c0_56] : memref<3x3x64x64xbf16, #tpu.memory_space<vmem>>, vector<1x1x64x64xbf16>
    %42 = vector.shape_cast %41 : vector<1x1x64x64xbf16> to vector<64x64xbf16>
    %cst_57 = arith.constant dense<0.000000e+00> : vector<160x64xf32>
    %43 = tpu.matmul %40, %42, %cst_57 {dimension_numbers = #tpu.dot_dimension_numbers<[1], [0], [0], [1], [0, 0, 1, 1], [], []>} : vector<160x64xbf16>, vector<64x64xbf16>, vector<160x64xf32> -> vector<160x64xf32>
    %44 = arith.addf %38, %43 : vector<160x64xf32>
    %c1_58 = arith.constant 1 : index
    %c2_59 = arith.constant 2 : index
    %c0_60 = arith.constant 0 : index
    %45 = vector.load %arg15[%c1_58, %c2_59, %c0_60] : memref<12x18x64xbf16, #tpu.memory_space<vmem>>, vector<10x16x64xbf16>
    %46 = vector.shape_cast %45 : vector<10x16x64xbf16> to vector<160x64xbf16>
    %c1_61 = arith.constant 1 : index
    %c2_62 = arith.constant 2 : index
    %c0_63 = arith.constant 0 : index
    %c0_64 = arith.constant 0 : index
    %47 = vector.load %arg4[%c1_61, %c2_62, %c0_63, %c0_64] : memref<3x3x64x64xbf16, #tpu.memory_space<vmem>>, vector<1x1x64x64xbf16>
    %48 = vector.shape_cast %47 : vector<1x1x64x64xbf16> to vector<64x64xbf16>
    %cst_65 = arith.constant dense<0.000000e+00> : vector<160x64xf32>
    %49 = tpu.matmul %46, %48, %cst_65 {dimension_numbers = #tpu.dot_dimension_numbers<[1], [0], [0], [1], [0, 0, 1, 1], [], []>} : vector<160x64xbf16>, vector<64x64xbf16>, vector<160x64xf32> -> vector<160x64xf32>
    %50 = arith.addf %44, %49 : vector<160x64xf32>
    %c2_66 = arith.constant 2 : index
    %c0_67 = arith.constant 0 : index
    %c0_68 = arith.constant 0 : index
    %51 = vector.load %arg15[%c2_66, %c0_67, %c0_68] : memref<12x18x64xbf16, #tpu.memory_space<vmem>>, vector<10x16x64xbf16>
    %52 = vector.shape_cast %51 : vector<10x16x64xbf16> to vector<160x64xbf16>
    %c2_69 = arith.constant 2 : index
    %c0_70 = arith.constant 0 : index
    %c0_71 = arith.constant 0 : index
    %c0_72 = arith.constant 0 : index
    %53 = vector.load %arg4[%c2_69, %c0_70, %c0_71, %c0_72] : memref<3x3x64x64xbf16, #tpu.memory_space<vmem>>, vector<1x1x64x64xbf16>
    %54 = vector.shape_cast %53 : vector<1x1x64x64xbf16> to vector<64x64xbf16>
    %cst_73 = arith.constant dense<0.000000e+00> : vector<160x64xf32>
    %55 = tpu.matmul %52, %54, %cst_73 {dimension_numbers = #tpu.dot_dimension_numbers<[1], [0], [0], [1], [0, 0, 1, 1], [], []>} : vector<160x64xbf16>, vector<64x64xbf16>, vector<160x64xf32> -> vector<160x64xf32>
    %56 = arith.addf %50, %55 : vector<160x64xf32>
    %c2_74 = arith.constant 2 : index
    %c1_75 = arith.constant 1 : index
    %c0_76 = arith.constant 0 : index
    %57 = vector.load %arg15[%c2_74, %c1_75, %c0_76] : memref<12x18x64xbf16, #tpu.memory_space<vmem>>, vector<10x16x64xbf16>
    %58 = vector.shape_cast %57 : vector<10x16x64xbf16> to vector<160x64xbf16>
    %c2_77 = arith.constant 2 : index
    %c1_78 = arith.constant 1 : index
    %c0_79 = arith.constant 0 : index
    %c0_80 = arith.constant 0 : index
    %59 = vector.load %arg4[%c2_77, %c1_78, %c0_79, %c0_80] : memref<3x3x64x64xbf16, #tpu.memory_space<vmem>>, vector<1x1x64x64xbf16>
    %60 = vector.shape_cast %59 : vector<1x1x64x64xbf16> to vector<64x64xbf16>
    %cst_81 = arith.constant dense<0.000000e+00> : vector<160x64xf32>
    %61 = tpu.matmul %58, %60, %cst_81 {dimension_numbers = #tpu.dot_dimension_numbers<[1], [0], [0], [1], [0, 0, 1, 1], [], []>} : vector<160x64xbf16>, vector<64x64xbf16>, vector<160x64xf32> -> vector<160x64xf32>
    %62 = arith.addf %56, %61 : vector<160x64xf32>
    %c2_82 = arith.constant 2 : index
    %c2_83 = arith.constant 2 : index
    %c0_84 = arith.constant 0 : index
    %63 = vector.load %arg15[%c2_82, %c2_83, %c0_84] : memref<12x18x64xbf16, #tpu.memory_space<vmem>>, vector<10x16x64xbf16>
    %64 = vector.shape_cast %63 : vector<10x16x64xbf16> to vector<160x64xbf16>
    %c2_85 = arith.constant 2 : index
    %c2_86 = arith.constant 2 : index
    %c0_87 = arith.constant 0 : index
    %c0_88 = arith.constant 0 : index
    %65 = vector.load %arg4[%c2_85, %c2_86, %c0_87, %c0_88] : memref<3x3x64x64xbf16, #tpu.memory_space<vmem>>, vector<1x1x64x64xbf16>
    %66 = vector.shape_cast %65 : vector<1x1x64x64xbf16> to vector<64x64xbf16>
    %cst_89 = arith.constant dense<0.000000e+00> : vector<160x64xf32>
    %67 = tpu.matmul %64, %66, %cst_89 {dimension_numbers = #tpu.dot_dimension_numbers<[1], [0], [0], [1], [0, 0, 1, 1], [], []>} : vector<160x64xbf16>, vector<64x64xbf16>, vector<160x64xf32> -> vector<160x64xf32>
    %68 = arith.addf %62, %67 : vector<160x64xf32>
    %c0_90 = arith.constant 0 : index
    %c0_91 = arith.constant 0 : index
    %69 = vector.load %arg5[%c0_90, %c0_91] : memref<1x64xf32, #tpu.memory_space<vmem>>, vector<1x64xf32>
    %70 = vector.broadcast %69 : vector<1x64xf32> to vector<160x64xf32>
    %71 = arith.addf %68, %70 : vector<160x64xf32>
    %cst_92 = arith.constant 0.000000e+00 : f32
    %72 = vector.broadcast %cst_92 : f32 to vector<160x64xf32>
    %73 = arith.maximumf %71, %72 : vector<160x64xf32>
    %74 = vector.shape_cast %73 : vector<160x64xf32> to vector<10x16x64xf32>
    %cst_93 = arith.constant 0.000000e+00 : bf16
    %75 = vector.broadcast %cst_93 : bf16 to vector<10x18x64xbf16>
    %c0_94 = arith.constant 0 : index
    %c0_95 = arith.constant 0 : index
    %c0_96 = arith.constant 0 : index
    %76 = vector.load %arg16[%c0_94, %c0_95, %c0_96] : memref<10x18x64xbf16, #tpu.memory_space<vmem>>, vector<10x18x64xbf16>
    tpu.vector_store %arg16[%c0_94, %c0_95, %c0_96], %75 {strides = array<i32>} : memref<10x18x64xbf16, #tpu.memory_space<vmem>>, vector<10x18x64xbf16>,
    %77 = vector.extract_strided_slice %74 {offsets = [1, 0, 0], sizes = [8, 16, 64], strides = [1, 1, 1]} : vector<10x16x64xf32> to vector<8x16x64xf32>
    %78 = arith.truncf %77 : vector<8x16x64xf32> to vector<8x16x64xbf16>
    %c1_97 = arith.constant 1 : index
    %c1_98 = arith.constant 1 : index
    %c0_99 = arith.constant 0 : index
    %79 = vector.load %arg16[%c1_97, %c1_98, %c0_99] : memref<10x18x64xbf16, #tpu.memory_space<vmem>>, vector<8x16x64xbf16>
    tpu.vector_store %arg16[%c1_97, %c1_98, %c0_99], %78 {strides = array<i32>} : memref<10x18x64xbf16, #tpu.memory_space<vmem>>, vector<8x16x64xbf16>,
    %c0_i32 = arith.constant 0 : i32
    %80 = arith.cmpi sgt, %arg1, %c0_i32 : i32
    %81 = arith.extui %80 : i1 to i32
    %c0_i32_100 = arith.constant 0 : i32
    %82 = arith.cmpi ne, %81, %c0_i32_100 : i32
    scf.if %82 {
      %175 = vector.extract_strided_slice %74 {offsets = [0, 0, 0], sizes = [1, 16, 64], strides = [1, 1, 1]} : vector<10x16x64xf32> to vector<1x16x64xf32>
      %176 = arith.truncf %175 : vector<1x16x64xf32> to vector<1x16x64xbf16>
      %c0_206 = arith.constant 0 : index
      %c1_207 = arith.constant 1 : index
      %c0_208 = arith.constant 0 : index
      %177 = vector.load %arg16[%c0_206, %c1_207, %c0_208] : memref<10x18x64xbf16, #tpu.memory_space<vmem>>, vector<1x16x64xbf16>
      tpu.vector_store %arg16[%c0_206, %c1_207, %c0_208], %176 {strides = array<i32>} : memref<10x18x64xbf16, #tpu.memory_space<vmem>>, vector<1x16x64xbf16>,
    } else {
    }
    %c1_i32 = arith.constant 1 : i32
    %83 = arith.cmpi slt, %arg1, %c1_i32 : i32
    %84 = arith.extui %83 : i1 to i32
    %c0_i32_101 = arith.constant 0 : i32
    %85 = arith.cmpi ne, %84, %c0_i32_101 : i32
    scf.if %85 {
      %175 = vector.extract_strided_slice %74 {offsets = [9, 0, 0], sizes = [1, 16, 64], strides = [1, 1, 1]} : vector<10x16x64xf32> to vector<1x16x64xf32>
      %176 = arith.truncf %175 : vector<1x16x64xf32> to vector<1x16x64xbf16>
      %c9 = arith.constant 9 : index
      %c1_206 = arith.constant 1 : index
      %c0_207 = arith.constant 0 : index
      %177 = vector.load %arg16[%c9, %c1_206, %c0_207] : memref<10x18x64xbf16, #tpu.memory_space<vmem>>, vector<1x16x64xbf16>
      tpu.vector_store %arg16[%c9, %c1_206, %c0_207], %176 {strides = array<i32>} : memref<10x18x64xbf16, #tpu.memory_space<vmem>>, vector<1x16x64xbf16>,
    } else {
    }
    %cst_102 = arith.constant 0.000000e+00 : f32
    %86 = vector.broadcast %cst_102 : f32 to vector<128x64xf32>
    %c0_103 = arith.constant 0 : index
    %c0_104 = arith.constant 0 : index
    %c0_105 = arith.constant 0 : index
    %87 = vector.load %arg16[%c0_103, %c0_104, %c0_105] : memref<10x18x64xbf16, #tpu.memory_space<vmem>>, vector<8x16x64xbf16>
    %88 = vector.shape_cast %87 : vector<8x16x64xbf16> to vector<128x64xbf16>
    %c0_106 = arith.constant 0 : index
    %c0_107 = arith.constant 0 : index
    %c0_108 = arith.constant 0 : index
    %c0_109 = arith.constant 0 : index
    %89 = vector.load %arg6[%c0_106, %c0_107, %c0_108, %c0_109] : memref<3x3x64x64xbf16, #tpu.memory_space<vmem>>, vector<1x1x64x64xbf16>
    %90 = vector.shape_cast %89 : vector<1x1x64x64xbf16> to vector<64x64xbf16>
    %cst_110 = arith.constant dense<0.000000e+00> : vector<128x64xf32>
    %91 = tpu.matmul %88, %90, %cst_110 {dimension_numbers = #tpu.dot_dimension_numbers<[1], [0], [0], [1], [0, 0, 1, 1], [], []>} : vector<128x64xbf16>, vector<64x64xbf16>, vector<128x64xf32> -> vector<128x64xf32>
    %92 = arith.addf %86, %91 : vector<128x64xf32>
    %c0_111 = arith.constant 0 : index
    %c1_112 = arith.constant 1 : index
    %c0_113 = arith.constant 0 : index
    %93 = vector.load %arg16[%c0_111, %c1_112, %c0_113] : memref<10x18x64xbf16, #tpu.memory_space<vmem>>, vector<8x16x64xbf16>
    %94 = vector.shape_cast %93 : vector<8x16x64xbf16> to vector<128x64xbf16>
    %c0_114 = arith.constant 0 : index
    %c1_115 = arith.constant 1 : index
    %c0_116 = arith.constant 0 : index
    %c0_117 = arith.constant 0 : index
    %95 = vector.load %arg6[%c0_114, %c1_115, %c0_116, %c0_117] : memref<3x3x64x64xbf16, #tpu.memory_space<vmem>>, vector<1x1x64x64xbf16>
    %96 = vector.shape_cast %95 : vector<1x1x64x64xbf16> to vector<64x64xbf16>
    %cst_118 = arith.constant dense<0.000000e+00> : vector<128x64xf32>
    %97 = tpu.matmul %94, %96, %cst_118 {dimension_numbers = #tpu.dot_dimension_numbers<[1], [0], [0], [1], [0, 0, 1, 1], [], []>} : vector<128x64xbf16>, vector<64x64xbf16>, vector<128x64xf32> -> vector<128x64xf32>
    %98 = arith.addf %92, %97 : vector<128x64xf32>
    %c0_119 = arith.constant 0 : index
    %c2_120 = arith.constant 2 : index
    %c0_121 = arith.constant 0 : index
    %99 = vector.load %arg16[%c0_119, %c2_120, %c0_121] : memref<10x18x64xbf16, #tpu.memory_space<vmem>>, vector<8x16x64xbf16>
    %100 = vector.shape_cast %99 : vector<8x16x64xbf16> to vector<128x64xbf16>
    %c0_122 = arith.constant 0 : index
    %c2_123 = arith.constant 2 : index
    %c0_124 = arith.constant 0 : index
    %c0_125 = arith.constant 0 : index
    %101 = vector.load %arg6[%c0_122, %c2_123, %c0_124, %c0_125] : memref<3x3x64x64xbf16, #tpu.memory_space<vmem>>, vector<1x1x64x64xbf16>
    %102 = vector.shape_cast %101 : vector<1x1x64x64xbf16> to vector<64x64xbf16>
    %cst_126 = arith.constant dense<0.000000e+00> : vector<128x64xf32>
    %103 = tpu.matmul %100, %102, %cst_126 {dimension_numbers = #tpu.dot_dimension_numbers<[1], [0], [0], [1], [0, 0, 1, 1], [], []>} : vector<128x64xbf16>, vector<64x64xbf16>, vector<128x64xf32> -> vector<128x64xf32>
    %104 = arith.addf %98, %103 : vector<128x64xf32>
    %c1_127 = arith.constant 1 : index
    %c0_128 = arith.constant 0 : index
    %c0_129 = arith.constant 0 : index
    %105 = vector.load %arg16[%c1_127, %c0_128, %c0_129] : memref<10x18x64xbf16, #tpu.memory_space<vmem>>, vector<8x16x64xbf16>
    %106 = vector.shape_cast %105 : vector<8x16x64xbf16> to vector<128x64xbf16>
    %c1_130 = arith.constant 1 : index
    %c0_131 = arith.constant 0 : index
    %c0_132 = arith.constant 0 : index
    %c0_133 = arith.constant 0 : index
    %107 = vector.load %arg6[%c1_130, %c0_131, %c0_132, %c0_133] : memref<3x3x64x64xbf16, #tpu.memory_space<vmem>>, vector<1x1x64x64xbf16>
    %108 = vector.shape_cast %107 : vector<1x1x64x64xbf16> to vector<64x64xbf16>
    %cst_134 = arith.constant dense<0.000000e+00> : vector<128x64xf32>
    %109 = tpu.matmul %106, %108, %cst_134 {dimension_numbers = #tpu.dot_dimension_numbers<[1], [0], [0], [1], [0, 0, 1, 1], [], []>} : vector<128x64xbf16>, vector<64x64xbf16>, vector<128x64xf32> -> vector<128x64xf32>
    %110 = arith.addf %104, %109 : vector<128x64xf32>
    %c1_135 = arith.constant 1 : index
    %c1_136 = arith.constant 1 : index
    %c0_137 = arith.constant 0 : index
    %111 = vector.load %arg16[%c1_135, %c1_136, %c0_137] : memref<10x18x64xbf16, #tpu.memory_space<vmem>>, vector<8x16x64xbf16>
    %112 = vector.shape_cast %111 : vector<8x16x64xbf16> to vector<128x64xbf16>
    %c1_138 = arith.constant 1 : index
    %c1_139 = arith.constant 1 : index
    %c0_140 = arith.constant 0 : index
    %c0_141 = arith.constant 0 : index
    %113 = vector.load %arg6[%c1_138, %c1_139, %c0_140, %c0_141] : memref<3x3x64x64xbf16, #tpu.memory_space<vmem>>, vector<1x1x64x64xbf16>
    %114 = vector.shape_cast %113 : vector<1x1x64x64xbf16> to vector<64x64xbf16>
    %cst_142 = arith.constant dense<0.000000e+00> : vector<128x64xf32>
    %115 = tpu.matmul %112, %114, %cst_142 {dimension_numbers = #tpu.dot_dimension_numbers<[1], [0], [0], [1], [0, 0, 1, 1], [], []>} : vector<128x64xbf16>, vector<64x64xbf16>, vector<128x64xf32> -> vector<128x64xf32>
    %116 = arith.addf %110, %115 : vector<128x64xf32>
    %c1_143 = arith.constant 1 : index
    %c2_144 = arith.constant 2 : index
    %c0_145 = arith.constant 0 : index
    %117 = vector.load %arg16[%c1_143, %c2_144, %c0_145] : memref<10x18x64xbf16, #tpu.memory_space<vmem>>, vector<8x16x64xbf16>
    %118 = vector.shape_cast %117 : vector<8x16x64xbf16> to vector<128x64xbf16>
    %c1_146 = arith.constant 1 : index
    %c2_147 = arith.constant 2 : index
    %c0_148 = arith.constant 0 : index
    %c0_149 = arith.constant 0 : index
    %119 = vector.load %arg6[%c1_146, %c2_147, %c0_148, %c0_149] : memref<3x3x64x64xbf16, #tpu.memory_space<vmem>>, vector<1x1x64x64xbf16>
    %120 = vector.shape_cast %119 : vector<1x1x64x64xbf16> to vector<64x64xbf16>
    %cst_150 = arith.constant dense<0.000000e+00> : vector<128x64xf32>
    %121 = tpu.matmul %118, %120, %cst_150 {dimension_numbers = #tpu.dot_dimension_numbers<[1], [0], [0], [1], [0, 0, 1, 1], [], []>} : vector<128x64xbf16>, vector<64x64xbf16>, vector<128x64xf32> -> vector<128x64xf32>
    %122 = arith.addf %116, %121 : vector<128x64xf32>
    %c2_151 = arith.constant 2 : index
    %c0_152 = arith.constant 0 : index
    %c0_153 = arith.constant 0 : index
    %123 = vector.load %arg16[%c2_151, %c0_152, %c0_153] : memref<10x18x64xbf16, #tpu.memory_space<vmem>>, vector<8x16x64xbf16>
    %124 = vector.shape_cast %123 : vector<8x16x64xbf16> to vector<128x64xbf16>
    %c2_154 = arith.constant 2 : index
    %c0_155 = arith.constant 0 : index
    %c0_156 = arith.constant 0 : index
    %c0_157 = arith.constant 0 : index
    %125 = vector.load %arg6[%c2_154, %c0_155, %c0_156, %c0_157] : memref<3x3x64x64xbf16, #tpu.memory_space<vmem>>, vector<1x1x64x64xbf16>
    %126 = vector.shape_cast %125 : vector<1x1x64x64xbf16> to vector<64x64xbf16>
    %cst_158 = arith.constant dense<0.000000e+00> : vector<128x64xf32>
    %127 = tpu.matmul %124, %126, %cst_158 {dimension_numbers = #tpu.dot_dimension_numbers<[1], [0], [0], [1], [0, 0, 1, 1], [], []>} : vector<128x64xbf16>, vector<64x64xbf16>, vector<128x64xf32> -> vector<128x64xf32>
    %128 = arith.addf %122, %127 : vector<128x64xf32>
    %c2_159 = arith.constant 2 : index
    %c1_160 = arith.constant 1 : index
    %c0_161 = arith.constant 0 : index
    %129 = vector.load %arg16[%c2_159, %c1_160, %c0_161] : memref<10x18x64xbf16, #tpu.memory_space<vmem>>, vector<8x16x64xbf16>
    %130 = vector.shape_cast %129 : vector<8x16x64xbf16> to vector<128x64xbf16>
    %c2_162 = arith.constant 2 : index
    %c1_163 = arith.constant 1 : index
    %c0_164 = arith.constant 0 : index
    %c0_165 = arith.constant 0 : index
    %131 = vector.load %arg6[%c2_162, %c1_163, %c0_164, %c0_165] : memref<3x3x64x64xbf16, #tpu.memory_space<vmem>>, vector<1x1x64x64xbf16>
    %132 = vector.shape_cast %131 : vector<1x1x64x64xbf16> to vector<64x64xbf16>
    %cst_166 = arith.constant dense<0.000000e+00> : vector<128x64xf32>
    %133 = tpu.matmul %130, %132, %cst_166 {dimension_numbers = #tpu.dot_dimension_numbers<[1], [0], [0], [1], [0, 0, 1, 1], [], []>} : vector<128x64xbf16>, vector<64x64xbf16>, vector<128x64xf32> -> vector<128x64xf32>
    %134 = arith.addf %128, %133 : vector<128x64xf32>
    %c2_167 = arith.constant 2 : index
    %c2_168 = arith.constant 2 : index
    %c0_169 = arith.constant 0 : index
    %135 = vector.load %arg16[%c2_167, %c2_168, %c0_169] : memref<10x18x64xbf16, #tpu.memory_space<vmem>>, vector<8x16x64xbf16>
    %136 = vector.shape_cast %135 : vector<8x16x64xbf16> to vector<128x64xbf16>
    %c2_170 = arith.constant 2 : index
    %c2_171 = arith.constant 2 : index
    %c0_172 = arith.constant 0 : index
    %c0_173 = arith.constant 0 : index
    %137 = vector.load %arg6[%c2_170, %c2_171, %c0_172, %c0_173] : memref<3x3x64x64xbf16, #tpu.memory_space<vmem>>, vector<1x1x64x64xbf16>
    %138 = vector.shape_cast %137 : vector<1x1x64x64xbf16> to vector<64x64xbf16>
    %cst_174 = arith.constant dense<0.000000e+00> : vector<128x64xf32>
    %139 = tpu.matmul %136, %138, %cst_174 {dimension_numbers = #tpu.dot_dimension_numbers<[1], [0], [0], [1], [0, 0, 1, 1], [], []>} : vector<128x64xbf16>, vector<64x64xbf16>, vector<128x64xf32> -> vector<128x64xf32>
    %140 = arith.addf %134, %139 : vector<128x64xf32>
    %c0_175 = arith.constant 0 : index
    %c0_176 = arith.constant 0 : index
    %141 = vector.load %arg7[%c0_175, %c0_176] : memref<1x64xf32, #tpu.memory_space<vmem>>, vector<1x64xf32>
    %142 = vector.broadcast %141 : vector<1x64xf32> to vector<128x64xf32>
    %143 = arith.addf %140, %142 : vector<128x64xf32>
    %144 = vector.shape_cast %1 : vector<8x16x64xf32> to vector<128x64xf32>
    %cst_177 = arith.constant 1.000000e-01 : f32
    %145 = vector.broadcast %cst_177 : f32 to vector<128x64xf32>
    %146 = arith.mulf %145, %143 : vector<128x64xf32>
    %147 = arith.addf %144, %146 : vector<128x64xf32>
    %148 = arith.truncf %147 : vector<128x64xf32> to vector<128x64xbf16>
    %c0_178 = arith.constant 0 : index
    %c0_179 = arith.constant 0 : index
    %149 = vector.load %arg8[%c0_178, %c0_179] : memref<64x64xbf16, #tpu.memory_space<vmem>>, vector<64x64xbf16>
    %cst_180 = arith.constant dense<0.000000e+00> : vector<128x64xf32>
    %150 = tpu.matmul %148, %149, %cst_180 {dimension_numbers = #tpu.dot_dimension_numbers<[1], [0], [0], [1], [0, 0, 1, 1], [], []>} : vector<128x64xbf16>, vector<64x64xbf16>, vector<128x64xf32> -> vector<128x64xf32>
    %c0_181 = arith.constant 0 : index
    %c0_182 = arith.constant 0 : index
    %151 = vector.load %arg9[%c0_181, %c0_182] : memref<1x64xf32, #tpu.memory_space<vmem>>, vector<1x64xf32>
    %152 = vector.broadcast %151 : vector<1x64xf32> to vector<128x64xf32>
    %153 = arith.addf %150, %152 : vector<128x64xf32>
    %cst_183 = arith.constant 0.000000e+00 : f32
    %154 = vector.broadcast %cst_183 : f32 to vector<128x64xf32>
    %155 = arith.maximumf %153, %154 : vector<128x64xf32>
    %156 = arith.truncf %155 : vector<128x64xf32> to vector<128x64xbf16>
    %c0_184 = arith.constant 0 : index
    %c0_185 = arith.constant 0 : index
    %157 = vector.load %arg10[%c0_184, %c0_185] : memref<64x64xbf16, #tpu.memory_space<vmem>>, vector<64x64xbf16>
    %cst_186 = arith.constant dense<0.000000e+00> : vector<128x64xf32>
    %158 = tpu.matmul %156, %157, %cst_186 {dimension_numbers = #tpu.dot_dimension_numbers<[1], [0], [0], [1], [0, 0, 1, 1], [], []>} : vector<128x64xbf16>, vector<64x64xbf16>, vector<128x64xf32> -> vector<128x64xf32>
    %c0_187 = arith.constant 0 : index
    %c0_188 = arith.constant 0 : index
    %159 = vector.load %arg11[%c0_187, %c0_188] : memref<1x64xf32, #tpu.memory_space<vmem>>, vector<1x64xf32>
    %160 = vector.broadcast %159 : vector<1x64xf32> to vector<128x64xf32>
    %161 = arith.addf %158, %160 : vector<128x64xf32>
    %162 = vector.shape_cast %147 : vector<128x64xf32> to vector<1x8x16x64xf32>
    %163 = vector.shape_cast %161 : vector<128x64xf32> to vector<1x8x16x64xf32>
    %c0_189 = arith.constant 0 : index
    %c0_190 = arith.constant 0 : index
    %c0_191 = arith.constant 0 : index
    %c0_192 = arith.constant 0 : index
    %164 = vector.load %arg12[%c0_189, %c0_190, %c0_191, %c0_192] : memref<1x8x16x64xf32, #tpu.memory_space<vmem>>, vector<1x8x16x64xf32>
    tpu.vector_store %arg12[%c0_189, %c0_190, %c0_191, %c0_192], %162 {strides = array<i32>} : memref<1x8x16x64xf32, #tpu.memory_space<vmem>>, vector<1x8x16x64xf32>,
    %c0_193 = arith.constant 0 : index
    %c0_194 = arith.constant 0 : index
    %c0_195 = arith.constant 0 : index
    %c0_196 = arith.constant 0 : index
    %165 = vector.load %arg13[%c0_193, %c0_194, %c0_195, %c0_196] : memref<1x8x16x64xf32, #tpu.memory_space<vmem>>, vector<1x8x16x64xf32>
    tpu.vector_store %arg13[%c0_193, %c0_194, %c0_195, %c0_196], %163 {strides = array<i32>} : memref<1x8x16x64xf32, #tpu.memory_space<vmem>>, vector<1x8x16x64xf32>,
    %cst_197 = arith.constant dense<0.000000e+00> : vector<64xf32>
    %166 = vector.multi_reduction <add>, %161, %cst_197 [0] : vector<128x64xf32> to vector<64xf32>
    %167 = vector.shape_cast %166 : vector<64xf32> to vector<1x64xf32>
    %168 = vector.shape_cast %167 : vector<1x64xf32> to vector<1x1x64xf32>
    %c0_i32_198 = arith.constant 0 : i32
    %169 = arith.cmpi eq, %arg1, %c0_i32_198 : i32
    %170 = arith.extui %169 : i1 to i32
    %c0_i32_199 = arith.constant 0 : i32
    %171 = arith.cmpi ne, %170, %c0_i32_199 : i32
    scf.if %171 {
      %cst_206 = arith.constant 0.000000e+00 : f32
      %175 = vector.broadcast %cst_206 : f32 to vector<1x1x64xf32>
      %c0_207 = arith.constant 0 : index
      %c0_208 = arith.constant 0 : index
      %c0_209 = arith.constant 0 : index
      %176 = vector.load %arg14[%c0_207, %c0_208, %c0_209] : memref<1x1x64xf32, #tpu.memory_space<vmem>>, vector<1x1x64xf32>
      tpu.vector_store %arg14[%c0_207, %c0_208, %c0_209], %175 {strides = array<i32>} : memref<1x1x64xf32, #tpu.memory_space<vmem>>, vector<1x1x64xf32>,
    } else {
    }
    %c0_200 = arith.constant 0 : index
    %c0_201 = arith.constant 0 : index
    %c0_202 = arith.constant 0 : index
    %172 = vector.load %arg14[%c0_200, %c0_201, %c0_202] : memref<1x1x64xf32, #tpu.memory_space<vmem>>, vector<1x1x64xf32>
    %173 = arith.addf %172, %168 : vector<1x1x64xf32>
    %c0_203 = arith.constant 0 : index
    %c0_204 = arith.constant 0 : index
    %c0_205 = arith.constant 0 : index
    %174 = vector.load %arg14[%c0_203, %c0_204, %c0_205] : memref<1x1x64xf32, #tpu.memory_space<vmem>>, vector<1x1x64xf32>
    tpu.vector_store %arg14[%c0_203, %c0_204, %c0_205], %173 {strides = array<i32>} : memref<1x1x64xf32, #tpu.memory_space<vmem>>, vector<1x1x64xf32>,
    return
  }
  func.func @transform_0(%arg0: i32, %arg1: i32) -> (i32, i32, i32, i32) {
    %c0_i32 = arith.constant 0 : i32
    %c0_i32_0 = arith.constant 0 : i32
    %c0_i32_1 = arith.constant 0 : i32
    return %arg0, %arg1, %c0_i32, %c0_i32_0 : i32, i32, i32, i32
  }
  func.func @transform_1(%arg0: i32, %arg1: i32) -> (i32, i32, i32, i32, i32) {
    %c0_i32 = arith.constant 0 : i32
    %c0_i32_0 = arith.constant 0 : i32
    %c0_i32_1 = arith.constant 0 : i32
    %c0_i32_2 = arith.constant 0 : i32
    return %arg0, %arg1, %c0_i32, %c0_i32_0, %c0_i32_1 : i32, i32, i32, i32, i32
  }
  func.func @transform_2(%arg0: i32, %arg1: i32) -> (i32, i32, i32, i32) {
    %c0_i32 = arith.constant 0 : i32
    %c0_i32_0 = arith.constant 0 : i32
    %c0_i32_1 = arith.constant 0 : i32
    %c0_i32_2 = arith.constant 0 : i32
    %c0_i32_3 = arith.constant 0 : i32
    return %c0_i32, %c0_i32_0, %c0_i32_1, %c0_i32_2 : i32, i32, i32, i32
  }
  func.func @transform_3(%arg0: i32, %arg1: i32) -> (i32, i32) {
    %c0_i32 = arith.constant 0 : i32
    %c0_i32_0 = arith.constant 0 : i32
    %c0_i32_1 = arith.constant 0 : i32
    return %c0_i32, %c0_i32_0 : i32, i32
  }
  func.func @transform_4(%arg0: i32, %arg1: i32) -> (i32, i32, i32, i32) {
    %c0_i32 = arith.constant 0 : i32
    %c0_i32_0 = arith.constant 0 : i32
    %c0_i32_1 = arith.constant 0 : i32
    %c0_i32_2 = arith.constant 0 : i32
    %c0_i32_3 = arith.constant 0 : i32
    return %c0_i32, %c0_i32_0, %c0_i32_1, %c0_i32_2 : i32, i32, i32, i32
  }
  func.func @transform_5(%arg0: i32, %arg1: i32) -> (i32, i32) {
    %c0_i32 = arith.constant 0 : i32
    %c0_i32_0 = arith.constant 0 : i32
    %c0_i32_1 = arith.constant 0 : i32
    return %c0_i32, %c0_i32_0 : i32, i32
  }
  func.func @transform_6(%arg0: i32, %arg1: i32) -> (i32, i32) {
    %c0_i32 = arith.constant 0 : i32
    %c0_i32_0 = arith.constant 0 : i32
    %c0_i32_1 = arith.constant 0 : i32
    return %c0_i32, %c0_i32_0 : i32, i32
  }
  func.func @transform_7(%arg0: i32, %arg1: i32) -> (i32, i32) {
    %c0_i32 = arith.constant 0 : i32
    %c0_i32_0 = arith.constant 0 : i32
    %c0_i32_1 = arith.constant 0 : i32
    return %c0_i32, %c0_i32_0 : i32, i32
  }
  func.func @transform_8(%arg0: i32, %arg1: i32) -> (i32, i32) {
    %c0_i32 = arith.constant 0 : i32
    %c0_i32_0 = arith.constant 0 : i32
    %c0_i32_1 = arith.constant 0 : i32
    return %c0_i32, %c0_i32_0 : i32, i32
  }
  func.func @transform_9(%arg0: i32, %arg1: i32) -> (i32, i32) {
    %c0_i32 = arith.constant 0 : i32
    %c0_i32_0 = arith.constant 0 : i32
    %c0_i32_1 = arith.constant 0 : i32
    return %c0_i32, %c0_i32_0 : i32, i32
  }
  func.func @transform_10(%arg0: i32, %arg1: i32) -> (i32, i32, i32, i32) {
    %c0_i32 = arith.constant 0 : i32
    %c0_i32_0 = arith.constant 0 : i32
    %c0_i32_1 = arith.constant 0 : i32
    return %arg0, %arg1, %c0_i32, %c0_i32_0 : i32, i32, i32, i32
  }
  func.func @transform_11(%arg0: i32, %arg1: i32) -> (i32, i32, i32, i32) {
    %c0_i32 = arith.constant 0 : i32
    %c0_i32_0 = arith.constant 0 : i32
    %c0_i32_1 = arith.constant 0 : i32
    return %arg0, %arg1, %c0_i32, %c0_i32_0 : i32, i32, i32, i32
  }
  func.func @transform_12(%arg0: i32, %arg1: i32) -> (i32, i32, i32) {
    %c0_i32 = arith.constant 0 : i32
    %c0_i32_0 = arith.constant 0 : i32
    %c0_i32_1 = arith.constant 0 : i32
    return %arg0, %c0_i32, %c0_i32_0 : i32, i32, i32
  }
}

module attributes {stable_mosaic.version = 11 : i64} {
  func.func @kernel(%arg0: i32, %arg1: i32, %arg2: memref<1x8x16x64xf32, #tpu.memory_space<vmem>>, %arg3: memref<1x8x16x64xf32, #tpu.memory_space<vmem>>, %arg4: memref<1x1x64xf32, #tpu.memory_space<vmem>>, %arg5: memref<1x8x16x64xf32, #tpu.memory_space<vmem>>, %arg6: memref<1x8x16x64xf32, #tpu.memory_space<vmem>>) attributes {dimension_semantics = [#tpu.dimension_semantics<parallel>, #tpu.dimension_semantics<parallel>], iteration_bounds = array<i64: 2, 2>, scalar_prefetch = 0 : i64, scratch_operands = 0 : i64, tpu.core_type = #tpu.core_type<tc>, window_params = [{transform_indices = @transform_0, window_bounds = array<i64: 1, 8, 16, 64>}, {transform_indices = @transform_1, window_bounds = array<i64: 1, 8, 16, 64>}, {transform_indices = @transform_2, window_bounds = array<i64: 1, 1, 64>}, {transform_indices = @transform_3, window_bounds = array<i64: 1, 8, 16, 64>}, {transform_indices = @transform_4, window_bounds = array<i64: 1, 8, 16, 64>}]} {
    %c0 = arith.constant 0 : index
    %c0_0 = arith.constant 0 : index
    %c0_1 = arith.constant 0 : index
    %0 = vector.load %arg4[%c0, %c0_0, %c0_1] : memref<1x1x64xf32, #tpu.memory_space<vmem>>, vector<1x1x64xf32>
    %1 = vector.shape_cast %0 : vector<1x1x64xf32> to vector<1x1x1x64xf32>
    %c0_2 = arith.constant 0 : index
    %c0_3 = arith.constant 0 : index
    %c0_4 = arith.constant 0 : index
    %c0_5 = arith.constant 0 : index
    %2 = vector.load %arg2[%c0_2, %c0_3, %c0_4, %c0_5] : memref<1x8x16x64xf32, #tpu.memory_space<vmem>>, vector<1x8x16x64xf32>
    %c0_6 = arith.constant 0 : index
    %c0_7 = arith.constant 0 : index
    %c0_8 = arith.constant 0 : index
    %c0_9 = arith.constant 0 : index
    %3 = vector.load %arg3[%c0_6, %c0_7, %c0_8, %c0_9] : memref<1x8x16x64xf32, #tpu.memory_space<vmem>>, vector<1x8x16x64xf32>
    %4 = vector.broadcast %1 : vector<1x1x1x64xf32> to vector<1x8x16x64xf32>
    %5 = arith.mulf %3, %4 : vector<1x8x16x64xf32>
    %cst = arith.constant 1.000000e-01 : f32
    %6 = vector.broadcast %cst : f32 to vector<1x8x16x64xf32>
    %7 = arith.mulf %6, %5 : vector<1x8x16x64xf32>
    %8 = arith.addf %2, %7 : vector<1x8x16x64xf32>
    %c0_10 = arith.constant 0 : index
    %c0_11 = arith.constant 0 : index
    %c0_12 = arith.constant 0 : index
    %c0_13 = arith.constant 0 : index
    %9 = vector.load %arg5[%c0_10, %c0_11, %c0_12, %c0_13] : memref<1x8x16x64xf32, #tpu.memory_space<vmem>>, vector<1x8x16x64xf32>
    %10 = arith.addf %8, %9 : vector<1x8x16x64xf32>
    %c0_14 = arith.constant 0 : index
    %c0_15 = arith.constant 0 : index
    %c0_16 = arith.constant 0 : index
    %c0_17 = arith.constant 0 : index
    %11 = vector.load %arg6[%c0_14, %c0_15, %c0_16, %c0_17] : memref<1x8x16x64xf32, #tpu.memory_space<vmem>>, vector<1x8x16x64xf32>
    tpu.vector_store %arg6[%c0_14, %c0_15, %c0_16, %c0_17], %10 {strides = array<i32>} : memref<1x8x16x64xf32, #tpu.memory_space<vmem>>, vector<1x8x16x64xf32>,
    return
  }
  func.func @transform_0(%arg0: i32, %arg1: i32) -> (i32, i32, i32, i32) {
    %c0_i32 = arith.constant 0 : i32
    %c0_i32_0 = arith.constant 0 : i32
    %c0_i32_1 = arith.constant 0 : i32
    return %arg0, %arg1, %c0_i32, %c0_i32_0 : i32, i32, i32, i32
  }
  func.func @transform_1(%arg0: i32, %arg1: i32) -> (i32, i32, i32, i32) {
    %c0_i32 = arith.constant 0 : i32
    %c0_i32_0 = arith.constant 0 : i32
    %c0_i32_1 = arith.constant 0 : i32
    return %arg0, %arg1, %c0_i32, %c0_i32_0 : i32, i32, i32, i32
  }
  func.func @transform_2(%arg0: i32, %arg1: i32) -> (i32, i32, i32) {
    %c0_i32 = arith.constant 0 : i32
    %c0_i32_0 = arith.constant 0 : i32
    %c0_i32_1 = arith.constant 0 : i32
    return %arg0, %c0_i32, %c0_i32_0 : i32, i32, i32
  }
  func.func @transform_3(%arg0: i32, %arg1: i32) -> (i32, i32, i32, i32) {
    %c0_i32 = arith.constant 0 : i32
    %c0_i32_0 = arith.constant 0 : i32
    %c0_i32_1 = arith.constant 0 : i32
    return %arg0, %arg1, %c0_i32, %c0_i32_0 : i32, i32, i32, i32
  }
  func.func @transform_4(%arg0: i32, %arg1: i32) -> (i32, i32, i32, i32) {
    %c0_i32 = arith.constant 0 : i32
    %c0_i32_0 = arith.constant 0 : i32
    %c0_i32_1 = arith.constant 0 : i32
    return %arg0, %arg1, %c0_i32, %c0_i32_0 : i32, i32, i32, i32
  }
}

module attributes {stable_mosaic.version = 11 : i64} {
  func.func @kernel(%arg0: i32, %arg1: i32, %arg2: memref<1x8x16x64xf32, #tpu.memory_space<vmem>>, %arg3: memref<1x8x16x64xf32, #tpu.memory_space<vmem>>, %arg4: memref<1x1x4x16x64xf32, #tpu.memory_space<vmem>>, %arg5: memref<1x1x4x16x64xf32, #tpu.memory_space<vmem>>, %arg6: memref<1x1x64xf32, #tpu.memory_space<vmem>>, %arg7: memref<3x3x64x64xbf16, #tpu.memory_space<vmem>>, %arg8: memref<1x64xf32, #tpu.memory_space<vmem>>, %arg9: memref<3x3x64x64xbf16, #tpu.memory_space<vmem>>, %arg10: memref<1x64xf32, #tpu.memory_space<vmem>>, %arg11: memref<64x64xbf16, #tpu.memory_space<vmem>>, %arg12: memref<1x64xf32, #tpu.memory_space<vmem>>, %arg13: memref<64x64xbf16, #tpu.memory_space<vmem>>, %arg14: memref<1x64xf32, #tpu.memory_space<vmem>>, %arg15: memref<1x8x16x64xf32, #tpu.memory_space<vmem>>, %arg16: memref<1x8x16x64xf32, #tpu.memory_space<vmem>>, %arg17: memref<1x1x64xf32, #tpu.memory_space<vmem>>, %arg18: memref<12x18x64xbf16, #tpu.memory_space<vmem>>, %arg19: memref<10x18x64xbf16, #tpu.memory_space<vmem>>) attributes {dimension_semantics = [#tpu.dimension_semantics<parallel>, #tpu.dimension_semantics<arbitrary>], iteration_bounds = array<i64: 2, 2>, scalar_prefetch = 0 : i64, scratch_operands = 2 : i64, tpu.core_type = #tpu.core_type<tc>, window_params = [{transform_indices = @transform_0, window_bounds = array<i64: 1, 8, 16, 64>}, {transform_indices = @transform_1, window_bounds = array<i64: 1, 8, 16, 64>}, {transform_indices = @transform_2, window_bounds = array<i64: 1, 1, 4, 16, 64>}, {transform_indices = @transform_3, window_bounds = array<i64: 1, 1, 4, 16, 64>}, {transform_indices = @transform_4, window_bounds = array<i64: 1, 1, 64>}, {pipeline_mode = #tpu.pipeline_mode<synchronous>, transform_indices = @transform_5, window_bounds = array<i64: 3, 3, 64, 64>}, {pipeline_mode = #tpu.pipeline_mode<synchronous>, transform_indices = @transform_6, window_bounds = array<i64: 1, 64>}, {pipeline_mode = #tpu.pipeline_mode<synchronous>, transform_indices = @transform_7, window_bounds = array<i64: 3, 3, 64, 64>}, {pipeline_mode = #tpu.pipeline_mode<synchronous>, transform_indices = @transform_8, window_bounds = array<i64: 1, 64>}, {pipeline_mode = #tpu.pipeline_mode<synchronous>, transform_indices = @transform_9, window_bounds = array<i64: 64, 64>}, {pipeline_mode = #tpu.pipeline_mode<synchronous>, transform_indices = @transform_10, window_bounds = array<i64: 1, 64>}, {pipeline_mode = #tpu.pipeline_mode<synchronous>, transform_indices = @transform_11, window_bounds = array<i64: 64, 64>}, {pipeline_mode = #tpu.pipeline_mode<synchronous>, transform_indices = @transform_12, window_bounds = array<i64: 1, 64>}, {transform_indices = @transform_13, window_bounds = array<i64: 1, 8, 16, 64>}, {transform_indices = @transform_14, window_bounds = array<i64: 1, 8, 16, 64>}, {transform_indices = @transform_15, window_bounds = array<i64: 1, 1, 64>}]} {
    %c0 = arith.constant 0 : index
    %c0_0 = arith.constant 0 : index
    %c0_1 = arith.constant 0 : index
    %0 = vector.load %arg6[%c0, %c0_0, %c0_1] : memref<1x1x64xf32, #tpu.memory_space<vmem>>, vector<1x1x64xf32>
    %c0_2 = arith.constant 0 : index
    %c0_3 = arith.constant 0 : index
    %c0_4 = arith.constant 0 : index
    %c0_5 = arith.constant 0 : index
    %1 = vector.load %arg2[%c0_2, %c0_3, %c0_4, %c0_5] : memref<1x8x16x64xf32, #tpu.memory_space<vmem>>, vector<1x8x16x64xf32>
    %2 = vector.shape_cast %1 : vector<1x8x16x64xf32> to vector<8x16x64xf32>
    %c0_6 = arith.constant 0 : index
    %c0_7 = arith.constant 0 : index
    %c0_8 = arith.constant 0 : index
    %c0_9 = arith.constant 0 : index
    %3 = vector.load %arg3[%c0_6, %c0_7, %c0_8, %c0_9] : memref<1x8x16x64xf32, #tpu.memory_space<vmem>>, vector<1x8x16x64xf32>
    %4 = vector.shape_cast %3 : vector<1x8x16x64xf32> to vector<8x16x64xf32>
    %5 = vector.broadcast %0 : vector<1x1x64xf32> to vector<8x16x64xf32>
    %6 = arith.mulf %4, %5 : vector<8x16x64xf32>
    %cst = arith.constant 1.000000e-01 : f32
    %7 = vector.broadcast %cst : f32 to vector<8x16x64xf32>
    %8 = arith.mulf %7, %6 : vector<8x16x64xf32>
    %9 = arith.addf %2, %8 : vector<8x16x64xf32>
    %c0_10 = arith.constant 0 : index
    %c0_11 = arith.constant 0 : index
    %c0_12 = arith.constant 0 : index
    %c0_13 = arith.constant 0 : index
    %c0_14 = arith.constant 0 : index
    %10 = vector.load %arg4[%c0_10, %c0_11, %c0_12, %c0_13, %c0_14] : memref<1x1x4x16x64xf32, #tpu.memory_space<vmem>>, vector<1x1x4x16x64xf32>
    %11 = vector.shape_cast %10 : vector<1x1x4x16x64xf32> to vector<4x16x64xf32>
    %c0_15 = arith.constant 0 : index
    %c0_16 = arith.constant 0 : index
    %c0_17 = arith.constant 0 : index
    %c0_18 = arith.constant 0 : index
    %c0_19 = arith.constant 0 : index
    %12 = vector.load %arg5[%c0_15, %c0_16, %c0_17, %c0_18, %c0_19] : memref<1x1x4x16x64xf32, #tpu.memory_space<vmem>>, vector<1x1x4x16x64xf32>
    %13 = vector.shape_cast %12 : vector<1x1x4x16x64xf32> to vector<4x16x64xf32>
    %14 = vector.broadcast %0 : vector<1x1x64xf32> to vector<4x16x64xf32>
    %15 = arith.mulf %13, %14 : vector<4x16x64xf32>
    %cst_20 = arith.constant 1.000000e-01 : f32
    %16 = vector.broadcast %cst_20 : f32 to vector<4x16x64xf32>
    %17 = arith.mulf %16, %15 : vector<4x16x64xf32>
    %18 = arith.addf %11, %17 : vector<4x16x64xf32>
    %cst_21 = arith.constant 0.000000e+00 : bf16
    %19 = vector.broadcast %cst_21 : bf16 to vector<12x18x64xbf16>
    %c0_22 = arith.constant 0 : index
    %c0_23 = arith.constant 0 : index
    %c0_24 = arith.constant 0 : index
    %20 = vector.load %arg18[%c0_22, %c0_23, %c0_24] : memref<12x18x64xbf16, #tpu.memory_space<vmem>>, vector<12x18x64xbf16>
    tpu.vector_store %arg18[%c0_22, %c0_23, %c0_24], %19 {strides = array<i32>} : memref<12x18x64xbf16, #tpu.memory_space<vmem>>, vector<12x18x64xbf16>,
    %21 = vector.extract_strided_slice %18 {offsets = [0, 0, 0], sizes = [2, 16, 64], strides = [1, 1, 1]} : vector<4x16x64xf32> to vector<2x16x64xf32>
    %22 = arith.truncf %21 : vector<2x16x64xf32> to vector<2x16x64xbf16>
    %c0_25 = arith.constant 0 : index
    %c1 = arith.constant 1 : index
    %c0_26 = arith.constant 0 : index
    %23 = vector.load %arg18[%c0_25, %c1, %c0_26] : memref<12x18x64xbf16, #tpu.memory_space<vmem>>, vector<2x16x64xbf16>
    tpu.vector_store %arg18[%c0_25, %c1, %c0_26], %22 {strides = array<i32>} : memref<12x18x64xbf16, #tpu.memory_space<vmem>>, vector<2x16x64xbf16>,
    %24 = vector.extract_strided_slice %18 {offsets = [2, 0, 0], sizes = [2, 16, 64], strides = [1, 1, 1]} : vector<4x16x64xf32> to vector<2x16x64xf32>
    %25 = arith.truncf %24 : vector<2x16x64xf32> to vector<2x16x64xbf16>
    %c10 = arith.constant 10 : index
    %c1_27 = arith.constant 1 : index
    %c0_28 = arith.constant 0 : index
    %26 = vector.load %arg18[%c10, %c1_27, %c0_28] : memref<12x18x64xbf16, #tpu.memory_space<vmem>>, vector<2x16x64xbf16>
    tpu.vector_store %arg18[%c10, %c1_27, %c0_28], %25 {strides = array<i32>} : memref<12x18x64xbf16, #tpu.memory_space<vmem>>, vector<2x16x64xbf16>,
    %27 = arith.truncf %9 : vector<8x16x64xf32> to vector<8x16x64xbf16>
    %c2 = arith.constant 2 : index
    %c1_29 = arith.constant 1 : index
    %c0_30 = arith.constant 0 : index
    %28 = vector.load %arg18[%c2, %c1_29, %c0_30] : memref<12x18x64xbf16, #tpu.memory_space<vmem>>, vector<8x16x64xbf16>
    tpu.vector_store %arg18[%c2, %c1_29, %c0_30], %27 {strides = array<i32>} : memref<12x18x64xbf16, #tpu.memory_space<vmem>>, vector<8x16x64xbf16>,
    %cst_31 = arith.constant 0.000000e+00 : f32
    %29 = vector.broadcast %cst_31 : f32 to vector<160x64xf32>
    %c0_32 = arith.constant 0 : index
    %c0_33 = arith.constant 0 : index
    %c0_34 = arith.constant 0 : index
    %30 = vector.load %arg18[%c0_32, %c0_33, %c0_34] : memref<12x18x64xbf16, #tpu.memory_space<vmem>>, vector<10x16x64xbf16>
    %31 = vector.shape_cast %30 : vector<10x16x64xbf16> to vector<160x64xbf16>
    %c0_35 = arith.constant 0 : index
    %c0_36 = arith.constant 0 : index
    %c0_37 = arith.constant 0 : index
    %c0_38 = arith.constant 0 : index
    %32 = vector.load %arg7[%c0_35, %c0_36, %c0_37, %c0_38] : memref<3x3x64x64xbf16, #tpu.memory_space<vmem>>, vector<1x1x64x64xbf16>
    %33 = vector.shape_cast %32 : vector<1x1x64x64xbf16> to vector<64x64xbf16>
    %cst_39 = arith.constant dense<0.000000e+00> : vector<160x64xf32>
    %34 = tpu.matmul %31, %33, %cst_39 {dimension_numbers = #tpu.dot_dimension_numbers<[1], [0], [0], [1], [0, 0, 1, 1], [], []>} : vector<160x64xbf16>, vector<64x64xbf16>, vector<160x64xf32> -> vector<160x64xf32>
    %35 = arith.addf %29, %34 : vector<160x64xf32>
    %c0_40 = arith.constant 0 : index
    %c1_41 = arith.constant 1 : index
    %c0_42 = arith.constant 0 : index
    %36 = vector.load %arg18[%c0_40, %c1_41, %c0_42] : memref<12x18x64xbf16, #tpu.memory_space<vmem>>, vector<10x16x64xbf16>
    %37 = vector.shape_cast %36 : vector<10x16x64xbf16> to vector<160x64xbf16>
    %c0_43 = arith.constant 0 : index
    %c1_44 = arith.constant 1 : index
    %c0_45 = arith.constant 0 : index
    %c0_46 = arith.constant 0 : index
    %38 = vector.load %arg7[%c0_43, %c1_44, %c0_45, %c0_46] : memref<3x3x64x64xbf16, #tpu.memory_space<vmem>>, vector<1x1x64x64xbf16>
    %39 = vector.shape_cast %38 : vector<1x1x64x64xbf16> to vector<64x64xbf16>
    %cst_47 = arith.constant dense<0.000000e+00> : vector<160x64xf32>
    %40 = tpu.matmul %37, %39, %cst_47 {dimension_numbers = #tpu.dot_dimension_numbers<[1], [0], [0], [1], [0, 0, 1, 1], [], []>} : vector<160x64xbf16>, vector<64x64xbf16>, vector<160x64xf32> -> vector<160x64xf32>
    %41 = arith.addf %35, %40 : vector<160x64xf32>
    %c0_48 = arith.constant 0 : index
    %c2_49 = arith.constant 2 : index
    %c0_50 = arith.constant 0 : index
    %42 = vector.load %arg18[%c0_48, %c2_49, %c0_50] : memref<12x18x64xbf16, #tpu.memory_space<vmem>>, vector<10x16x64xbf16>
    %43 = vector.shape_cast %42 : vector<10x16x64xbf16> to vector<160x64xbf16>
    %c0_51 = arith.constant 0 : index
    %c2_52 = arith.constant 2 : index
    %c0_53 = arith.constant 0 : index
    %c0_54 = arith.constant 0 : index
    %44 = vector.load %arg7[%c0_51, %c2_52, %c0_53, %c0_54] : memref<3x3x64x64xbf16, #tpu.memory_space<vmem>>, vector<1x1x64x64xbf16>
    %45 = vector.shape_cast %44 : vector<1x1x64x64xbf16> to vector<64x64xbf16>
    %cst_55 = arith.constant dense<0.000000e+00> : vector<160x64xf32>
    %46 = tpu.matmul %43, %45, %cst_55 {dimension_numbers = #tpu.dot_dimension_numbers<[1], [0], [0], [1], [0, 0, 1, 1], [], []>} : vector<160x64xbf16>, vector<64x64xbf16>, vector<160x64xf32> -> vector<160x64xf32>
    %47 = arith.addf %41, %46 : vector<160x64xf32>
    %c1_56 = arith.constant 1 : index
    %c0_57 = arith.constant 0 : index
    %c0_58 = arith.constant 0 : index
    %48 = vector.load %arg18[%c1_56, %c0_57, %c0_58] : memref<12x18x64xbf16, #tpu.memory_space<vmem>>, vector<10x16x64xbf16>
    %49 = vector.shape_cast %48 : vector<10x16x64xbf16> to vector<160x64xbf16>
    %c1_59 = arith.constant 1 : index
    %c0_60 = arith.constant 0 : index
    %c0_61 = arith.constant 0 : index
    %c0_62 = arith.constant 0 : index
    %50 = vector.load %arg7[%c1_59, %c0_60, %c0_61, %c0_62] : memref<3x3x64x64xbf16, #tpu.memory_space<vmem>>, vector<1x1x64x64xbf16>
    %51 = vector.shape_cast %50 : vector<1x1x64x64xbf16> to vector<64x64xbf16>
    %cst_63 = arith.constant dense<0.000000e+00> : vector<160x64xf32>
    %52 = tpu.matmul %49, %51, %cst_63 {dimension_numbers = #tpu.dot_dimension_numbers<[1], [0], [0], [1], [0, 0, 1, 1], [], []>} : vector<160x64xbf16>, vector<64x64xbf16>, vector<160x64xf32> -> vector<160x64xf32>
    %53 = arith.addf %47, %52 : vector<160x64xf32>
    %c1_64 = arith.constant 1 : index
    %c1_65 = arith.constant 1 : index
    %c0_66 = arith.constant 0 : index
    %54 = vector.load %arg18[%c1_64, %c1_65, %c0_66] : memref<12x18x64xbf16, #tpu.memory_space<vmem>>, vector<10x16x64xbf16>
    %55 = vector.shape_cast %54 : vector<10x16x64xbf16> to vector<160x64xbf16>
    %c1_67 = arith.constant 1 : index
    %c1_68 = arith.constant 1 : index
    %c0_69 = arith.constant 0 : index
    %c0_70 = arith.constant 0 : index
    %56 = vector.load %arg7[%c1_67, %c1_68, %c0_69, %c0_70] : memref<3x3x64x64xbf16, #tpu.memory_space<vmem>>, vector<1x1x64x64xbf16>
    %57 = vector.shape_cast %56 : vector<1x1x64x64xbf16> to vector<64x64xbf16>
    %cst_71 = arith.constant dense<0.000000e+00> : vector<160x64xf32>
    %58 = tpu.matmul %55, %57, %cst_71 {dimension_numbers = #tpu.dot_dimension_numbers<[1], [0], [0], [1], [0, 0, 1, 1], [], []>} : vector<160x64xbf16>, vector<64x64xbf16>, vector<160x64xf32> -> vector<160x64xf32>
    %59 = arith.addf %53, %58 : vector<160x64xf32>
    %c1_72 = arith.constant 1 : index
    %c2_73 = arith.constant 2 : index
    %c0_74 = arith.constant 0 : index
    %60 = vector.load %arg18[%c1_72, %c2_73, %c0_74] : memref<12x18x64xbf16, #tpu.memory_space<vmem>>, vector<10x16x64xbf16>
    %61 = vector.shape_cast %60 : vector<10x16x64xbf16> to vector<160x64xbf16>
    %c1_75 = arith.constant 1 : index
    %c2_76 = arith.constant 2 : index
    %c0_77 = arith.constant 0 : index
    %c0_78 = arith.constant 0 : index
    %62 = vector.load %arg7[%c1_75, %c2_76, %c0_77, %c0_78] : memref<3x3x64x64xbf16, #tpu.memory_space<vmem>>, vector<1x1x64x64xbf16>
    %63 = vector.shape_cast %62 : vector<1x1x64x64xbf16> to vector<64x64xbf16>
    %cst_79 = arith.constant dense<0.000000e+00> : vector<160x64xf32>
    %64 = tpu.matmul %61, %63, %cst_79 {dimension_numbers = #tpu.dot_dimension_numbers<[1], [0], [0], [1], [0, 0, 1, 1], [], []>} : vector<160x64xbf16>, vector<64x64xbf16>, vector<160x64xf32> -> vector<160x64xf32>
    %65 = arith.addf %59, %64 : vector<160x64xf32>
    %c2_80 = arith.constant 2 : index
    %c0_81 = arith.constant 0 : index
    %c0_82 = arith.constant 0 : index
    %66 = vector.load %arg18[%c2_80, %c0_81, %c0_82] : memref<12x18x64xbf16, #tpu.memory_space<vmem>>, vector<10x16x64xbf16>
    %67 = vector.shape_cast %66 : vector<10x16x64xbf16> to vector<160x64xbf16>
    %c2_83 = arith.constant 2 : index
    %c0_84 = arith.constant 0 : index
    %c0_85 = arith.constant 0 : index
    %c0_86 = arith.constant 0 : index
    %68 = vector.load %arg7[%c2_83, %c0_84, %c0_85, %c0_86] : memref<3x3x64x64xbf16, #tpu.memory_space<vmem>>, vector<1x1x64x64xbf16>
    %69 = vector.shape_cast %68 : vector<1x1x64x64xbf16> to vector<64x64xbf16>
    %cst_87 = arith.constant dense<0.000000e+00> : vector<160x64xf32>
    %70 = tpu.matmul %67, %69, %cst_87 {dimension_numbers = #tpu.dot_dimension_numbers<[1], [0], [0], [1], [0, 0, 1, 1], [], []>} : vector<160x64xbf16>, vector<64x64xbf16>, vector<160x64xf32> -> vector<160x64xf32>
    %71 = arith.addf %65, %70 : vector<160x64xf32>
    %c2_88 = arith.constant 2 : index
    %c1_89 = arith.constant 1 : index
    %c0_90 = arith.constant 0 : index
    %72 = vector.load %arg18[%c2_88, %c1_89, %c0_90] : memref<12x18x64xbf16, #tpu.memory_space<vmem>>, vector<10x16x64xbf16>
    %73 = vector.shape_cast %72 : vector<10x16x64xbf16> to vector<160x64xbf16>
    %c2_91 = arith.constant 2 : index
    %c1_92 = arith.constant 1 : index
    %c0_93 = arith.constant 0 : index
    %c0_94 = arith.constant 0 : index
    %74 = vector.load %arg7[%c2_91, %c1_92, %c0_93, %c0_94] : memref<3x3x64x64xbf16, #tpu.memory_space<vmem>>, vector<1x1x64x64xbf16>
    %75 = vector.shape_cast %74 : vector<1x1x64x64xbf16> to vector<64x64xbf16>
    %cst_95 = arith.constant dense<0.000000e+00> : vector<160x64xf32>
    %76 = tpu.matmul %73, %75, %cst_95 {dimension_numbers = #tpu.dot_dimension_numbers<[1], [0], [0], [1], [0, 0, 1, 1], [], []>} : vector<160x64xbf16>, vector<64x64xbf16>, vector<160x64xf32> -> vector<160x64xf32>
    %77 = arith.addf %71, %76 : vector<160x64xf32>
    %c2_96 = arith.constant 2 : index
    %c2_97 = arith.constant 2 : index
    %c0_98 = arith.constant 0 : index
    %78 = vector.load %arg18[%c2_96, %c2_97, %c0_98] : memref<12x18x64xbf16, #tpu.memory_space<vmem>>, vector<10x16x64xbf16>
    %79 = vector.shape_cast %78 : vector<10x16x64xbf16> to vector<160x64xbf16>
    %c2_99 = arith.constant 2 : index
    %c2_100 = arith.constant 2 : index
    %c0_101 = arith.constant 0 : index
    %c0_102 = arith.constant 0 : index
    %80 = vector.load %arg7[%c2_99, %c2_100, %c0_101, %c0_102] : memref<3x3x64x64xbf16, #tpu.memory_space<vmem>>, vector<1x1x64x64xbf16>
    %81 = vector.shape_cast %80 : vector<1x1x64x64xbf16> to vector<64x64xbf16>
    %cst_103 = arith.constant dense<0.000000e+00> : vector<160x64xf32>
    %82 = tpu.matmul %79, %81, %cst_103 {dimension_numbers = #tpu.dot_dimension_numbers<[1], [0], [0], [1], [0, 0, 1, 1], [], []>} : vector<160x64xbf16>, vector<64x64xbf16>, vector<160x64xf32> -> vector<160x64xf32>
    %83 = arith.addf %77, %82 : vector<160x64xf32>
    %c0_104 = arith.constant 0 : index
    %c0_105 = arith.constant 0 : index
    %84 = vector.load %arg8[%c0_104, %c0_105] : memref<1x64xf32, #tpu.memory_space<vmem>>, vector<1x64xf32>
    %85 = vector.broadcast %84 : vector<1x64xf32> to vector<160x64xf32>
    %86 = arith.addf %83, %85 : vector<160x64xf32>
    %cst_106 = arith.constant 0.000000e+00 : f32
    %87 = vector.broadcast %cst_106 : f32 to vector<160x64xf32>
    %88 = arith.maximumf %86, %87 : vector<160x64xf32>
    %89 = vector.shape_cast %88 : vector<160x64xf32> to vector<10x16x64xf32>
    %cst_107 = arith.constant 0.000000e+00 : bf16
    %90 = vector.broadcast %cst_107 : bf16 to vector<10x18x64xbf16>
    %c0_108 = arith.constant 0 : index
    %c0_109 = arith.constant 0 : index
    %c0_110 = arith.constant 0 : index
    %91 = vector.load %arg19[%c0_108, %c0_109, %c0_110] : memref<10x18x64xbf16, #tpu.memory_space<vmem>>, vector<10x18x64xbf16>
    tpu.vector_store %arg19[%c0_108, %c0_109, %c0_110], %90 {strides = array<i32>} : memref<10x18x64xbf16, #tpu.memory_space<vmem>>, vector<10x18x64xbf16>,
    %92 = vector.extract_strided_slice %89 {offsets = [1, 0, 0], sizes = [8, 16, 64], strides = [1, 1, 1]} : vector<10x16x64xf32> to vector<8x16x64xf32>
    %93 = arith.truncf %92 : vector<8x16x64xf32> to vector<8x16x64xbf16>
    %c1_111 = arith.constant 1 : index
    %c1_112 = arith.constant 1 : index
    %c0_113 = arith.constant 0 : index
    %94 = vector.load %arg19[%c1_111, %c1_112, %c0_113] : memref<10x18x64xbf16, #tpu.memory_space<vmem>>, vector<8x16x64xbf16>
    tpu.vector_store %arg19[%c1_111, %c1_112, %c0_113], %93 {strides = array<i32>} : memref<10x18x64xbf16, #tpu.memory_space<vmem>>, vector<8x16x64xbf16>,
    %c0_i32 = arith.constant 0 : i32
    %95 = arith.cmpi sgt, %arg1, %c0_i32 : i32
    %96 = arith.extui %95 : i1 to i32
    %c0_i32_114 = arith.constant 0 : i32
    %97 = arith.cmpi ne, %96, %c0_i32_114 : i32
    scf.if %97 {
      %190 = vector.extract_strided_slice %89 {offsets = [0, 0, 0], sizes = [1, 16, 64], strides = [1, 1, 1]} : vector<10x16x64xf32> to vector<1x16x64xf32>
      %191 = arith.truncf %190 : vector<1x16x64xf32> to vector<1x16x64xbf16>
      %c0_220 = arith.constant 0 : index
      %c1_221 = arith.constant 1 : index
      %c0_222 = arith.constant 0 : index
      %192 = vector.load %arg19[%c0_220, %c1_221, %c0_222] : memref<10x18x64xbf16, #tpu.memory_space<vmem>>, vector<1x16x64xbf16>
      tpu.vector_store %arg19[%c0_220, %c1_221, %c0_222], %191 {strides = array<i32>} : memref<10x18x64xbf16, #tpu.memory_space<vmem>>, vector<1x16x64xbf16>,
    } else {
    }
    %c1_i32 = arith.constant 1 : i32
    %98 = arith.cmpi slt, %arg1, %c1_i32 : i32
    %99 = arith.extui %98 : i1 to i32
    %c0_i32_115 = arith.constant 0 : i32
    %100 = arith.cmpi ne, %99, %c0_i32_115 : i32
    scf.if %100 {
      %190 = vector.extract_strided_slice %89 {offsets = [9, 0, 0], sizes = [1, 16, 64], strides = [1, 1, 1]} : vector<10x16x64xf32> to vector<1x16x64xf32>
      %191 = arith.truncf %190 : vector<1x16x64xf32> to vector<1x16x64xbf16>
      %c9 = arith.constant 9 : index
      %c1_220 = arith.constant 1 : index
      %c0_221 = arith.constant 0 : index
      %192 = vector.load %arg19[%c9, %c1_220, %c0_221] : memref<10x18x64xbf16, #tpu.memory_space<vmem>>, vector<1x16x64xbf16>
      tpu.vector_store %arg19[%c9, %c1_220, %c0_221], %191 {strides = array<i32>} : memref<10x18x64xbf16, #tpu.memory_space<vmem>>, vector<1x16x64xbf16>,
    } else {
    }
    %cst_116 = arith.constant 0.000000e+00 : f32
    %101 = vector.broadcast %cst_116 : f32 to vector<128x64xf32>
    %c0_117 = arith.constant 0 : index
    %c0_118 = arith.constant 0 : index
    %c0_119 = arith.constant 0 : index
    %102 = vector.load %arg19[%c0_117, %c0_118, %c0_119] : memref<10x18x64xbf16, #tpu.memory_space<vmem>>, vector<8x16x64xbf16>
    %103 = vector.shape_cast %102 : vector<8x16x64xbf16> to vector<128x64xbf16>
    %c0_120 = arith.constant 0 : index
    %c0_121 = arith.constant 0 : index
    %c0_122 = arith.constant 0 : index
    %c0_123 = arith.constant 0 : index
    %104 = vector.load %arg9[%c0_120, %c0_121, %c0_122, %c0_123] : memref<3x3x64x64xbf16, #tpu.memory_space<vmem>>, vector<1x1x64x64xbf16>
    %105 = vector.shape_cast %104 : vector<1x1x64x64xbf16> to vector<64x64xbf16>
    %cst_124 = arith.constant dense<0.000000e+00> : vector<128x64xf32>
    %106 = tpu.matmul %103, %105, %cst_124 {dimension_numbers = #tpu.dot_dimension_numbers<[1], [0], [0], [1], [0, 0, 1, 1], [], []>} : vector<128x64xbf16>, vector<64x64xbf16>, vector<128x64xf32> -> vector<128x64xf32>
    %107 = arith.addf %101, %106 : vector<128x64xf32>
    %c0_125 = arith.constant 0 : index
    %c1_126 = arith.constant 1 : index
    %c0_127 = arith.constant 0 : index
    %108 = vector.load %arg19[%c0_125, %c1_126, %c0_127] : memref<10x18x64xbf16, #tpu.memory_space<vmem>>, vector<8x16x64xbf16>
    %109 = vector.shape_cast %108 : vector<8x16x64xbf16> to vector<128x64xbf16>
    %c0_128 = arith.constant 0 : index
    %c1_129 = arith.constant 1 : index
    %c0_130 = arith.constant 0 : index
    %c0_131 = arith.constant 0 : index
    %110 = vector.load %arg9[%c0_128, %c1_129, %c0_130, %c0_131] : memref<3x3x64x64xbf16, #tpu.memory_space<vmem>>, vector<1x1x64x64xbf16>
    %111 = vector.shape_cast %110 : vector<1x1x64x64xbf16> to vector<64x64xbf16>
    %cst_132 = arith.constant dense<0.000000e+00> : vector<128x64xf32>
    %112 = tpu.matmul %109, %111, %cst_132 {dimension_numbers = #tpu.dot_dimension_numbers<[1], [0], [0], [1], [0, 0, 1, 1], [], []>} : vector<128x64xbf16>, vector<64x64xbf16>, vector<128x64xf32> -> vector<128x64xf32>
    %113 = arith.addf %107, %112 : vector<128x64xf32>
    %c0_133 = arith.constant 0 : index
    %c2_134 = arith.constant 2 : index
    %c0_135 = arith.constant 0 : index
    %114 = vector.load %arg19[%c0_133, %c2_134, %c0_135] : memref<10x18x64xbf16, #tpu.memory_space<vmem>>, vector<8x16x64xbf16>
    %115 = vector.shape_cast %114 : vector<8x16x64xbf16> to vector<128x64xbf16>
    %c0_136 = arith.constant 0 : index
    %c2_137 = arith.constant 2 : index
    %c0_138 = arith.constant 0 : index
    %c0_139 = arith.constant 0 : index
    %116 = vector.load %arg9[%c0_136, %c2_137, %c0_138, %c0_139] : memref<3x3x64x64xbf16, #tpu.memory_space<vmem>>, vector<1x1x64x64xbf16>
    %117 = vector.shape_cast %116 : vector<1x1x64x64xbf16> to vector<64x64xbf16>
    %cst_140 = arith.constant dense<0.000000e+00> : vector<128x64xf32>
    %118 = tpu.matmul %115, %117, %cst_140 {dimension_numbers = #tpu.dot_dimension_numbers<[1], [0], [0], [1], [0, 0, 1, 1], [], []>} : vector<128x64xbf16>, vector<64x64xbf16>, vector<128x64xf32> -> vector<128x64xf32>
    %119 = arith.addf %113, %118 : vector<128x64xf32>
    %c1_141 = arith.constant 1 : index
    %c0_142 = arith.constant 0 : index
    %c0_143 = arith.constant 0 : index
    %120 = vector.load %arg19[%c1_141, %c0_142, %c0_143] : memref<10x18x64xbf16, #tpu.memory_space<vmem>>, vector<8x16x64xbf16>
    %121 = vector.shape_cast %120 : vector<8x16x64xbf16> to vector<128x64xbf16>
    %c1_144 = arith.constant 1 : index
    %c0_145 = arith.constant 0 : index
    %c0_146 = arith.constant 0 : index
    %c0_147 = arith.constant 0 : index
    %122 = vector.load %arg9[%c1_144, %c0_145, %c0_146, %c0_147] : memref<3x3x64x64xbf16, #tpu.memory_space<vmem>>, vector<1x1x64x64xbf16>
    %123 = vector.shape_cast %122 : vector<1x1x64x64xbf16> to vector<64x64xbf16>
    %cst_148 = arith.constant dense<0.000000e+00> : vector<128x64xf32>
    %124 = tpu.matmul %121, %123, %cst_148 {dimension_numbers = #tpu.dot_dimension_numbers<[1], [0], [0], [1], [0, 0, 1, 1], [], []>} : vector<128x64xbf16>, vector<64x64xbf16>, vector<128x64xf32> -> vector<128x64xf32>
    %125 = arith.addf %119, %124 : vector<128x64xf32>
    %c1_149 = arith.constant 1 : index
    %c1_150 = arith.constant 1 : index
    %c0_151 = arith.constant 0 : index
    %126 = vector.load %arg19[%c1_149, %c1_150, %c0_151] : memref<10x18x64xbf16, #tpu.memory_space<vmem>>, vector<8x16x64xbf16>
    %127 = vector.shape_cast %126 : vector<8x16x64xbf16> to vector<128x64xbf16>
    %c1_152 = arith.constant 1 : index
    %c1_153 = arith.constant 1 : index
    %c0_154 = arith.constant 0 : index
    %c0_155 = arith.constant 0 : index
    %128 = vector.load %arg9[%c1_152, %c1_153, %c0_154, %c0_155] : memref<3x3x64x64xbf16, #tpu.memory_space<vmem>>, vector<1x1x64x64xbf16>
    %129 = vector.shape_cast %128 : vector<1x1x64x64xbf16> to vector<64x64xbf16>
    %cst_156 = arith.constant dense<0.000000e+00> : vector<128x64xf32>
    %130 = tpu.matmul %127, %129, %cst_156 {dimension_numbers = #tpu.dot_dimension_numbers<[1], [0], [0], [1], [0, 0, 1, 1], [], []>} : vector<128x64xbf16>, vector<64x64xbf16>, vector<128x64xf32> -> vector<128x64xf32>
    %131 = arith.addf %125, %130 : vector<128x64xf32>
    %c1_157 = arith.constant 1 : index
    %c2_158 = arith.constant 2 : index
    %c0_159 = arith.constant 0 : index
    %132 = vector.load %arg19[%c1_157, %c2_158, %c0_159] : memref<10x18x64xbf16, #tpu.memory_space<vmem>>, vector<8x16x64xbf16>
    %133 = vector.shape_cast %132 : vector<8x16x64xbf16> to vector<128x64xbf16>
    %c1_160 = arith.constant 1 : index
    %c2_161 = arith.constant 2 : index
    %c0_162 = arith.constant 0 : index
    %c0_163 = arith.constant 0 : index
    %134 = vector.load %arg9[%c1_160, %c2_161, %c0_162, %c0_163] : memref<3x3x64x64xbf16, #tpu.memory_space<vmem>>, vector<1x1x64x64xbf16>
    %135 = vector.shape_cast %134 : vector<1x1x64x64xbf16> to vector<64x64xbf16>
    %cst_164 = arith.constant dense<0.000000e+00> : vector<128x64xf32>
    %136 = tpu.matmul %133, %135, %cst_164 {dimension_numbers = #tpu.dot_dimension_numbers<[1], [0], [0], [1], [0, 0, 1, 1], [], []>} : vector<128x64xbf16>, vector<64x64xbf16>, vector<128x64xf32> -> vector<128x64xf32>
    %137 = arith.addf %131, %136 : vector<128x64xf32>
    %c2_165 = arith.constant 2 : index
    %c0_166 = arith.constant 0 : index
    %c0_167 = arith.constant 0 : index
    %138 = vector.load %arg19[%c2_165, %c0_166, %c0_167] : memref<10x18x64xbf16, #tpu.memory_space<vmem>>, vector<8x16x64xbf16>
    %139 = vector.shape_cast %138 : vector<8x16x64xbf16> to vector<128x64xbf16>
    %c2_168 = arith.constant 2 : index
    %c0_169 = arith.constant 0 : index
    %c0_170 = arith.constant 0 : index
    %c0_171 = arith.constant 0 : index
    %140 = vector.load %arg9[%c2_168, %c0_169, %c0_170, %c0_171] : memref<3x3x64x64xbf16, #tpu.memory_space<vmem>>, vector<1x1x64x64xbf16>
    %141 = vector.shape_cast %140 : vector<1x1x64x64xbf16> to vector<64x64xbf16>
    %cst_172 = arith.constant dense<0.000000e+00> : vector<128x64xf32>
    %142 = tpu.matmul %139, %141, %cst_172 {dimension_numbers = #tpu.dot_dimension_numbers<[1], [0], [0], [1], [0, 0, 1, 1], [], []>} : vector<128x64xbf16>, vector<64x64xbf16>, vector<128x64xf32> -> vector<128x64xf32>
    %143 = arith.addf %137, %142 : vector<128x64xf32>
    %c2_173 = arith.constant 2 : index
    %c1_174 = arith.constant 1 : index
    %c0_175 = arith.constant 0 : index
    %144 = vector.load %arg19[%c2_173, %c1_174, %c0_175] : memref<10x18x64xbf16, #tpu.memory_space<vmem>>, vector<8x16x64xbf16>
    %145 = vector.shape_cast %144 : vector<8x16x64xbf16> to vector<128x64xbf16>
    %c2_176 = arith.constant 2 : index
    %c1_177 = arith.constant 1 : index
    %c0_178 = arith.constant 0 : index
    %c0_179 = arith.constant 0 : index
    %146 = vector.load %arg9[%c2_176, %c1_177, %c0_178, %c0_179] : memref<3x3x64x64xbf16, #tpu.memory_space<vmem>>, vector<1x1x64x64xbf16>
    %147 = vector.shape_cast %146 : vector<1x1x64x64xbf16> to vector<64x64xbf16>
    %cst_180 = arith.constant dense<0.000000e+00> : vector<128x64xf32>
    %148 = tpu.matmul %145, %147, %cst_180 {dimension_numbers = #tpu.dot_dimension_numbers<[1], [0], [0], [1], [0, 0, 1, 1], [], []>} : vector<128x64xbf16>, vector<64x64xbf16>, vector<128x64xf32> -> vector<128x64xf32>
    %149 = arith.addf %143, %148 : vector<128x64xf32>
    %c2_181 = arith.constant 2 : index
    %c2_182 = arith.constant 2 : index
    %c0_183 = arith.constant 0 : index
    %150 = vector.load %arg19[%c2_181, %c2_182, %c0_183] : memref<10x18x64xbf16, #tpu.memory_space<vmem>>, vector<8x16x64xbf16>
    %151 = vector.shape_cast %150 : vector<8x16x64xbf16> to vector<128x64xbf16>
    %c2_184 = arith.constant 2 : index
    %c2_185 = arith.constant 2 : index
    %c0_186 = arith.constant 0 : index
    %c0_187 = arith.constant 0 : index
    %152 = vector.load %arg9[%c2_184, %c2_185, %c0_186, %c0_187] : memref<3x3x64x64xbf16, #tpu.memory_space<vmem>>, vector<1x1x64x64xbf16>
    %153 = vector.shape_cast %152 : vector<1x1x64x64xbf16> to vector<64x64xbf16>
    %cst_188 = arith.constant dense<0.000000e+00> : vector<128x64xf32>
    %154 = tpu.matmul %151, %153, %cst_188 {dimension_numbers = #tpu.dot_dimension_numbers<[1], [0], [0], [1], [0, 0, 1, 1], [], []>} : vector<128x64xbf16>, vector<64x64xbf16>, vector<128x64xf32> -> vector<128x64xf32>
    %155 = arith.addf %149, %154 : vector<128x64xf32>
    %c0_189 = arith.constant 0 : index
    %c0_190 = arith.constant 0 : index
    %156 = vector.load %arg10[%c0_189, %c0_190] : memref<1x64xf32, #tpu.memory_space<vmem>>, vector<1x64xf32>
    %157 = vector.broadcast %156 : vector<1x64xf32> to vector<128x64xf32>
    %158 = arith.addf %155, %157 : vector<128x64xf32>
    %159 = vector.shape_cast %9 : vector<8x16x64xf32> to vector<128x64xf32>
    %cst_191 = arith.constant 1.000000e-01 : f32
    %160 = vector.broadcast %cst_191 : f32 to vector<128x64xf32>
    %161 = arith.mulf %160, %158 : vector<128x64xf32>
    %162 = arith.addf %159, %161 : vector<128x64xf32>
    %163 = arith.truncf %162 : vector<128x64xf32> to vector<128x64xbf16>
    %c0_192 = arith.constant 0 : index
    %c0_193 = arith.constant 0 : index
    %164 = vector.load %arg11[%c0_192, %c0_193] : memref<64x64xbf16, #tpu.memory_space<vmem>>, vector<64x64xbf16>
    %cst_194 = arith.constant dense<0.000000e+00> : vector<128x64xf32>
    %165 = tpu.matmul %163, %164, %cst_194 {dimension_numbers = #tpu.dot_dimension_numbers<[1], [0], [0], [1], [0, 0, 1, 1], [], []>} : vector<128x64xbf16>, vector<64x64xbf16>, vector<128x64xf32> -> vector<128x64xf32>
    %c0_195 = arith.constant 0 : index
    %c0_196 = arith.constant 0 : index
    %166 = vector.load %arg12[%c0_195, %c0_196] : memref<1x64xf32, #tpu.memory_space<vmem>>, vector<1x64xf32>
    %167 = vector.broadcast %166 : vector<1x64xf32> to vector<128x64xf32>
    %168 = arith.addf %165, %167 : vector<128x64xf32>
    %cst_197 = arith.constant 0.000000e+00 : f32
    %169 = vector.broadcast %cst_197 : f32 to vector<128x64xf32>
    %170 = arith.maximumf %168, %169 : vector<128x64xf32>
    %171 = arith.truncf %170 : vector<128x64xf32> to vector<128x64xbf16>
    %c0_198 = arith.constant 0 : index
    %c0_199 = arith.constant 0 : index
    %172 = vector.load %arg13[%c0_198, %c0_199] : memref<64x64xbf16, #tpu.memory_space<vmem>>, vector<64x64xbf16>
    %cst_200 = arith.constant dense<0.000000e+00> : vector<128x64xf32>
    %173 = tpu.matmul %171, %172, %cst_200 {dimension_numbers = #tpu.dot_dimension_numbers<[1], [0], [0], [1], [0, 0, 1, 1], [], []>} : vector<128x64xbf16>, vector<64x64xbf16>, vector<128x64xf32> -> vector<128x64xf32>
    %c0_201 = arith.constant 0 : index
    %c0_202 = arith.constant 0 : index
    %174 = vector.load %arg14[%c0_201, %c0_202] : memref<1x64xf32, #tpu.memory_space<vmem>>, vector<1x64xf32>
    %175 = vector.broadcast %174 : vector<1x64xf32> to vector<128x64xf32>
    %176 = arith.addf %173, %175 : vector<128x64xf32>
    %177 = vector.shape_cast %162 : vector<128x64xf32> to vector<1x8x16x64xf32>
    %178 = vector.shape_cast %176 : vector<128x64xf32> to vector<1x8x16x64xf32>
    %c0_203 = arith.constant 0 : index
    %c0_204 = arith.constant 0 : index
    %c0_205 = arith.constant 0 : index
    %c0_206 = arith.constant 0 : index
    %179 = vector.load %arg15[%c0_203, %c0_204, %c0_205, %c0_206] : memref<1x8x16x64xf32, #tpu.memory_space<vmem>>, vector<1x8x16x64xf32>
    tpu.vector_store %arg15[%c0_203, %c0_204, %c0_205, %c0_206], %177 {strides = array<i32>} : memref<1x8x16x64xf32, #tpu.memory_space<vmem>>, vector<1x8x16x64xf32>,
    %c0_207 = arith.constant 0 : index
    %c0_208 = arith.constant 0 : index
    %c0_209 = arith.constant 0 : index
    %c0_210 = arith.constant 0 : index
    %180 = vector.load %arg16[%c0_207, %c0_208, %c0_209, %c0_210] : memref<1x8x16x64xf32, #tpu.memory_space<vmem>>, vector<1x8x16x64xf32>
    tpu.vector_store %arg16[%c0_207, %c0_208, %c0_209, %c0_210], %178 {strides = array<i32>} : memref<1x8x16x64xf32, #tpu.memory_space<vmem>>, vector<1x8x16x64xf32>,
    %cst_211 = arith.constant dense<0.000000e+00> : vector<64xf32>
    %181 = vector.multi_reduction <add>, %176, %cst_211 [0] : vector<128x64xf32> to vector<64xf32>
    %182 = vector.shape_cast %181 : vector<64xf32> to vector<1x64xf32>
    %183 = vector.shape_cast %182 : vector<1x64xf32> to vector<1x1x64xf32>
    %c0_i32_212 = arith.constant 0 : i32
    %184 = arith.cmpi eq, %arg1, %c0_i32_212 : i32
    %185 = arith.extui %184 : i1 to i32
    %c0_i32_213 = arith.constant 0 : i32
    %186 = arith.cmpi ne, %185, %c0_i32_213 : i32
    scf.if %186 {
      %cst_220 = arith.constant 0.000000e+00 : f32
      %190 = vector.broadcast %cst_220 : f32 to vector<1x1x64xf32>
      %c0_221 = arith.constant 0 : index
      %c0_222 = arith.constant 0 : index
      %c0_223 = arith.constant 0 : index
      %191 = vector.load %arg17[%c0_221, %c0_222, %c0_223] : memref<1x1x64xf32, #tpu.memory_space<vmem>>, vector<1x1x64xf32>
      tpu.vector_store %arg17[%c0_221, %c0_222, %c0_223], %190 {strides = array<i32>} : memref<1x1x64xf32, #tpu.memory_space<vmem>>, vector<1x1x64xf32>,
    } else {
    }
    %c0_214 = arith.constant 0 : index
    %c0_215 = arith.constant 0 : index
    %c0_216 = arith.constant 0 : index
    %187 = vector.load %arg17[%c0_214, %c0_215, %c0_216] : memref<1x1x64xf32, #tpu.memory_space<vmem>>, vector<1x1x64xf32>
    %188 = arith.addf %187, %183 : vector<1x1x64xf32>
    %c0_217 = arith.constant 0 : index
    %c0_218 = arith.constant 0 : index
    %c0_219 = arith.constant 0 : index
    %189 = vector.load %arg17[%c0_217, %c0_218, %c0_219] : memref<1x1x64xf32, #tpu.memory_space<vmem>>, vector<1x1x64xf32>
    tpu.vector_store %arg17[%c0_217, %c0_218, %c0_219], %188 {strides = array<i32>} : memref<1x1x64xf32, #tpu.memory_space<vmem>>, vector<1x1x64xf32>,
    return
  }
  func.func @transform_0(%arg0: i32, %arg1: i32) -> (i32, i32, i32, i32) {
    %c0_i32 = arith.constant 0 : i32
    %c0_i32_0 = arith.constant 0 : i32
    %c0_i32_1 = arith.constant 0 : i32
    return %arg0, %arg1, %c0_i32, %c0_i32_0 : i32, i32, i32, i32
  }
  func.func @transform_1(%arg0: i32, %arg1: i32) -> (i32, i32, i32, i32) {
    %c0_i32 = arith.constant 0 : i32
    %c0_i32_0 = arith.constant 0 : i32
    %c0_i32_1 = arith.constant 0 : i32
    return %arg0, %arg1, %c0_i32, %c0_i32_0 : i32, i32, i32, i32
  }
  func.func @transform_2(%arg0: i32, %arg1: i32) -> (i32, i32, i32, i32, i32) {
    %c0_i32 = arith.constant 0 : i32
    %c0_i32_0 = arith.constant 0 : i32
    %c0_i32_1 = arith.constant 0 : i32
    %c0_i32_2 = arith.constant 0 : i32
    return %arg0, %arg1, %c0_i32, %c0_i32_0, %c0_i32_1 : i32, i32, i32, i32, i32
  }
  func.func @transform_3(%arg0: i32, %arg1: i32) -> (i32, i32, i32, i32, i32) {
    %c0_i32 = arith.constant 0 : i32
    %c0_i32_0 = arith.constant 0 : i32
    %c0_i32_1 = arith.constant 0 : i32
    %c0_i32_2 = arith.constant 0 : i32
    return %arg0, %arg1, %c0_i32, %c0_i32_0, %c0_i32_1 : i32, i32, i32, i32, i32
  }
  func.func @transform_4(%arg0: i32, %arg1: i32) -> (i32, i32, i32) {
    %c0_i32 = arith.constant 0 : i32
    %c0_i32_0 = arith.constant 0 : i32
    %c0_i32_1 = arith.constant 0 : i32
    return %arg0, %c0_i32, %c0_i32_0 : i32, i32, i32
  }
  func.func @transform_5(%arg0: i32, %arg1: i32) -> (i32, i32, i32, i32) {
    %c0_i32 = arith.constant 0 : i32
    %c0_i32_0 = arith.constant 0 : i32
    %c0_i32_1 = arith.constant 0 : i32
    %c0_i32_2 = arith.constant 0 : i32
    %c0_i32_3 = arith.constant 0 : i32
    return %c0_i32, %c0_i32_0, %c0_i32_1, %c0_i32_2 : i32, i32, i32, i32
  }
  func.func @transform_6(%arg0: i32, %arg1: i32) -> (i32, i32) {
    %c0_i32 = arith.constant 0 : i32
    %c0_i32_0 = arith.constant 0 : i32
    %c0_i32_1 = arith.constant 0 : i32
    return %c0_i32, %c0_i32_0 : i32, i32
  }
  func.func @transform_7(%arg0: i32, %arg1: i32) -> (i32, i32, i32, i32) {
    %c0_i32 = arith.constant 0 : i32
    %c0_i32_0 = arith.constant 0 : i32
    %c0_i32_1 = arith.constant 0 : i32
    %c0_i32_2 = arith.constant 0 : i32
    %c0_i32_3 = arith.constant 0 : i32
    return %c0_i32, %c0_i32_0, %c0_i32_1, %c0_i32_2 : i32, i32, i32, i32
  }
  func.func @transform_8(%arg0: i32, %arg1: i32) -> (i32, i32) {
    %c0_i32 = arith.constant 0 : i32
    %c0_i32_0 = arith.constant 0 : i32
    %c0_i32_1 = arith.constant 0 : i32
    return %c0_i32, %c0_i32_0 : i32, i32
  }
  func.func @transform_9(%arg0: i32, %arg1: i32) -> (i32, i32) {
    %c0_i32 = arith.constant 0 : i32
    %c0_i32_0 = arith.constant 0 : i32
    %c0_i32_1 = arith.constant 0 : i32
    return %c0_i32, %c0_i32_0 : i32, i32
  }
  func.func @transform_10(%arg0: i32, %arg1: i32) -> (i32, i32) {
    %c0_i32 = arith.constant 0 : i32
    %c0_i32_0 = arith.constant 0 : i32
    %c0_i32_1 = arith.constant 0 : i32
    return %c0_i32, %c0_i32_0 : i32, i32
  }
  func.func @transform_11(%arg0: i32, %arg1: i32) -> (i32, i32) {
    %c0_i32 = arith.constant 0 : i32
    %c0_i32_0 = arith.constant 0 : i32
    %c0_i32_1 = arith.constant 0 : i32
    return %c0_i32, %c0_i32_0 : i32, i32
  }
  func.func @transform_12(%arg0: i32, %arg1: i32) -> (i32, i32) {
    %c0_i32 = arith.constant 0 : i32
    %c0_i32_0 = arith.constant 0 : i32
    %c0_i32_1 = arith.constant 0 : i32
    return %c0_i32, %c0_i32_0 : i32, i32
  }
  func.func @transform_13(%arg0: i32, %arg1: i32) -> (i32, i32, i32, i32) {
    %c0_i32 = arith.constant 0 : i32
    %c0_i32_0 = arith.constant 0 : i32
    %c0_i32_1 = arith.constant 0 : i32
    return %arg0, %arg1, %c0_i32, %c0_i32_0 : i32, i32, i32, i32
  }
  func.func @transform_14(%arg0: i32, %arg1: i32) -> (i32, i32, i32, i32) {
    %c0_i32 = arith.constant 0 : i32
    %c0_i32_0 = arith.constant 0 : i32
    %c0_i32_1 = arith.constant 0 : i32
    return %arg0, %arg1, %c0_i32, %c0_i32_0 : i32, i32, i32, i32
  }
  func.func @transform_15(%arg0: i32, %arg1: i32) -> (i32, i32, i32) {
    %c0_i32 = arith.constant 0 : i32
    %c0_i32_0 = arith.constant 0 : i32
    %c0_i32_1 = arith.constant 0 : i32
    return %arg0, %c0_i32, %c0_i32_0 : i32, i32, i32
  }
}

</mosaic_0001>

<bundles_post_ra>
// kernel: sspn_forward.5
= control target key start
LH: loop header
LB: loop body
LE: loop exit
PB: predicated region body
PF: predicated region fallthrough
CT: control target
= control target key end

     0   :  { %9 = vsyncpa [#allocation3], 0  ;;  %s1102_s0 = inlined_call_operand.vmem [shape: f32[2,16,16,64], index: 0, kind: input, shape index: {}]   ;;  %s1103_s1 = inlined_call_operand.vmem [shape: f32[2,16,16,64], index: 1, kind: input, shape index: {}]   ;;  %s1104_s2 = inlined_call_operand.vmem [shape: f32[2,1,64], index: 2, kind: input, shape index: {}]   ;;  %s1105_s3 = inlined_call_operand.vmem [shape: f32[2,16,16,64], index: 3, kind: input, shape index: {}]   ;;  %s1106_s4 = inlined_call_operand.hbm [shape: f32[2,16,16,64], index: 4, kind: output, shape index: {}]  }
   0x1   :  { %11 = vsyncpa [#allocation3 + $0x1], 0  ;;  %s835_s15 = smov 0   ;;  %s837_s16 = smov 0  }
   0x2   :  { %s839_s17 = smov 0   ;;  %s841_s18 = smov 0  }
   0x3   :  { %s843_s19 = smov 0   ;;  %s845_s20 = smov 0  }
   0x4   :  { %s847_s21 = smov 0   ;;  %s849_s22 = smov 0  }
   0x5 LB: > { %s611_s23 = sadd.s32 4294967295, %s805_s22   ;;  %s612_s24 = sadd.s32 4294967294, %s805_s22   ;;  %s805_s22 = sphi %s849_s22, %s17_s22   ;;  %s801_s21 = sphi %s847_s21, %s1121_s21   ;;  %s797_s20 = sphi %s845_s20, %s1120_s20   ;;  %s793_s19 = sphi %s843_s19, %s1119_s19   ;;  %s789_s18 = sphi %s841_s18, %s1118_s18   ;;  %s785_s17 = sphi %s839_s17, %s1117_s17   ;;  %s781_s16 = sphi %s837_s16, %s1116_s16   ;;  %s777_s15 = sphi %s835_s15, %s1115_s15  }
   0x6   : > { %s26_s25 = sadd.s32 1, %s797_s20  ;;  %s29_s26 = sadd.s32 1, %s801_s21 }
   0x7   : > { %p27_p0 = scmp.ge.s32.totalorder %s26_s25, 2  ;;  %p158_p1 = scmp.ne.s32.totalorder %s785_s17, %s781_s16 }
   0x8   : > { %p159_p2 = scmp.eq.s32.totalorder %s611_s23, 3  ;;  %p164_p5 = scmp.ne.s32.totalorder %s781_s16, %s777_s15 }
   0x9   : > { %s1123_s25 = smov (%p27_p0, %s26_s25), 0  ;;  %s1125_s26 = smov (!%p27_p0, %s29_s26), %s801_s21 }
   0xa   : > { %1109 = sst [smem:[#allocation5_spill]] %s1123_s25  ;;  %s144_s27 = ssub.s32 %s797_s20, %s1123_s25 }
   0xb   : > { %p886_p3 = por %p159_p2, %p158_p1  ;;  %p31_p4 = scmp.ge.s32.totalorder %s1125_s26, 2 }
   0xc   : > { %p165_p6 = scmp.eq.s32.totalorder %s612_s24, 3  ;;  %p615_p7 = scmp.ge.s32.totalorder %s805_s22, 1 }
   0xd   : > { %s1127_s26 = smov (%p31_p4, %s1125_s26), 0  ;;  %p231_p9 = scmp.lt.s32.totalorder %s805_s22, 5 }
   0xe   : > { %1111 = sst [smem:[#allocation6_spill]] %s1127_s26  ;;  %p895_p8 = por %p165_p6, %p164_p5 }
   0xf   : > { %s143_s30 = ssub.s32 %s801_s21, %s1127_s26  ;;  %s148_s5 = sadd.s32 1, %s785_s17 }
  0x10   : > { %s145_s6 = sor.u32 %s144_s27, %s143_s30  ;;  %p232_p10 = pnand %p615_p7, %p231_p9 }
  0x11   : > { %p146_p11 = scmp.eq.s32.totalorder %s145_s6, 0  ;;  %s617_s8 = sshll.u32 (!%p232_p10), %s789_s18, 3  ;;  %vm441_vm0 = vcmask (!%p232_p10), 523264  }
  0x12   : > { %235 = sbr.rel (%p232_p10) target bundleno = 72 (0x48), region = 36  ;;  %p286_p12 = scmp.lt.s32.totalorder (!%p232_p10), %s793_s19, 1 }
  0x13   : > { %s904_s7 = scalar_select %p146_p11, %s785_s17, %s148_s5  }
  0x14   : > { %p288_p13 = scmp.lt.s32.totalorder (!%p232_p10), %s617_s8, 15  ;;  %s807_s6 = smov (!%p232_p10), [#allocation2]  }
  0x19   : > { %s287_s9 = scalar_select %p286_p12, %s793_s19, 1 }
  0x1a   : > { %s1129_s8 = smov (!%p288_p13, %s617_s8), 15 }
  0x1b   : > { %s619_s10 = sshll.u32 %s287_s9, 5  ;;  %s309_s13 = scalar_lea.vmem %s1104_s2, %s287_s9 }
  0x1c   : > { %s618_s14 = sshll.u32 %s1129_s8, 1  ;;  %v912_v0 = vld [vmem:[%s309_s13] ss:$0 sm:$0xff]  ;;  %s282_s8 = sand.u32 1, %s781_s16  }
  0x1d   : > { %s292_s23 = sadd.s32 %s619_s10, %s618_s14  ;;  %s938_s26 = sshll.u32 %s282_s8, 7 }
  0x1e   : > { %s620_s24 = sshll.u32 %s292_s23, 3  ;;  %s964_s12 = scalar_lea.vmem [#allocation2], %s938_s26 }
  0x1f   : > { %s917_s5 = scalar_lea.vmem %s1102_s0, %s620_s24  ;;  %s922_s25 = scalar_lea.vmem %s1103_s1, %s620_s24 }
  0x20   : > { %v339_v1 = vld [vmem:[%s922_s25] sm:$0xff]  ;;  %s929_s11 = scalar_lea.vmem %s1105_s3, %s620_s24  ;;  %v340_v3 = vld [vmem:[%s922_s25 + $0x8] sm:$0xff]  ;;  %v341_v6 = vld [vmem:[%s922_s25 + $0x10] sm:$0xff]  ;;  %s637_s13 = sshll.u32 %s789_s18, 4 }
  0x21   : > { %v361_v2 = vmul.f32 %v912_v0, %v339_v1  ;;  %v323_v4 = vld [vmem:[%s917_s5] sm:$0xff]  ;;  %v362_v5 = vmul.f32 %v912_v0, %v340_v3  ;;  %v324_v8 = vld [vmem:[%s917_s5 + $0x8] sm:$0xff]  ;;  %v363_v9 = vmul.f32 %v912_v0, %v341_v6  ;;  %v342_v10 = vld [vmem:[%s922_s25 + $0x18] sm:$0xff]  ;;  %s633_s14 = sshll.u32 %s793_s19, 5  ;;  %s1050_s30 = scalar_lea.sflag [#allocation3], %s282_s8 }
  0x22   : > { %v409_v11 = vld [vmem:[%s929_s11] sm:$0xff]  ;;  %v325_v13 = vld [vmem:[%s917_s5 + $0x10] sm:$0xff]  ;;  %v364_v14 = vmul.f32 %v912_v0, %v342_v10  ;;  %v410_v17 = vld [vmem:[%s929_s11 + $0x8] sm:$0xff]  ;;  %s1012_s19 = sadd.s32 %s637_s13, %s633_s14  ;;  %s715_s9 = sshll.u32 %s807_s6, 4  ;;  %s716_s9 = int_to_ptr.vmem [resolvable:$false] %s715_s9 }
  0x23   : > { %v377_v7 = vmul.f32 0.1, %v361_v2  ;;  %v378_v12 = vmul.f32 0.1, %v362_v5  ;;  %v343_v15 = vld [vmem:[%s922_s25 + $0x20] sm:$0xff]  ;;  %v326_v19 = vld [vmem:[%s917_s5 + $0x18] sm:$0xff] }
  0x24   : > { %v379_v18 = vmul.f32 0.1, %v363_v9  ;;  %v365_v20 = vmul.f32 %v912_v0, %v343_v15  ;;  %v344_v21 = vld [vmem:[%s922_s25 + $0x28] sm:$0xff]  ;;  %v411_v23 = vld [vmem:[%s929_s11 + $0x10] sm:$0xff]  ;;  %v380_v24 = vmul.f32 0.1, %v364_v14 }
  0x25   : > { %v393_v16 = vadd.f32 %v377_v7, %v323_v4  ;;  %v394_v22 = vadd.f32 %v378_v12, %v324_v8  ;;  %v327_v25 = vld [vmem:[%s917_s5 + $0x20] sm:$0xff]  ;;  %v366_v26 = vmul.f32 %v912_v0, %v344_v21  ;;  %v345_v27 = vld [vmem:[%s922_s25 + $0x30] sm:$0xff]  ;;  %v412_v30 = vld [vmem:[%s929_s11 + $0x18] sm:$0xff]  ;;  %s634_s18 = sshll.u32 %s1012_s19, 7  ;;  %s717_s10 = scalar_lea.vmem %s716_s9, 4096 }
  0x26   : > { %v395_v29 = vadd.f32 %v379_v18, %v325_v13  ;;  %v381_v31 = vmul.f32 0.1, %v365_v20  ;;  %v328_v32 = vld [vmem:[%s917_s5 + $0x28] sm:$0xff]  ;;  %v367_v33 = vmul.f32 %v912_v0, %v345_v27  ;;  %v346_v34 = vld [vmem:[%s922_s25 + $0x38] sm:$0xff]  ;;  %v396_v36 = vadd.f32 %v380_v24, %v326_v19  ;;  %v413_v37 = vld [vmem:[%s929_s11 + $0x20] sm:$0xff]  ;;  %s1038_s27 = scalar_lea.hbm %s1106_s4, %s634_s18 }
  0x27   : > { %v425_v28 = vadd.f32 %v409_v11, %v393_v16  ;;  %v426_v35 = vadd.f32 %v410_v17, %v394_v22  ;;  %v382_v38 = vmul.f32 0.1, %v366_v26  ;;  %v329_v39 = vld [vmem:[%s917_s5 + $0x30] sm:$0xff]  ;;  %v368_v40 = vmul.f32 %v912_v0, %v346_v34  ;;  %v347_v41 = vld [vmem:[%s922_s25 + $0x40] sm:$0xff]  ;;  %v414_v44 = vld [vmem:[%s929_s11 + $0x28] sm:$0xff] }
  0x28   : > { %v427_v42 = vadd.f32 %v411_v23, %v395_v29  ;;  %v397_v43 = vadd.f32 %v381_v31, %v327_v25  ;;  %v383_v45 = vmul.f32 0.1, %v367_v33  ;;  %v330_v46 = vld [vmem:[%s917_s5 + $0x38] sm:$0xff]  ;;  %v369_v47 = vmul.f32 %v912_v0, %v347_v41  ;;  %v348_v48 = vld [vmem:[%s922_s25 + $0x48] sm:$0xff]  ;;  %v415_v51 = vld [vmem:[%s929_s11 + $0x30] sm:$0xff] }
  0x29   : > { %442 = vst.msk [vmem:[%s964_s12] sm:$0xff] %vm441_vm0, %v425_v28  ;;  %443 = vst.msk [vmem:[%s964_s12 + $0x8] sm:$0xff] %vm441_vm0, %v426_v35  ;;  %v428_v49 = vadd.f32 %v412_v30, %v396_v36  ;;  %v398_v50 = vadd.f32 %v382_v38, %v328_v32  ;;  %v384_v52 = vmul.f32 0.1, %v368_v40  ;;  %v331_v53 = vld [vmem:[%s917_s5 + $0x40] sm:$0xff]  ;;  %v370_v54 = vmul.f32 %v912_v0, %v348_v48  ;;  %v349_v55 = vld [vmem:[%s922_s25 + $0x50] sm:$0xff] }
  0x2a   : > { %444 = vst.msk [vmem:[%s964_s12 + $0x10] sm:$0xff] %vm441_vm0, %v427_v42  ;;  %v429_v56 = vadd.f32 %v413_v37, %v397_v43  ;;  %v399_v57 = vadd.f32 %v383_v45, %v329_v39  ;;  %v416_v58 = vld [vmem:[%s929_s11 + $0x38] sm:$0xff]  ;;  %v385_v59 = vmul.f32 0.1, %v369_v47  ;;  %v332_v60 = vld [vmem:[%s917_s5 + $0x48] sm:$0xff]  ;;  %v371_v61 = vmul.f32 %v912_v0, %v349_v55  ;;  %v417_v2 = vld [vmem:[%s929_s11 + $0x40] sm:$0xff] }
  0x2b   : > { %v350_v62 = vld [vmem:[%s922_s25 + $0x58] sm:$0xff]  ;;  %445 = vst.msk [vmem:[%s964_s12 + $0x18] sm:$0xff] %vm441_vm0, %v428_v49  ;;  %v430_v63 = vadd.f32 %v414_v44, %v398_v50  ;;  %v400_v1 = vadd.f32 %v384_v52, %v330_v46  ;;  %v386_v3 = vmul.f32 0.1, %v370_v54  ;;  %v333_v4 = vld [vmem:[%s917_s5 + $0x50] sm:$0xff]  ;;  %v351_v6 = vld [vmem:[%s922_s25 + $0x60] sm:$0xff] }
  0x2c   : > { %v372_v5 = vmul.f32 %v912_v0, %v350_v62  ;;  %446 = vst.msk [vmem:[%s964_s12 + $0x20] sm:$0xff] %vm441_vm0, %v429_v56  ;;  %v431_v7 = vadd.f32 %v415_v51, %v399_v57  ;;  %v401_v8 = vadd.f32 %v385_v59, %v331_v53  ;;  %v418_v9 = vld [vmem:[%s929_s11 + $0x48] sm:$0xff]  ;;  %v387_v10 = vmul.f32 0.1, %v371_v61  ;;  %v334_v11 = vld [vmem:[%s917_s5 + $0x58] sm:$0xff]  ;;  %v419_v16 = vld [vmem:[%s929_s11 + $0x50] sm:$0xff] }
  0x2d   : > { %v373_v12 = vmul.f32 %v912_v0, %v351_v6  ;;  %v352_v13 = vld [vmem:[%s922_s25 + $0x68] sm:$0xff]  ;;  %447 = vst.msk [vmem:[%s964_s12 + $0x28] sm:$0xff] %vm441_vm0, %v430_v63  ;;  %v432_v14 = vadd.f32 %v416_v58, %v400_v1  ;;  %v402_v15 = vadd.f32 %v386_v3, %v332_v60  ;;  %v335_v18 = vld [vmem:[%s917_s5 + $0x60] sm:$0xff]  ;;  %v353_v20 = vld [vmem:[%s922_s25 + $0x70] sm:$0xff] }
  0x2e   : > { %v388_v17 = vmul.f32 0.1, %v372_v5  ;;  %v374_v19 = vmul.f32 %v912_v0, %v352_v13  ;;  %448 = vst.msk [vmem:[%s964_s12 + $0x30] sm:$0xff] %vm441_vm0, %v431_v7  ;;  %v433_v21 = vadd.f32 %v417_v2, %v401_v8  ;;  %v403_v22 = vadd.f32 %v387_v10, %v333_v4  ;;  %v420_v23 = vld [vmem:[%s929_s11 + $0x58] sm:$0xff]  ;;  %v336_v25 = vld [vmem:[%s917_s5 + $0x68] sm:$0xff]  ;;  %v421_v30 = vld [vmem:[%s929_s11 + $0x60] sm:$0xff] }
  0x2f   : > { %v389_v24 = vmul.f32 0.1, %v373_v12  ;;  %v375_v26 = vmul.f32 %v912_v0, %v353_v20  ;;  %v354_v27 = vld [vmem:[%s922_s25 + $0x78] sm:$0xff]  ;;  %449 = vst.msk [vmem:[%s964_s12 + $0x38] sm:$0xff] %vm441_vm0, %v432_v14  ;;  %v434_v28 = vadd.f32 %v418_v9, %v402_v15  ;;  %v337_v32 = vld [vmem:[%s917_s5 + $0x70] sm:$0xff]  ;;  %v422_v36 = vld [vmem:[%s929_s11 + $0x68] sm:$0xff] }
  0x30   : > { %v404_v29 = vadd.f32 %v388_v17, %v334_v11  ;;  %v390_v31 = vmul.f32 0.1, %v374_v19  ;;  %v376_v33 = vmul.f32 %v912_v0, %v354_v27  ;;  %450 = vst.msk [vmem:[%s964_s12 + $0x40] sm:$0xff] %vm441_vm0, %v433_v21  ;;  %v435_v34 = vadd.f32 %v419_v16, %v403_v22  ;;  %v338_v38 = vld [vmem:[%s917_s5 + $0x78] sm:$0xff]  ;;  %v423_v41 = vld [vmem:[%s929_s11 + $0x70] sm:$0xff]  ;;  %s475_s25 = sshll.u32 %s964_s12, 4  ;;  %s1040_s25 = int_to_ptr.vmem [resolvable:$true] %s475_s25 }
  0x31   : > { %v405_v35 = vadd.f32 %v389_v24, %v335_v18  ;;  %v391_v37 = vmul.f32 0.1, %v375_v26  ;;  %451 = vst.msk [vmem:[%s964_s12 + $0x48] sm:$0xff] %vm441_vm0, %v434_v28  ;;  %v424_v44 = vld [vmem:[%s929_s11 + $0x78] sm:$0xff]  ;;  %s711_s5 = scalar_lea.vmem %s1040_s25, 2048  ;;  %p718_p4 = scmp.lt.s32.totalorder %s1040_s25, %s716_s9 }
  0x32   : > { %v436_v39 = vadd.f32 %v420_v23, %v404_v29  ;;  %v406_v40 = vadd.f32 %v390_v31, %v336_v25  ;;  %v392_v42 = vmul.f32 0.1, %v376_v33  ;;  %452 = vst.msk [vmem:[%s964_s12 + $0x50] sm:$0xff] %vm441_vm0, %v435_v34  ;;  %p712_p0 = scmp.ne.s32.totalorder %s1040_s25, %s711_s5  ;;  %p719_p5 = scmp.lt.s32.totalorder %s717_s10, %s711_s5 }
  0x33   : > { %v437_v0 = vadd.f32 %v421_v30, %v405_v35  ;;  %v407_v43 = vadd.f32 %v391_v37, %v337_v32 }
  0x34   : > { %453 = vst.msk [vmem:[%s964_s12 + $0x58] sm:$0xff] %vm441_vm0, %v436_v39  ;;  %v438_v45 = vadd.f32 %v422_v36, %v406_v40  ;;  %v408_v46 = vadd.f32 %v392_v42, %v338_v38  ;;  %p713_p1 = pnand %p712_p0, %p886_p3  ;;  %p720_p6 = por %p719_p5, %p718_p4 }
  0x35   : > { %454 = vst.msk [vmem:[%s964_s12 + $0x60] sm:$0xff] %vm441_vm0, %v437_v0  ;;  %v439_v47 = vadd.f32 %v423_v41, %v407_v43 }
  0x36   : > { %455 = vst.msk [vmem:[%s964_s12 + $0x68] sm:$0xff] %vm441_vm0, %v438_v45  ;;  %v440_v48 = vadd.f32 %v424_v44, %v408_v46  ;;  %p714_p2 = pneg %p713_p1 }
  0x37   : > { %456 = vst.msk [vmem:[%s964_s12 + $0x70] sm:$0xff] %vm441_vm0, %v439_v47 }
  0x38   : > { %457 = vst.msk [vmem:[%s964_s12 + $0x78] sm:$0xff] %vm441_vm0, %v440_v48  ;;  %p721_p7 = pnand %p720_p6, %p714_p2 }
  0x3a   : > { %724 = shalt.err (!%p721_p7)
}
  0x3b   : > { %s725_s8 = scalar_lea.hbm %s1038_s27, 2048  ;;  %s729_s12 = scalar_lea.hbm %s1106_s4, 8192 }
  0x3c   : > { %p726_p9 = scmp.ne.s32.totalorder %s1038_s27, %s725_s8  ;;  %p730_p12 = scmp.lt.u32.totalorder %s1038_s27, %s1106_s4 }
  0x3d   : > { %p731_p13 = scmp.lt.u32.totalorder %s729_s12, %s725_s8  ;;  %p733_p1 = scmp.lt.u32.totalorder %s725_s8, %s1038_s27 }
  0x3e   : > { %p727_p10 = pnand %p726_p9, %p886_p3 }
  0x3f   : > { %p732_p0 = por %p731_p13, %p730_p12 }
  0x40   : > { %p728_p11 = pneg %p727_p10 }
  0x41   : > { %p734_p2 = por %p733_p1, %p732_p0 }
  0x43   : > { %p735_p4 = pnand %p734_p2, %p728_p11 }
  0x45   : > { %738 = shalt.err (!%p735_p4)
}
  0x46   : > { %s808_s19 = smov 128   ;;  %s809_s18 = smov 8  }
  0x47   : > { %638 = dma.vmem_to_hbm [thread:$0]  (%p886_p3), %s1040_s25, 2048, %s1038_s27, %s1050_s30, %s808_s19, %s808_s19, %s809_s18  }
  0x48 PF: > { %p644_p5 = scmp.ge.s32.totalorder %s805_s22, 2  ;;  %s490_s23 = sand.u32 1, %s777_s15  }
  0x49   : > { %s491_s24 = scalar_lea.sflag [#allocation3], %s490_s23 }
  0x4a   : > { %p641_p6 = pnand %p644_p5, %p895_p8 }
  0x4c   : > { %772 = dma.done.wait (!%p641_p6), %s491_s24, 2048  }
  0x4d   : > { %774 = vsyncadd (!%p641_p6), %s491_s24, 4294965248  ;;  %s17_s22 = sadd.s32 1, %s805_s22   ;;  %s1113_s28 = sld [smem:[#allocation5_spill]] }
  0x4e   : > { %p14_p7 = scmp.ge.s32.totalorder %s17_s22, 6   ;;  %s1114_s25 = sld [smem:[#allocation6_spill]] }
  0x4f   : > { %s1115_s15 = smov %s781_s16  ;;  %s1116_s16 = smov %s785_s17 }
  0x50   : > { %s1117_s17 = smov %s904_s7  ;;  %s1118_s18 = smov %s797_s20 }
  0x51   : > { %s1119_s19 = smov %s801_s21  ;;  %16 = sbr.rel (!%p14_p7) target bundleno = 5 (0x5), region = 80 }
  0x53   : > { %s1120_s20 = smov %s1113_s28 }
  0x54   : > { %s1121_s21 = smov %s1114_s25 }
  0x58   :  { %496 = vsyncpa [#allocation3], 1 }
  0x59   :  { %498 = vsyncpa [#allocation3 + $0x1], 1 }

// kernel: sspn_forward.3
= control target key start
LH: loop header
LB: loop body
LE: loop exit
PB: predicated region body
PF: predicated region fallthrough
CT: control target
= control target key end

     0   :  { %s10081_s21 = smov 0   ;;  %s10083_s22 = smov 0   ;;  %s12577_s0 = inlined_call_operand.vmem [shape: f32[2,16,16,64], index: 0, kind: input, shape index: {}]   ;;  %s12578_s1 = inlined_call_operand.vmem [shape: f32[2,2,4,16,64], index: 1, kind: input, shape index: {}]   ;;  %s12579_s2 = inlined_call_operand.vmem [shape: bf16[3,3,64,64], index: 2, kind: input, shape index: {}]   ;;  %s12580_s3 = inlined_call_operand.vmem [shape: f32[1,64], index: 3, kind: input, shape index: {}]   ;;  %s12581_s4 = inlined_call_operand.vmem [shape: bf16[3,3,64,64], index: 4, kind: input, shape index: {}]   ;;  %s12582_s5 = inlined_call_operand.vmem [shape: f32[1,64], index: 5, kind: input, shape index: {}]   ;;  %s12583_s6 = inlined_call_operand.vmem [shape: bf16[64,64], index: 6, kind: input, shape index: {}]   ;;  %s12584_s7 = inlined_call_operand.vmem [shape: f32[1,64], index: 7, kind: input, shape index: {}]   ;;  %s12585_s8 = inlined_call_operand.vmem [shape: bf16[64,64], index: 8, kind: input, shape index: {}]   ;;  %s12586_s9 = inlined_call_operand.vmem [shape: f32[1,64], index: 9, kind: input, shape index: {}]   ;;  %s12587_s10 = inlined_call_operand.vmem [shape: f32[2,16,16,64], index: 10, kind: output, shape index: {0}]   ;;  %s12588_s11 = inlined_call_operand.vmem [shape: f32[2,16,16,64], index: 11, kind: output, shape index: {1}]   ;;  %s12589_s12 = inlined_call_operand.vmem [shape: f32[2,1,64], index: 12, kind: output, shape index: {2}]  }
   0x1   :  { %s10085_s23 = smov 0   ;;  %s10087_s24 = smov 0  }
   0x2   :  { %s10089_s25 = smov 0  }
   0x3 LB: > { %12604 = sst [smem:[#allocation4_spill]] %s10008_s24  ;;  %s32_s26 = sadd.s32 1, %s10004_s23  ;;  %s10012_s25 = sphi %s10089_s25, %s23_s25   ;;  %s10008_s24 = sphi %s10087_s24, %s12663_s24   ;;  %s10004_s23 = sphi %s10085_s23, %s12662_s23   ;;  %s10000_s22 = sphi %s10083_s22, %s12658_s22   ;;  %s9996_s21 = sphi %s10081_s21, %s12661_s21  }
   0x4   : > { %s35_s27 = sadd.s32 1, %s10008_s24  ;;  %p33_p0 = scmp.ge.s32.totalorder %s32_s26, 2 }
   0x5   : > { %p8030_p1 = scmp.ge.s32.totalorder %s10012_s25, 1  ;;  %p407_p2 = scmp.lt.s32.totalorder %s10012_s25, 5 }
   0x6   : > { %s12665_s26 = smov (%p33_p0, %s32_s26), 0  ;;  %s12667_s27 = smov (!%p33_p0, %s35_s27), %s10008_s24 }
   0x7   : > { %12605 = sst [smem:[#allocation5_spill]] %s12665_s26  ;;  %p408_p3 = pnand %p8030_p1, %p407_p2 }
   0x8   : > { %p37_p4 = scmp.ge.s32.totalorder %s12667_s27, 2 }
   0x9   : > { %411 = sbr.rel (%p408_p3) target bundleno = 1694 (0x69e), region = 60 }
   0xa   : > { %s12669_s27 = smov (%p37_p4, %s12667_s27), 0 }
   0xb   : > { %12606 = sst [smem:[#allocation6_spill]] %s12669_s27 }
  0x10   : > { %v9849_v0 = vld [vmem:[%s12579_s2 + $0x20] sm:$0xff]   ;;  %s8031_s30 = sshll.u32 %s9996_s21, 3  ;;  %v10120_v1 = vld [vmem:[%s12579_s2 + $0x28] sm:$0xff]   ;;  %p482_p5 = scmp.lt.s32.totalorder %s10000_s22, 1  ;;  %v10128_v2 = vld [vmem:[%s12579_s2 + $0x30] sm:$0xff]   ;;  %vm551_vm0 = vcmask 519168  }
  0x11   : > { %9003 = vmatprep.subr.bf16.mxu0 %v9849_v0  ;;  %p484_p6 = scmp.lt.s32.totalorder %s8031_s30, 15  ;;  %vm554_vm1 = vcmask 516096   ;;  %v10014_v3 = vmov 0   ;;  %p494_p7 = scmp.lt.s32.totalorder %s9996_s21, 1  ;;  %v9852_v4 = vld [vmem:[%s12579_s2 + $0x38] sm:$0xff]   ;;  %v10324_v13 = vld [vmem:[%s12579_s2] sm:$0xff]  }
  0x12   : > { %9004 = vmatpush3.bf16.msra.mxu0 %v9849_v0  ;;  %s12671_s22 = smov (!%p482_p5, %s10000_s22), 1  ;;  %552 = vst.msk [vmem:[#allocation2] sm:$0xf] %vm551_vm0, %v10014_v3  ;;  %553 = vst.msk [vmem:[#allocation2 + $0x4] sm:$0xf] %vm551_vm0, %v10014_v3  ;;  %vm1339_vm10 = vcmask 523264  }
  0x13   : > { %9005 = vmatprep.subr.bf16.mxu0 %v10120_v1  ;;  %s12673_s30 = smov (!%p484_p6, %s8031_s30), 15  ;;  %s8033_s17 = sshll.u32 %s12671_s22, 5  ;;  %555 = vst.msk [vmem:[#allocation2 + $0x8] sm:$0x1] %vm554_vm1, %v10014_v3  ;;  %4275 = vst.msk [vmem:[#allocation3 + $0x8] sm:$0x1] %vm554_vm1, %v10014_v3 }
  0x14   : > { %4302 = vst.msk [vmem:[#allocation3 + $0x74] sm:$0x1] %vm554_vm1, %v10014_v3  ;;  %558 = vst.msk [vmem:[#allocation2 + $0x14] sm:$0x1] %vm554_vm1, %v10014_v3  ;;  %s8032_s18 = sshll.u32 %s12673_s30, 1  ;;  %s10274_s29 = scalar_lea.vmem %s12589_s12, %s12671_s22  ;;  %vm1730_vm12 = vcmask 1042432  }
  0x15   : > { %556 = vst.msk [vmem:[#allocation2 + $0xc] sm:$0xf] %vm551_vm0, %v10014_v3  ;;  %557 = vst.msk [vmem:[#allocation2 + $0x10] sm:$0xf] %vm551_vm0, %v10014_v3  ;;  %s488_s19 = sadd.s32 %s8033_s17, %s8032_s18  ;;  %s8036_s16 = sshll.u32 %s12671_s22, 4  ;;  %vm1731_vm13 = vcmask 1046532  }
  0x16   : > { %559 = vst.msk [vmem:[#allocation2 + $0x18] sm:$0xf] %vm551_vm0, %v10014_v3  ;;  %560 = vst.msk [vmem:[#allocation2 + $0x1c] sm:$0xf] %vm551_vm0, %v10014_v3  ;;  %9006 = vmatpush3.bf16.msra.mxu0 %v10120_v1  ;;  %s8034_s15 = sshll.u32 %s488_s19, 3  ;;  %p8397_p8 = scmp.le.s32.totalorder %s9996_s21, 0 }
  0x17   : > { %561 = vst.msk [vmem:[#allocation2 + $0x20] sm:$0x1] %vm554_vm1, %v10014_v3  ;;  %564 = vst.msk [vmem:[#allocation2 + $0x2c] sm:$0x1] %vm554_vm1, %v10014_v3  ;;  %9007 = vmatprep.subr.bf16.mxu0 %v10128_v2  ;;  %s10284_s26 = scalar_lea.vmem %s12577_s0, %s8034_s15  ;;  %s10289_s18 = scalar_lea.vmem %s12587_s10, %s8034_s15  ;;  %vm601_vm2 = vsmask.f32 256 }
  0x18   : > { %562 = vst.msk [vmem:[#allocation2 + $0x24] sm:$0xf] %vm551_vm0, %v10014_v3  ;;  %563 = vst.msk [vmem:[#allocation2 + $0x28] sm:$0xf] %vm551_vm0, %v10014_v3  ;;  %s495_s20 = scalar_select %p494_p7, %s9996_s21, 1  ;;  %v10293_v5 = vld [vmem:[%s10284_s26] sm:$0xff] }
  0x19   : > { %565 = vst.msk [vmem:[#allocation2 + $0x30] sm:$0xf] %vm551_vm0, %v10014_v3  ;;  %566 = vst.msk [vmem:[#allocation2 + $0x34] sm:$0xf] %vm551_vm0, %v10014_v3  ;;  %v10296_v6 = vld [vmem:[%s10284_s26 + $0x8] sm:$0xff]  ;;  %v10299_v7 = vld [vmem:[%s10284_s26 + $0x10] sm:$0xff]  ;;  %s10305_s24 = scalar_lea.vmem %s12588_s11, %s8034_s15  ;;  %v8709_v8 = vpack.c.bf16 %v10293_v5, %v10293_v5 }
  0x1a   : > { %567 = vst.msk [vmem:[#allocation2 + $0x38] sm:$0x1] %vm554_vm1, %v10014_v3  ;;  %570 = vst.msk [vmem:[#allocation2 + $0x44] sm:$0x1] %vm554_vm1, %v10014_v3  ;;  %9008 = vmatpush3.bf16.msra.mxu0 %v10128_v2  ;;  %v8710_v9 = vpack.c.bf16 %v10296_v6, %v10296_v6  ;;  %v10312_v10 = vld [vmem:[%s10284_s26 + $0x18] sm:$0xff]  ;;  %v10316_v11 = vpack.c.bf16 %v10299_v7, %v10299_v7  ;;  %v10319_v12 = vld [vmem:[%s10284_s26 + $0x20] sm:$0xff] }
  0x1b   : > { %568 = vst.msk [vmem:[#allocation2 + $0x3c] sm:$0xf] %vm551_vm0, %v10014_v3  ;;  %569 = vst.msk [vmem:[#allocation2 + $0x40] sm:$0xf] %vm551_vm0, %v10014_v3  ;;  %9009 = vmatprep.subr.bf16.mxu0 %v9852_v4  ;;  %s8035_s19 = sshll.u32 %s495_s20, 3  ;;  %v10328_v14 = vpack.c.bf16 %v10312_v10, %v10312_v10  ;;  %v10332_v15 = vpack.c.bf16 %v10319_v12, %v10319_v12  ;;  %v779_v16 = vshrl.u32 %v8709_v8, 16 }
  0x1c   : > { %571 = vst.msk [vmem:[#allocation2 + $0x48] sm:$0xf] %vm551_vm0, %v10014_v3  ;;  %572 = vst.msk [vmem:[#allocation2 + $0x4c] sm:$0xf] %vm551_vm0, %v10014_v3  ;;  %s498_s14 = sadd.s32 %s8036_s16, %s8035_s19  ;;  %vm602_vm3 = vsmask.f32 4368 }
  0x1d   : > { %573 = vst.msk [vmem:[#allocation2 + $0x50] sm:$0x1] %vm554_vm1, %v10014_v3  ;;  %576 = vst.msk [vmem:[#allocation2 + $0x5c] sm:$0x1] %vm554_vm1, %v10014_v3  ;;  %v782_v17 = vshll.u32 %v8709_v8, 16  ;;  %v10335_v18 = vld [vmem:[%s10284_s26 + $0x28] sm:$0xff] }
  0x1e   : > { %574 = vst.msk [vmem:[#allocation2 + $0x54] sm:$0xf] %vm551_vm0, %v10014_v3  ;;  %575 = vst.msk [vmem:[#allocation2 + $0x58] sm:$0xf] %vm551_vm0, %v10014_v3  ;;  %s8037_s15 = sshll.u32 %s498_s14, 3  ;;  %v787_v19 = vshrl.u32 %v8710_v9, 16  ;;  %9010 = vmatpush3.bf16.msra.mxu0 %v9852_v4  ;;  %v10354_v31 = vpack.c.bf16 %v10335_v18, %v10335_v18 }
  0x1f   : > { %577 = vst.msk [vmem:[#allocation2 + $0x60] sm:$0xf] %vm551_vm0, %v10014_v3  ;;  %578 = vst.msk [vmem:[#allocation2 + $0x64] sm:$0xf] %vm551_vm0, %v10014_v3  ;;  %vm645_vm4 = vsmask.f32 7938  ;;  %s10341_s20 = scalar_lea.vmem %s12578_s1, %s8037_s15  ;;  %9031 = vmatprep.subr.bf16.mxu0 %v10324_v13 }
  0x20   : > { %579 = vst.msk [vmem:[#allocation2 + $0x68] sm:$0x1] %vm554_vm1, %v10014_v3  ;;  %582 = vst.msk [vmem:[#allocation2 + $0x74] sm:$0x1] %vm554_vm1, %v10014_v3  ;;  %v790_v20 = vshll.u32 %v8710_v9, 16  ;;  %v796_v21 = vshrl.u32 %v10316_v11, 16 }
  0x21   : > { %580 = vst.msk [vmem:[#allocation2 + $0x6c] sm:$0xf] %vm551_vm0, %v10014_v3  ;;  %581 = vst.msk [vmem:[#allocation2 + $0x70] sm:$0xf] %vm551_vm0, %v10014_v3  ;;  %v781_v22 = vrot.slane %v779_v16, 7  ;;  %v799_v23 = vshll.u32 %v10316_v11, 16 }
  0x22   : > { %583 = vst.msk [vmem:[#allocation2 + $0x78] sm:$0xf] %vm551_vm0, %v10014_v3  ;;  %584 = vst.msk [vmem:[#allocation2 + $0x7c] sm:$0xf] %vm551_vm0, %v10014_v3  ;;  %v804_v24 = vshrl.u32 %v10328_v14, 16  ;;  %v807_v25 = vshll.u32 %v10328_v14, 16 }
  0x23   : > { %585 = vst.msk [vmem:[#allocation2 + $0x80] sm:$0x1] %vm554_vm1, %v10014_v3  ;;  %588 = vst.msk [vmem:[#allocation2 + $0x8c] sm:$0x1] %vm554_vm1, %v10014_v3  ;;  %v543_v26 = vld [vmem:[%s10341_s20] sm:$0xff]  ;;  %v544_v27 = vld [vmem:[%s10341_s20 + $0x8] sm:$0xff]  ;;  %v784_v37 = vor.u32 %v782_v17, %v781_v22 }
  0x24   : > { %586 = vst.msk [vmem:[#allocation2 + $0x84] sm:$0xf] %vm551_vm0, %v10014_v3  ;;  %587 = vst.msk [vmem:[#allocation2 + $0x88] sm:$0xf] %vm551_vm0, %v10014_v3  ;;  %v545_v28 = vld [vmem:[%s10341_s20 + $0x10] sm:$0xff]  ;;  %v789_v29 = vrot.slane %v787_v19, 7  ;;  %v8701_v33 = vpack.c.bf16 %v543_v26, %v543_v26  ;;  %v8702_v34 = vpack.c.bf16 %v544_v27, %v544_v27 }
  0x25   : > { %4273 = vst.msk [vmem:[#allocation3] sm:$0xf] %vm551_vm0, %v10014_v3  ;;  %4274 = vst.msk [vmem:[#allocation3 + $0x4] sm:$0xf] %vm551_vm0, %v10014_v3  ;;  %v10350_v30 = vrot.slane %v796_v21, 7  ;;  %v813_v32 = vshrl.u32 %v10332_v15, 16  ;;  %v8703_v36 = vpack.c.bf16 %v545_v28, %v545_v28 }
  0x26   : > { %4276 = vst.msk [vmem:[#allocation3 + $0xc] sm:$0xf] %vm551_vm0, %v10014_v3  ;;  %4277 = vst.msk [vmem:[#allocation3 + $0x10] sm:$0xf] %vm551_vm0, %v10014_v3  ;;  %v546_v35 = vld [vmem:[%s10341_s20 + $0x18] sm:$0xff]  ;;  %v785_v39 = vrot.slane %v781_v22, 4  ;;  %v792_v40 = vor.u32 %v790_v20, %v789_v29 }
  0x27   : > { %4278 = vst.msk [vmem:[#allocation3 + $0x14] sm:$0x1] %vm554_vm1, %v10014_v3  ;;  %4281 = vst.msk [vmem:[#allocation3 + $0x20] sm:$0x1] %vm554_vm1, %v10014_v3  ;;  %v8704_v38 = vpack.c.bf16 %v546_v35, %v546_v35  ;;  %v794_v41 = vrot.slane %v789_v29, 4  ;;  %v605_v44 = vshrl.u32 %v8701_v33, 16  ;;  %v801_v0 = vor.u32 %v799_v23, %v10350_v30 }
  0x28   : > { %4279 = vst.msk [vmem:[#allocation3 + $0x18] sm:$0xf] %vm551_vm0, %v10014_v3  ;;  %4280 = vst.msk [vmem:[#allocation3 + $0x1c] sm:$0xf] %vm551_vm0, %v10014_v3  ;;  %v939_v42 = vld [vmem:[#allocation2 + $0x18] sm:$0xf] }
  0x29   : > { %4282 = vst.msk [vmem:[#allocation3 + $0x24] sm:$0xf] %vm551_vm0, %v10014_v3  ;;  %4283 = vst.msk [vmem:[#allocation3 + $0x28] sm:$0xf] %vm551_vm0, %v10014_v3  ;;  %v608_v45 = vshll.u32 %v8701_v33, 16  ;;  %v613_v46 = vshrl.u32 %v8702_v34, 16 }
  0x2a   : > { %4284 = vst.msk [vmem:[#allocation3 + $0x2c] sm:$0x1] %vm554_vm1, %v10014_v3  ;;  %4287 = vst.msk [vmem:[#allocation3 + $0x38] sm:$0x1] %vm554_vm1, %v10014_v3  ;;  %v616_v47 = vshll.u32 %v8702_v34, 16  ;;  %v622_v50 = vshrl.u32 %v8703_v36, 16 }
  0x2b   : > { %4285 = vst.msk [vmem:[#allocation3 + $0x30] sm:$0xf] %vm551_vm0, %v10014_v3  ;;  %4286 = vst.msk [vmem:[#allocation3 + $0x34] sm:$0xf] %vm551_vm0, %v10014_v3  ;;  %v943_v48 = vld [vmem:[#allocation2 + $0x20] sm:$0x1] }
  0x2c   : > { %4288 = vst.msk [vmem:[#allocation3 + $0x3c] sm:$0xf] %vm551_vm0, %v10014_v3  ;;  %4289 = vst.msk [vmem:[#allocation3 + $0x40] sm:$0xf] %vm551_vm0, %v10014_v3  ;;  %v625_v51 = vshll.u32 %v8703_v36, 16  ;;  %v630_v52 = vshrl.u32 %v8704_v38, 16 }
  0x2d   : > { %4290 = vst.msk [vmem:[#allocation3 + $0x44] sm:$0x1] %vm554_vm1, %v10014_v3  ;;  %4293 = vst.msk [vmem:[#allocation3 + $0x50] sm:$0x1] %vm554_vm1, %v10014_v3  ;;  %v633_v53 = vshll.u32 %v8704_v38, 16  ;;  %v607_v54 = vrot.slane %v605_v44, 7 }
  0x2e   : > { %4291 = vst.msk [vmem:[#allocation3 + $0x48] sm:$0xf] %vm551_vm0, %v10014_v3  ;;  %4292 = vst.msk [vmem:[#allocation3 + $0x4c] sm:$0xf] %vm551_vm0, %v10014_v3  ;;  %v615_v55 = vrot.slane %v613_v46, 7  ;;  %v624_v61 = vrot.slane %v622_v50, 7 }
  0x2f   : > { %4294 = vst.msk [vmem:[#allocation3 + $0x54] sm:$0xf] %vm551_vm0, %v10014_v3  ;;  %4295 = vst.msk [vmem:[#allocation3 + $0x58] sm:$0xf] %vm551_vm0, %v10014_v3  ;;  %v647_v59 = vld [vmem:[#allocation2] sm:$0xf]  ;;  %v610_v1 = vor.u32 %v608_v45, %v607_v54 }
  0x30   : > { %4296 = vst.msk [vmem:[#allocation3 + $0x5c] sm:$0x1] %vm554_vm1, %v10014_v3  ;;  %4299 = vst.msk [vmem:[#allocation3 + $0x68] sm:$0x1] %vm554_vm1, %v10014_v3  ;;  %v653_v60 = vld [vmem:[#allocation2 + $0x8] sm:$0x1]  ;;  %v627_v11 = vor.u32 %v625_v51, %v624_v61 }
  0x31   : > { %4297 = vst.msk [vmem:[#allocation3 + $0x60] sm:$0xf] %vm551_vm0, %v10014_v3  ;;  %4298 = vst.msk [vmem:[#allocation3 + $0x64] sm:$0xf] %vm551_vm0, %v10014_v3  ;;  %v632_v62 = vrot.slane %v630_v52, 7  ;;  %v611_v2 = vrot.slane %v607_v54, 4 }
  0x32   : > { %4300 = vst.msk [vmem:[#allocation3 + $0x6c] sm:$0xf] %vm551_vm0, %v10014_v3  ;;  %4301 = vst.msk [vmem:[#allocation3 + $0x70] sm:$0xf] %vm551_vm0, %v10014_v3  ;;  %v618_v3 = vor.u32 %v616_v47, %v615_v55  ;;  %v620_v4 = vrot.slane %v615_v55, 4  ;;  %v628_v16 = vrot.slane %v624_v61, 4 }
  0x33   : > { %12607 = vst [vmem:[#allocation7_spill] sm:$0xff] %v10296_v6  ;;  %12608 = vst [vmem:[#allocation8_spill] sm:$0xff] %v10319_v12  ;;  %v656_v8 = vld [vmem:[#allocation2 + $0xc] sm:$0xf]  ;;  %v660_v9 = vld [vmem:[#allocation2 + $0x14] sm:$0x1]  ;;  %v635_v17 = vor.u32 %v633_v53, %v632_v62 }
  0x34   : > { %12609 = vst [vmem:[#allocation9_spill] sm:$0xff] %v10335_v18  ;;  %vm10360_vm5 = vmor %vm601_vm2, %vm602_vm3  ;;  %v637_v19 = vrot.slane %v632_v62, 4  ;;  %v946_v20 = vld [vmem:[#allocation2 + $0x24] sm:$0xf]  ;;  %v802_v26 = vrot.slane %v10350_v30, 4  ;;  %v10392_v27 = vld [vmem:[%s10284_s26 + $0x30] sm:$0xff] }
  0x35   : > { %vm10366_vm6 = vmand %vm551_vm0, %vm645_vm4  ;;  %v793_v57 = vsel %vm10360_vm5, %v785_v39, %v792_v40  ;;  %v619_v21 = vsel %vm10360_vm5, %v611_v2, %v618_v3  ;;  %12616 = vst [vmem:[#allocation10_spill] sm:$0xff] %v10392_v27  ;;  %v636_v28 = vsel %vm10360_vm5, %v628_v16, %v635_v17  ;;  %v806_v34 = vrot.slane %v804_v24, 7  ;;  %v10404_v35 = vld [vmem:[%s10284_s26 + $0x38] sm:$0xff]  ;;  %v950_v36 = vld [vmem:[#allocation2 + $0x2c] sm:$0x1] }
  0x36   : > { %vm10372_vm7 = vmand %vm554_vm1, %vm601_vm2  ;;  %v940_v58 = vsel %vm10366_vm6, %v784_v37, %v939_v42  ;;  %942 = vst.msk [vmem:[#allocation2 + $0x1c] sm:$0xf] %vm551_vm0, %v793_v57  ;;  %v648_v22 = vsel %vm10366_vm6, %v610_v1, %v647_v59  ;;  %v657_v29 = vsel %vm10366_vm6, %v627_v11, %v656_v8  ;;  %v947_v30 = vsel %vm10366_vm6, %v801_v0, %v946_v20  ;;  %v953_v42 = vld [vmem:[#allocation2 + $0x30] sm:$0xf]  ;;  %v10421_v45 = vld [vmem:[%s10284_s26 + $0x40] sm:$0xff] }
  0x37   : > { %941 = vst [vmem:[#allocation2 + $0x18] sm:$0xf] %v940_v58  ;;  %v944_v63 = vsel %vm10372_vm7, %v794_v41, %v943_v48  ;;  %v654_v23 = vsel %vm10372_vm7, %v620_v4, %v653_v60  ;;  %649 = vst [vmem:[#allocation2] sm:$0xf] %v648_v22  ;;  %v661_v33 = vsel %vm10372_vm7, %v637_v19, %v660_v9  ;;  %v815_v37 = vrot.slane %v813_v32, 7  ;;  %v10424_v32 = vld [vmem:[%s10284_s26 + $0x48] sm:$0xff] }
  0x38   : > { %945 = vst [vmem:[#allocation2 + $0x20] sm:$0x1] %v944_v63  ;;  %650 = vst.msk [vmem:[#allocation2 + $0x4] sm:$0xf] %vm551_vm0, %v619_v21  ;;  %v816_v38 = vshll.u32 %v10332_v15, 16  ;;  %v821_v39 = vshrl.u32 %v10354_v31, 16  ;;  %v809_v24 = vor.u32 %v807_v25, %v806_v34  ;;  %v10418_v44 = vpack.c.bf16 %v10392_v27, %v10392_v27 }
  0x39   : > { %655 = vst [vmem:[#allocation2 + $0x8] sm:$0x1] %v654_v23  ;;  %12617 = vst [vmem:[#allocation11_spill] sm:$0xff] %v10404_v35  ;;  %vm1033_vm8 = vsmask.f32 3328  ;;  %v811_v40 = vrot.slane %v806_v34, 4  ;;  %v10466_v8 = vpack.c.bf16 %v10421_v45, %v10421_v45  ;;  %v10470_v9 = vpack.c.bf16 %v10424_v32, %v10424_v32 }
  0x3a   : > { %658 = vst [vmem:[#allocation2 + $0xc] sm:$0xf] %v657_v29  ;;  %659 = vst.msk [vmem:[#allocation2 + $0x10] sm:$0xf] %vm551_vm0, %v636_v28  ;;  %vm1034_vm9 = vsmask.f32 7440  ;;  %v818_v14 = vor.u32 %v816_v38, %v815_v37  ;;  %v810_v55 = vsel %vm10360_vm5, %v802_v26, %v809_v24 }
  0x3b   : > { %662 = vst [vmem:[#allocation2 + $0x14] sm:$0x1] %v661_v33  ;;  %948 = vst [vmem:[#allocation2 + $0x24] sm:$0xf] %v947_v30  ;;  %v824_v41 = vshll.u32 %v10354_v31, 16  ;;  %v819_v25 = vrot.slane %v815_v37, 4  ;;  %v10434_v31 = vpack.c.bf16 %v10404_v35, %v10404_v35  ;;  %v951_v57 = vsel %vm10372_vm7, %v811_v40, %v950_v36 }
  0x3c   : > { %12618 = vst [vmem:[#allocation12_spill] sm:$0xff] %v10421_v45  ;;  %12619 = vst [vmem:[#allocation13_spill] sm:$0xff] %v10424_v32  ;;  %v10430_v47 = vrot.slane %v821_v39, 7  ;;  %v10449_v59 = vld [vmem:[%s10284_s26 + $0x50] sm:$0xff]  ;;  %v954_v4 = vsel %vm10366_vm6, %v818_v14, %v953_v42 }
  0x3d   : > { %v10428_v46 = vld [vmem:[#allocation2 + $0x1c] sm:$0xf]  ;;  %12620 = vst [vmem:[#allocation14_spill] sm:$0xff] %v10449_v59  ;;  %949 = vst.msk [vmem:[#allocation2 + $0x28] sm:$0xf] %vm551_vm0, %v810_v55  ;;  %v10487_v29 = vpack.c.bf16 %v10449_v59, %v10449_v59 }
  0x3e   : > { %v10426_v15 = vld [vmem:[#allocation2 + $0x18] sm:$0xf]  ;;  %v1094_v52 = vshll.u32 %v10428_v46, 16  ;;  %v1098_v53 = vshrl.u32 %v10428_v46, 16  ;;  %v826_v58 = vor.u32 %v824_v41, %v10430_v47  ;;  %952 = vst [vmem:[#allocation2 + $0x2c] sm:$0x1] %v951_v57  ;;  %vm10496_vm11 = vmor %vm1033_vm8, %vm1034_vm9 }
  0x3f   : > { %v10436_v48 = vld [vmem:[#allocation2 + $0x20] sm:$0x1]  ;;  %v1085_v50 = vshrl.u32 %v10426_v15, 16  ;;  %v1088_v51 = vshll.u32 %v10426_v15, 16  ;;  %v10456_v1 = vld [vmem:[#allocation2 + $0x4] sm:$0xf]  ;;  %vm10735_vm14 = vmor %vm1730_vm12, %vm1731_vm13 }
  0x40   : > { %v1104_v54 = vshll.u32 %v10436_v48, 16  ;;  %v10451_v62 = vrot.slane %v1094_v52, 5  ;;  %v1100_v63 = vrot.slane %v1098_v53, 4  ;;  %v10454_v0 = vld [vmem:[#allocation2] sm:$0xf]  ;;  %v827_v3 = vsel %vm10360_vm5, %v819_v25, %v826_v58 }
  0x41   : > { %v1087_v60 = vrot.slane %v1085_v50, 4  ;;  %v1090_v61 = vrot.slane %v1088_v51, 5  ;;  %v10458_v2 = vld [vmem:[#allocation2 + $0x8] sm:$0x1]  ;;  %v1037_v11 = vshrl.u32 %v10454_v0, 16  ;;  %v1040_v16 = vshll.u32 %v10454_v0, 16 }
  0x42   : > { %v1046_v17 = vshll.u32 %v10456_v1, 16  ;;  %v1050_v19 = vshrl.u32 %v10456_v1, 16  ;;  %v10476_v20 = vld [vmem:[#allocation2 + $0xc] sm:$0xf]  ;;  %955 = vst [vmem:[#allocation2 + $0x30] sm:$0xf] %v954_v4  ;;  %v1101_v28 = vor.u32 %v1100_v63, %v10451_v62 }
  0x43   : > { %956 = vst.msk [vmem:[#allocation2 + $0x34] sm:$0xf] %vm551_vm0, %v827_v3  ;;  %v1056_v21 = vshll.u32 %v10458_v2, 16  ;;  %v10480_v22 = vld [vmem:[#allocation2 + $0x10] sm:$0xf]  ;;  %v1091_v26 = vor.u32 %v1090_v61, %v1087_v60  ;;  %v1039_v33 = vrot.slane %v1037_v11, 4 }
  0x44   : > { %v10482_v23 = vld [vmem:[#allocation2 + $0x14] sm:$0x1]  ;;  %v1042_v34 = vrot.slane %v1040_v16, 5  ;;  %v1048_v30 = vrot.slane %v1046_v17, 5  ;;  %v1052_v36 = vrot.slane %v1050_v19, 4  ;;  %v1061_v38 = vshrl.u32 %v10476_v20, 16 }
  0x45   : > { %v1058_v37 = vrot.slane %v1056_v21, 5  ;;  %v1064_v39 = vshll.u32 %v10476_v20, 16  ;;  %v1070_v24 = vshll.u32 %v10480_v22, 16  ;;  %v1074_v42 = vshrl.u32 %v10480_v22, 16  ;;  %v10501_v55 = vld [vmem:[#allocation2 + $0x24] sm:$0xf] }
  0x46   : > { %v1043_v40 = vor.u32 %v1042_v34, %v1039_v33  ;;  %v1053_v41 = vor.u32 %v1052_v36, %v1048_v30  ;;  %v1080_v14 = vshll.u32 %v10482_v23, 16  ;;  %v1063_v51 = vrot.slane %v1061_v38, 4  ;;  %v10504_v63 = vld [vmem:[#allocation2 + $0x28] sm:$0xf]  ;;  %v10506_v17 = vld [vmem:[#allocation2 + $0x2c] sm:$0x1] }
  0x47   : > { %v1066_v52 = vrot.slane %v1064_v39, 5  ;;  %v1072_v53 = vrot.slane %v1070_v24, 5  ;;  %v1076_v60 = vrot.slane %v1074_v42, 4  ;;  %v1092_v11 = vrot.slane %v1091_v26, 4 }
  0x48   : > { %v1044_v57 = vrot.slane %v1043_v40, 4  ;;  %v1054_v58 = vrot.slane %v1053_v41, 4  ;;  %v1082_v4 = vrot.slane %v1080_v14, 5  ;;  %v1102_v16 = vrot.slane %v1101_v28, 4 }
  0x49   : > { %v1067_v3 = vor.u32 %v1066_v52, %v1063_v51  ;;  %v1077_v33 = vor.u32 %v1076_v60, %v1072_v53  ;;  %v1106_v34 = vrot.slane %v1104_v54, 5  ;;  %v10514_v36 = vld [vmem:[#allocation2 + $0x30] sm:$0xf]  ;;  %v1097_v26 = vsel %vm10496_vm11, %v1092_v11, %v10451_v62  ;;  %v957_v60 = vld [vmem:[#allocation2 + $0x38] sm:$0x1] }
  0x4a   : > { %v1049_v19 = vsel %vm10496_vm11, %v1044_v57, %v1048_v30  ;;  %v1059_v21 = vsel %vm10496_vm11, %v1054_v58, %v1058_v37  ;;  %v1109_v28 = vshrl.u32 %v10501_v55, 16  ;;  %v1112_v37 = vshll.u32 %v10501_v55, 16  ;;  %v10524_v41 = vld [vmem:[#allocation2 + $0x34] sm:$0xf] }
  0x4b   : > { %v8078_v38 = vcombine.low %v1049_v19, %v1059_v21  ;;  %v1068_v39 = vrot.slane %v1067_v3, 4  ;;  %v1078_v24 = vrot.slane %v1077_v33, 4  ;;  %v1107_v30 = vsel %vm10496_vm11, %v1102_v16, %v1106_v34  ;;  %v9854_v16 = vld [vmem:[%s12579_s2 + $0x8] sm:$0xff]  }
  0x4c   : > { %v1118_v40 = vshll.u32 %v10504_v63, 16  ;;  %v8080_v42 = vcombine.low %v1097_v26, %v1107_v30  ;;  %v1111_v14 = vrot.slane %v1109_v28, 4  ;;  %v1122_v62 = vshrl.u32 %v10504_v63, 16 }
  0x4d   : > { %9011 = vmatprep.mubr.msk.bf16.mxu0 %vm1339_vm10, %v8078_v38  ;;  %v1073_v54 = vsel %vm10496_vm11, %v1068_v39, %v1072_v53  ;;  %v1083_v51 = vsel %vm10496_vm11, %v1078_v24, %v1082_v4  ;;  %v1114_v52 = vrot.slane %v1112_v37, 5  ;;  %v1128_v58 = vshll.u32 %v10506_v17, 16 }
  0x4e   : > { %v1120_v57 = vrot.slane %v1118_v40, 5  ;;  %v8079_v3 = vcombine.low %v1073_v54, %v1083_v51  ;;  %v1124_v11 = vrot.slane %v1122_v62, 4  ;;  %v828_v53 = vrot.slane %v10430_v47, 4  ;;  %v9855_v40 = vld [vmem:[%s12579_s2 + $0x10] sm:$0xff]  }
  0x4f   : > { %v1133_v19 = vshrl.u32 %v10514_v36, 16  ;;  %v1115_v21 = vor.u32 %v1114_v52, %v1111_v14  ;;  %v1130_v33 = vrot.slane %v1128_v58, 5  ;;  %v1136_v34 = vshll.u32 %v10514_v36, 16 }
  0x50   : > { %v1142_v4 = vshll.u32 %v10524_v41, 16  ;;  %9012 = vmatmul.mubr.msk.bf16.vlgmr.msra.gmra.mrb[0].mxu0 %vm1339_vm10, %v8079_v3  ;;  %v1125_v38 = vor.u32 %v1124_v11, %v1120_v57  ;;  %v958_v39 = vsel %vm10372_vm7, %v828_v53, %v957_v60  ;;  %v1146_v28 = vshrl.u32 %v10524_v41, 16  ;;  %v964_v3 = vld [vmem:[#allocation2 + $0x44] sm:$0x1] }
  0x51   : > { %v1135_v26 = vrot.slane %v1133_v19, 4  ;;  %9032 = vmatpush3.bf16.msra.mxu0 %v10324_v13  ;;  %9015 = vmatprep.mubr.msk.bf16.mxu0 %vm1339_vm10, %v8080_v42  ;;  %v1116_v47 = vrot.slane %v1115_v21, 4  ;;  %959 = vst [vmem:[#allocation2 + $0x38] sm:$0x1] %v958_v39  ;;  %v1138_v24 = vrot.slane %v1136_v34, 5  ;;  %v830_v37 = vshrl.u32 %v10418_v44, 16 }
  0x52   : > { %v10546_v30 = vrot.slane %v1142_v4, 5  ;;  %v1126_v54 = vrot.slane %v1125_v38, 4  ;;  %9033 = vmatprep.subr.bf16.mxu0 %v9854_v16  ;;  %v1148_v14 = vrot.slane %v1146_v28, 4  ;;  %v833_v62 = vshll.u32 %v10418_v44, 16  ;;  %v960_v42 = vld [vmem:[#allocation2 + $0x3c] sm:$0xf] }
  0x53   : > { %v838_v13 = vshrl.u32 %v10434_v31, 16  ;;  %v1121_v51 = vsel %vm10496_vm11, %v1116_v47, %v1120_v57  ;;  %v1139_v52 = vor.u32 %v1138_v24, %v1135_v26  ;;  %v832_v58 = vrot.slane %v830_v37, 7  ;;  %v10562_v21 = vld [vmem:[%s10284_s26 + $0x58] sm:$0xff]  ;;  %v10568_v39 = vld [vmem:[%s10284_s26 + $0x60] sm:$0xff]  ;;  %v967_v24 = vld [vmem:[#allocation2 + $0x48] sm:$0xf] }
  0x54   : > { %v841_v60 = vshll.u32 %v10434_v31, 16  ;;  %v1131_v11 = vsel %vm10496_vm11, %v1126_v54, %v1130_v33  ;;  %v1149_v53 = vor.u32 %v1148_v14, %v10546_v30  ;;  %v847_v44 = vshrl.u32 %v10466_v8, 16  ;;  %12623 = vst [vmem:[#allocation15_spill] sm:$0xff] %v10562_v21  ;;  %v9856_v57 = vld [vmem:[%s12579_s2 + $0x18] sm:$0xff]   ;;  %12624 = vst [vmem:[#allocation16_spill] sm:$0xff] %v10568_v39  ;;  %v10571_v37 = vld [vmem:[%s10284_s26 + $0x68] sm:$0xff] }
  0x55   : > { %v840_v19 = vrot.slane %v838_v13, 7  ;;  %v8081_v34 = vcombine.low %v1121_v51, %v1131_v11  ;;  %9034 = vmatpush3.bf16.msra.mxu0 %v9854_v16  ;;  %v1140_v4 = vrot.slane %v1139_v52, 4  ;;  %v835_v31 = vor.u32 %v833_v62, %v832_v58  ;;  %12625 = vst [vmem:[#allocation17_spill] sm:$0xff] %v10571_v37 }
  0x56   : > { %v836_v38 = vrot.slane %v832_v58, 4  ;;  %v1150_v33 = vrot.slane %v1149_v53, 4  ;;  %9035 = vmatprep.subr.bf16.mxu0 %v9855_v40  ;;  %v849_v47 = vrot.slane %v847_v44, 7  ;;  %v850_v14 = vshll.u32 %v10466_v8, 16  ;;  %v10591_v8 = vld [vmem:[%s12579_s2 + $0x40] sm:$0xff]  }
  0x57   : > { %v843_v26 = vor.u32 %v841_v60, %v840_v19  ;;  %v845_v28 = vrot.slane %v840_v19, 4  ;;  %v1145_v54 = vsel %vm10496_vm11, %v1140_v4, %v10546_v30  ;;  %v961_v16 = vsel %vm10366_vm6, %v835_v31, %v960_v42  ;;  %v971_v60 = vld [vmem:[#allocation2 + $0x50] sm:$0x1] }
  0x58   : > { %v855_v62 = vshrl.u32 %v10470_v9, 16  ;;  %9016 = vmatmul.mubr.msk.bf16.gmra.mrb[4].mxu0 %vm1339_vm10, %v8081_v34  ;;  %v10581_v13 = vld [vmem:[#allocation2 + $0x38] sm:$0x1]  ;;  %962 = vst [vmem:[#allocation2 + $0x3c] sm:$0xf] %v961_v16  ;;  %v853_v58 = vrot.slane %v849_v47, 4  ;;  %v852_v11 = vor.u32 %v850_v14, %v849_v47  ;;  %v8721_v44 = vpack.c.bf16 %v10568_v39, %v10568_v39 }
  0x59   : > { %v844_v51 = vsel %vm10360_vm5, %v836_v38, %v843_v26  ;;  %v965_v52 = vsel %vm10372_vm7, %v845_v28, %v964_v3  ;;  %v858_v30 = vshll.u32 %v10470_v9, 16  ;;  %v1152_v42 = vshll.u32 %v10581_v13, 16  ;;  %9036 = vmatpush3.bf16.msra.mxu0 %v9855_v40  ;;  %v974_v26 = vld [vmem:[#allocation2 + $0x54] sm:$0xf] }
  0x5a   : > { %963 = vst.msk [vmem:[#allocation2 + $0x40] sm:$0xf] %vm551_vm0, %v844_v51  ;;  %966 = vst [vmem:[#allocation2 + $0x44] sm:$0x1] %v965_v52  ;;  %v857_v53 = vrot.slane %v855_v62, 7  ;;  %v8720_v3 = vpack.c.bf16 %v10562_v21, %v10562_v21  ;;  %v864_v9 = vshrl.u32 %v10487_v29, 16  ;;  %9037 = vmatprep.subr.bf16.mxu0 %v9856_v57  ;;  %v10603_v34 = vpack.c.bf16 %v10571_v37, %v10571_v37 }
  0x5b   : > { %v867_v19 = vshll.u32 %v10487_v29, 16  ;;  %v1154_v4 = vrot.slane %v1152_v42, 5  ;;  %v968_v38 = vsel %vm10366_vm6, %v852_v11, %v967_v24  ;;  %v881_v29 = vshrl.u32 %v8721_v44, 16  ;;  %v10608_v14 = vld [vmem:[%s10284_s26 + $0x70] sm:$0xff] }
  0x5c   : > { %v860_v40 = vor.u32 %v858_v30, %v857_v53  ;;  %v862_v31 = vrot.slane %v857_v53, 4  ;;  %969 = vst [vmem:[#allocation2 + $0x48] sm:$0xf] %v968_v38  ;;  %v866_v28 = vrot.slane %v864_v9, 7  ;;  %v872_v47 = vshrl.u32 %v8720_v3, 16  ;;  %12626 = vst [vmem:[#allocation18_spill] sm:$0xff] %v10608_v14 }
  0x5d   : > { %v875_v16 = vshll.u32 %v8720_v3, 16  ;;  %v1155_v62 = vsel %vm10496_vm11, %v1150_v33, %v1154_v4  ;;  %9038 = vmatpush3.bf16.msra.mxu0 %v9856_v57  ;;  %v884_v30 = vshll.u32 %v8721_v44, 16  ;;  %v978_v3 = vld [vmem:[#allocation2 + $0x5c] sm:$0x1]  ;;  %v10620_v33 = vrot.slane %v881_v29, 7 }
  0x5e   : > { %v861_v51 = vsel %vm10360_vm5, %v853_v58, %v860_v40  ;;  %v972_v52 = vsel %vm10372_vm7, %v862_v31, %v971_v60  ;;  %v8082_v24 = vcombine.low %v1145_v54, %v1155_v62  ;;  %v869_v42 = vor.u32 %v867_v19, %v866_v28  ;;  %9059 = vmatprep.subr.bf16.mxu0 %v10591_v8  ;;  %v981_v38 = vld [vmem:[#allocation2 + $0x60] sm:$0xf]  ;;  %v10641_v62 = vld [vmem:[%s10284_s26 + $0x78] sm:$0xff] }
  0x5f   : > { %970 = vst.msk [vmem:[#allocation2 + $0x4c] sm:$0xf] %vm551_vm0, %v861_v51  ;;  %973 = vst [vmem:[#allocation2 + $0x50] sm:$0x1] %v972_v52  ;;  %v870_v11 = vrot.slane %v866_v28, 4  ;;  %v874_v53 = vrot.slane %v872_v47, 7  ;;  %v10626_v54 = vpack.c.bf16 %v10608_v14, %v10608_v14 }
  0x60   : > { %v10618_v9 = vld [vmem:[#allocation2 + $0x3c] sm:$0xf]  ;;  %v889_v58 = vshrl.u32 %v10603_v34, 16  ;;  %v892_v57 = vshll.u32 %v10603_v34, 16  ;;  %9019 = vmatprep.mubr.msk.bf16.mxu0 %vm1339_vm10, %v8082_v24  ;;  %v975_v31 = vsel %vm10366_vm6, %v869_v42, %v974_v26  ;;  %12627 = vst [vmem:[#allocation19_spill] sm:$0xff] %v10641_v62  ;;  %v1759_v18 = vrot.slane %v10506_v17, 5 }
  0x61   : > { %v10629_v60 = vld [vmem:[#allocation2 + $0x40] sm:$0xf]  ;;  %v10631_v19 = vld [vmem:[#allocation2 + $0x44] sm:$0x1]  ;;  %v1157_v44 = vshrl.u32 %v10618_v9, 16  ;;  %v1160_v4 = vshll.u32 %v10618_v9, 16  ;;  %v877_v40 = vor.u32 %v875_v16, %v874_v53  ;;  %v886_v16 = vor.u32 %v884_v30, %v10620_v33 }
  0x62   : > { %v1166_v34 = vshll.u32 %v10629_v60, 16  ;;  %v1170_v28 = vshrl.u32 %v10629_v60, 16  ;;  %v1176_v47 = vshll.u32 %v10631_v19, 16  ;;  %v879_v29 = vrot.slane %v874_v53, 4  ;;  %976 = vst [vmem:[#allocation2 + $0x54] sm:$0xf] %v975_v31 }
  0x63   : > { %v1159_v51 = vrot.slane %v1157_v44, 4  ;;  %v1162_v52 = vrot.slane %v1160_v4, 5  ;;  %v878_v24 = vsel %vm10360_vm5, %v870_v11, %v877_v40  ;;  %v10646_v61 = vld [vmem:[#allocation2 + $0x48] sm:$0xf]  ;;  %v887_v11 = vrot.slane %v10620_v33, 4 }
  0x64   : > { %v1168_v50 = vrot.slane %v1166_v34, 5  ;;  %v1172_v26 = vrot.slane %v1170_v28, 4  ;;  %v1178_v42 = vrot.slane %v1176_v47, 5  ;;  %977 = vst.msk [vmem:[#allocation2 + $0x58] sm:$0xf] %vm551_vm0, %v878_v24  ;;  %v979_v53 = vsel %vm10372_vm7, %v879_v29, %v978_v3 }
  0x65   : > { %v1163_v31 = vor.u32 %v1162_v52, %v1159_v51  ;;  %v1181_v37 = vshrl.u32 %v10646_v61, 16  ;;  %v1184_v44 = vshll.u32 %v10646_v61, 16  ;;  %980 = vst [vmem:[#allocation2 + $0x5c] sm:$0x1] %v979_v53  ;;  %v891_v34 = vrot.slane %v889_v58, 7 }
  0x66   : > { %v1173_v4 = vor.u32 %v1172_v26, %v1168_v50  ;;  %v10654_v30 = vld [vmem:[#allocation2 + $0x4c] sm:$0xf]  ;;  %v10656_v40 = vld [vmem:[#allocation2 + $0x50] sm:$0x1]  ;;  %v982_v28 = vsel %vm10366_vm6, %v886_v16, %v981_v38  ;;  %v10662_v3 = vpack.c.bf16 %v10641_v62, %v10641_v62 }
  0x67   : > { %v1164_v47 = vrot.slane %v1163_v31, 4  ;;  %v1183_v29 = vrot.slane %v1181_v37, 4  ;;  %v1186_v51 = vrot.slane %v1184_v44, 5  ;;  %v1190_v52 = vshll.u32 %v10654_v30, 16  ;;  %983 = vst [vmem:[#allocation2 + $0x60] sm:$0xf] %v982_v28 }
  0x68   : > { %v1174_v33 = vrot.slane %v1173_v4, 4  ;;  %v1194_v24 = vshrl.u32 %v10654_v30, 16  ;;  %v1200_v26 = vshll.u32 %v10656_v40, 16  ;;  %v894_v53 = vor.u32 %v892_v57, %v891_v34  ;;  %v985_v31 = vld [vmem:[#allocation2 + $0x68] sm:$0x1] }
  0x69   : > { %v1169_v58 = vsel %vm10496_vm11, %v1164_v47, %v1168_v50  ;;  %v1187_v38 = vor.u32 %v1186_v51, %v1183_v29  ;;  %v1192_v16 = vrot.slane %v1190_v52, 5  ;;  %v10669_v39 = vld [vmem:[#allocation2 + $0x54] sm:$0xf]  ;;  %v896_v62 = vrot.slane %v891_v34, 4 }
  0x6a   : > { %v1179_v37 = vsel %vm10496_vm11, %v1174_v33, %v1178_v42  ;;  %v1196_v44 = vrot.slane %v1194_v24, 4  ;;  %v1202_v28 = vrot.slane %v1200_v26, 5  ;;  %v1205_v4 = vshrl.u32 %v10669_v39, 16  ;;  %v1707_v6 = vld [vmem:[#allocation2 + $0x54] sm:$0xe] }
  0x6b   : > { %v8083_v14 = vcombine.low %v1169_v58, %v1179_v37  ;;  %v1188_v32 = vrot.slane %v1187_v38, 4  ;;  %v10674_v21 = vld [vmem:[#allocation2 + $0x58] sm:$0xf]  ;;  %v1208_v57 = vshll.u32 %v10669_v39, 16  ;;  %v895_v50 = vsel %vm10360_vm5, %v887_v11, %v894_v53 }
  0x6c   : > { %v1197_v47 = vor.u32 %v1196_v44, %v1192_v16  ;;  %v10679_v29 = vld [vmem:[#allocation2 + $0x5c] sm:$0x1]  ;;  %v1207_v34 = vrot.slane %v1205_v4, 4  ;;  %v1214_v51 = vshll.u32 %v10674_v21, 16  ;;  %v1218_v42 = vshrl.u32 %v10674_v21, 16 }
  0x6d   : > { %984 = vst.msk [vmem:[#allocation2 + $0x64] sm:$0xf] %vm551_vm0, %v895_v50  ;;  %9020 = vmatmul.mubr.msk.bf16.gmra.mrb[8].mxu0 %vm1339_vm10, %v8083_v14  ;;  %v1193_v52 = vsel %vm10496_vm11, %v1188_v32, %v1192_v16  ;;  %v1210_v33 = vrot.slane %v1208_v57, 5  ;;  %v1224_v24 = vshll.u32 %v10679_v29, 16  ;;  %v986_v11 = vsel %vm10372_vm7, %v896_v62, %v985_v31 }
  0x6e   : > { %v1198_v26 = vrot.slane %v1197_v47, 4  ;;  %v1216_v53 = vrot.slane %v1214_v51, 5  ;;  %v1220_v58 = vrot.slane %v1218_v42, 4  ;;  %987 = vst [vmem:[#allocation2 + $0x68] sm:$0x1] %v986_v11  ;;  %v898_v37 = vshrl.u32 %v10626_v54, 16 }
  0x6f   : > { %v10690_v38 = vld [vmem:[#allocation2 + $0x60] sm:$0xf]  ;;  %v1211_v44 = vor.u32 %v1210_v33, %v1207_v34  ;;  %v1226_v4 = vrot.slane %v1224_v24, 5  ;;  %v901_v62 = vshll.u32 %v10626_v54, 16  ;;  %v988_v11 = vld [vmem:[#allocation2 + $0x6c] sm:$0xf] }
  0x70   : > { %v1229_v14 = vshrl.u32 %v10690_v38, 16  ;;  %v1232_v32 = vshll.u32 %v10690_v38, 16  ;;  %v1203_v16 = vsel %vm10496_vm11, %v1198_v26, %v1202_v28  ;;  %v1221_v57 = vor.u32 %v1220_v58, %v1216_v53 }
  0x71   : > { %v900_v50 = vrot.slane %v898_v37, 7  ;;  %v8084_v31 = vcombine.low %v1193_v52, %v1203_v16  ;;  %v1212_v47 = vrot.slane %v1211_v44, 4  ;;  %v906_v33 = vshrl.u32 %v10662_v3, 16 }
  0x72   : > { %v1231_v51 = vrot.slane %v1229_v14, 4  ;;  %v1234_v42 = vrot.slane %v1232_v32, 5  ;;  %v1222_v45 = vrot.slane %v1221_v57, 4  ;;  %v909_v54 = vshll.u32 %v10662_v3, 16  ;;  %v992_v32 = vld [vmem:[#allocation2 + $0x74] sm:$0x1] }
  0x73   : > { %v903_v59 = vor.u32 %v901_v62, %v900_v50  ;;  %v904_v34 = vrot.slane %v900_v50, 4  ;;  %9023 = vmatprep.mubr.msk.bf16.mxu0 %vm1339_vm10, %v8084_v31  ;;  %v1217_v24 = vsel %vm10496_vm11, %v1212_v47, %v1216_v53  ;;  %v908_v14 = vrot.slane %v906_v33, 7  ;;  %v1700_v47 = vld [vmem:[#allocation2] sm:$0xe] }
  0x74   : > { %v10702_v28 = vld [vmem:[#allocation2 + $0x64] sm:$0xf]  ;;  %v1235_v26 = vor.u32 %v1234_v42, %v1231_v51  ;;  %v1227_v58 = vsel %vm10496_vm11, %v1222_v45, %v1226_v4  ;;  %v1701_v51 = vld [vmem:[#allocation2 + $0xc] sm:$0xe] }
  0x75   : > { %v1238_v37 = vshll.u32 %v10702_v28, 16  ;;  %v1242_v44 = vshrl.u32 %v10702_v28, 16  ;;  %v8085_v16 = vcombine.low %v1217_v24, %v1227_v58  ;;  %v10711_v57 = vld [vmem:[#allocation2 + $0x68] sm:$0x1]  ;;  %v989_v50 = vsel %vm10366_vm6, %v903_v59, %v988_v11 }
  0x76   : > { %v1236_v53 = vrot.slane %v1235_v26, 4  ;;  %v1248_v45 = vshll.u32 %v10711_v57, 16  ;;  %v911_v4 = vor.u32 %v909_v54, %v908_v14  ;;  %990 = vst [vmem:[#allocation2 + $0x6c] sm:$0xf] %v989_v50  ;;  %v913_v42 = vrot.slane %v908_v14, 4 }
  0x77   : > { %v1240_v62 = vrot.slane %v1238_v37, 5  ;;  %v1244_v31 = vrot.slane %v1242_v44, 4  ;;  %9024 = vmatmul.mubr.msk.bf16.gmra.mrb[12].mxu0 %vm1339_vm10, %v8085_v16  ;;  %v1745_v24 = vrot.slane %v10482_v23, 5  ;;  %v1702_v14 = vld [vmem:[#allocation2 + $0x18] sm:$0xe] }
  0x78   : > { %v1250_v58 = vrot.slane %v1248_v45, 5  ;;  %v912_v54 = vsel %vm10360_vm5, %v904_v34, %v911_v4  ;;  %v993_v37 = vsel %vm10372_vm7, %v913_v42, %v992_v32  ;;  %v1703_v23 = vld [vmem:[#allocation2 + $0x24] sm:$0xe]  ;;  %v8126_v34 = vrot.slane %v1700_v47, 9 }
  0x79   : > { %v1245_v26 = vor.u32 %v1244_v31, %v1240_v62  ;;  %991 = vst.msk [vmem:[#allocation2 + $0x70] sm:$0xf] %vm551_vm0, %v912_v54  ;;  %v1241_v16 = vsel %vm10496_vm11, %v1236_v53, %v1240_v62  ;;  %994 = vst [vmem:[#allocation2 + $0x74] sm:$0x1] %v993_v37  ;;  %v1735_v45 = vrot.slane %v10456_v1, 5  ;;  %v8127_v32 = vrot.slane %v1701_v51, 9 }
  0x7a   : > { %v12630_v4 = vrot.slane %v10480_v22, 5  ;;  %v8128_v53 = vrot.slane %v1702_v14, 9  ;;  %v1749_v62 = vrot.slane %v10428_v46, 5 }
  0x7b   : > { %v1246_v50 = vrot.slane %v1245_v26, 4  ;;  %v1752_v26 = vrot.slane %v10436_v48, 5  ;;  %v10750_v47 = vsel %vm10735_vm14, %v8126_v34, %v1735_v45  ;;  %v1737_v11 = vrot.slane %v1735_v45, 4 }
  0x7c   : > { %v1744_v42 = vrot.slane %v12630_v4, 4  ;;  %v12631_v51 = vmov %v12630_v4 }
  0x7d   : > { %v1251_v54 = vsel %vm10496_vm11, %v1246_v50, %v1250_v58  ;;  %v10746_v44 = vld [vmem:[#allocation2 + $0x6c] sm:$0xf]  ;;  %v10756_v4 = vsel %vm10735_vm14, %v8127_v32, %v12631_v51  ;;  %v12632_v50 = vrot.slane %v10458_v2, 5  ;;  %v1751_v32 = vrot.slane %v1749_v62, 4  ;;  %v1704_v51 = vld [vmem:[#allocation2 + $0x30] sm:$0xe] }
  0x7e   : > { %v8086_v37 = vcombine.low %v1241_v16, %v1251_v54  ;;  %v1253_v58 = vshrl.u32 %v10746_v44, 16  ;;  %v1256_v14 = vshll.u32 %v10746_v44, 16  ;;  %v10762_v48 = vsel %vm10735_vm14, %v1744_v42, %v1745_v24 }
  0x7f   : > { %v10766_v16 = vsel %vm10735_vm14, %v8128_v53, %v1749_v62  ;;  %v10773_v34 = vsel %vm10735_vm14, %v1737_v11, %v12632_v50  ;;  %v8129_v54 = vrot.slane %v1703_v23, 9  ;;  %v10788_v62 = vsel %vm10735_vm14, %v1751_v32, %v1752_v26  ;;  %v1705_v53 = vld [vmem:[#allocation2 + $0x3c] sm:$0xe]  ;;  %v1706_v32 = vld [vmem:[#allocation2 + $0x48] sm:$0xe] }
  0x80   : > { %9027 = vmatprep.mubr.msk.bf16.mxu0 %vm1339_vm10, %v8086_v37  ;;  %v10777_v24 = vld [vmem:[#allocation2 + $0x70] sm:$0xf]  ;;  %v1255_v42 = vrot.slane %v1253_v58, 4  ;;  %v1258_v59 = vrot.slane %v1256_v14, 5  ;;  %v1756_v37 = vrot.slane %v10504_v63, 5  ;;  %v8130_v26 = vrot.slane %v1704_v51, 9 }
  0x81   : > { %v10782_v2 = vld [vmem:[#allocation2 + $0x74] sm:$0x1]  ;;  %v1262_v11 = vshll.u32 %v10777_v24, 16  ;;  %v1266_v50 = vshrl.u32 %v10777_v24, 16  ;;  %v8131_v27 = vrot.slane %v1705_v53, 9  ;;  %v8133_v53 = vrot.slane %v1707_v6, 9 }
  0x82   : > { %v1259_v23 = vor.u32 %v1258_v59, %v1255_v42  ;;  %v1272_v45 = vshll.u32 %v10782_v2, 16  ;;  %v10795_v14 = vsel %vm10735_vm14, %v8129_v54, %v1756_v37  ;;  %v1758_v52 = vrot.slane %v1756_v37, 4 }
  0x83   : > { %v1264_v33 = vrot.slane %v1262_v11, 5  ;;  %v1268_v3 = vrot.slane %v1266_v50, 4  ;;  %v1763_v59 = vrot.slane %v10524_v41, 5  ;;  %v1766_v54 = vrot.slane %v10581_v13, 5  ;;  %v1708_v50 = vld [vmem:[#allocation2 + $0x60] sm:$0xe] }
  0x84   : > { %v1260_v35 = vrot.slane %v1259_v23, 4  ;;  %v1274_v12 = vrot.slane %v1272_v45, 5  ;;  %v10801_v58 = vsel %vm10735_vm14, %v1758_v52, %v1759_v18  ;;  %v1770_v11 = vrot.slane %v10629_v60, 5 }
  0x85   : > { %v1269_v42 = vor.u32 %v1268_v3, %v1264_v33  ;;  %v8147_v17 = vcombine.low %v10795_v14, %v10801_v58  ;;  %v10810_v45 = vsel %vm10735_vm14, %v8130_v26, %v1763_v59  ;;  %v1765_v51 = vrot.slane %v1763_v59, 4  ;;  %v2296_v58 = vld [vmem:[#allocation2 + $0xc] sm:$0xf]  ;;  %v9870_v14 = vld [vmem:[#allocation2 + $0x30] sm:$0xff]  }
  0x86   : > { %v1265_v37 = vsel %vm10496_vm11, %v1260_v35, %v1264_v33  ;;  %v1773_v18 = vrot.slane %v10631_v19, 5  ;;  %v8132_v52 = vrot.slane %v1706_v32, 9  ;;  %v1777_v35 = vrot.slane %v10654_v30, 5 }
  0x87   : > { %v1270_v3 = vrot.slane %v1269_v42, 4  ;;  %v10816_v13 = vsel %vm10735_vm14, %v1765_v51, %v1766_v54  ;;  %v1780_v33 = vrot.slane %v10656_v40, 5  ;;  %v10826_v19 = vsel %vm10735_vm14, %v8131_v27, %v1770_v11 }
  0x88   : > { %v8148_v26 = vcombine.low %v10810_v45, %v10816_v13  ;;  %v1772_v59 = vrot.slane %v1770_v11, 4  ;;  %v10830_v42 = vsel %vm10735_vm14, %v8132_v52, %v1777_v35  ;;  %v1779_v6 = vrot.slane %v1777_v35, 4  ;;  %v547_v35 = vld [vmem:[%s10341_s20 + $0x20] sm:$0xff] }
  0x89   : > { %v1275_v23 = vsel %vm10496_vm11, %v1270_v3, %v1274_v12  ;;  %v1784_v40 = vrot.slane %v10674_v21, 5  ;;  %v1787_v54 = vrot.slane %v10679_v29, 5  ;;  %v8134_v51 = vrot.slane %v1708_v50, 9  ;;  %v1709_v3 = vld [vmem:[#allocation2 + $0x6c] sm:$0xe]  ;;  %v9872_v45 = vld [vmem:[#allocation2 + $0x3c] sm:$0xff]  }
  0x8a   : > { %v8087_v32 = vcombine.low %v1265_v37, %v1275_v23  ;;  %v10835_v12 = vsel %vm10735_vm14, %v1772_v59, %v1773_v18  ;;  %v1791_v27 = vrot.slane %v10702_v28, 5  ;;  %v10844_v11 = vsel %vm10735_vm14, %v1779_v6, %v1780_v33  ;;  %v548_v29 = vld [vmem:[%s10341_s20 + $0x28] sm:$0xff] }
  0x8b   : > { %v10848_v52 = vsel %vm10735_vm14, %v8133_v53, %v1784_v40  ;;  %v1786_v18 = vrot.slane %v1784_v40, 4  ;;  %v12633_v50 = vcombine.low %v10454_v0, %v10456_v1  ;;  %v8135_v6 = vrot.slane %v1709_v3, 9  ;;  %v9858_v1 = vld [vmem:[%s12579_s2 + $0x48] sm:$0xff]  }
  0x8c   : > { %9028 = vmatmul.mubr.msk.bf16.gmra.mrb[16].mxu0 %vm1339_vm10, %v8087_v32  ;;  %v10860_v59 = vsel %vm10735_vm14, %v8134_v51, %v1791_v27  ;;  %v1793_v33 = vrot.slane %v1791_v27, 4  ;;  %v1794_v32 = vrot.slane %v10711_v57, 5  ;;  %v1798_v40 = vrot.slane %v10777_v24, 5 }
  0x8d   : > { %9039 = vmatprep.mubr.msk.bf16.mxu0 %vm1339_vm10, %v12633_v50  ;;  %v10865_v53 = vsel %vm10735_vm14, %v1786_v18, %v1787_v54  ;;  %v1801_v0 = vrot.slane %v10782_v2, 5  ;;  %v8705_v51 = vpack.c.bf16 %v547_v35, %v547_v35  ;;  %v8706_v27 = vpack.c.bf16 %v548_v29, %v548_v29 }
  0x8e   : > { %v10873_v50 = vsel %vm10735_vm14, %v1793_v33, %v1794_v32  ;;  %v10879_v54 = vsel %vm10735_vm14, %v8135_v6, %v1798_v40  ;;  %v1800_v3 = vrot.slane %v1798_v40, 4  ;;  %v12634_v6 = vcombine.low %v10476_v20, %v10480_v22  ;;  %v716_v40 = vld [vmem:[#allocation2 + $0x78] sm:$0xf] }
  0x8f   : > { %v8152_v57 = vcombine.low %v10860_v59, %v10873_v50  ;;  %v676_v18 = vshrl.u32 %v8705_v51, 16  ;;  %v679_v23 = vshll.u32 %v8705_v51, 16  ;;  %v684_v2 = vshrl.u32 %v8706_v27, 16 }
  0x90   : > { %v687_v37 = vshll.u32 %v8706_v27, 16  ;;  %v10886_v35 = vsel %vm10735_vm14, %v1800_v3, %v1801_v0  ;;  %v12635_v51 = vcombine.low %v10426_v15, %v10428_v46  ;;  %v9860_v15 = vld [vmem:[%s12579_s2 + $0x58] sm:$0xff]   ;;  %v2327_v13 = vshrl.u32 %v2296_v58, 16 }
  0x91   : > { %v8153_v29 = vcombine.low %v10879_v54, %v10886_v35  ;;  %v678_v33 = vrot.slane %v676_v18, 7  ;;  %v686_v32 = vrot.slane %v684_v2, 7  ;;  %v9859_v54 = vld [vmem:[%s12579_s2 + $0x50] sm:$0xff]  }
  0x92   : > { %v11008_v35 = vld [vmem:[#allocation2 + $0x14] sm:$0x1] }
  0x93   : > { %v681_v0 = vor.u32 %v679_v23, %v678_v33  ;;  %v682_v27 = vrot.slane %v678_v33, 4  ;;  %v689_v3 = vor.u32 %v687_v37, %v686_v32  ;;  %v691_v46 = vrot.slane %v686_v32, 4  ;;  %v720_v23 = vld [vmem:[#allocation2 + $0x80] sm:$0x1] }
  0x94   : > { %9040 = vmatmul.mubr.msk.bf16.vlgmr.msra.gmra.mrb[0].mxu0 %vm1339_vm10, %v12634_v6  ;;  %v12637_v37 = vcombine.low %v10514_v36, %v10524_v41  ;;  %v8109_v36 = vcombine.low %v10669_v39, %v10674_v21  ;;  %v8110_v41 = vcombine.low %v10690_v38, %v10702_v28  ;;  %v9863_v21 = vld [vmem:[%s12579_s2 + $0x68] sm:$0xff]   ;;  %v12640_v39 = vcombine.low %v10756_v4, %v10762_v48  ;;  %v9865_v38 = vld [vmem:[%s12579_s2 + $0x78] sm:$0xff]   ;;  %v9867_v28 = vld [vmem:[%s12579_s2 + $0x80] sm:$0xff]  }
  0x95   : > { %9060 = vmatpush3.bf16.msra.mxu0 %v10591_v8  ;;  %9043 = vmatprep.mubr.msk.bf16.mxu0 %vm1339_vm10, %v12635_v51  ;;  %v690_v20 = vsel %vm10360_vm5, %v682_v27, %v689_v3  ;;  %v717_v22 = vsel %vm10366_vm6, %v681_v0, %v716_v40  ;;  %v12636_v8 = vcombine.low %v10501_v55, %v10504_v63  ;;  %v9866_v48 = vld [vmem:[#allocation2 + $0xc] sm:$0xff]   ;;  %v11013_v6 = vld [vmem:[%s12579_s2 + $0xa0] sm:$0xff]  }
  0x96   : > { %9061 = vmatprep.subr.bf16.mxu0 %v9858_v1  ;;  %718 = vst [vmem:[#allocation2 + $0x78] sm:$0xf] %v717_v22  ;;  %719 = vst.msk [vmem:[#allocation2 + $0x7c] sm:$0xf] %vm551_vm0, %v690_v20  ;;  %v721_v18 = vsel %vm10372_vm7, %v691_v46, %v720_v23  ;;  %v8108_v55 = vcombine.low %v10646_v61, %v10654_v30  ;;  %v12638_v63 = vcombine.low %v10618_v9, %v10629_v60  ;;  %v9864_v30 = vld [vmem:[%s12579_s2 + $0x70] sm:$0xff]   ;;  %v9873_v22 = vld [vmem:[#allocation2 + $0x48] sm:$0xff]  }
  0x97   : > { %722 = vst [vmem:[#allocation2 + $0x80] sm:$0x1] %v721_v18  ;;  %v8111_v61 = vcombine.low %v10746_v44, %v10777_v24  ;;  %v12639_v9 = vcombine.low %v10750_v47, %v10773_v34  ;;  %v12641_v60 = vcombine.low %v10766_v16, %v10788_v62  ;;  %v12642_v44 = vcombine.low %v10826_v19, %v10835_v12  ;;  %v9868_v16 = vld [vmem:[#allocation2 + $0x18] sm:$0xff]   ;;  %v9869_v34 = vld [vmem:[#allocation2 + $0x24] sm:$0xff]   ;;  %v9874_v62 = vld [vmem:[%s12579_s2 + $0x90] sm:$0xff]  }
  0x98   : > { %v12643_v47 = vcombine.low %v10830_v42, %v10844_v11  ;;  %v12644_v4 = vcombine.low %v10848_v52, %v10865_v53  ;;  %v9871_v24 = vld [vmem:[%s12579_s2 + $0x88] sm:$0xff]   ;;  %v549_v19 = vld [vmem:[%s10341_s20 + $0x30] sm:$0xff]  ;;  %v550_v42 = vld [vmem:[%s10341_s20 + $0x38] sm:$0xff]  ;;  %v2346_v18 = vshll.u32 %v11008_v35, 16 }
  0x99   : > { %9062 = vmatpush3.bf16.msra.mxu0 %v9858_v1  ;;  %v9862_v1 = vld [vmem:[%s12579_s2 + $0x60] sm:$0xff]   ;;  %v9877_v12 = vld [vmem:[%s12579_s2 + $0x98] sm:$0xff]   ;;  %v8707_v52 = vpack.c.bf16 %v549_v19, %v549_v19  ;;  %v8708_v59 = vpack.c.bf16 %v550_v42, %v550_v42 }
  0x9a   : > { %9063 = vmatprep.subr.bf16.mxu0 %v9859_v54  ;;  %v2299_v11 = vld [vmem:[#allocation2 + $0x18] sm:$0xf]  ;;  %v2302_v46 = vld [vmem:[#allocation2 + $0x24] sm:$0xf] }
  0x9b   : > { %v701_v2 = vshrl.u32 %v8708_v59, 16  ;;  %v2351_v32 = vshrl.u32 %v2299_v11, 16  ;;  %v696_v51 = vshll.u32 %v8707_v52, 16  ;;  %v704_v27 = vshll.u32 %v8708_v59, 16 }
  0x9c   : > { %9044 = vmatmul.mubr.msk.bf16.gmra.mrb[4].mxu0 %vm1339_vm10, %v12636_v8  ;;  %v2354_v20 = vshll.u32 %v2299_v11, 16 }
  0x9d   : > { %9047 = vmatprep.mubr.msk.bf16.mxu0 %vm1339_vm10, %v12637_v37  ;;  %9064 = vmatpush3.bf16.msra.mxu0 %v9859_v54  ;;  %v11015_v0 = vrot.slane %v701_v2, 7  ;;  %v2308_v2 = vld [vmem:[#allocation2 + $0x3c] sm:$0xf] }
  0x9e   : > { %9065 = vmatprep.subr.bf16.mxu0 %v9860_v15 }
  0x9f   : > { %v706_v23 = vor.u32 %v704_v27, %v11015_v0 }
  0xa1   : > { %9066 = vmatpush3.bf16.msra.mxu0 %v9860_v15  ;;  %v11019_v15 = vld [vmem:[#allocation2 + $0x1c] sm:$0xf] }
  0xa2   : > { %9087 = vmatprep.subr.bf16.mxu0 %v9862_v1 }
  0xa4   : > { %9048 = vmatmul.mubr.msk.bf16.gmra.mrb[8].mxu0 %vm1339_vm10, %v12638_v63  ;;  %v723_v63 = vld [vmem:[#allocation2 + $0x84] sm:$0xf] }
  0xa5   : > { %9051 = vmatprep.mubr.msk.bf16.mxu0 %vm1339_vm10, %v8108_v55  ;;  %v11023_v55 = vld [vmem:[#allocation2 + $0x28] sm:$0xf] }
  0xac   : > { %9052 = vmatmul.mubr.msk.bf16.gmra.mrb[12].mxu0 %vm1339_vm10, %v8109_v36 }
  0xad   : > { %9055 = vmatprep.mubr.msk.bf16.mxu0 %vm1339_vm10, %v8110_v41  ;;  %v2353_v41 = vrot.slane %v2351_v32, 4 }
  0xb4   : > { %9056 = vmatmul.mubr.msk.bf16.gmra.mrb[16].mxu0 %vm1339_vm10, %v8111_v61  ;;  %v2305_v61 = vld [vmem:[#allocation2 + $0x30] sm:$0xf] }
  0xb5   : > { %9067 = vmatprep.mubr.msk.bf16.mxu0 %vm1339_vm10, %v12639_v9 }
  0xbc   : > { %9068 = vmatmul.mubr.msk.bf16.vlgmr.msra.gmra.mrb[0].mxu0 %vm1339_vm10, %v12640_v39 }
  0xbd   : > { %9088 = vmatpush3.bf16.msra.mxu0 %v9862_v1  ;;  %9071 = vmatprep.mubr.msk.bf16.mxu0 %vm1339_vm10, %v12641_v60  ;;  %v9875_v1 = vld [vmem:[#allocation2 + $0x54] sm:$0xff]   ;;  %v2356_v60 = vrot.slane %v2354_v20, 5 }
  0xbe   : > { %9089 = vmatprep.subr.bf16.mxu0 %v9863_v21 }
  0xbf   : > { %v2357_v42 = vor.u32 %v2356_v60, %v2353_v41 }
  0xc1   : > { %9090 = vmatpush3.bf16.msra.mxu0 %v9863_v21 }
  0xc2   : > { %9091 = vmatprep.subr.bf16.mxu0 %v9864_v30 }
  0xc4   : > { %9072 = vmatmul.mubr.msk.bf16.gmra.mrb[4].mxu0 %vm1339_vm10, %v8147_v17  ;;  %v10997_v17 = vld [vmem:[#allocation2 + $0x10] sm:$0xf] }
  0xc5   : > { %9075 = vmatprep.mubr.msk.bf16.mxu0 %vm1339_vm10, %v8148_v26  ;;  %9092 = vmatpush3.bf16.msra.mxu0 %v9864_v30  ;;  %v2330_v26 = vshll.u32 %v2296_v58, 16  ;;  %v2336_v53 = vshll.u32 %v10997_v17, 16  ;;  %v2340_v50 = vshrl.u32 %v10997_v17, 16  ;;  %v2360_v30 = vshll.u32 %v11019_v15, 16 }
  0xc6   : > { %9093 = vmatprep.subr.bf16.mxu0 %v9865_v38  ;;  %v2348_v58 = vrot.slane %v2346_v18, 5 }
  0xc7   : > { %v2332_v33 = vrot.slane %v2330_v26, 5  ;;  %v11017_v3 = vrot.slane %v2336_v53, 5  ;;  %v2342_v54 = vrot.slane %v2340_v50, 4  ;;  %v9876_v26 = vld [vmem:[#allocation2 + $0x60] sm:$0xff]  }
  0xc9   : > { %9094 = vmatpush3.bf16.msra.mxu0 %v9865_v38  ;;  %v2343_v39 = vor.u32 %v2342_v54, %v11017_v3  ;;  %v2364_v38 = vshrl.u32 %v11019_v15, 16 }
  0xca   : > { %9115 = vmatprep.subr.bf16.mxu0 %v9867_v28 }
  0xcb   : > { %v2344_v19 = vrot.slane %v2343_v39, 4  ;;  %v2366_v11 = vrot.slane %v2364_v38, 4 }
  0xcc   : > { %9076 = vmatmul.mubr.msk.bf16.gmra.mrb[8].mxu0 %vm1339_vm10, %v12642_v44  ;;  %v2375_v44 = vshrl.u32 %v2302_v46, 16 }
  0xcd   : > { %9079 = vmatprep.mubr.msk.bf16.mxu0 %vm1339_vm10, %v12643_v47  ;;  %v2378_v47 = vshll.u32 %v2302_v46, 16 }
  0xce   : > { %v2377_v59 = vrot.slane %v2375_v44, 4  ;;  %v11071_v44 = vld [vmem:[#allocation2 + $0x4c] sm:$0xf] }
  0xcf   : > { %v2380_v53 = vrot.slane %v2378_v47, 5  ;;  %v9879_v47 = vld [vmem:[#allocation2 + $0x78] sm:$0xff]  }
  0xd4   : > { %9080 = vmatmul.mubr.msk.bf16.gmra.mrb[12].mxu0 %vm1339_vm10, %v12644_v4  ;;  %v2384_v4 = vshll.u32 %v11023_v55, 16 }
  0xd5   : > { %9083 = vmatprep.mubr.msk.bf16.mxu0 %vm1339_vm10, %v8152_v57  ;;  %v693_v57 = vshrl.u32 %v8707_v52, 16  ;;  %v11048_v52 = vld [vmem:[#allocation2 + $0x38] sm:$0x1] }
  0xd6   : > { %v11050_v50 = vrot.slane %v2384_v4, 5  ;;  %v2418_v18 = vshll.u32 %v11048_v52, 16 }
  0xd7   : > { %v695_v40 = vrot.slane %v693_v57, 7 }
  0xd9   : > { %v698_v8 = vor.u32 %v696_v51, %v695_v40  ;;  %v699_v37 = vrot.slane %v695_v40, 4  ;;  %v11053_v51 = vld [vmem:[#allocation2 + $0x40] sm:$0xf] }
  0xda   : > { %v2436_v41 = vshrl.u32 %v11053_v51, 16 }
  0xdb   : > { %v707_v9 = vsel %vm10360_vm5, %v699_v37, %v706_v23  ;;  %v724_v21 = vsel %vm10366_vm6, %v698_v8, %v723_v63  ;;  %v2358_v37 = vrot.slane %v2357_v42, 4  ;;  %v2381_v23 = vor.u32 %v2380_v53, %v2377_v59 }
  0xdc   : > { %9084 = vmatmul.mubr.msk.bf16.gmra.mrb[16].mxu0 %vm1339_vm10, %v8153_v29  ;;  %v2329_v29 = vrot.slane %v2327_v13, 4  ;;  %725 = vst [vmem:[#allocation2 + $0x84] sm:$0xf] %v724_v21  ;;  %726 = vst.msk [vmem:[#allocation2 + $0x88] sm:$0xf] %vm551_vm0, %v707_v9  ;;  %v2423_v63 = vshrl.u32 %v2308_v2, 16 }
  0xdd   : > { %9095 = vmatprep.mubr.msk.bf16.mxu0 %vm1339_vm10, %v9866_v48  ;;  %v2388_v48 = vshrl.u32 %v11023_v55, 16  ;;  %v2311_v21 = vld [vmem:[#allocation2 + $0x48] sm:$0xf] }
  0xde   : > { %v2333_v36 = vor.u32 %v2332_v33, %v2329_v29  ;;  %v9878_v29 = vld [vmem:[#allocation2 + $0x6c] sm:$0xff]   ;;  %v2447_v59 = vshrl.u32 %v2311_v21, 16  ;;  %v2450_v53 = vshll.u32 %v2311_v21, 16 }
  0xdf   : > { %v2390_v57 = vrot.slane %v2388_v48, 4  ;;  %v2382_v48 = vrot.slane %v2381_v23, 4 }
  0xe4   : > { %9096 = vmatmul.mubr.msk.bf16.vlgmr.msra.gmra.mrb[0].mxu0 %vm1339_vm10, %v9868_v16  ;;  %v11040_v16 = vld [vmem:[#allocation2 + $0x20] sm:$0x1] }
  0xe5   : > { %9116 = vmatpush3.bf16.msra.mxu0 %v9867_v28  ;;  %9099 = vmatprep.mubr.msk.bf16.mxu0 %vm1339_vm10, %v9869_v34  ;;  %v11033_v28 = vld [vmem:[#allocation2 + $0x34] sm:$0xf]  ;;  %v2399_v34 = vshrl.u32 %v2305_v61, 16  ;;  %v2370_v33 = vshll.u32 %v11040_v16, 16 }
  0xe6   : > { %9117 = vmatprep.subr.bf16.mxu0 %v9871_v24  ;;  %v2412_v13 = vshrl.u32 %v11033_v28, 16 }
  0xe7   : > { %v2401_v32 = vrot.slane %v2399_v34, 4 }
  0xe8   : > { %v2414_v54 = vrot.slane %v2412_v13, 4 }
  0xe9   : > { %9118 = vmatpush3.bf16.msra.mxu0 %v9871_v24  ;;  %v2402_v24 = vshll.u32 %v2305_v61, 16 }
  0xea   : > { %9119 = vmatprep.subr.bf16.mxu0 %v9874_v62 }
  0xeb   : > { %v2404_v40 = vrot.slane %v2402_v24, 5  ;;  %v2420_v24 = vrot.slane %v2418_v18, 5  ;;  %v2452_v18 = vrot.slane %v2450_v53, 5 }
  0xec   : > { %9100 = vmatmul.mubr.msk.bf16.gmra.mrb[4].mxu0 %vm1339_vm10, %v9870_v14  ;;  %v11042_v14 = vld [vmem:[#allocation2 + $0x2c] sm:$0x1] }
  0xed   : > { %9103 = vmatprep.mubr.msk.bf16.mxu0 %vm1339_vm10, %v9872_v45  ;;  %9120 = vmatpush3.bf16.msra.mxu0 %v9874_v62  ;;  %v2334_v62 = vrot.slane %v2333_v36, 4  ;;  %v2408_v45 = vshll.u32 %v11033_v28, 16  ;;  %v2394_v8 = vshll.u32 %v11042_v14, 16  ;;  %v2426_v36 = vshll.u32 %v2308_v2, 16 }
  0xee   : > { %9121 = vmatprep.subr.bf16.mxu0 %v9877_v12  ;;  %v2405_v61 = vor.u32 %v2404_v40, %v2401_v32  ;;  %v2456_v2 = vshll.u32 %v11071_v44, 16  ;;  %v2387_v40 = vsel %vm10496_vm11, %v2382_v48, %v11050_v50  ;;  %v11108_v48 = vld [vmem:[#allocation2 + $0x64] sm:$0xf] }
  0xef   : > { %v11055_v27 = vrot.slane %v2408_v45, 5  ;;  %v2339_v20 = vsel %vm10496_vm11, %v2334_v62, %v11017_v3  ;;  %v2432_v3 = vshll.u32 %v11053_v51, 16  ;;  %v2396_v38 = vrot.slane %v2394_v8, 5  ;;  %v2314_v62 = vld [vmem:[#allocation2 + $0x54] sm:$0xf] }
  0xf0   : > { %v2425_v45 = vrot.slane %v2423_v63, 4  ;;  %v2428_v13 = vrot.slane %v2426_v36, 5  ;;  %v2406_v42 = vrot.slane %v2405_v61, 4  ;;  %v11102_v63 = vrot.slane %v2456_v2, 5 }
  0xf1   : > { %9122 = vmatpush3.bf16.msra.mxu0 %v9877_v12  ;;  %v11046_v12 = vrot.slane %v2360_v30, 5  ;;  %v2415_v9 = vor.u32 %v2414_v54, %v11055_v27  ;;  %v2372_v30 = vrot.slane %v2370_v33, 5  ;;  %v2474_v33 = vshll.u32 %v2314_v62, 16 }
  0xf2   : > { %9143 = vmatprep.subr.bf16.mxu0 %v11013_v6  ;;  %v2411_v23 = vsel %vm10496_vm11, %v2406_v42, %v11055_v27  ;;  %v2320_v42 = vld [vmem:[#allocation2 + $0x6c] sm:$0xf]  ;;  %v2504_v2 = vshll.u32 %v11108_v48, 16 }
  0xf3   : > { %v2367_v46 = vor.u32 %v2366_v11, %v11046_v12  ;;  %v2363_v4 = vsel %vm10496_vm11, %v2358_v37, %v11046_v12  ;;  %v2416_v11 = vrot.slane %v2415_v9, 4  ;;  %v2460_v12 = vshrl.u32 %v11071_v44, 16 }
  0xf4   : > { %9104 = vmatmul.mubr.msk.bf16.gmra.mrb[8].mxu0 %vm1339_vm10, %v9873_v22  ;;  %v2349_v22 = vsel %vm10496_vm11, %v2344_v19, %v2348_v58  ;;  %v11076_v58 = vld [vmem:[#allocation2 + $0x44] sm:$0x1]  ;;  %v2438_v19 = vrot.slane %v2436_v41, 4  ;;  %v2476_v41 = vrot.slane %v2474_v33, 5 }
  0xf5   : > { %9107 = vmatprep.mubr.msk.bf16.mxu0 %vm1339_vm10, %v9875_v1  ;;  %v2391_v1 = vor.u32 %v2390_v57, %v11050_v50  ;;  %v8208_v39 = vcombine.low %v2339_v20, %v2349_v22  ;;  %v2368_v60 = vrot.slane %v2367_v46, 4  ;;  %v11080_v57 = vld [vmem:[#allocation2 + $0x58] sm:$0xf]  ;;  %v2442_v20 = vshll.u32 %v11076_v58, 16 }
  0xf6   : > { %v2429_v22 = vor.u32 %v2428_v13, %v2425_v45  ;;  %v2480_v8 = vshll.u32 %v11080_v57, 16  ;;  %v2484_v37 = vshrl.u32 %v11080_v57, 16  ;;  %v2421_v50 = vsel %vm10496_vm11, %v2416_v11, %v2420_v24  ;;  %v9881_v24 = vld [vmem:[%s12579_s2 + $0xa8] sm:$0xff]   ;;  %v11117_v11 = vld [vmem:[#allocation2 + $0x70] sm:$0xf] }
  0xf7   : > { %v2392_v34 = vrot.slane %v2391_v1, 4  ;;  %v2373_v32 = vsel %vm10496_vm11, %v2368_v60, %v2372_v30  ;;  %v2449_v1 = vrot.slane %v2447_v59, 4  ;;  %v2462_v36 = vrot.slane %v2460_v12, 4  ;;  %v2317_v60 = vld [vmem:[#allocation2 + $0x60] sm:$0xf] }
  0xf8   : > { %v8209_v61 = vcombine.low %v2363_v4, %v2373_v32  ;;  %v2444_v21 = vrot.slane %v2442_v20, 5  ;;  %v2430_v30 = vrot.slane %v2429_v22, 4  ;;  %v2486_v27 = vrot.slane %v2484_v37, 4 }
  0xf9   : > { %v2397_v54 = vsel %vm10496_vm11, %v2392_v34, %v2396_v38  ;;  %v8211_v34 = vcombine.low %v2411_v23, %v2421_v50  ;;  %v2453_v4 = vor.u32 %v2452_v18, %v2449_v1  ;;  %v2463_v45 = vor.u32 %v2462_v36, %v11102_v63  ;;  %v11136_v50 = vld [vmem:[#allocation2 + $0x68] sm:$0x1] }
  0xfa   : > { %v8210_v9 = vcombine.low %v2387_v40, %v2397_v54  ;;  %v2495_v59 = vshrl.u32 %v2317_v60, 16  ;;  %v2498_v53 = vshll.u32 %v2317_v60, 16  ;;  %v2508_v12 = vshrl.u32 %v11108_v48, 16  ;;  %v9882_v54 = vld [vmem:[%s12579_s2 + $0xb0] sm:$0xff]   ;;  %v11140_v60 = vld [vmem:[#allocation2 + $0x7c] sm:$0xf] }
  0xfb   : > { %v2519_v20 = vshrl.u32 %v2320_v42, 16  ;;  %v2528_v22 = vshll.u32 %v11117_v11, 16  ;;  %v11138_v36 = vrot.slane %v2504_v2, 5 }
  0xfc   : > { %9108 = vmatmul.mubr.msk.bf16.gmra.mrb[12].mxu0 %vm1339_vm10, %v9876_v26  ;;  %v11078_v26 = vrot.slane %v2432_v3, 5  ;;  %v2497_v1 = vrot.slane %v2495_v59, 4  ;;  %v2500_v18 = vrot.slane %v2498_v53, 5 }
  0xfd   : > { %9111 = vmatprep.mubr.msk.bf16.mxu0 %vm1339_vm10, %v9878_v29  ;;  %v2471_v29 = vshrl.u32 %v2314_v62, 16  ;;  %v11113_v62 = vld [vmem:[#allocation2 + $0x5c] sm:$0x1] }
  0xfe   : > { %v2439_v46 = vor.u32 %v2438_v19, %v11078_v26  ;;  %v2490_v40 = vshll.u32 %v11113_v62, 16  ;;  %v2501_v53 = vor.u32 %v2500_v18, %v2497_v1 }
  0xff   : > { %v2473_v3 = vrot.slane %v2471_v29, 4  ;;  %v2435_v29 = vsel %vm10496_vm11, %v2430_v30, %v11078_v26  ;;  %v2464_v26 = vrot.slane %v2463_v45, 4  ;;  %v9883_v30 = vld [vmem:[%s12579_s2 + $0xb8] sm:$0xff]  }
 0x100   : > { %v2440_v38 = vrot.slane %v2439_v46, 4  ;;  %v2532_v46 = vshrl.u32 %v11117_v11, 16 }
 0x101   : > { %v2477_v19 = vor.u32 %v2476_v41, %v2473_v3  ;;  %v2510_v3 = vrot.slane %v2508_v12, 4 }
 0x102   : > { %v2445_v33 = vsel %vm10496_vm11, %v2440_v38, %v2444_v21  ;;  %v2323_v21 = vld [vmem:[#allocation2 + $0x78] sm:$0xf]  ;;  %v2521_v38 = vrot.slane %v2519_v20, 4  ;;  %v2534_v45 = vrot.slane %v2532_v46, 4  ;;  %v11167_v20 = vld [vmem:[%s12579_s2 + $0xc0] sm:$0xff]   ;;  %v2502_v46 = vrot.slane %v2501_v53, 4 }
 0x103   : > { %v2478_v23 = vrot.slane %v2477_v19, 4  ;;  %v8212_v41 = vcombine.low %v2435_v29, %v2445_v33  ;;  %v2514_v19 = vshll.u32 %v11136_v50, 16  ;;  %v2511_v2 = vor.u32 %v2510_v3, %v11138_v36 }
 0x104   : > { %9112 = vmatmul.mubr.msk.bf16.gmra.mrb[16].mxu0 %vm1339_vm10, %v9879_v47  ;;  %v11106_v47 = vrot.slane %v2480_v8, 5  ;;  %v2454_v8 = vrot.slane %v2453_v4, 4  ;;  %v2530_v4 = vrot.slane %v2528_v22, 5  ;;  %v2543_v12 = vshrl.u32 %v2323_v21, 16 }
 0x105   : > { %9123 = vmatprep.mubr.msk.bf16.mxu0 %vm1339_vm10, %v8208_v39  ;;  %v11104_v39 = vld [vmem:[#allocation2 + $0x50] sm:$0x1]  ;;  %v2546_v29 = vshll.u32 %v2323_v21, 16  ;;  %v2552_v33 = vshll.u32 %v11140_v60, 16  ;;  %v708_v3 = vrot.slane %v11015_v0, 4 }
 0x106   : > { %v2466_v13 = vshll.u32 %v11104_v39, 16  ;;  %v2487_v32 = vor.u32 %v2486_v27, %v11106_v47  ;;  %v2483_v59 = vsel %vm10496_vm11, %v2478_v23, %v11106_v47  ;;  %v727_v21 = vld [vmem:[#allocation2 + $0x8c] sm:$0x1] }
 0x107   : > { %v2548_v23 = vrot.slane %v2546_v29, 5  ;;  %v2554_v1 = vrot.slane %v2552_v33, 5 }
 0x108   : > { %v2468_v37 = vrot.slane %v2466_v13, 5  ;;  %v2459_v13 = vsel %vm10496_vm11, %v2454_v8, %v11102_v63  ;;  %v2512_v8 = vrot.slane %v2511_v2, 4 }
 0x10c   : > { %9124 = vmatmul.mubr.msk.bf16.vlgmr.msra.gmra.mrb[0].mxu0 %vm1339_vm10, %v8209_v61  ;;  %v2488_v61 = vrot.slane %v2487_v32, 4  ;;  %v2556_v32 = vshrl.u32 %v11140_v60, 16 }
 0x10d   : > { %9144 = vmatpush3.bf16.msra.mxu0 %v11013_v6  ;;  %9127 = vmatprep.mubr.msk.bf16.mxu0 %vm1339_vm10, %v8210_v9  ;;  %v2522_v6 = vshll.u32 %v2320_v42, 16  ;;  %v2492_v9 = vrot.slane %v2490_v40, 5  ;;  %v11151_v42 = vld [vmem:[#allocation2 + $0x74] sm:$0x1]  ;;  %v2535_v40 = vor.u32 %v2534_v45, %v2530_v4 }
 0x10e   : > { %9145 = vmatprep.subr.bf16.mxu0 %v9881_v24  ;;  %v2538_v47 = vshll.u32 %v11151_v42, 16  ;;  %v2558_v18 = vrot.slane %v2556_v32, 4 }
 0x10f   : > { %v2524_v27 = vrot.slane %v2522_v6, 5  ;;  %v2493_v63 = vsel %vm10496_vm11, %v2488_v61, %v2492_v9  ;;  %v2536_v61 = vrot.slane %v2535_v40, 4  ;;  %v2841_v40 = vrot.slane %v11019_v15, 5 }
 0x110   : > { %v8214_v22 = vcombine.low %v2483_v59, %v2493_v63  ;;  %v2540_v9 = vrot.slane %v2538_v47, 5  ;;  %v2559_v45 = vor.u32 %v2558_v18, %v2554_v1  ;;  %v2792_v59 = vld [vmem:[#allocation2 + $0xc] sm:$0xe]  ;;  %v2851_v15 = vrot.slane %v11042_v14, 5 }
 0x111   : > { %9146 = vmatpush3.bf16.msra.mxu0 %v9881_v24  ;;  %v2469_v24 = vsel %vm10496_vm11, %v2464_v26, %v2468_v37  ;;  %v2545_v26 = vrot.slane %v2543_v12, 4  ;;  %v11169_v37 = vld [vmem:[#allocation2 + $0x80] sm:$0x1]  ;;  %v8232_v33 = vrot.slane %v2792_v59, 9  ;;  %v2862_v14 = vrot.slane %v11053_v51, 5 }
 0x112   : > { %9147 = vmatprep.subr.bf16.mxu0 %v9882_v54  ;;  %v8213_v6 = vcombine.low %v2459_v13, %v2469_v24  ;;  %v2562_v0 = vshll.u32 %v11169_v37, 16  ;;  %v728_v13 = vsel %vm10372_vm7, %v708_v3, %v727_v21  ;;  %v2560_v63 = vrot.slane %v2559_v45, 4  ;;  %v2795_v21 = vld [vmem:[#allocation2 + $0x30] sm:$0xe] }
 0x113   : > { %729 = vst [vmem:[#allocation2 + $0x8c] sm:$0x1] %v728_v13  ;;  %v8235_v45 = vrot.slane %v2795_v21, 9  ;;  %v2858_v13 = vrot.slane %v11048_v52, 5  ;;  %v2869_v59 = vrot.slane %v11071_v44, 5 }
 0x114   : > { %9128 = vmatmul.mubr.msk.bf16.gmra.mrb[4].mxu0 %vm1339_vm10, %v8211_v34  ;;  %v2525_v34 = vor.u32 %v2524_v27, %v2521_v38  ;;  %v2507_v38 = vsel %vm10496_vm11, %v2502_v46, %v11138_v36  ;;  %v2549_v27 = vor.u32 %v2548_v23, %v2545_v26  ;;  %v2834_v36 = vrot.slane %v10997_v17, 5 }
 0x115   : > { %9131 = vmatprep.mubr.msk.bf16.mxu0 %vm1339_vm10, %v8212_v41  ;;  %9148 = vmatpush3.bf16.msra.mxu0 %v9882_v54  ;;  %v2516_v54 = vrot.slane %v2514_v19, 5  ;;  %v2541_v19 = vsel %vm10496_vm11, %v2536_v61, %v2540_v9  ;;  %v2564_v29 = vrot.slane %v2562_v0, 5  ;;  %v2843_v23 = vrot.slane %v2841_v40, 4 }
 0x116   : > { %9149 = vmatprep.subr.bf16.mxu0 %v9883_v30  ;;  %v2526_v41 = vrot.slane %v2525_v34, 4  ;;  %v2550_v12 = vrot.slane %v2549_v27, 4  ;;  %v2836_v32 = vrot.slane %v2834_v36, 4  ;;  %v2837_v34 = vrot.slane %v11008_v35, 5 }
 0x117   : > { %v2565_v17 = vsel %vm10496_vm11, %v2560_v63, %v2564_v29  ;;  %v2835_v47 = vsel %vm10735_vm14, %v8232_v33, %v2834_v36  ;;  %v2848_v35 = vrot.slane %v11023_v55, 5  ;;  %v2855_v61 = vrot.slane %v11033_v28, 5  ;;  %v9885_v28 = vld [vmem:[%s12579_s2 + $0xc8] sm:$0xff]   ;;  %v2798_v63 = vld [vmem:[#allocation2 + $0x54] sm:$0xe] }
 0x118   : > { %v2531_v24 = vsel %vm10496_vm11, %v2526_v41, %v2530_v4  ;;  %v2555_v4 = vsel %vm10496_vm11, %v2550_v12, %v2554_v1  ;;  %v2844_v1 = vrot.slane %v11040_v16, 5  ;;  %v2865_v36 = vrot.slane %v11076_v58, 5 }
 0x119   : > { %9150 = vmatpush3.bf16.msra.mxu0 %v9883_v30  ;;  %v2517_v30 = vsel %vm10496_vm11, %v2512_v8, %v2516_v54  ;;  %v8216_v2 = vcombine.low %v2531_v24, %v2541_v19  ;;  %v2793_v54 = vld [vmem:[#allocation2 + $0x18] sm:$0xe]  ;;  %v8217_v46 = vcombine.low %v2555_v4, %v2565_v17  ;;  %v2850_v3 = vrot.slane %v2848_v35, 4 }
 0x11a   : > { %9171 = vmatprep.subr.bf16.mxu0 %v11167_v20  ;;  %v8215_v53 = vcombine.low %v2507_v38, %v2517_v30  ;;  %v8233_v26 = vrot.slane %v2793_v54, 9  ;;  %v2845_v55 = vsel %vm10735_vm14, %v2843_v23, %v2844_v1  ;;  %v2796_v38 = vld [vmem:[#allocation2 + $0x3c] sm:$0xe]  ;;  %v2857_v0 = vrot.slane %v2855_v61, 4 }
 0x11b   : > { %v2852_v16 = vsel %vm10735_vm14, %v2850_v3, %v2851_v15  ;;  %v8236_v24 = vrot.slane %v2796_v38, 9  ;;  %v2864_v19 = vrot.slane %v2862_v14, 4  ;;  %v2856_v51 = vsel %vm10735_vm14, %v8235_v45, %v2855_v61 }
 0x11c   : > { %9132 = vmatmul.mubr.msk.bf16.gmra.mrb[8].mxu0 %vm1339_vm10, %v8213_v6  ;;  %v2838_v6 = vsel %vm10735_vm14, %v2836_v32, %v2837_v34  ;;  %v2842_v41 = vsel %vm10735_vm14, %v8233_v26, %v2841_v40  ;;  %v2859_v52 = vsel %vm10735_vm14, %v2857_v0, %v2858_v13  ;;  %v2876_v12 = vrot.slane %v11080_v57, 5  ;;  %v9888_v0 = vld [vmem:[#allocation2 + $0x18] sm:$0xff]   ;;  %v9890_v13 = vld [vmem:[#allocation2 + $0x24] sm:$0xff]  }
 0x11d   : > { %9135 = vmatprep.mubr.msk.bf16.mxu0 %vm1339_vm10, %v8214_v22  ;;  %v2794_v22 = vld [vmem:[#allocation2 + $0x24] sm:$0xe]  ;;  %v8250_v8 = vcombine.low %v2835_v47, %v2838_v6  ;;  %v8251_v30 = vcombine.low %v2842_v41, %v2845_v55  ;;  %v2866_v58 = vsel %vm10735_vm14, %v2864_v19, %v2865_v36  ;;  %v8253_v29 = vcombine.low %v2856_v51, %v2859_v52  ;;  %v9887_v47 = vld [vmem:[%s12579_s2 + $0xd8] sm:$0xff]   ;;  %v9894_v51 = vld [vmem:[#allocation2 + $0x48] sm:$0xff]  }
 0x11e   : > { %v8234_v18 = vrot.slane %v2794_v22, 9  ;;  %v2871_v44 = vrot.slane %v2869_v59, 4  ;;  %v2872_v34 = vrot.slane %v11104_v39, 5  ;;  %v8238_v4 = vrot.slane %v2798_v63, 9  ;;  %v3394_v19 = vld [vmem:[#allocation2 + $0x18] sm:$0xf] }
 0x11f   : > { %v2878_v17 = vrot.slane %v2876_v12, 4  ;;  %v2879_v40 = vrot.slane %v11113_v62, 5  ;;  %v2883_v39 = vrot.slane %v11108_v48, 5  ;;  %v2890_v22 = vrot.slane %v11117_v11, 5  ;;  %v9892_v36 = vld [vmem:[#allocation2 + $0x3c] sm:$0xff]  }
 0x120   : > { %v2849_v9 = vsel %vm10735_vm14, %v8234_v18, %v2848_v35  ;;  %v2873_v6 = vsel %vm10735_vm14, %v2871_v44, %v2872_v34  ;;  %v2877_v62 = vsel %vm10735_vm14, %v8238_v4, %v2876_v12  ;;  %v2799_v35 = vld [vmem:[#allocation2 + $0x60] sm:$0xe]  ;;  %v2886_v48 = vrot.slane %v11136_v50, 5  ;;  %v11286_v52 = vld [vmem:[#allocation2 + $0x1c] sm:$0xf]  ;;  %v9895_v4 = vld [vmem:[#allocation2 + $0x54] sm:$0xff]  }
 0x121   : > { %v8252_v27 = vcombine.low %v2849_v9, %v2852_v16  ;;  %v2880_v54 = vsel %vm10735_vm14, %v2878_v17, %v2879_v40  ;;  %v8239_v1 = vrot.slane %v2799_v35, 9  ;;  %v2885_v18 = vrot.slane %v2883_v39, 4  ;;  %v11300_v34 = vld [vmem:[%s12579_s2 + $0x100] sm:$0xff]   ;;  %v3400_v17 = vld [vmem:[#allocation2 + $0x30] sm:$0xf] }
 0x122   : > { %v8256_v23 = vcombine.low %v2877_v62, %v2880_v54  ;;  %v2892_v15 = vrot.slane %v2890_v22, 4  ;;  %v2893_v41 = vrot.slane %v11151_v42, 5  ;;  %v2897_v61 = vrot.slane %v11140_v60, 5  ;;  %v2801_v42 = vld [vmem:[#allocation2 + $0x78] sm:$0xe]  ;;  %v9897_v62 = vld [vmem:[#allocation2 + $0x60] sm:$0xff]  }
 0x123   : > { %v2884_v11 = vsel %vm10735_vm14, %v8239_v1, %v2883_v39  ;;  %v2887_v55 = vsel %vm10735_vm14, %v2885_v18, %v2886_v48  ;;  %v3438_v12 = vshrl.u32 %v11286_v52, 16  ;;  %v11306_v39 = vld [vmem:[#allocation2 + $0x34] sm:$0xf]  ;;  %v11308_v54 = vld [vmem:[#allocation2 + $0x20] sm:$0x1] }
 0x124   : > { %9136 = vmatmul.mubr.msk.bf16.gmra.mrb[12].mxu0 %vm1339_vm10, %v8215_v53  ;;  %v2863_v53 = vsel %vm10735_vm14, %v8236_v24, %v2862_v14  ;;  %v2894_v9 = vsel %vm10735_vm14, %v2892_v15, %v2893_v41  ;;  %v8257_v16 = vcombine.low %v2884_v11, %v2887_v55  ;;  %v8241_v14 = vrot.slane %v2801_v42, 9  ;;  %v9896_v24 = vld [vmem:[%s12579_s2 + $0xf0] sm:$0xff]   ;;  %v3403_v48 = vld [vmem:[#allocation2 + $0x3c] sm:$0xf] }
 0x125   : > { %9139 = vmatprep.mubr.msk.bf16.mxu0 %vm1339_vm10, %v8216_v2  ;;  %v2797_v2 = vld [vmem:[#allocation2 + $0x48] sm:$0xe]  ;;  %v8254_v33 = vcombine.low %v2863_v53, %v2866_v58  ;;  %v2899_v38 = vrot.slane %v2897_v61, 4  ;;  %v3428_v53 = vshll.u32 %v3394_v19, 16  ;;  %v9899_v58 = vld [vmem:[%s12579_s2 + $0xf8] sm:$0xff]   ;;  %v3482_v1 = vshll.u32 %v11306_v39, 16 }
 0x126   : > { %v8237_v32 = vrot.slane %v2797_v2, 9  ;;  %v2898_v60 = vsel %vm10735_vm14, %v8241_v14, %v2897_v61  ;;  %v3397_v2 = vld [vmem:[#allocation2 + $0x24] sm:$0xf]  ;;  %v3486_v18 = vshrl.u32 %v11306_v39, 16  ;;  %v3444_v41 = vshll.u32 %v11308_v54, 16 }
 0x127   : > { %v3452_v44 = vshll.u32 %v3397_v2, 16  ;;  %v3497_v42 = vshrl.u32 %v3403_v48, 16 }
 0x128   : > { %v2870_v57 = vsel %vm10735_vm14, %v8237_v32, %v2869_v59  ;;  %v3425_v59 = vshrl.u32 %v3394_v19, 16  ;;  %v3449_v32 = vshrl.u32 %v3397_v2, 16 }
 0x129   : > { %v8255_v26 = vcombine.low %v2870_v57, %v2873_v6 }
 0x12a   : > { %v3427_v63 = vrot.slane %v3425_v59, 4  ;;  %v3499_v59 = vrot.slane %v3497_v42, 4  ;;  %v3412_v42 = vld [vmem:[#allocation2 + $0x60] sm:$0xf] }
 0x12c   : > { %9140 = vmatmul.mubr.msk.bf16.gmra.mrb[16].mxu0 %vm1339_vm10, %v8217_v46  ;;  %v9889_v46 = vld [vmem:[%s12579_s2 + $0xe0] sm:$0xff]  }
 0x12d   : > { %9151 = vmatprep.mubr.msk.bf16.mxu0 %vm1339_vm10, %v8250_v8  ;;  %v2800_v8 = vld [vmem:[#allocation2 + $0x6c] sm:$0xe] }
 0x12e   : > { %v8240_v3 = vrot.slane %v2800_v8, 9  ;;  %v11311_v8 = vld [vmem:[#allocation2 + $0x2c] sm:$0x1] }
 0x130   : > { %v2891_v50 = vsel %vm10735_vm14, %v8240_v3, %v2890_v22  ;;  %v3451_v22 = vrot.slane %v3449_v32, 4  ;;  %v11315_v3 = vld [vmem:[#allocation2 + $0x40] sm:$0xf] }
 0x131   : > { %v8258_v21 = vcombine.low %v2891_v50, %v2894_v9  ;;  %v3468_v9 = vshll.u32 %v11311_v8, 16  ;;  %v3510_v14 = vshrl.u32 %v11315_v3, 16 }
 0x133   : > { %v3512_v2 = vrot.slane %v3510_v14, 4 }
 0x134   : > { %9152 = vmatmul.mubr.msk.bf16.vlgmr.msra.gmra.mrb[0].mxu0 %vm1339_vm10, %v8251_v30  ;;  %v2900_v30 = vrot.slane %v11169_v37, 5  ;;  %v9893_v37 = vld [vmem:[%s12579_s2 + $0xe8] sm:$0xff]  }
 0x135   : > { %9172 = vmatpush3.bf16.msra.mxu0 %v11167_v20  ;;  %9155 = vmatprep.mubr.msk.bf16.mxu0 %vm1339_vm10, %v8252_v27  ;;  %v9886_v20 = vld [vmem:[%s12579_s2 + $0xd0] sm:$0xff]  }
 0x136   : > { %9173 = vmatprep.subr.bf16.mxu0 %v9885_v28  ;;  %v2901_v27 = vsel %vm10735_vm14, %v2899_v38, %v2900_v30 }
 0x137   : > { %v8259_v45 = vcombine.low %v2898_v60, %v2901_v27  ;;  %v11326_v60 = vrot.slane %v3482_v1, 5  ;;  %v3488_v27 = vrot.slane %v3486_v18, 4 }
 0x139   : > { %9174 = vmatpush3.bf16.msra.mxu0 %v9885_v28  ;;  %v9891_v28 = vld [vmem:[#allocation2 + $0x30] sm:$0xff]  }
 0x13a   : > { %9175 = vmatprep.subr.bf16.mxu0 %v9886_v20 }
 0x13c   : > { %9156 = vmatmul.mubr.msk.bf16.gmra.mrb[4].mxu0 %vm1339_vm10, %v8253_v29  ;;  %v3430_v29 = vrot.slane %v3428_v53, 5 }
 0x13d   : > { %9159 = vmatprep.mubr.msk.bf16.mxu0 %vm1339_vm10, %v8254_v33  ;;  %9176 = vmatpush3.bf16.msra.mxu0 %v9886_v20  ;;  %v3434_v20 = vshll.u32 %v11286_v52, 16  ;;  %v11295_v33 = vld [vmem:[#allocation2 + $0x28] sm:$0xf] }
 0x13e   : > { %9177 = vmatprep.subr.bf16.mxu0 %v9887_v47  ;;  %v3458_v57 = vshll.u32 %v11295_v33, 16  ;;  %v3462_v6 = vshrl.u32 %v11295_v33, 16  ;;  %v3431_v35 = vor.u32 %v3430_v29, %v3427_v63  ;;  %v3489_v29 = vor.u32 %v3488_v27, %v11326_v60 }
 0x13f   : > { %v11302_v40 = vrot.slane %v3434_v20, 5  ;;  %v11337_v20 = vld [vmem:[#allocation2 + $0x4c] sm:$0xf] }
 0x140   : > { %v11320_v11 = vrot.slane %v3458_v57, 5  ;;  %v3464_v55 = vrot.slane %v3462_v6, 4  ;;  %v3432_v61 = vrot.slane %v3431_v35, 4  ;;  %v3530_v6 = vshll.u32 %v11337_v20, 16 }
 0x141   : > { %9178 = vmatpush3.bf16.msra.mxu0 %v9887_v47  ;;  %v3440_v47 = vrot.slane %v3438_v12, 4  ;;  %v3490_v18 = vrot.slane %v3489_v29, 4 }
 0x142   : > { %9199 = vmatprep.subr.bf16.mxu0 %v9889_v46  ;;  %v3437_v12 = vsel %vm10496_vm11, %v3432_v61, %v11302_v40 }
 0x143   : > { %v3441_v15 = vor.u32 %v3440_v47, %v11302_v40  ;;  %v3534_v40 = vshrl.u32 %v11337_v20, 16 }
 0x144   : > { %9160 = vmatmul.mubr.msk.bf16.gmra.mrb[8].mxu0 %vm1339_vm10, %v8255_v26  ;;  %v3473_v26 = vshrl.u32 %v3400_v17, 16 }
 0x145   : > { %9163 = vmatprep.mubr.msk.bf16.mxu0 %vm1339_vm10, %v8256_v23  ;;  %v3476_v23 = vshll.u32 %v3400_v17, 16 }
 0x146   : > { %v3475_v38 = vrot.slane %v3473_v26, 4  ;;  %v9901_v26 = vld [vmem:[#allocation2 + $0x84] sm:$0xff]  }
 0x147   : > { %v3478_v30 = vrot.slane %v3476_v23, 5 }
 0x149   : > { %v3479_v63 = vor.u32 %v3478_v30, %v3475_v38  ;;  %v11367_v30 = vld [vmem:[#allocation2 + $0x64] sm:$0xf] }
 0x14b   : > { %v3480_v1 = vrot.slane %v3479_v63, 4 }
 0x14c   : > { %9164 = vmatmul.mubr.msk.bf16.gmra.mrb[12].mxu0 %vm1339_vm10, %v8257_v16  ;;  %v3500_v16 = vshll.u32 %v3403_v48, 16 }
 0x14d   : > { %9167 = vmatprep.mubr.msk.bf16.mxu0 %vm1339_vm10, %v8258_v21  ;;  %v3506_v21 = vshll.u32 %v11315_v3, 16 }
 0x14e   : > { %v3502_v53 = vrot.slane %v3500_v16, 5  ;;  %v11365_v16 = vrot.slane %v3530_v6, 5 }
 0x154   : > { %9168 = vmatmul.mubr.msk.bf16.gmra.mrb[16].mxu0 %vm1339_vm10, %v8259_v45  ;;  %v9898_v45 = vld [vmem:[#allocation2 + $0x6c] sm:$0xff]  }
 0x155   : > { %9179 = vmatprep.mubr.msk.bf16.mxu0 %vm1339_vm10, %v9888_v0  ;;  %v3442_v0 = vrot.slane %v3441_v15, 4  ;;  %v11354_v15 = vld [vmem:[#allocation2 + $0x50] sm:$0x1] }
 0x15c   : > { %9180 = vmatmul.mubr.msk.bf16.vlgmr.msra.gmra.mrb[0].mxu0 %vm1339_vm10, %v9890_v13  ;;  %v3446_v13 = vrot.slane %v3444_v41, 5 }
 0x15d   : > { %9200 = vmatpush3.bf16.msra.mxu0 %v9889_v46  ;;  %9183 = vmatprep.mubr.msk.bf16.mxu0 %vm1339_vm10, %v9891_v28  ;;  %v3454_v46 = vrot.slane %v3452_v44, 5  ;;  %v3465_v28 = vor.u32 %v3464_v55, %v11320_v11  ;;  %v11344_v44 = vld [vmem:[#allocation2 + $0x44] sm:$0x1] }
 0x15e   : > { %9201 = vmatprep.subr.bf16.mxu0 %v9893_v37 }
 0x15f   : > { %v3455_v50 = vor.u32 %v3454_v46, %v3451_v22  ;;  %v3466_v17 = vrot.slane %v3465_v28, 4  ;;  %v3516_v22 = vshll.u32 %v11344_v44, 16  ;;  %v3409_v46 = vld [vmem:[#allocation2 + $0x54] sm:$0xf] }
 0x160   : > { %v3545_v14 = vshrl.u32 %v3409_v46, 16  ;;  %v3548_v38 = vshll.u32 %v3409_v46, 16 }
 0x161   : > { %9202 = vmatpush3.bf16.msra.mxu0 %v9893_v37  ;;  %v11329_v37 = vld [vmem:[#allocation2 + $0x38] sm:$0x1]  ;;  %v11331_v19 = vrot.slane %v3455_v50, 4 }
 0x162   : > { %9203 = vmatprep.subr.bf16.mxu0 %v9896_v24  ;;  %v3492_v32 = vshll.u32 %v11329_v37, 16  ;;  %v3547_v63 = vrot.slane %v3545_v14, 4  ;;  %v3550_v29 = vrot.slane %v3548_v38, 5  ;;  %v3418_v38 = vld [vmem:[#allocation2 + $0x78] sm:$0xf] }
 0x163   : > { %v3461_v41 = vsel %vm10496_vm11, %v11331_v19, %v11320_v11  ;;  %v3540_v11 = vshll.u32 %v11354_v15, 16  ;;  %v3572_v19 = vshll.u32 %v3412_v42, 16 }
 0x164   : > { %9184 = vmatmul.mubr.msk.bf16.gmra.mrb[4].mxu0 %vm1339_vm10, %v9892_v36  ;;  %v11333_v36 = vrot.slane %v3468_v9, 5  ;;  %v3494_v48 = vrot.slane %v3492_v32, 5  ;;  %v11363_v9 = vld [vmem:[#allocation2 + $0x58] sm:$0xf] }
 0x165   : > { %9187 = vmatprep.mubr.msk.bf16.mxu0 %vm1339_vm10, %v9894_v51  ;;  %9204 = vmatpush3.bf16.msra.mxu0 %v9896_v24  ;;  %v9900_v24 = vld [vmem:[#allocation2 + $0x78] sm:$0xff]   ;;  %v3406_v51 = vld [vmem:[#allocation2 + $0x48] sm:$0xf]  ;;  %v3558_v28 = vshrl.u32 %v11363_v9, 16 }
 0x166   : > { %9205 = vmatprep.subr.bf16.mxu0 %v9899_v58  ;;  %v3521_v47 = vshrl.u32 %v3406_v51, 16  ;;  %v3524_v57 = vshll.u32 %v3406_v51, 16  ;;  %v3471_v55 = vsel %vm10496_vm11, %v3466_v17, %v11333_v36  ;;  %v3485_v36 = vsel %vm10496_vm11, %v3480_v1, %v11326_v60  ;;  %v11387_v17 = vld [vmem:[#allocation2 + $0x5c] sm:$0x1] }
 0x167   : > { %v3495_v51 = vsel %vm10496_vm11, %v3490_v18, %v3494_v48  ;;  %v3551_v18 = vor.u32 %v3550_v29, %v3547_v63  ;;  %v3564_v48 = vshll.u32 %v11387_v17, 16 }
 0x168   : > { %v3523_v61 = vrot.slane %v3521_v47, 4  ;;  %v3526_v50 = vrot.slane %v3524_v57, 5  ;;  %v3560_v57 = vrot.slane %v3558_v28, 4 }
 0x169   : > { %9206 = vmatpush3.bf16.msra.mxu0 %v9899_v58  ;;  %v11335_v58 = vrot.slane %v3506_v21, 5  ;;  %v3536_v21 = vrot.slane %v3534_v40, 4  ;;  %v3574_v40 = vrot.slane %v3572_v19, 5  ;;  %v3552_v19 = vrot.slane %v3551_v18, 4 }
 0x16a   : > { %9227 = vmatprep.subr.bf16.mxu0 %v11300_v34 }
 0x16b   : > { %v3513_v35 = vor.u32 %v3512_v2, %v11335_v58  ;;  %v3527_v2 = vor.u32 %v3526_v50, %v3523_v61  ;;  %v11396_v61 = vld [vmem:[#allocation2 + $0x70] sm:$0xf] }
 0x16c   : > { %9188 = vmatmul.mubr.msk.bf16.gmra.mrb[8].mxu0 %vm1339_vm10, %v9895_v4  ;;  %v3447_v4 = vsel %vm10496_vm11, %v3442_v0, %v3446_v13  ;;  %v3518_v0 = vrot.slane %v3516_v22, 5  ;;  %v3554_v13 = vshll.u32 %v11363_v9, 16  ;;  %v11391_v22 = vld [vmem:[#allocation2 + $0x68] sm:$0x1] }
 0x16d   : > { %9191 = vmatprep.mubr.msk.bf16.mxu0 %vm1339_vm10, %v9897_v62  ;;  %v3503_v62 = vor.u32 %v3502_v53, %v3499_v59  ;;  %v8314_v23 = vcombine.low %v3437_v12, %v3447_v4  ;;  %v3578_v59 = vshll.u32 %v11367_v30, 16  ;;  %v3582_v53 = vshrl.u32 %v11367_v30, 16 }
 0x16e   : > { %v3537_v12 = vor.u32 %v3536_v21, %v11365_v16  ;;  %v3542_v4 = vrot.slane %v3540_v11, 5  ;;  %v11389_v47 = vrot.slane %v3554_v13, 5  ;;  %v3588_v21 = vshll.u32 %v11391_v22, 16 }
 0x16f   : > { %v3504_v27 = vrot.slane %v3503_v62, 4  ;;  %v8315_v62 = vcombine.low %v3461_v41, %v3471_v55  ;;  %v11393_v46 = vrot.slane %v3578_v59, 5  ;;  %v3602_v11 = vshll.u32 %v11396_v61, 16 }
 0x170   : > { %v3538_v1 = vrot.slane %v3537_v12, 4  ;;  %v3561_v41 = vor.u32 %v3560_v57, %v11389_v47  ;;  %v3606_v13 = vshrl.u32 %v11396_v61, 16  ;;  %v3617_v59 = vshrl.u32 %v3418_v38, 16 }
 0x171   : > { %v3509_v32 = vsel %vm10496_vm11, %v3504_v27, %v11335_v58  ;;  %v3528_v58 = vrot.slane %v3527_v2, 4  ;;  %v11403_v27 = vld [vmem:[#allocation2 + $0x7c] sm:$0xf]  ;;  %v3590_v29 = vrot.slane %v3588_v21, 5  ;;  %v3604_v57 = vrot.slane %v3602_v11, 5 }
 0x172   : > { %v3630_v2 = vshrl.u32 %v11403_v27, 16  ;;  %v3562_v12 = vrot.slane %v3561_v41, 4 }
 0x173   : > { %v3533_v28 = vsel %vm10496_vm11, %v3528_v58, %v11365_v16 }
 0x174   : > { %9192 = vmatmul.mubr.msk.bf16.gmra.mrb[12].mxu0 %vm1339_vm10, %v9898_v45  ;;  %v3514_v45 = vrot.slane %v3513_v35, 4  ;;  %v8316_v35 = vcombine.low %v3485_v36, %v3495_v51  ;;  %v3566_v36 = vrot.slane %v3564_v48, 5  ;;  %v9904_v51 = vld [vmem:[%s12579_s2 + $0x110] sm:$0xff]   ;;  %v3632_v18 = vrot.slane %v3630_v2, 4 }
 0x175   : > { %9195 = vmatprep.mubr.msk.bf16.mxu0 %vm1339_vm10, %v9900_v24  ;;  %v3569_v24 = vshrl.u32 %v3412_v42, 16  ;;  %v9903_v42 = vld [vmem:[%s12579_s2 + $0x108] sm:$0xff]   ;;  %v3557_v48 = vsel %vm10496_vm11, %v3552_v19, %v11389_v47 }
 0x176   : > { %v3519_v60 = vsel %vm10496_vm11, %v3514_v45, %v3518_v0 }
 0x177   : > { %v3571_v6 = vrot.slane %v3569_v24, 4  ;;  %v8317_v50 = vcombine.low %v3509_v32, %v3519_v60  ;;  %v3543_v24 = vsel %vm10496_vm11, %v3538_v1, %v3542_v4  ;;  %v11421_v60 = vld [vmem:[#allocation2 + $0x74] sm:$0x1] }
 0x178   : > { %v3612_v41 = vshll.u32 %v11421_v60, 16 }
 0x179   : > { %v3575_v55 = vor.u32 %v3574_v40, %v3571_v6  ;;  %v3608_v6 = vrot.slane %v3606_v13, 4  ;;  %v8318_v40 = vcombine.low %v3533_v28, %v3543_v24 }
 0x17b   : > { %v3576_v63 = vrot.slane %v3575_v55, 4  ;;  %v11434_v55 = vld [vmem:[#allocation2 + $0x80] sm:$0x1] }
 0x17c   : > { %9196 = vmatmul.mubr.msk.bf16.gmra.mrb[16].mxu0 %vm1339_vm10, %v9901_v26  ;;  %v3584_v26 = vrot.slane %v3582_v53, 4  ;;  %v3620_v53 = vshll.u32 %v3418_v38, 16  ;;  %v3636_v24 = vshll.u32 %v11434_v55, 16 }
 0x17d   : > { %9207 = vmatprep.mubr.msk.bf16.mxu0 %vm1339_vm10, %v8314_v23  ;;  %v3415_v23 = vld [vmem:[#allocation2 + $0x6c] sm:$0xf]  ;;  %v3581_v21 = vsel %vm10496_vm11, %v3576_v63, %v11393_v46 }
 0x17e   : > { %v3593_v14 = vshrl.u32 %v3415_v23, 16  ;;  %v3585_v45 = vor.u32 %v3584_v26, %v11393_v46  ;;  %v3596_v0 = vshll.u32 %v3415_v23, 16  ;;  %v9905_v26 = vld [vmem:[%s12579_s2 + $0x118] sm:$0xff]   ;;  %v3619_v23 = vrot.slane %v3617_v59, 4 }
 0x17f   : > { %v3622_v58 = vrot.slane %v3620_v53, 5  ;;  %v3614_v53 = vrot.slane %v3612_v41, 5 }
 0x180   : > { %v3595_v16 = vrot.slane %v3593_v14, 4  ;;  %v3586_v32 = vrot.slane %v3585_v45, 4  ;;  %v3598_v4 = vrot.slane %v3596_v0, 5  ;;  %v3609_v45 = vor.u32 %v3608_v6, %v3604_v57 }
 0x182   : > { %v3591_v14 = vsel %vm10496_vm11, %v3586_v32, %v3590_v29  ;;  %v3599_v38 = vor.u32 %v3598_v4, %v3595_v16  ;;  %v3610_v59 = vrot.slane %v3609_v45, 4  ;;  %v3638_v16 = vrot.slane %v3636_v24, 5  ;;  %v11446_v32 = vld [vmem:[#allocation2 + $0x8c] sm:$0x1] }
 0x183   : > { %v8320_v19 = vcombine.low %v3581_v21, %v3591_v14 }
 0x184   : > { %9208 = vmatmul.mubr.msk.bf16.vlgmr.msra.gmra.mrb[0].mxu0 %vm1339_vm10, %v8315_v62  ;;  %v3421_v62 = vld [vmem:[#allocation2 + $0x84] sm:$0xf]  ;;  %v3615_v6 = vsel %vm10496_vm11, %v3610_v59, %v3614_v53  ;;  %v3942_v59 = vrot.slane %v11311_v8, 5 }
 0x185   : > { %9228 = vmatpush3.bf16.msra.mxu0 %v11300_v34  ;;  %9211 = vmatprep.mubr.msk.bf16.mxu0 %vm1339_vm10, %v8316_v35  ;;  %v3626_v34 = vshll.u32 %v11403_v27, 16  ;;  %v11423_v35 = vld [vmem:[#allocation2 + $0x88] sm:$0xf]  ;;  %v3641_v47 = vshrl.u32 %v3421_v62, 16  ;;  %v3644_v0 = vshll.u32 %v3421_v62, 16 }
 0x186   : > { %9229 = vmatprep.subr.bf16.mxu0 %v9903_v42  ;;  %v3650_v11 = vshll.u32 %v11423_v35, 16  ;;  %v3654_v13 = vshrl.u32 %v11423_v35, 16 }
 0x187   : > { %v3628_v1 = vrot.slane %v3626_v34, 5  ;;  %v3643_v34 = vrot.slane %v3641_v47, 4  ;;  %v3646_v2 = vrot.slane %v3644_v0, 5  ;;  %v3935_v47 = vrot.slane %v11308_v54, 5 }
 0x188   : > { %v3939_v0 = vrot.slane %v11295_v33, 5  ;;  %v3946_v54 = vrot.slane %v11306_v39, 5  ;;  %v3949_v33 = vrot.slane %v11329_v37, 5  ;;  %v3960_v37 = vrot.slane %v11337_v20, 5 }
 0x189   : > { %9230 = vmatpush3.bf16.msra.mxu0 %v9903_v42  ;;  %v3567_v42 = vsel %vm10496_vm11, %v3562_v12, %v3566_v36  ;;  %v3633_v28 = vor.u32 %v3632_v18, %v3628_v1  ;;  %v3600_v36 = vrot.slane %v3599_v38, 4  ;;  %v3656_v12 = vrot.slane %v3654_v13, 4 }
 0x18a   : > { %9231 = vmatprep.subr.bf16.mxu0 %v9904_v51  ;;  %v8319_v46 = vcombine.low %v3557_v48, %v3567_v42  ;;  %v3932_v18 = vrot.slane %v11286_v52, 5  ;;  %v3890_v48 = vld [vmem:[#allocation2 + $0x18] sm:$0xe] }
 0x18b   : > { %v3634_v29 = vrot.slane %v3633_v28, 4  ;;  %v3605_v4 = vsel %vm10496_vm11, %v3600_v36, %v3604_v57  ;;  %v8338_v38 = vrot.slane %v3890_v48, 9  ;;  %v3892_v28 = vld [vmem:[#allocation2 + $0x30] sm:$0xe]  ;;  %v3941_v36 = vrot.slane %v3939_v0, 4 }
 0x18c   : > { %9212 = vmatmul.mubr.msk.bf16.gmra.mrb[4].mxu0 %vm1339_vm10, %v8317_v50  ;;  %v3623_v50 = vor.u32 %v3622_v58, %v3619_v23  ;;  %v8321_v42 = vcombine.low %v3605_v4, %v3615_v6  ;;  %v3934_v45 = vrot.slane %v3932_v18, 4  ;;  %v8340_v53 = vrot.slane %v3892_v28, 9 }
 0x18d   : > { %9215 = vmatprep.mubr.msk.bf16.mxu0 %vm1339_vm10, %v8318_v40  ;;  %9232 = vmatpush3.bf16.msra.mxu0 %v9904_v51  ;;  %v3652_v51 = vrot.slane %v3650_v11, 5  ;;  %v3647_v40 = vor.u32 %v3646_v2, %v3643_v34  ;;  %v3639_v58 = vsel %vm10496_vm11, %v3634_v29, %v3638_v16  ;;  %v3933_v11 = vsel %vm10735_vm14, %v8338_v38, %v3932_v18  ;;  %v3894_v29 = vld [vmem:[#allocation2 + $0x48] sm:$0xe] }
 0x18e   : > { %9233 = vmatprep.subr.bf16.mxu0 %v9905_v26  ;;  %v3624_v63 = vrot.slane %v3623_v50, 4  ;;  %v3936_v13 = vsel %vm10735_vm14, %v3934_v45, %v3935_v47  ;;  %v3891_v50 = vld [vmem:[#allocation2 + $0x24] sm:$0xe]  ;;  %v3948_v34 = vrot.slane %v3946_v54, 4  ;;  %v3943_v39 = vsel %vm10735_vm14, %v3941_v36, %v3942_v59 }
 0x18f   : > { %v3657_v62 = vor.u32 %v3656_v12, %v3652_v51  ;;  %v3648_v41 = vrot.slane %v3647_v40, 4  ;;  %v3947_v12 = vsel %vm10735_vm14, %v8340_v53, %v3946_v54  ;;  %v3967_v18 = vrot.slane %v11363_v9, 5 }
 0x190   : > { %v3629_v23 = vsel %vm10496_vm11, %v3624_v63, %v3628_v1  ;;  %v3950_v8 = vsel %vm10735_vm14, %v3948_v34, %v3949_v33  ;;  %v3893_v63 = vld [vmem:[#allocation2 + $0x3c] sm:$0xe]  ;;  %v3970_v45 = vrot.slane %v11387_v17, 5  ;;  %v3977_v9 = vrot.slane %v11391_v22, 5 }
 0x191   : > { %9234 = vmatpush3.bf16.msra.mxu0 %v9905_v26  ;;  %v3660_v26 = vshll.u32 %v11446_v32, 16  ;;  %v8322_v57 = vcombine.low %v3629_v23, %v3639_v58  ;;  %v3658_v21 = vrot.slane %v3657_v62, 4  ;;  %v3653_v1 = vsel %vm10496_vm11, %v3648_v41, %v3652_v51 }
 0x192   : > { %v3953_v51 = vrot.slane %v11315_v3, 5  ;;  %v8358_v4 = vcombine.low %v3947_v12, %v3950_v8  ;;  %v8341_v6 = vrot.slane %v3893_v63, 9  ;;  %v3956_v62 = vrot.slane %v11344_v44, 5 }
 0x193   : > { %v3662_v14 = vrot.slane %v3660_v26, 5  ;;  %v8342_v26 = vrot.slane %v3894_v29, 9  ;;  %v3962_v23 = vrot.slane %v3960_v37, 4  ;;  %v3963_v3 = vrot.slane %v11354_v15, 5  ;;  %v11539_v29 = vld [vmem:[%s12580_s3] ss:$0 sm:$0xff] }
 0x194   : > { %9216 = vmatmul.mubr.msk.bf16.gmra.mrb[8].mxu0 %vm1339_vm10, %v8319_v46  ;;  %v8356_v46 = vcombine.low %v3933_v11, %v3936_v13  ;;  %v3955_v40 = vrot.slane %v3953_v51, 4  ;;  %v3954_v58 = vsel %vm10735_vm14, %v8341_v6, %v3953_v51  ;;  %v3974_v15 = vrot.slane %v11367_v30, 5  ;;  %v3897_v13 = vld [vmem:[#allocation2 + $0x6c] sm:$0xe] }
 0x195   : > { %9219 = vmatprep.mubr.msk.bf16.mxu0 %vm1339_vm10, %v8320_v19  ;;  %v3663_v52 = vsel %vm10496_vm11, %v3658_v21, %v3662_v14  ;;  %v8339_v19 = vrot.slane %v3891_v50, 9  ;;  %v3961_v48 = vsel %vm10735_vm14, %v8342_v26, %v3960_v37  ;;  %v3964_v44 = vsel %vm10735_vm14, %v3962_v23, %v3963_v3  ;;  %v3898_v50 = vld [vmem:[#allocation2 + $0x78] sm:$0xe] }
 0x196   : > { %v8323_v24 = vcombine.low %v3653_v1, %v3663_v52  ;;  %v3957_v20 = vsel %vm10735_vm14, %v3955_v40, %v3956_v62  ;;  %v8360_v21 = vcombine.low %v3961_v48, %v3964_v44  ;;  %v3969_v38 = vrot.slane %v3967_v18, 4 }
 0x197   : > { %v3940_v2 = vsel %vm10735_vm14, %v8339_v19, %v3939_v0  ;;  %v8359_v41 = vcombine.low %v3954_v58, %v3957_v20  ;;  %v3976_v1 = vrot.slane %v3974_v15, 4  ;;  %v3981_v0 = vrot.slane %v11396_v61, 5 }
 0x198   : > { %v8357_v16 = vcombine.low %v3940_v2, %v3943_v39  ;;  %v3971_v30 = vsel %vm10735_vm14, %v3969_v38, %v3970_v45  ;;  %v3988_v22 = vrot.slane %v11403_v27, 5  ;;  %v3984_v19 = vrot.slane %v11421_v60, 5  ;;  %v3899_v2 = vld [vmem:[#allocation2 + $0x84] sm:$0xe]  ;;  %v4512_v45 = vld [vmem:[#allocation3 + $0xc] sm:$0xf] }
 0x199   : > { %v3978_v17 = vsel %vm10735_vm14, %v3976_v1, %v3977_v9  ;;  %v8346_v36 = vrot.slane %v3898_v50, 9  ;;  %v3991_v61 = vrot.slane %v11434_v55, 5  ;;  %v3995_v34 = vrot.slane %v11423_v35, 5 }
 0x19a   : > { %v3990_v59 = vrot.slane %v3988_v22, 4  ;;  %v8347_v51 = vrot.slane %v3899_v2, 9  ;;  %v3998_v8 = vrot.slane %v11446_v32, 5 }
 0x19b   : > { %v3989_v33 = vsel %vm10735_vm14, %v8346_v36, %v3988_v22  ;;  %v3997_v12 = vrot.slane %v3995_v34, 4 }
 0x19c   : > { %9220 = vmatmul.mubr.msk.bf16.gmra.mrb[12].mxu0 %vm1339_vm10, %v8321_v42  ;;  %v3895_v42 = vld [vmem:[#allocation2 + $0x54] sm:$0xe]  ;;  %v3992_v60 = vsel %vm10735_vm14, %v3990_v59, %v3991_v61  ;;  %v3996_v35 = vsel %vm10735_vm14, %v8347_v51, %v3995_v34 }
 0x19d   : > { %9223 = vmatprep.mubr.msk.bf16.mxu0 %vm1339_vm10, %v8322_v57  ;;  %v3896_v57 = vld [vmem:[#allocation2 + $0x60] sm:$0xe]  ;;  %v8343_v14 = vrot.slane %v3895_v42, 9  ;;  %v8364_v39 = vcombine.low %v3989_v33, %v3992_v60  ;;  %v3999_v63 = vsel %vm10735_vm14, %v3997_v12, %v3998_v8  ;;  %v4526_v12 = vld [vmem:[#allocation3 + $0x24] sm:$0xf] }
 0x19e   : > { %v8344_v47 = vrot.slane %v3896_v57, 9  ;;  %v8365_v37 = vcombine.low %v3996_v35, %v3999_v63 }
 0x19f   : > { %v3968_v52 = vsel %vm10735_vm14, %v8343_v14, %v3967_v18 }
 0x1a0   : > { %v3975_v11 = vsel %vm10735_vm14, %v8344_v47, %v3974_v15  ;;  %v8361_v54 = vcombine.low %v3968_v52, %v3971_v30 }
 0x1a1   : > { %v8362_v28 = vcombine.low %v3975_v11, %v3978_v17 }
 0x1a4   : > { %9224 = vmatmul.mubr.msk.bf16.gmra.mrb[16].mxu0 %vm1339_vm10, %v8323_v24  ;;  %v8345_v24 = vrot.slane %v3897_v13, 9  ;;  %v4516_v13 = vld [vmem:[#allocation3 + $0x14] sm:$0x1] }
 0x1a5   : > { %9235 = vmatprep.mubr.msk.bf16.mxu0 %vm1339_vm10, %v8356_v46  ;;  %v3983_v46 = vrot.slane %v3981_v0, 4 }
 0x1a6   : > { %v3982_v53 = vsel %vm10735_vm14, %v8345_v24, %v3981_v0 }
 0x1a7   : > { %v3985_v27 = vsel %vm10735_vm14, %v3983_v46, %v3984_v19 }
 0x1a8   : > { %v8363_v55 = vcombine.low %v3982_v53, %v3985_v27 }
 0x1ac   : > { %9236 = vmatmul.mubr.msk.bf16.vlgmr.msra.gmra.mrb[0].mxu0 %vm1339_vm10, %v8357_v16 }
 0x1ad   : > { %9239 = vmatprep.mubr.msk.bf16.mxu0 %vm1339_vm10, %v8358_v4 }
 0x1b4   : > { %9240 = vmatmul.mubr.msk.bf16.gmra.mrb[4].mxu0 %vm1339_vm10, %v8359_v41 }
 0x1b5   : > { %9243 = vmatprep.mubr.msk.bf16.mxu0 %vm1339_vm10, %v8360_v21 }
 0x1bc   : > { %9244 = vmatmul.mubr.msk.bf16.gmra.mrb[8].mxu0 %vm1339_vm10, %v8361_v54 }
 0x1bd   : > { %9247 = vmatprep.mubr.msk.bf16.mxu0 %vm1339_vm10, %v8362_v28 }
 0x1c4   : > { %9248 = vmatmul.mubr.msk.bf16.gmra.mrb[12].mxu0 %vm1339_vm10, %v8363_v55 }
 0x1c5   : > { %9251 = vmatprep.mubr.msk.bf16.mxu0 %vm1339_vm10, %v8364_v39 }
 0x1cc   : > { %9252 = vmatmul.mubr.msk.bf16.gmra.mrb[16].mxu0 %vm1339_vm10, %v8365_v37 }
 0x27f   : > { %v9237_v16 = vpop.f32.mrb[0].mxu0 }
 0x280   : > { %v4235_v32 = vadd.f32 %v9237_v16, %v11539_v29  ;;  %v4127_v4 = vpop.f32.mrb[1].mxu0 }
 0x281   : > { %v11543_v6 = vadd.f32 %v11539_v29, %v4127_v4  ;;  %v9238_v40 = vpop.f32.mrb[2].mxu0 }
 0x282   : > { %v4255_v62 = vmax.f32 %v4235_v32, 0.0  ;;  %v4236_v26 = vadd.f32 %v9238_v40, %v11539_v29  ;;  %v4130_v23 = vpop.f32.mrb[3].mxu0 }
 0x283   : > { %v4253_v3 = vmax.f32 %v11543_v6, 0.0  ;;  %v11548_v58 = vadd.f32 %v11539_v29, %v4130_v23  ;;  %v4519_v23 = vld [vmem:[#allocation3 + $0x18] sm:$0xf] }
 0x284   : > { %v8725_v20 = vpack.c.bf16 %v4255_v62, %v4255_v62  ;;  %v4256_v18 = vmax.f32 %v4236_v26, 0.0 }
 0x285   : > { %v4254_v48 = vmax.f32 %v11548_v58, 0.0 }
 0x286   : > { %v4352_v44 = vshrl.u32 %v8725_v20, 16  ;;  %v8726_v42 = vpack.c.bf16 %v4256_v18, %v4256_v18  ;;  %v4355_v41 = vshll.u32 %v8725_v20, 16 }
 0x287   : > { %v9241_v15 = vpop.f32.mrb[4].mxu0 }
 0x288   : > { %v4354_v57 = vrot.slane %v4352_v44, 7  ;;  %v4360_v21 = vshrl.u32 %v8726_v42, 16  ;;  %v4239_v14 = vadd.f32 %v9241_v15, %v11539_v29  ;;  %v4143_v38 = vpop.f32.mrb[5].mxu0  ;;  %v4363_v30 = vshll.u32 %v8726_v42, 16 }
 0x289   : > { %v4237_v47 = vadd.f32 %v11539_v29, %v4143_v38  ;;  %v9242_v1 = vpop.f32.mrb[6].mxu0 }
 0x28a   : > { %v4357_v9 = vor.u32 %v4355_v41, %v4354_v57  ;;  %v4362_v52 = vrot.slane %v4360_v21, 7  ;;  %v4259_v0 = vmax.f32 %v4239_v14, 0.0  ;;  %v4146_v11 = vpop.f32.mrb[7].mxu0  ;;  %v4358_v17 = vrot.slane %v4354_v57, 4  ;;  %v4530_v14 = vld [vmem:[#allocation3 + $0x2c] sm:$0x1] }
 0x28b   : > { %v4257_v22 = vmax.f32 %v4237_v47, 0.0  ;;  %v4240_v50 = vadd.f32 %v9242_v1, %v11539_v29  ;;  %v4238_v54 = vadd.f32 %v11539_v29, %v4146_v11 }
 0x28c   : > { %v4513_v28 = vsel %vm10366_vm6, %v4357_v9, %v4512_v45  ;;  %v4365_v24 = vor.u32 %v4363_v30, %v4362_v52  ;;  %v4367_v46 = vrot.slane %v4362_v52, 4  ;;  %v8729_v19 = vpack.c.bf16 %v4259_v0, %v4259_v0  ;;  %v4523_v0 = vld [vmem:[#allocation3 + $0x20] sm:$0x1] }
 0x28d   : > { %4514 = vst [vmem:[#allocation3 + $0xc] sm:$0xf] %v4513_v28  ;;  %v8727_v36 = vpack.c.bf16 %v4257_v22, %v4257_v22  ;;  %v4260_v59 = vmax.f32 %v4240_v50, 0.0  ;;  %v4258_v61 = vmax.f32 %v4238_v54, 0.0 }
 0x28e   : > { %v4366_v53 = vsel %vm10360_vm5, %v4358_v17, %v4365_v24  ;;  %v4517_v27 = vsel %vm10372_vm7, %v4367_v46, %v4516_v13  ;;  %v4386_v34 = vshrl.u32 %v8729_v19, 16  ;;  %v4389_v51 = vshll.u32 %v8729_v19, 16 }
 0x28f   : > { %4515 = vst.msk [vmem:[#allocation3 + $0x10] sm:$0xf] %vm551_vm0, %v4366_v53  ;;  %4518 = vst [vmem:[#allocation3 + $0x14] sm:$0x1] %v4517_v27  ;;  %v4369_v33 = vshrl.u32 %v8727_v36, 16  ;;  %v8730_v60 = vpack.c.bf16 %v4260_v59, %v4260_v59  ;;  %v8728_v2 = vpack.c.bf16 %v4258_v61, %v4258_v61  ;;  %v9245_v55 = vpop.f32.mrb[8].mxu0 }
 0x290   : > { %v4388_v39 = vrot.slane %v4386_v34, 7  ;;  %v4372_v8 = vshll.u32 %v8727_v36, 16  ;;  %v4243_v35 = vadd.f32 %v9245_v55, %v11539_v29  ;;  %v4159_v63 = vpop.f32.mrb[9].mxu0  ;;  %v4540_v27 = vld [vmem:[#allocation3 + $0x3c] sm:$0xf] }
 0x291   : > { %v4371_v37 = vrot.slane %v4369_v33, 7  ;;  %v4394_v16 = vshrl.u32 %v8730_v60, 16  ;;  %v4397_v32 = vshll.u32 %v8730_v60, 16  ;;  %v4377_v4 = vshrl.u32 %v8728_v2, 16  ;;  %v9246_v40 = vpop.f32.mrb[10].mxu0 }
 0x292   : > { %v4391_v62 = vor.u32 %v4389_v51, %v4388_v39  ;;  %v4392_v26 = vrot.slane %v4388_v39, 4  ;;  %v4380_v20 = vshll.u32 %v8728_v2, 16  ;;  %v4263_v18 = vmax.f32 %v4243_v35, 0.0  ;;  %v4162_v44 = vpop.f32.mrb[11].mxu0 }
 0x293   : > { %v4374_v42 = vor.u32 %v4372_v8, %v4371_v37  ;;  %v4375_v15 = vrot.slane %v4371_v37, 4  ;;  %v4396_v57 = vrot.slane %v4394_v16, 7  ;;  %v4379_v41 = vrot.slane %v4377_v4, 7 }
 0x294   : > { %v4527_v21 = vsel %vm10366_vm6, %v4391_v62, %v4526_v12  ;;  %v8733_v38 = vpack.c.bf16 %v4263_v18, %v4263_v18  ;;  %v4241_v45 = vadd.f32 %v11539_v29, %v4159_v63  ;;  %v4244_v47 = vadd.f32 %v9246_v40, %v11539_v29 }
 0x295   : > { %4528 = vst [vmem:[#allocation3 + $0x24] sm:$0xf] %v4527_v21  ;;  %v4520_v1 = vsel %vm10366_vm6, %v4374_v42, %v4519_v23  ;;  %v4399_v9 = vor.u32 %v4397_v32, %v4396_v57  ;;  %v4401_v52 = vrot.slane %v4396_v57, 4  ;;  %v4382_v30 = vor.u32 %v4380_v20, %v4379_v41  ;;  %v4544_v57 = vld [vmem:[#allocation3 + $0x44] sm:$0x1] }
 0x296   : > { %4521 = vst [vmem:[#allocation3 + $0x18] sm:$0xf] %v4520_v1  ;;  %v4384_v11 = vrot.slane %v4379_v41, 4  ;;  %v4420_v17 = vshrl.u32 %v8733_v38, 16  ;;  %v4423_v13 = vshll.u32 %v8733_v38, 16  ;;  %v4261_v22 = vmax.f32 %v4241_v45, 0.0 }
 0x297   : > { %v4400_v50 = vsel %vm10360_vm5, %v4392_v26, %v4399_v9  ;;  %v4531_v54 = vsel %vm10372_vm7, %v4401_v52, %v4530_v14  ;;  %v4383_v28 = vsel %vm10360_vm5, %v4375_v15, %v4382_v30  ;;  %v4264_v24 = vmax.f32 %v4244_v47, 0.0  ;;  %v9249_v46 = vpop.f32.mrb[12].mxu0  ;;  %v4533_v26 = vld [vmem:[#allocation3 + $0x30] sm:$0xf] }
 0x298   : > { %4529 = vst.msk [vmem:[#allocation3 + $0x28] sm:$0xf] %vm551_vm0, %v4400_v50  ;;  %4532 = vst [vmem:[#allocation3 + $0x2c] sm:$0x1] %v4531_v54  ;;  %v4524_v19 = vsel %vm10372_vm7, %v4384_v11, %v4523_v0  ;;  %v4422_v36 = vrot.slane %v4420_v17, 7  ;;  %v8731_v59 = vpack.c.bf16 %v4261_v22, %v4261_v22  ;;  %v4242_v61 = vadd.f32 %v11539_v29, %v4162_v44  ;;  %v4175_v53 = vpop.f32.mrb[13].mxu0 }
 0x299   : > { %4522 = vst.msk [vmem:[#allocation3 + $0x1c] sm:$0xf] %vm551_vm0, %v4383_v28  ;;  %4525 = vst [vmem:[#allocation3 + $0x20] sm:$0x1] %v4524_v19  ;;  %v8734_v34 = vpack.c.bf16 %v4264_v24, %v4264_v24  ;;  %v4247_v33 = vadd.f32 %v9249_v46, %v11539_v29  ;;  %v4245_v60 = vadd.f32 %v11539_v29, %v4175_v53  ;;  %v9250_v2 = vpop.f32.mrb[14].mxu0 }
 0x29a   : > { %v4425_v55 = vor.u32 %v4423_v13, %v4422_v36  ;;  %v4426_v39 = vrot.slane %v4422_v36, 4  ;;  %v4403_v51 = vshrl.u32 %v8731_v59, 16  ;;  %v4406_v12 = vshll.u32 %v8731_v59, 16  ;;  %v4178_v8 = vpop.f32.mrb[15].mxu0  ;;  %v4537_v28 = vld [vmem:[#allocation3 + $0x38] sm:$0x1] }
 0x29b   : > { %v4428_v35 = vshrl.u32 %v8734_v34, 16  ;;  %v4431_v63 = vshll.u32 %v8734_v34, 16  ;;  %v4262_v37 = vmax.f32 %v4242_v61, 0.0  ;;  %v4267_v16 = vmax.f32 %v4247_v33, 0.0  ;;  %v4547_v34 = vld [vmem:[#allocation3 + $0x48] sm:$0xf] }
 0x29c   : > { %v4541_v32 = vsel %vm10366_vm6, %v4425_v55, %v4540_v27  ;;  %v4405_v4 = vrot.slane %v4403_v51, 7  ;;  %v4265_v40 = vmax.f32 %v4245_v60, 0.0  ;;  %v4248_v62 = vadd.f32 %v9250_v2, %v11539_v29  ;;  %v4554_v27 = vld [vmem:[#allocation3 + $0x54] sm:$0xf] }
 0x29d   : > { %4542 = vst [vmem:[#allocation3 + $0x3c] sm:$0xf] %v4541_v32  ;;  %v4430_v23 = vrot.slane %v4428_v35, 7  ;;  %v8732_v20 = vpack.c.bf16 %v4262_v37, %v4262_v37  ;;  %v8737_v18 = vpack.c.bf16 %v4267_v16, %v4267_v16  ;;  %v4246_v44 = vadd.f32 %v11539_v29, %v4178_v8 }
 0x29e   : > { %v4408_v42 = vor.u32 %v4406_v12, %v4405_v4  ;;  %v4409_v15 = vrot.slane %v4405_v4, 4  ;;  %v8735_v41 = vpack.c.bf16 %v4265_v40, %v4265_v40  ;;  %v4268_v21 = vmax.f32 %v4248_v62, 0.0 }
 0x29f   : > { %v4433_v14 = vor.u32 %v4431_v63, %v4430_v23  ;;  %v4435_v38 = vrot.slane %v4430_v23, 4  ;;  %v4411_v45 = vshrl.u32 %v8732_v20, 16  ;;  %v4414_v47 = vshll.u32 %v8732_v20, 16  ;;  %v9253_v1 = vpop.f32.mrb[16].mxu0  ;;  %v4558_v23 = vld [vmem:[#allocation3 + $0x5c] sm:$0x1] }
 0x2a0   : > { %v4534_v9 = vsel %vm10366_vm6, %v4408_v42, %v4533_v26  ;;  %v4454_v52 = vshrl.u32 %v8737_v18, 16  ;;  %v4457_v30 = vshll.u32 %v8737_v18, 16  ;;  %v4437_v0 = vshrl.u32 %v8735_v41, 16  ;;  %v4191_v11 = vpop.f32.mrb[17].mxu0 }
 0x2a1   : > { %4535 = vst [vmem:[#allocation3 + $0x30] sm:$0xf] %v4534_v9  ;;  %v4434_v17 = vsel %vm10360_vm5, %v4426_v39, %v4433_v14  ;;  %v4545_v13 = vsel %vm10372_vm7, %v4435_v38, %v4544_v57  ;;  %v4413_v22 = vrot.slane %v4411_v45, 7  ;;  %v4440_v50 = vshll.u32 %v8735_v41, 16  ;;  %v9254_v54 = vpop.f32.mrb[18].mxu0 }
 0x2a2   : > { %4543 = vst.msk [vmem:[#allocation3 + $0x40] sm:$0xf] %vm551_vm0, %v4434_v17  ;;  %4546 = vst [vmem:[#allocation3 + $0x44] sm:$0x1] %v4545_v13  ;;  %v4456_v24 = vrot.slane %v4454_v52, 7  ;;  %v4439_v46 = vrot.slane %v4437_v0, 7  ;;  %v8738_v19 = vpack.c.bf16 %v4268_v21, %v4268_v21  ;;  %v11594_v33 = vadd.f32 %v9253_v1, %v11539_v29 }
 0x2a3   : > { %v4266_v36 = vmax.f32 %v4246_v44, 0.0  ;;  %v4194_v59 = vpop.f32.mrb[19].mxu0  ;;  %v4416_v61 = vor.u32 %v4414_v47, %v4413_v22  ;;  %v4418_v53 = vrot.slane %v4413_v22, 4  ;;  %v4249_v60 = vadd.f32 %v11539_v29, %v4191_v11  ;;  %v4551_v45 = vld [vmem:[#allocation3 + $0x50] sm:$0x1] }
 0x2a4   : > { %v4459_v2 = vor.u32 %v4457_v30, %v4456_v24  ;;  %v4442_v55 = vor.u32 %v4440_v50, %v4439_v46  ;;  %v4462_v12 = vshrl.u32 %v8738_v19, 16  ;;  %v4465_v8 = vshll.u32 %v8738_v19, 16  ;;  %v4561_v13 = vld [vmem:[#allocation3 + $0x60] sm:$0xf] }
 0x2a5   : > { %v4417_v39 = vsel %vm10360_vm5, %v4409_v15, %v4416_v61  ;;  %v4538_v51 = vsel %vm10372_vm7, %v4418_v53, %v4537_v28  ;;  %v8736_v37 = vpack.c.bf16 %v4266_v36, %v4266_v36  ;;  %v4271_v16 = vmax.f32 %v11594_v33, 0.0 }
 0x2a6   : > { %4536 = vst.msk [vmem:[#allocation3 + $0x34] sm:$0xf] %vm551_vm0, %v4417_v39  ;;  %4539 = vst [vmem:[#allocation3 + $0x38] sm:$0x1] %v4538_v51  ;;  %v4555_v35 = vsel %vm10366_vm6, %v4459_v2, %v4554_v27  ;;  %v4548_v63 = vsel %vm10366_vm6, %v4442_v55, %v4547_v34  ;;  %v4464_v32 = vrot.slane %v4462_v12, 7  ;;  %v4269_v4 = vmax.f32 %v4249_v60, 0.0 }
 0x2a7   : > { %4556 = vst [vmem:[#allocation3 + $0x54] sm:$0xf] %v4555_v35  ;;  %4549 = vst [vmem:[#allocation3 + $0x48] sm:$0xf] %v4548_v63  ;;  %v11608_v40 = vadd.f32 %v9254_v54, %v11539_v29  ;;  %v4250_v62 = vadd.f32 %v11539_v29, %v4194_v59  ;;  %v4460_v26 = vrot.slane %v4456_v24, 4  ;;  %v4445_v20 = vshrl.u32 %v8736_v37, 16 }
 0x2a8   : > { %v4467_v18 = vor.u32 %v4465_v8, %v4464_v32  ;;  %v4469_v44 = vrot.slane %v4464_v32, 4  ;;  %v8739_v42 = vpack.c.bf16 %v4269_v4, %v4269_v4  ;;  %v4448_v41 = vshll.u32 %v8736_v37, 16  ;;  %v4598_v8 = vld [vmem:[#allocation3] sm:$0xf] (!%p8397_p8)  ;;  %v4602_v35 = vld [vmem:[#allocation3 + $0x8] sm:$0x1] (!%p8397_p8) }
 0x2a9   : > { %v4272_v15 = vmax.f32 %v11608_v40, 0.0  ;;  %v4447_v57 = vrot.slane %v4445_v20, 7  ;;  %v4270_v21 = vmax.f32 %v4250_v62, 0.0  ;;  %v4443_v29 = vrot.slane %v4439_v46, 4  ;;  %v4565_v46 = vld [vmem:[#allocation3 + $0x68] sm:$0x1] }
 0x2aa   : > { %v4468_v14 = vsel %vm10360_vm5, %v4460_v26, %v4467_v18  ;;  %v4559_v38 = vsel %vm10372_vm7, %v4469_v44, %v4558_v23  ;;  %v4471_v47 = vshrl.u32 %v8739_v42, 16  ;;  %v4474_v0 = vshll.u32 %v8739_v42, 16 }
 0x2ab   : > { %4557 = vst.msk [vmem:[#allocation3 + $0x58] sm:$0xf] %vm551_vm0, %v4468_v14  ;;  %4560 = vst [vmem:[#allocation3 + $0x5c] sm:$0x1] %v4559_v38  ;;  %v4450_v1 = vor.u32 %v4448_v41, %v4447_v57  ;;  %v4452_v9 = vrot.slane %v4447_v57, 4  ;;  %v8740_v52 = vpack.c.bf16 %v4270_v21, %v4270_v21  ;;  %v8741_v27 = vpack.c.bf16 (!%p8397_p8), %v4253_v3, %v4253_v3 }
 0x2ac   : > { %v4473_v30 = vrot.slane %v4471_v47, 7  ;;  %v8742_v34 = vpack.c.bf16 (!%p8397_p8), %v4254_v48, %v4254_v48 }
 0x2ad   : > { %v4451_v11 = vsel %vm10360_vm5, %v4443_v29, %v4450_v1  ;;  %v4552_v17 = vsel %vm10372_vm7, %v4452_v9, %v4551_v45  ;;  %v4479_v22 = vshrl.u32 %v8740_v52, 16  ;;  %v4482_v28 = vshll.u32 %v8740_v52, 16 }
 0x2ae   : > { %4550 = vst.msk [vmem:[#allocation3 + $0x4c] sm:$0xf] %vm551_vm0, %v4451_v11  ;;  %4553 = vst [vmem:[#allocation3 + $0x50] sm:$0x1] %v4552_v17  ;;  %v4476_v50 = vor.u32 %v4474_v0, %v4473_v30  ;;  %v4477_v19 = vrot.slane %v4473_v30, 4  ;;  %4571 = sbr.rel (%p8397_p8) target bundleno = 696 (0x2b8), region = 64 }
 0x2af   : > { %v4481_v54 = vrot.slane %v4479_v22, 7  ;;  %v4579_v60 = vshrl.u32 (!%p8397_p8), %v8741_v27, 16  ;;  %v4582_v2 = vshll.u32 (!%p8397_p8), %v8741_v27, 16  ;;  %v4587_v55 = vshrl.u32 (!%p8397_p8), %v8742_v34, 16 }
 0x2b0   : > { %v4562_v24 = vsel %vm10366_vm6, %v4476_v50, %v4561_v13  ;;  %v4590_v39 = vshll.u32 (!%p8397_p8), %v8742_v34, 16 }
 0x2b1   : > { %4563 = vst [vmem:[#allocation3 + $0x60] sm:$0xf] %v4562_v24  ;;  %v4484_v36 = vor.u32 %v4482_v28, %v4481_v54  ;;  %v4486_v59 = vrot.slane %v4481_v54, 4  ;;  %v4581_v51 = vrot.slane (!%p8397_p8), %v4579_v60, 7  ;;  %v4589_v12 = vrot.slane (!%p8397_p8), %v4587_v55, 7 }
 0x2b3   : > { %v4485_v61 = vsel %vm10360_vm5, %v4477_v19, %v4484_v36  ;;  %v4566_v53 = vsel %vm10372_vm7, %v4486_v59, %v4565_v46  ;;  %v4584_v63 = vor.u32 (!%p8397_p8), %v4582_v2, %v4581_v51  ;;  %v4585_v37 = vrot.slane (!%p8397_p8), %v4581_v51, 4 }
 0x2b4   : > { %4564 = vst.msk [vmem:[#allocation3 + $0x64] sm:$0xf] %vm551_vm0, %v4485_v61  ;;  %4567 = vst [vmem:[#allocation3 + $0x68] sm:$0x1] %v4566_v53  ;;  %v4592_v32 = vor.u32 (!%p8397_p8), %v4590_v39, %v4589_v12  ;;  %v4594_v4 = vrot.slane (!%p8397_p8), %v4589_v12, 4 }
 0x2b5   : > { %v4599_v6 = vsel %vm10366_vm6, %v4584_v63, %v4598_v8 }
 0x2b6   : > { %v4593_v3 = vsel %vm10360_vm5, %v4585_v37, %v4592_v32  ;;  %v4603_v58 = vsel %vm10372_vm7, %v4594_v4, %v4602_v35  ;;  %4600 = vst [vmem:[#allocation3] sm:$0xf] %v4599_v6 }
 0x2b7   : > { %4601 = vst.msk [vmem:[#allocation3 + $0x4] sm:$0xf] %vm551_vm0, %v4593_v3  ;;  %4604 = vst [vmem:[#allocation3 + $0x8] sm:$0x1] %v4603_v58 }
 0x2b8 PF: > { %p8400_p9 = scmp.ge.s32.totalorder %s9996_s21, 1 }
 0x2b9   : > { %v8743_v48 = vpack.c.bf16 (!%p8400_p9), %v4271_v16, %v4271_v16  ;;  %v8744_v40 = vpack.c.bf16 (!%p8400_p9), %v4272_v15, %v4272_v15  ;;  %v4636_v42 = vld [vmem:[#allocation3 + $0x6c] sm:$0xf] (!%p8400_p9)  ;;  %v4640_v57 = vld [vmem:[#allocation3 + $0x74] sm:$0x1] (!%p8400_p9) }
 0x2ba   : > { %4608 = sbr.rel (%p8400_p9) target bundleno = 708 (0x2c4), region = 68 }
 0x2bb   : > { %v4616_v62 = vshrl.u32 (!%p8400_p9), %v8743_v48, 16  ;;  %v4619_v26 = vshll.u32 (!%p8400_p9), %v8743_v48, 16  ;;  %v4624_v23 = vshrl.u32 (!%p8400_p9), %v8744_v40, 16  ;;  %v4627_v20 = vshll.u32 (!%p8400_p9), %v8744_v40, 16 }
 0x2bd   : > { %v4618_v18 = vrot.slane (!%p8400_p9), %v4616_v62, 7  ;;  %v4626_v44 = vrot.slane (!%p8400_p9), %v4624_v23, 7 }
 0x2bf   : > { %v4621_v41 = vor.u32 (!%p8400_p9), %v4619_v26, %v4618_v18  ;;  %v4622_v21 = vrot.slane (!%p8400_p9), %v4618_v18, 4  ;;  %v4629_v14 = vor.u32 (!%p8400_p9), %v4627_v20, %v4626_v44  ;;  %v4631_v38 = vrot.slane (!%p8400_p9), %v4626_v44, 4 }
 0x2c1   : > { %v4637_v45 = vsel %vm10366_vm6, %v4621_v41, %v4636_v42  ;;  %v4630_v33 = vsel %vm10360_vm5, %v4622_v21, %v4629_v14  ;;  %v4641_v16 = vsel %vm10372_vm7, %v4631_v38, %v4640_v57 }
 0x2c2   : > { %4638 = vst [vmem:[#allocation3 + $0x6c] sm:$0xf] %v4637_v45  ;;  %4639 = vst.msk [vmem:[#allocation3 + $0x70] sm:$0xf] %vm551_vm0, %v4630_v33 }
 0x2c3   : > { %4642 = vst [vmem:[#allocation3 + $0x74] sm:$0x1] %v4641_v16 }
 0x2c4 PF: > { %v9906_v15 = vld [vmem:[%s12581_s4 + $0x20] sm:$0xff]   ;;  %v9907_v49 = vld [vmem:[%s12581_s4 + $0x28] sm:$0xff]   ;;  %v9908_v43 = vld [vmem:[%s12581_s4 + $0x30] sm:$0xff]   ;;  %p8698_p10 = scmp.ne.s32.totalorder %s9996_s21, 0 }
 0x2c5   : > { %9255 = vmatprep.subr.bf16.mxu1 %v9906_v15  ;;  %v11663_v56 = vld [vmem:[#allocation3] sm:$0xf]  ;;  %v11665_v47 = vld [vmem:[#allocation3 + $0x4] sm:$0xf]  ;;  %v11667_v29 = vld [vmem:[#allocation3 + $0x8] sm:$0x1] }
 0x2c6   : > { %9256 = vmatpush3.bf16.msra.mxu1 %v9906_v15  ;;  %v4676_v1 = vshrl.u32 %v11663_v56, 16  ;;  %v4679_v9 = vshll.u32 %v11663_v56, 16  ;;  %v4685_v52 = vshll.u32 %v11665_v47, 16  ;;  %v4689_v30 = vshrl.u32 %v11665_v47, 16  ;;  %v11673_v0 = vld [vmem:[#allocation3 + $0xc] sm:$0xf] }
 0x2c7   : > { %9257 = vmatprep.subr.bf16.mxu1 %v9907_v49  ;;  %v9909_v11 = vld [vmem:[%s12581_s4 + $0x38] sm:$0xff]   ;;  %v4695_v17 = vshll.u32 %v11667_v29, 16  ;;  %v11679_v13 = vld [vmem:[#allocation3 + $0x10] sm:$0xf]  ;;  %v4668_v22 = vld [vmem:[#allocation3 + $0x14] sm:$0x1] }
 0x2c8   : > { %v4678_v50 = vrot.slane %v4676_v1, 4  ;;  %v4681_v54 = vrot.slane %v4679_v9, 5  ;;  %v4687_v28 = vrot.slane %v4685_v52, 5  ;;  %v4691_v24 = vrot.slane %v4689_v30, 4  ;;  %v11685_v60 = vld [vmem:[#allocation3 + $0x18] sm:$0xf] }
 0x2c9   : > { %v4697_v46 = vrot.slane %v4695_v17, 5  ;;  %v4700_v19 = vshrl.u32 %v11673_v0, 16  ;;  %v4703_v36 = vshll.u32 %v11673_v0, 16  ;;  %v4709_v59 = vshll.u32 %v11679_v13, 16  ;;  %v9910_v6 = vld [vmem:[%s12581_s4] sm:$0xff]  }
 0x2ca   : > { %9258 = vmatpush3.bf16.msra.mxu1 %v9907_v49  ;;  %v4682_v61 = vor.u32 %v4681_v54, %v4678_v50  ;;  %v4692_v53 = vor.u32 %v4691_v24, %v4687_v28  ;;  %v4713_v27 = vshrl.u32 %v11679_v13, 16  ;;  %v4719_v34 = vshll.u32 %v4668_v22, 16  ;;  %v11693_v3 = vld [vmem:[#allocation3 + $0x1c] sm:$0xf]  ;;  %v11700_v26 = vld [vmem:[#allocation3 + $0x20] sm:$0x1] }
 0x2cb   : > { %9259 = vmatprep.subr.bf16.mxu1 %v9908_v43  ;;  %v4702_v2 = vrot.slane %v4700_v19, 4  ;;  %v4705_v55 = vrot.slane %v4703_v36, 5  ;;  %v4711_v39 = vrot.slane %v4709_v59, 5  ;;  %v5263_v51 = vrot.slane %v11679_v13, 5  ;;  %v11703_v20 = vld [vmem:[#allocation3 + $0x24] sm:$0xf] }
 0x2cc   : > { %v4683_v12 = vrot.slane %v4682_v61, 4  ;;  %v4693_v8 = vrot.slane %v4692_v53, 4  ;;  %v4715_v35 = vrot.slane %v4713_v27, 4  ;;  %v4721_v63 = vrot.slane %v4719_v34, 5  ;;  %v11715_v16 = vld [vmem:[#allocation3 + $0x28] sm:$0xf] }
 0x2cd   : > { %v4706_v37 = vor.u32 %v4705_v55, %v4702_v2  ;;  %v5265_v32 = vrot.slane %v5263_v51, 4  ;;  %v5266_v4 = vrot.slane %v4668_v22, 5  ;;  %v4724_v58 = vshrl.u32 %v11685_v60, 16  ;;  %v11721_v30 = vld [vmem:[#allocation3 + $0x2c] sm:$0x1] }
 0x2ce   : > { %9260 = vmatpush3.bf16.msra.mxu1 %v9908_v43  ;;  %v4688_v48 = vsel %vm10496_vm11, %v4683_v12, %v4687_v28  ;;  %v4698_v40 = vsel %vm10496_vm11, %v4693_v8, %v4697_v46  ;;  %v4716_v62 = vor.u32 %v4715_v35, %v4711_v39  ;;  %v4727_v23 = vshll.u32 %v11685_v60, 16  ;;  %v9911_v28 = vld [vmem:[%s12581_s4 + $0x8] sm:$0xff]   ;;  %v11728_v24 = vld [vmem:[#allocation3 + $0x34] sm:$0xf]  ;;  %v9912_v35 = vld [vmem:[%s12581_s4 + $0x10] sm:$0xff]  }
 0x2cf   : > { %9261 = vmatprep.subr.bf16.mxu1 %v9909_v11  ;;  %v8411_v18 = vcombine.low %v4688_v48, %v4698_v40  ;;  %v4707_v44 = vrot.slane %v4706_v37, 4  ;;  %v11707_v42 = vsel %vm10735_vm14, %v5265_v32, %v5266_v4  ;;  %v4726_v57 = vrot.slane %v4724_v58, 4  ;;  %v11732_v61 = vld [vmem:[#allocation3 + $0x38] sm:$0x1]  ;;  %v11743_v58 = vld [vmem:[#allocation3 + $0x3c] sm:$0xf] }
 0x2d0   : > { %v4717_v41 = vrot.slane %v4716_v62, 4  ;;  %v4729_v21 = vrot.slane %v4727_v23, 5  ;;  %v4733_v14 = vshll.u32 %v11693_v3, 16  ;;  %v4737_v38 = vshrl.u32 %v11693_v3, 16  ;;  %v11749_v23 = vld [vmem:[#allocation3 + $0x40] sm:$0xf] }
 0x2d1   : > { %9263 = vmatprep.mubr.msk.bf16.mxu1 %vm1339_vm10, %v8411_v18  ;;  %v4712_v45 = vsel %vm10496_vm11, %v4707_v44, %v4711_v39  ;;  %v4743_v33 = vshll.u32 %v11700_v26, 16  ;;  %v4748_v15 = vshrl.u32 %v11703_v20, 16  ;;  %v4751_v49 = vshll.u32 %v11703_v20, 16  ;;  %v12393_v31 = vld [vmem:[%s12582_s5] ss:$0 sm:$0xff] }
 0x2d2   : > { %9262 = vmatpush3.bf16.msra.mxu1 %v9909_v11  ;;  %v4722_v43 = vsel %vm10496_vm11, %v4717_v41, %v4721_v63  ;;  %v4730_v1 = vor.u32 %v4729_v21, %v4726_v57  ;;  %v4735_v9 = vrot.slane %v4733_v14, 5  ;;  %v4739_v52 = vrot.slane %v4737_v38, 4  ;;  %v11723_v11 = vld [vmem:[#allocation3 + $0x30] sm:$0xf]  ;;  %v11754_v21 = vld [vmem:[#allocation3 + $0x44] sm:$0x1] }
 0x2d3   : > { %9279 = vmatprep.subr.bf16.mxu1 %v9910_v6  ;;  %v8412_v17 = vcombine.low %v4712_v45, %v4722_v43  ;;  %v4745_v22 = vrot.slane %v4743_v33, 5  ;;  %v4750_v50 = vrot.slane %v4748_v15, 4  ;;  %v4753_v54 = vrot.slane %v4751_v49, 5  ;;  %v11756_v14 = vld [vmem:[#allocation3 + $0x48] sm:$0xf] }
 0x2d4   : > { %v4731_v46 = vrot.slane %v4730_v1, 4  ;;  %v4740_v19 = vor.u32 %v4739_v52, %v4735_v9  ;;  %v4757_v36 = vshll.u32 %v11715_v16, 16  ;;  %v4761_v59 = vshrl.u32 %v11715_v16, 16  ;;  %v9913_v38 = vld [vmem:[%s12581_s4 + $0x18] sm:$0xff]  }
 0x2d5   : > { %9264 = vmatmul.mubr.msk.bf16.vlgmr.msra.gmra.mrb[0].mxu1 %vm1339_vm10, %v8412_v17  ;;  %v4754_v53 = vor.u32 %v4753_v54, %v4750_v50  ;;  %v4767_v27 = vshll.u32 %v11721_v30, 16  ;;  %v4772_v34 = vshrl.u32 %v11723_v11, 16  ;;  %v4775_v2 = vshll.u32 %v11723_v11, 16  ;;  %v11762_v43 = vld [vmem:[#allocation3 + $0x4c] sm:$0xf] }
 0x2d6   : > { %9280 = vmatpush3.bf16.msra.mxu1 %v9910_v6  ;;  %v4736_v55 = vsel %vm10496_vm11, %v4731_v46, %v4735_v9  ;;  %v4741_v39 = vrot.slane %v4740_v19, 4  ;;  %v4759_v12 = vrot.slane %v4757_v36, 5  ;;  %v4763_v8 = vrot.slane %v4761_v59, 4 }
 0x2d7   : > { %v4755_v63 = vrot.slane %v4754_v53, 4  ;;  %v4769_v37 = vrot.slane %v4767_v27, 5  ;;  %9281 = vmatprep.subr.bf16.mxu1 %v9911_v28  ;;  %v4774_v32 = vrot.slane %v4772_v34, 4  ;;  %v4777_v4 = vrot.slane %v4775_v2, 5  ;;  %v11772_v53 = vld [vmem:[#allocation3 + $0x50] sm:$0x1] }
 0x2d8   : > { %v4746_v6 = vsel %vm10496_vm11, %v4741_v39, %v4745_v22  ;;  %v4764_v48 = vor.u32 %v4763_v8, %v4759_v12  ;;  %v4781_v40 = vshll.u32 %v11728_v24, 16  ;;  %v4785_v62 = vshrl.u32 %v11728_v24, 16  ;;  %v11774_v27 = vld [vmem:[#allocation3 + $0x54] sm:$0xf] }
 0x2d9   : > { %v8413_v18 = vcombine.low %v4736_v55, %v4746_v6  ;;  %v4760_v44 = vsel %vm10496_vm11, %v4755_v63, %v4759_v12  ;;  %v4778_v57 = vor.u32 %v4777_v4, %v4774_v32  ;;  %v4791_v41 = vshll.u32 %v11732_v61, 16  ;;  %v11778_v12 = vld [vmem:[#allocation3 + $0x58] sm:$0xf]  ;;  %v11787_v4 = vld [vmem:[%s12581_s4 + $0x40] sm:$0xff]  }
 0x2da   : > { %v4765_v45 = vrot.slane %v4764_v48, 4  ;;  %9282 = vmatpush3.bf16.msra.mxu1 %v9911_v28  ;;  %v4783_v33 = vrot.slane %v4781_v40, 5  ;;  %v4787_v15 = vrot.slane %v4785_v62, 4  ;;  %v4796_v49 = vshrl.u32 %v11743_v58, 16 }
 0x2db   : > { %9267 = vmatprep.mubr.msk.bf16.mxu1 %vm1339_vm10, %v8413_v18  ;;  %v4779_v1 = vrot.slane %v4778_v57, 4  ;;  %v4793_v9 = vrot.slane %v4791_v41, 5  ;;  %v4799_v52 = vshll.u32 %v11743_v58, 16  ;;  %v4805_v17 = vshll.u32 %v11749_v23, 16  ;;  %9283 = vmatprep.subr.bf16.mxu1 %v9912_v35 }
 0x2dc   : > { %v4770_v22 = vsel %vm10496_vm11, %v4765_v45, %v4769_v37  ;;  %v4788_v50 = vor.u32 %v4787_v15, %v4783_v33  ;;  %v4798_v54 = vrot.slane %v4796_v49, 4  ;;  %v4809_v28 = vshrl.u32 %v11749_v23, 16 }
 0x2dd   : > { %v8414_v46 = vcombine.low %v4760_v44, %v4770_v22  ;;  %v4784_v19 = vsel %vm10496_vm11, %v4779_v1, %v4783_v33  ;;  %v4801_v36 = vrot.slane %v4799_v52, 5  ;;  %v4807_v59 = vrot.slane %v4805_v17, 5 }
 0x2de   : > { %v4789_v34 = vrot.slane %v4788_v50, 4  ;;  %v4811_v2 = vrot.slane %v4809_v28, 4  ;;  %v4815_v55 = vshll.u32 %v11754_v21, 16  ;;  %9284 = vmatpush3.bf16.msra.mxu1 %v9912_v35  ;;  %v4820_v39 = vshrl.u32 %v11756_v14, 16 }
 0x2df   : > { %9268 = vmatmul.mubr.msk.bf16.gmra.mrb[4].mxu1 %vm1339_vm10, %v8414_v46  ;;  %v4802_v8 = vor.u32 %v4801_v36, %v4798_v54  ;;  %v4823_v63 = vshll.u32 %v11756_v14, 16  ;;  %v4829_v37 = vshll.u32 %v11762_v43, 16  ;;  %v4833_v32 = vshrl.u32 %v11762_v43, 16  ;;  %9285 = vmatprep.subr.bf16.mxu1 %v9913_v38  ;;  %v5230_v36 = vld [vmem:[#allocation3] sm:$0xe] }
 0x2e0   : > { %v4794_v35 = vsel %vm10496_vm11, %v4789_v34, %v4793_v9  ;;  %v4812_v6 = vor.u32 %v4811_v2, %v4807_v59  ;;  %v4817_v48 = vrot.slane %v4815_v55, 5  ;;  %v4822_v40 = vrot.slane %v4820_v39, 4  ;;  %v11796_v9 = vld [vmem:[#allocation3 + $0x5c] sm:$0x1] }
 0x2e1   : > { %v8415_v62 = vcombine.low %v4784_v19, %v4794_v35  ;;  %v4803_v18 = vrot.slane %v4802_v8, 4  ;;  %v4825_v44 = vrot.slane %v4823_v63, 5  ;;  %v4831_v57 = vrot.slane %v4829_v37, 5  ;;  %v5231_v63 = vld [vmem:[#allocation3 + $0xc] sm:$0xe] }
 0x2e2   : > { %v4813_v41 = vrot.slane %v4812_v6, 4  ;;  %v4835_v45 = vrot.slane %v4833_v32, 4  ;;  %v4839_v33 = vshll.u32 %v11772_v53, 16  ;;  %v4844_v15 = vshrl.u32 %v11774_v27, 16  ;;  %9286 = vmatpush3.bf16.msra.mxu1 %v9913_v38  ;;  %v5232_v37 = vld [vmem:[#allocation3 + $0x18] sm:$0xe] }
 0x2e3   : > { %9271 = vmatprep.mubr.msk.bf16.mxu1 %vm1339_vm10, %v8415_v62  ;;  %v4808_v49 = vsel %vm10496_vm11, %v4803_v18, %v4807_v59  ;;  %v4826_v1 = vor.u32 %v4825_v44, %v4822_v40  ;;  %v4847_v52 = vshll.u32 %v11774_v27, 16  ;;  %v4853_v17 = vshll.u32 %v11778_v12, 16  ;;  %9303 = vmatprep.subr.bf16.mxu1 %v11787_v4  ;;  %v5233_v44 = vld [vmem:[#allocation3 + $0x24] sm:$0xe] }
 0x2e4   : > { %v4818_v22 = vsel %vm10496_vm11, %v4813_v41, %v4817_v48  ;;  %v4836_v50 = vor.u32 %v4835_v45, %v4831_v57  ;;  %v4841_v54 = vrot.slane %v4839_v33, 5  ;;  %v4846_v38 = vrot.slane %v4844_v15, 4 }
 0x2e5   : > { %v8416_v28 = vcombine.low %v4808_v49, %v4818_v22  ;;  %v4827_v46 = vrot.slane %v4826_v1, 4  ;;  %v4849_v19 = vrot.slane %v4847_v52, 5  ;;  %v4855_v34 = vrot.slane %v4853_v17, 5  ;;  %v5234_v52 = vld [vmem:[#allocation3 + $0x30] sm:$0xe] }
 0x2e6   : > { %v4837_v59 = vrot.slane %v4836_v50, 4  ;;  %v4857_v2 = vshrl.u32 %v11778_v12, 16  ;;  %v4863_v55 = vshll.u32 %v11796_v9, 16  ;;  %v5259_v32 = vrot.slane %v11667_v29, 5 }
 0x2e7   : > { %9272 = vmatmul.mubr.msk.bf16.gmra.mrb[8].mxu1 %vm1339_vm10, %v8416_v28  ;;  %v4832_v39 = vsel %vm10496_vm11, %v4827_v46, %v4831_v57  ;;  %v4850_v8 = vor.u32 %v4849_v19, %v4846_v38  ;;  %v8431_v18 = vcombine.low %v11663_v56, %v11665_v47  ;;  %v8432_v57 = vcombine.low %v11673_v0, %v11679_v13  ;;  %v5236_v19 = vld [vmem:[#allocation3 + $0x48] sm:$0xe] }
 0x2e8   : > { %v4842_v35 = vsel %vm10496_vm11, %v4837_v59, %v4841_v54  ;;  %v4859_v6 = vrot.slane %v4857_v2, 4  ;;  %v4865_v62 = vrot.slane %v4863_v55, 5  ;;  %v8451_v45 = vrot.slane %v5230_v36, 9  ;;  %v5235_v54 = vld [vmem:[#allocation3 + $0x3c] sm:$0xe]  ;;  %v9925_v13 = vld [vmem:[%s12581_s4 + $0x58] sm:$0xff]  }
 0x2e9   : > { %v8417_v48 = vcombine.low %v4832_v39, %v4842_v35  ;;  %v4851_v40 = vrot.slane %v4850_v8, 4  ;;  %v5256_v33 = vrot.slane %v11665_v47, 5  ;;  %v8452_v15 = vrot.slane %v5231_v63, 9  ;;  %v5237_v35 = vld [vmem:[#allocation3 + $0x54] sm:$0xe] }
 0x2ea   : > { %v4860_v41 = vor.u32 %v4859_v6, %v4855_v34  ;;  %v8453_v49 = vrot.slane %v5232_v37, 9  ;;  %v5270_v1 = vrot.slane %v11693_v3, 5  ;;  %v5273_v50 = vrot.slane %v11700_v26, 5 }
 0x2eb   : > { %9275 = vmatprep.mubr.msk.bf16.mxu1 %vm1339_vm10, %v8417_v48  ;;  %v4856_v29 = vsel %vm10496_vm11, %v4851_v40, %v4855_v34  ;;  %v11822_v56 = vsel %vm10735_vm14, %v8451_v45, %v5256_v33  ;;  %v5258_v22 = vrot.slane %v5256_v33, 4  ;;  %v11829_v47 = vsel %vm10735_vm14, %v8452_v15, %v5263_v51 }
 0x2ec   : > { %v4861_v17 = vrot.slane %v4860_v41, 4  ;;  %v11833_v38 = vsel %vm10735_vm14, %v8453_v49, %v5270_v1  ;;  %v5272_v28 = vrot.slane %v5270_v1, 4  ;;  %v8454_v46 = vrot.slane %v5233_v44, 9 }
 0x2ed   : > { %v11839_v26 = vsel %vm10735_vm14, %v5258_v22, %v5259_v32  ;;  %v8468_v59 = vcombine.low %v11829_v47, %v11707_v42  ;;  %v5277_v51 = vrot.slane %v11715_v16, 5  ;;  %v5280_v39 = vrot.slane %v11721_v30, 5  ;;  %v9932_v42 = vld [vmem:[%s12581_s4 + $0x80] sm:$0xff]   ;;  %v9933_v47 = vld [vmem:[#allocation3 + $0x24] sm:$0xff]  }
 0x2ee   : > { %v4866_v36 = vsel %vm10496_vm11, %v4861_v17, %v4865_v62  ;;  %v8467_v2 = vcombine.low %v11822_v56, %v11839_v26  ;;  %v11848_v55 = vsel %vm10735_vm14, %v5272_v28, %v5273_v50  ;;  %v8455_v32 = vrot.slane %v5234_v52, 9  ;;  %v5733_v26 = vld [vmem:[#allocation3 + $0x18] sm:$0xf] }
 0x2ef   : > { %v8418_v34 = vcombine.low %v4856_v29, %v4866_v36  ;;  %v8469_v8 = vcombine.low %v11833_v38, %v11848_v55  ;;  %v11855_v63 = vsel %vm10735_vm14, %v8454_v46, %v5277_v51  ;;  %v5279_v37 = vrot.slane %v5277_v51, 4  ;;  %v9935_v38 = vld [vmem:[%s12581_s4 + $0x88] sm:$0xff]  }
 0x2f0   : > { %v5284_v6 = vrot.slane %v11728_v24, 5  ;;  %v5287_v48 = vrot.slane %v11732_v61, 5  ;;  %v8456_v40 = vrot.slane %v5235_v54, 9  ;;  %v5291_v62 = vrot.slane %v11749_v23, 5  ;;  %v11958_v55 = vld [vmem:[#allocation3 + $0x1c] sm:$0xf] }
 0x2f1   : > { %9276 = vmatmul.mubr.msk.bf16.gmra.mrb[12].mxu1 %vm1339_vm10, %v8418_v34  ;;  %v5281_v30 = vsel %vm10735_vm14, %v5279_v37, %v5280_v39  ;;  %v5294_v44 = vrot.slane %v11754_v21, 5  ;;  %v8457_v41 = vrot.slane %v5236_v19, 9  ;;  %v5298_v45 = vrot.slane %v11762_v43, 5  ;;  %v9922_v39 = vld [vmem:[%s12581_s4 + $0x50] sm:$0xff]  }
 0x2f2   : > { %9287 = vmatprep.mubr.msk.bf16.mxu1 %vm1339_vm10, %v8431_v18  ;;  %v8470_v33 = vcombine.low %v11855_v63, %v5281_v30  ;;  %v5285_v29 = vsel %vm10735_vm14, %v8455_v32, %v5284_v6  ;;  %v5286_v15 = vrot.slane %v5284_v6, 4  ;;  %v5292_v61 = vsel %vm10735_vm14, %v8456_v40, %v5291_v62  ;;  %v9938_v6 = vld [vmem:[%s12581_s4 + $0x90] sm:$0xff]  }
 0x2f3   : > { %v5293_v49 = vrot.slane %v5291_v62, 4  ;;  %v5299_v18 = vsel %vm10735_vm14, %v8457_v41, %v5298_v45  ;;  %v5300_v1 = vrot.slane %v5298_v45, 4  ;;  %v5301_v52 = vrot.slane %v11772_v53, 5  ;;  %v9919_v53 = vld [vmem:[%s12581_s4 + $0x48] sm:$0xff]   ;;  %v9934_v62 = vld [vmem:[#allocation3 + $0x30] sm:$0xff]   ;;  %v9941_v45 = vld [vmem:[%s12581_s4 + $0x98] sm:$0xff]  }
 0x2f4   : > { %v5288_v21 = vsel %vm10735_vm14, %v5286_v15, %v5287_v48  ;;  %v8458_v17 = vrot.slane %v5237_v35, 9  ;;  %v5305_v22 = vrot.slane %v11778_v12, 5  ;;  %v5308_v50 = vrot.slane %v11796_v9, 5  ;;  %v9936_v41 = vld [vmem:[#allocation3 + $0x3c] sm:$0xff]  }
 0x2f5   : > { %v8433_v54 = vcombine.low %v11685_v60, %v11693_v3  ;;  %v8471_v28 = vcombine.low %v5285_v29, %v5288_v21  ;;  %v5295_v46 = vsel %vm10735_vm14, %v5293_v49, %v5294_v44  ;;  %v5302_v19 = vsel %vm10735_vm14, %v5300_v1, %v5301_v52  ;;  %v11974_v15 = vld [vmem:[#allocation3 + $0x20] sm:$0x1]  ;;  %v11978_v21 = vld [vmem:[#allocation3 + $0x28] sm:$0xf] }
 0x2f6   : > { %v8472_v36 = vcombine.low %v5292_v61, %v5295_v46  ;;  %v8473_v51 = vcombine.low %v5299_v18, %v5302_v19  ;;  %v5306_v34 = vsel %vm10735_vm14, %v8458_v17, %v5305_v22  ;;  %v5307_v9 = vrot.slane %v5305_v22, 4  ;;  %v5736_v18 = vld [vmem:[#allocation3 + $0x24] sm:$0xf] }
 0x2f7   : > { %v8434_v63 = vcombine.low %v11703_v20, %v11715_v16  ;;  %v8435_v0 = vcombine.low %v11723_v11, %v11728_v24  ;;  %v8436_v20 = vcombine.low %v11743_v58, %v11749_v23  ;;  %v8437_v16 = vcombine.low %v11756_v14, %v11762_v43  ;;  %v9927_v24 = vld [vmem:[%s12581_s4 + $0x68] sm:$0xff]   ;;  %v9928_v58 = vld [vmem:[%s12581_s4 + $0x70] sm:$0xff]   ;;  %v9929_v23 = vld [vmem:[%s12581_s4 + $0x78] sm:$0xff]  }
 0x2f8   : > { %v5309_v60 = vsel %vm10735_vm14, %v5307_v9, %v5308_v50  ;;  %v8438_v11 = vcombine.low %v11774_v27, %v11778_v12  ;;  %v9930_v14 = vld [vmem:[#allocation3 + $0xc] sm:$0xff]   ;;  %v9931_v27 = vld [vmem:[#allocation3 + $0x18] sm:$0xff]   ;;  %v5779_v32 = vshrl.u32 %v5733_v26, 16  ;;  %v5782_v35 = vshll.u32 %v5733_v26, 16 }
 0x2f9   : > { %9288 = vmatmul.mubr.msk.bf16.vlgmr.msra.gmra.mrb[0].mxu1 %vm1339_vm10, %v8432_v57  ;;  %v8474_v3 = vcombine.low %v5306_v34, %v5309_v60  ;;  %v5730_v43 = vld [vmem:[#allocation3 + $0xc] sm:$0xf]  ;;  %v11951_v12 = vld [vmem:[#allocation3 + $0x10] sm:$0xf]  ;;  %v5788_v48 = vshll.u32 %v11958_v55, 16  ;;  %v5792_v40 = vshrl.u32 %v11958_v55, 16 }
 0x2fa   : > { %9304 = vmatpush3.bf16.msra.mxu1 %v11787_v4  ;;  %9291 = vmatprep.mubr.msk.bf16.mxu1 %vm1339_vm10, %v8433_v54  ;;  %v9926_v4 = vld [vmem:[%s12581_s4 + $0x60] sm:$0xff]   ;;  %v5755_v57 = vshrl.u32 %v5730_v43, 16  ;;  %v5758_v56 = vshll.u32 %v5730_v43, 16  ;;  %v5781_v61 = vrot.slane %v5779_v32, 4  ;;  %v5784_v49 = vrot.slane %v5782_v35, 5  ;;  %v9937_v60 = vld [vmem:[#allocation3 + $0x48] sm:$0xff]  }
 0x2fb   : > { %9305 = vmatprep.subr.bf16.mxu1 %v9919_v53  ;;  %v11976_v1 = vrot.slane %v5788_v48, 5  ;;  %v5794_v52 = vrot.slane %v5792_v40, 4  ;;  %v5798_v54 = vshll.u32 %v11974_v15, 16  ;;  %v5803_v46 = vshrl.u32 %v5736_v18, 16  ;;  %v5739_v9 = vld [vmem:[#allocation3 + $0x30] sm:$0xf] }
 0x2fc   : > { %v5760_v37 = vrot.slane %v5758_v56, 5  ;;  %v5806_v19 = vshll.u32 %v5736_v18, 16 }
 0x2fd   : > { %v5795_v34 = vor.u32 %v5794_v52, %v11976_v1 }
 0x2fe   : > { %9306 = vmatpush3.bf16.msra.mxu1 %v9919_v53  ;;  %v5812_v53 = vshll.u32 %v11978_v21, 16 }
 0x2ff   : > { %9307 = vmatprep.subr.bf16.mxu1 %v9922_v39 }
 0x301   : > { %9292 = vmatmul.mubr.msk.bf16.gmra.mrb[4].mxu1 %vm1339_vm10, %v8434_v63 }
 0x302   : > { %9295 = vmatprep.mubr.msk.bf16.mxu1 %vm1339_vm10, %v8435_v0  ;;  %9308 = vmatpush3.bf16.msra.mxu1 %v9922_v39  ;;  %v11993_v0 = vld [vmem:[#allocation3 + $0x2c] sm:$0x1] }
 0x303   : > { %9309 = vmatprep.subr.bf16.mxu1 %v9925_v13 }
 0x306   : > { %9310 = vmatpush3.bf16.msra.mxu1 %v9925_v13  ;;  %v5805_v13 = vrot.slane %v5803_v46, 4 }
 0x307   : > { %9327 = vmatprep.subr.bf16.mxu1 %v9926_v4 }
 0x309   : > { %9296 = vmatmul.mubr.msk.bf16.gmra.mrb[8].mxu1 %vm1339_vm10, %v8436_v20  ;;  %v11995_v20 = vld [vmem:[#allocation3 + $0x34] sm:$0xf] }
 0x30a   : > { %9299 = vmatprep.mubr.msk.bf16.mxu1 %vm1339_vm10, %v8437_v16  ;;  %v5742_v16 = vld [vmem:[#allocation3 + $0x3c] sm:$0xf]  ;;  %v5836_v56 = vshll.u32 %v11995_v20, 16 }
 0x30b   : > { %v5854_v26 = vshll.u32 %v5742_v16, 16 }
 0x311   : > { %9300 = vmatmul.mubr.msk.bf16.gmra.mrb[12].mxu1 %vm1339_vm10, %v8438_v11  ;;  %v11997_v11 = vrot.slane %v5812_v53, 5  ;;  %v12029_v53 = vld [vmem:[#allocation3 + $0x4c] sm:$0xf] }
 0x312   : > { %9311 = vmatprep.mubr.msk.bf16.mxu1 %vm1339_vm10, %v8467_v2  ;;  %v5768_v2 = vshrl.u32 %v11951_v12, 16 }
 0x314   : > { %v5770_v44 = vrot.slane %v5768_v2, 4  ;;  %v5822_v2 = vshll.u32 %v11993_v0, 16 }
 0x316   : > { %v5824_v52 = vrot.slane %v5822_v2, 5 }
 0x319   : > { %9312 = vmatmul.mubr.msk.bf16.vlgmr.msra.gmra.mrb[0].mxu1 %vm1339_vm10, %v8468_v59  ;;  %v5764_v59 = vshll.u32 %v11951_v12, 16 }
 0x31a   : > { %9328 = vmatpush3.bf16.msra.mxu1 %v9926_v4  ;;  %9315 = vmatprep.mubr.msk.bf16.mxu1 %vm1339_vm10, %v8469_v8  ;;  %v5757_v8 = vrot.slane %v5755_v57, 4  ;;  %v5808_v4 = vrot.slane %v5806_v19, 5  ;;  %v5800_v57 = vrot.slane %v5798_v54, 5 }
 0x31b   : > { %9329 = vmatprep.subr.bf16.mxu1 %v9927_v24  ;;  %v11967_v30 = vrot.slane %v5764_v59, 5 }
 0x31c   : > { %v5761_v29 = vor.u32 %v5760_v37, %v5757_v8  ;;  %v5809_v32 = vor.u32 %v5808_v4, %v5805_v13  ;;  %v5884_v4 = vshll.u32 %v12029_v53, 16 }
 0x31d   : > { %v5771_v17 = vor.u32 %v5770_v44, %v11967_v30  ;;  %v12022_v44 = vrot.slane %v5836_v56, 5 }
 0x31e   : > { %9330 = vmatpush3.bf16.msra.mxu1 %v9927_v24  ;;  %v5762_v50 = vrot.slane %v5761_v29, 4 }
 0x31f   : > { %9331 = vmatprep.subr.bf16.mxu1 %v9928_v58  ;;  %v5772_v39 = vrot.slane %v5771_v17, 4 }
 0x321   : > { %9316 = vmatmul.mubr.msk.bf16.gmra.mrb[4].mxu1 %vm1339_vm10, %v8470_v33  ;;  %v11972_v33 = vld [vmem:[#allocation3 + $0x14] sm:$0x1] }
 0x322   : > { %9319 = vmatprep.mubr.msk.bf16.mxu1 %vm1339_vm10, %v8471_v28  ;;  %9332 = vmatpush3.bf16.msra.mxu1 %v9928_v58  ;;  %v5774_v22 = vshll.u32 %v11972_v33, 16  ;;  %v11987_v28 = vld [vmem:[%s12581_s4 + $0xa0] sm:$0xff]   ;;  %v5827_v58 = vshrl.u32 %v5739_v9, 16 }
 0x323   : > { %9333 = vmatprep.subr.bf16.mxu1 %v9929_v23 }
 0x324   : > { %v5776_v63 = vrot.slane %v5774_v22, 5 }
 0x326   : > { %9334 = vmatpush3.bf16.msra.mxu1 %v9929_v23  ;;  %v5830_v23 = vshll.u32 %v5739_v9, 16  ;;  %v5777_v59 = vsel %vm10496_vm11, %v5772_v39, %v5776_v63  ;;  %v12033_v39 = vld [vmem:[#allocation3 + $0x58] sm:$0xf] }
 0x327   : > { %9351 = vmatprep.subr.bf16.mxu1 %v9932_v42  ;;  %v5912_v56 = vshrl.u32 %v12033_v39, 16 }
 0x328   : > { %v5832_v48 = vrot.slane %v5830_v23, 5 }
 0x329   : > { %9320 = vmatmul.mubr.msk.bf16.gmra.mrb[8].mxu1 %vm1339_vm10, %v8472_v36  ;;  %v5816_v36 = vshrl.u32 %v11978_v21, 16 }
 0x32a   : > { %9323 = vmatprep.mubr.msk.bf16.mxu1 %vm1339_vm10, %v8473_v51  ;;  %v5785_v51 = vor.u32 %v5784_v49, %v5781_v61  ;;  %v5856_v61 = vrot.slane %v5854_v26, 5  ;;  %v9940_v49 = vld [vmem:[#allocation3 + $0x60] sm:$0xff]  }
 0x32b   : > { %v5818_v24 = vrot.slane %v5816_v36, 4 }
 0x32c   : > { %v5786_v43 = vrot.slane %v5785_v51, 4 }
 0x32d   : > { %v5819_v35 = vor.u32 %v5818_v24, %v11997_v11 }
 0x32e   : > { %v5791_v40 = vsel %vm10496_vm11, %v5786_v43, %v11976_v1  ;;  %v5810_v1 = vrot.slane %v5809_v32, 4 }
 0x32f   : > { %v5820_v54 = vrot.slane %v5819_v35, 4 }
 0x330   : > { %v5815_v24 = vsel %vm10496_vm11, %v5810_v1, %v11997_v11  ;;  %v5886_v11 = vrot.slane %v5884_v4, 5 }
 0x331   : > { %9324 = vmatmul.mubr.msk.bf16.gmra.mrb[12].mxu1 %vm1339_vm10, %v8474_v3  ;;  %v9939_v3 = vld [vmem:[#allocation3 + $0x54] sm:$0xff]  }
 0x332   : > { %9335 = vmatprep.mubr.msk.bf16.mxu1 %vm1339_vm10, %v9930_v14  ;;  %v5767_v14 = vsel %vm10496_vm11, %v5762_v50, %v11967_v30  ;;  %v12020_v30 = vld [vmem:[#allocation3 + $0x38] sm:$0x1]  ;;  %v5745_v50 = vld [vmem:[#allocation3 + $0x48] sm:$0xf] }
 0x333   : > { %v8523_v18 = vcombine.low %v5767_v14, %v5777_v59  ;;  %v5846_v19 = vshll.u32 %v12020_v30, 16  ;;  %v5878_v13 = vshll.u32 %v5745_v50, 16 }
 0x335   : > { %v5848_v14 = vrot.slane %v5846_v19, 5 }
 0x339   : > { %9336 = vmatmul.mubr.msk.bf16.vlgmr.msra.gmra.mrb[0].mxu1 %vm1339_vm10, %v9931_v27  ;;  %v5796_v27 = vrot.slane %v5795_v34, 4 }
 0x33a   : > { %9352 = vmatpush3.bf16.msra.mxu1 %v9932_v42  ;;  %9339 = vmatprep.mubr.msk.bf16.mxu1 %vm1339_vm10, %v9933_v47  ;;  %v11999_v42 = vld [vmem:[#allocation3 + $0x40] sm:$0xf]  ;;  %v5840_v47 = vshrl.u32 %v11995_v20, 16 }
 0x33b   : > { %9353 = vmatprep.subr.bf16.mxu1 %v9935_v38  ;;  %v5860_v8 = vshll.u32 %v11999_v42, 16  ;;  %v5864_v37 = vshrl.u32 %v11999_v42, 16 }
 0x33d   : > { %v12026_v17 = vrot.slane %v5860_v8, 5  ;;  %v5866_v22 = vrot.slane %v5864_v37, 4  ;;  %v12047_v8 = vld [vmem:[#allocation3 + $0x50] sm:$0x1]  ;;  %v5880_v37 = vrot.slane %v5878_v13, 5 }
 0x33e   : > { %9354 = vmatpush3.bf16.msra.mxu1 %v9935_v38  ;;  %v5851_v38 = vshrl.u32 %v5742_v16, 16  ;;  %v5888_v16 = vshrl.u32 %v12029_v53, 16 }
 0x33f   : > { %9355 = vmatprep.subr.bf16.mxu1 %v9938_v6  ;;  %v5867_v63 = vor.u32 %v5866_v22, %v12026_v17  ;;  %v12060_v22 = vld [vmem:[#allocation3 + $0x5c] sm:$0x1] }
 0x340   : > { %v5853_v29 = vrot.slane %v5851_v38, 4  ;;  %v5890_v32 = vrot.slane %v5888_v16, 4 }
 0x341   : > { %9340 = vmatmul.mubr.msk.bf16.gmra.mrb[4].mxu1 %vm1339_vm10, %v9934_v62  ;;  %v5801_v62 = vsel %vm10496_vm11, %v5796_v27, %v5800_v57  ;;  %v5908_v57 = vshll.u32 %v12033_v39, 16  ;;  %v5868_v2 = vrot.slane %v5867_v63, 4 }
 0x342   : > { %9343 = vmatprep.mubr.msk.bf16.mxu1 %vm1339_vm10, %v9936_v41  ;;  %9356 = vmatpush3.bf16.msra.mxu1 %v9938_v6  ;;  %v5829_v6 = vrot.slane %v5827_v58, 4  ;;  %v5842_v41 = vrot.slane %v5840_v47, 4  ;;  %v8524_v36 = vcombine.low %v5791_v40, %v5801_v62  ;;  %v5857_v34 = vor.u32 %v5856_v61, %v5853_v29  ;;  %v12052_v61 = vld [vmem:[#allocation3 + $0x64] sm:$0xf] }
 0x343   : > { %9357 = vmatprep.subr.bf16.mxu1 %v9941_v45  ;;  %v5825_v58 = vsel %vm10496_vm11, %v5820_v54, %v5824_v52  ;;  %v5914_v29 = vrot.slane %v5912_v56, 4  ;;  %v5894_v52 = vshll.u32 %v12047_v8, 16  ;;  %v9945_v56 = vld [vmem:[%s12581_s4 + $0xb8] sm:$0xff]  }
 0x344   : > { %v5833_v46 = vor.u32 %v5832_v48, %v5829_v6  ;;  %v5843_v51 = vor.u32 %v5842_v41, %v12022_v44  ;;  %v5858_v38 = vrot.slane %v5857_v34, 4  ;;  %v8525_v35 = vcombine.low %v5815_v24, %v5825_v58  ;;  %v9943_v6 = vld [vmem:[%s12581_s4 + $0xa8] sm:$0xff]   ;;  %v5751_v48 = vld [vmem:[#allocation3 + $0x60] sm:$0xf] }
 0x345   : > { %v5910_v41 = vrot.slane %v5908_v57, 5  ;;  %v5926_v19 = vshll.u32 %v5751_v48, 16  ;;  %v5936_v34 = vshrl.u32 %v12052_v61, 16  ;;  %v5896_v4 = vrot.slane %v5894_v52, 5  ;;  %v12076_v57 = vld [vmem:[#allocation3 + $0x68] sm:$0x1] }
 0x346   : > { %9358 = vmatpush3.bf16.msra.mxu1 %v9941_v45  ;;  %v12024_v45 = vld [vmem:[#allocation3 + $0x44] sm:$0x1]  ;;  %v5834_v23 = vrot.slane %v5833_v46, 4  ;;  %v5844_v47 = vrot.slane %v5843_v51, 4  ;;  %v5891_v46 = vor.u32 %v5890_v32, %v5886_v11  ;;  %v5932_v51 = vshll.u32 %v12052_v61, 16 }
 0x347   : > { %9375 = vmatprep.subr.bf16.mxu1 %v11987_v28  ;;  %v5870_v9 = vshll.u32 %v12024_v45, 16  ;;  %v5928_v24 = vrot.slane %v5926_v19, 5  ;;  %v6142_v19 = vld [vmem:[#allocation3 + $0x24] sm:$0xe] }
 0x348   : > { %v5892_v13 = vrot.slane %v5891_v46, 4  ;;  %v5934_v58 = vrot.slane %v5932_v51, 5 }
 0x349   : > { %9344 = vmatmul.mubr.msk.bf16.gmra.mrb[8].mxu1 %vm1339_vm10, %v9937_v60  ;;  %v5875_v60 = vshrl.u32 %v5745_v50, 16  ;;  %v5872_v26 = vrot.slane %v5870_v9, 5  ;;  %v5863_v50 = vsel %vm10496_vm11, %v5858_v38, %v12026_v17  ;;  %v9944_v17 = vld [vmem:[%s12581_s4 + $0xb0] sm:$0xff]   ;;  %v5915_v9 = vor.u32 %v5914_v29, %v5910_v41 }
 0x34a   : > { %9347 = vmatprep.mubr.msk.bf16.mxu1 %vm1339_vm10, %v9939_v3  ;;  %v5748_v3 = vld [vmem:[#allocation3 + $0x54] sm:$0xf]  ;;  %v5897_v38 = vsel %vm10496_vm11, %v5892_v13, %v5896_v4  ;;  %v6143_v4 = vld [vmem:[#allocation3 + $0x30] sm:$0xe] }
 0x34b   : > { %v5899_v43 = vshrl.u32 %v5748_v3, 16  ;;  %v5902_v27 = vshll.u32 %v5748_v3, 16  ;;  %v5877_v59 = vrot.slane %v5875_v60, 4  ;;  %v5873_v1 = vsel %vm10496_vm11, %v5868_v2, %v5872_v26 }
 0x34c   : > { %v5918_v60 = vshll.u32 %v12060_v22, 16  ;;  %v8527_v63 = vcombine.low %v5863_v50, %v5873_v1  ;;  %v5942_v2 = vshll.u32 %v12076_v57, 16  ;;  %v6181_v1 = vrot.slane %v11958_v55, 5 }
 0x34d   : > { %v5901_v40 = vrot.slane %v5899_v43, 4  ;;  %v5904_v62 = vrot.slane %v5902_v27, 5  ;;  %v5881_v54 = vor.u32 %v5880_v37, %v5877_v59  ;;  %v5916_v43 = vrot.slane %v5915_v9, 4 }
 0x34e   : > { %v5920_v27 = vrot.slane %v5918_v60, 5  ;;  %v6184_v9 = vrot.slane %v11974_v15, 5  ;;  %v8545_v60 = vrot.slane %v6142_v19, 9  ;;  %v6191_v55 = vrot.slane %v11993_v0, 5 }
 0x34f   : > { %v6202_v0 = vrot.slane %v11999_v42, 5 }
 0x350   : > { %v5921_v32 = vsel %vm10496_vm11, %v5916_v43, %v5920_v27  ;;  %v6198_v43 = vrot.slane %v12020_v30, 5  ;;  %v6209_v30 = vrot.slane %v12029_v53, 5 }
 0x351   : > { %9348 = vmatmul.mubr.msk.bf16.gmra.mrb[12].mxu1 %vm1339_vm10, %v9940_v49  ;;  %v5839_v49 = vsel %vm10496_vm11, %v5834_v23, %v12022_v44  ;;  %v5923_v44 = vshrl.u32 %v5751_v48, 16  ;;  %v5938_v23 = vrot.slane %v5936_v34, 4 }
 0x352   : > { %9359 = vmatprep.mubr.msk.bf16.mxu1 %vm1339_vm10, %v8523_v18  ;;  %v5849_v18 = vsel %vm10496_vm11, %v5844_v47, %v5848_v14  ;;  %v6211_v53 = vrot.slane %v6209_v30, 4 }
 0x353   : > { %v8526_v3 = vcombine.low %v5839_v49, %v5849_v18  ;;  %v5925_v16 = vrot.slane %v5923_v44, 4  ;;  %v5939_v59 = vor.u32 %v5938_v23, %v5934_v58  ;;  %v5944_v49 = vrot.slane %v5942_v2, 5  ;;  %v9948_v2 = vld [vmem:[%s12581_s4 + $0xd0] sm:$0xff]  }
 0x354   : > { %v6188_v44 = vrot.slane %v11978_v21, 5  ;;  %v8546_v23 = vrot.slane %v6143_v4, 9  ;;  %v9958_v4 = vld [vmem:[%s12581_s4 + $0xf0] sm:$0xff]  }
 0x355   : > { %v5929_v26 = vor.u32 %v5928_v24, %v5925_v16  ;;  %v5940_v29 = vrot.slane %v5939_v59, 4  ;;  %v6144_v16 = vld [vmem:[#allocation3 + $0x3c] sm:$0xe]  ;;  %v6145_v59 = vld [vmem:[#allocation3 + $0x48] sm:$0xe] }
 0x356   : > { %v6189_v13 = vsel %vm10735_vm14, %v8545_v60, %v6188_v44  ;;  %v8547_v27 = vrot.slane %v6144_v16, 9  ;;  %v6652_v60 = vld [vmem:[#allocation3 + $0x24] sm:$0xf] }
 0x357   : > { %v5945_v50 = vsel %vm10496_vm11, %v5940_v29, %v5944_v49  ;;  %v6219_v29 = vrot.slane %v12060_v22, 5  ;;  %v9949_v49 = vld [vmem:[%s12581_s4 + $0xd8] sm:$0xff]  }
 0x359   : > { %9360 = vmatmul.mubr.msk.bf16.vlgmr.msra.gmra.mrb[0].mxu1 %vm1339_vm10, %v8524_v36  ;;  %v5905_v36 = vor.u32 %v5904_v62, %v5901_v40  ;;  %v5930_v62 = vrot.slane %v5929_v26, 4  ;;  %v6203_v26 = vsel %vm10735_vm14, %v8547_v27, %v6202_v0  ;;  %v9956_v27 = vld [vmem:[#allocation3 + $0x48] sm:$0xff]  }
 0x35a   : > { %9376 = vmatpush3.bf16.msra.mxu1 %v11987_v28  ;;  %9363 = vmatprep.mubr.msk.bf16.mxu1 %vm1339_vm10, %v8525_v35  ;;  %v5882_v28 = vrot.slane %v5881_v54, 4  ;;  %v6174_v35 = vrot.slane %v11951_v12, 5 }
 0x35b   : > { %9377 = vmatprep.subr.bf16.mxu1 %v9943_v6  ;;  %v5906_v14 = vrot.slane %v5905_v36, 4  ;;  %v5935_v12 = vsel %vm10496_vm11, %v5930_v62, %v5934_v58  ;;  %v6183_v36 = vrot.slane %v6181_v1, 4 }
 0x35c   : > { %v5887_v47 = vsel %vm10496_vm11, %v5882_v28, %v5886_v11  ;;  %v9946_v11 = vld [vmem:[%s12581_s4 + $0xc0] sm:$0xff]   ;;  %v6176_v52 = vrot.slane %v6174_v35, 4  ;;  %v8530_v51 = vcombine.low %v5935_v12, %v5945_v50  ;;  %v6195_v28 = vrot.slane %v11995_v20, 5  ;;  %v9947_v20 = vld [vmem:[%s12581_s4 + $0xc8] sm:$0xff]  }
 0x35d   : > { %v5911_v37 = vsel %vm10496_vm11, %v5906_v14, %v5910_v41  ;;  %v8528_v48 = vcombine.low %v5887_v47, %v5897_v38  ;;  %v6177_v41 = vrot.slane %v11972_v33, 5  ;;  %v6141_v33 = vld [vmem:[#allocation3 + $0x18] sm:$0xe]  ;;  %v6185_v21 = vsel %vm10735_vm14, %v6183_v36, %v6184_v9  ;;  %v9952_v12 = vld [vmem:[%s12581_s4 + $0xe0] sm:$0xff]   ;;  %v12171_v36 = vld [vmem:[#allocation3 + $0x1c] sm:$0xf] }
 0x35e   : > { %9378 = vmatpush3.bf16.msra.mxu1 %v9943_v6  ;;  %v6140_v6 = vld [vmem:[#allocation3 + $0xc] sm:$0xe]  ;;  %v8529_v40 = vcombine.low %v5911_v37, %v5921_v32  ;;  %v6197_v14 = vrot.slane %v6195_v28, 4  ;;  %v6205_v47 = vrot.slane %v12024_v45, 5  ;;  %v6196_v42 = vsel %vm10735_vm14, %v8546_v23, %v6195_v28  ;;  %v6146_v32 = vld [vmem:[#allocation3 + $0x54] sm:$0xe] }
 0x35f   : > { %9379 = vmatprep.subr.bf16.mxu1 %v9944_v17  ;;  %v8543_v18 = vrot.slane %v6140_v6, 9  ;;  %v6178_v46 = vsel %vm10735_vm14, %v6176_v52, %v6177_v41  ;;  %v6216_v37 = vrot.slane %v12033_v39, 5  ;;  %v8548_v6 = vrot.slane %v6145_v59, 9  ;;  %v6147_v41 = vld [vmem:[#allocation3 + $0x60] sm:$0xe]  ;;  %v9955_v9 = vld [vmem:[%s12581_s4 + $0xe8] sm:$0xff]  }
 0x360   : > { %v6199_v38 = vsel %vm10735_vm14, %v6197_v14, %v6198_v43  ;;  %v6687_v28 = vshrl.u32 %v12171_v36, 16  ;;  %v6655_v23 = vld [vmem:[#allocation3 + $0x30] sm:$0xf]  ;;  %v9954_v14 = vld [vmem:[#allocation3 + $0x3c] sm:$0xff]  }
 0x361   : > { %9364 = vmatmul.mubr.msk.bf16.gmra.mrb[4].mxu1 %vm1339_vm10, %v8526_v3  ;;  %v6175_v54 = vsel %vm10735_vm14, %v8543_v18, %v6174_v35  ;;  %v6190_v3 = vrot.slane %v6188_v44, 4  ;;  %v8562_v35 = vcombine.low %v6196_v42, %v6199_v38  ;;  %v6218_v62 = vrot.slane %v6216_v37, 4 }
 0x362   : > { %9367 = vmatprep.mubr.msk.bf16.mxu1 %vm1339_vm10, %v8527_v63  ;;  %9380 = vmatpush3.bf16.msra.mxu1 %v9944_v17  ;;  %v8559_v34 = vcombine.low %v6175_v54, %v6178_v46  ;;  %v8544_v17 = vrot.slane %v6141_v33, 9  ;;  %v6210_v39 = vsel %vm10735_vm14, %v8548_v6, %v6209_v30  ;;  %v8550_v54 = vrot.slane %v6147_v41, 9 }
 0x363   : > { %9381 = vmatprep.subr.bf16.mxu1 %v9945_v56  ;;  %v6192_v15 = vsel %vm10735_vm14, %v6190_v3, %v6191_v55  ;;  %v6220_v52 = vsel %vm10735_vm14, %v6218_v62, %v6219_v29  ;;  %v6226_v33 = vrot.slane %v12076_v57, 5  ;;  %v6649_v57 = vld [vmem:[#allocation3 + $0x18] sm:$0xf]  ;;  %v6722_v59 = vshrl.u32 %v6655_v23, 16  ;;  %v12211_v29 = vld [vmem:[%s12581_s4 + $0x100] sm:$0xff]  }
 0x364   : > { %v6182_v63 = vsel %vm10735_vm14, %v8544_v17, %v6181_v1  ;;  %v8561_v58 = vcombine.low %v6189_v13, %v6192_v15  ;;  %v9953_v17 = vld [vmem:[#allocation3 + $0x30] sm:$0xff]   ;;  %v6674_v3 = vshrl.u32 %v6649_v57, 16  ;;  %v6677_v55 = vshll.u32 %v6649_v57, 16  ;;  %v12220_v57 = vld [vmem:[#allocation3 + $0x38] sm:$0x1] }
 0x365   : > { %v8560_v24 = vcombine.low %v6182_v63, %v6185_v21  ;;  %v12176_v63 = vld [vmem:[#allocation3 + $0x28] sm:$0xf]  ;;  %v6683_v21 = vshll.u32 %v12171_v36, 16  ;;  %v6698_v13 = vshrl.u32 %v6652_v60, 16  ;;  %v6701_v15 = vshll.u32 %v6652_v60, 16 }
 0x366   : > { %9382 = vmatpush3.bf16.msra.mxu1 %v9945_v56  ;;  %v6204_v56 = vrot.slane %v6202_v0, 4  ;;  %v6707_v0 = vshll.u32 %v12176_v63, 16  ;;  %v6711_v16 = vshrl.u32 %v12176_v63, 16 }
 0x367   : > { %9399 = vmatprep.subr.bf16.mxu1 %v9946_v11  ;;  %v12187_v43 = vrot.slane %v6683_v21, 5  ;;  %v6700_v42 = vrot.slane %v6698_v13, 4  ;;  %v6703_v38 = vrot.slane %v6701_v15, 5 }
 0x368   : > { %v6206_v45 = vsel %vm10735_vm14, %v6204_v56, %v6205_v47  ;;  %v9961_v56 = vld [vmem:[%s12581_s4 + $0xf8] sm:$0xff]   ;;  %v12192_v47 = vld [vmem:[#allocation3 + $0x20] sm:$0x1]  ;;  %v12194_v30 = vrot.slane %v6707_v0, 5  ;;  %v6741_v0 = vshll.u32 %v12220_v57, 16 }
 0x369   : > { %9368 = vmatmul.mubr.msk.bf16.gmra.mrb[8].mxu1 %vm1339_vm10, %v8528_v48  ;;  %v6212_v48 = vrot.slane %v12047_v8, 5  ;;  %v6223_v8 = vrot.slane %v12052_v61, 5  ;;  %v6704_v6 = vor.u32 %v6703_v38, %v6700_v42 }
 0x36a   : > { %9371 = vmatprep.mubr.msk.bf16.mxu1 %vm1339_vm10, %v8529_v40  ;;  %v8549_v40 = vrot.slane %v6146_v32, 9  ;;  %v12198_v32 = vld [vmem:[#allocation3 + $0x2c] sm:$0x1] }
 0x36b   : > { %v6213_v18 = vsel %vm10735_vm14, %v6211_v53, %v6212_v48  ;;  %v6225_v46 = vrot.slane %v6223_v8, 4  ;;  %v6224_v61 = vsel %vm10735_vm14, %v8550_v54, %v6223_v8  ;;  %v6717_v62 = vshll.u32 %v12198_v32, 16  ;;  %v9957_v8 = vld [vmem:[#allocation3 + $0x54] sm:$0xff]  }
 0x36c   : > { %v6217_v22 = vsel %vm10735_vm14, %v8549_v40, %v6216_v37  ;;  %v8564_v50 = vcombine.low %v6210_v39, %v6213_v18  ;;  %v6658_v18 = vld [vmem:[#allocation3 + $0x3c] sm:$0xf] }
 0x36d   : > { %v8565_v1 = vcombine.low %v6217_v22, %v6220_v52  ;;  %v6227_v44 = vsel %vm10735_vm14, %v6225_v46, %v6226_v33  ;;  %v9959_v22 = vld [vmem:[#allocation3 + $0x60] sm:$0xff]   ;;  %v6746_v33 = vshrl.u32 %v6658_v18, 16 }
 0x36e   : > { %v8566_v19 = vcombine.low %v6224_v61, %v6227_v44  ;;  %v6749_v61 = vshll.u32 %v6658_v18, 16  ;;  %v12217_v44 = vld [vmem:[#allocation3 + $0x4c] sm:$0xf] }
 0x36f   : > { %v6779_v13 = vshll.u32 %v12217_v44, 16  ;;  %v6783_v15 = vshrl.u32 %v12217_v44, 16 }
 0x371   : > { %9372 = vmatmul.mubr.msk.bf16.gmra.mrb[12].mxu1 %vm1339_vm10, %v8530_v51  ;;  %v9950_v51 = vld [vmem:[#allocation3 + $0x18] sm:$0xff]  }
 0x372   : > { %9383 = vmatprep.mubr.msk.bf16.mxu1 %vm1339_vm10, %v8559_v34  ;;  %v9951_v34 = vld [vmem:[#allocation3 + $0x24] sm:$0xff]  }
 0x379   : > { %9384 = vmatmul.mubr.msk.bf16.vlgmr.msra.gmra.mrb[0].mxu1 %vm1339_vm10, %v8560_v24  ;;  %v6676_v24 = vrot.slane %v6674_v3, 4 }
 0x37a   : > { %9400 = vmatpush3.bf16.msra.mxu1 %v9946_v11  ;;  %9387 = vmatprep.mubr.msk.bf16.mxu1 %vm1339_vm10, %v8561_v58  ;;  %v8563_v11 = vcombine.low %v6203_v26, %v6206_v45  ;;  %v6679_v58 = vrot.slane %v6677_v55, 5  ;;  %v6713_v26 = vrot.slane %v6711_v16, 4  ;;  %v12196_v45 = vld [vmem:[#allocation3 + $0x34] sm:$0xf]  ;;  %v6748_v16 = vrot.slane %v6746_v33, 4 }
 0x37b   : > { %9401 = vmatprep.subr.bf16.mxu1 %v9947_v20  ;;  %v6731_v53 = vshll.u32 %v12196_v45, 16  ;;  %v6735_v48 = vshrl.u32 %v12196_v45, 16 }
 0x37c   : > { %v6680_v37 = vor.u32 %v6679_v58, %v6676_v24  ;;  %v6714_v40 = vor.u32 %v6713_v26, %v12194_v30  ;;  %v6751_v24 = vrot.slane %v6749_v61, 5 }
 0x37d   : > { %v12215_v54 = vrot.slane %v6731_v53, 5  ;;  %v6737_v46 = vrot.slane %v6735_v48, 4  ;;  %v12249_v48 = vld [vmem:[#allocation3 + $0x58] sm:$0xf] }
 0x37e   : > { %9402 = vmatpush3.bf16.msra.mxu1 %v9947_v20  ;;  %v6689_v20 = vrot.slane %v6687_v28, 4  ;;  %v6681_v52 = vrot.slane %v6680_v37, 4  ;;  %v6785_v37 = vrot.slane %v6783_v15, 4 }
 0x37f   : > { %9403 = vmatprep.subr.bf16.mxu1 %v9948_v2 }
 0x380   : > { %v6686_v21 = vsel %vm10496_vm11, %v6681_v52, %v12187_v43 }
 0x381   : > { %9388 = vmatmul.mubr.msk.bf16.gmra.mrb[4].mxu1 %vm1339_vm10, %v8562_v35  ;;  %v6690_v35 = vor.u32 %v6689_v20, %v12187_v43  ;;  %v12240_v43 = vld [vmem:[#allocation3 + $0x44] sm:$0x1]  ;;  %v9960_v20 = vld [vmem:[#allocation3 + $0x6c] sm:$0xff]  }
 0x382   : > { %9391 = vmatprep.mubr.msk.bf16.mxu1 %vm1339_vm10, %v8563_v11  ;;  %9404 = vmatpush3.bf16.msra.mxu1 %v9948_v2  ;;  %v6725_v2 = vshll.u32 %v6655_v23, 16  ;;  %v6693_v11 = vshll.u32 %v12192_v47, 16  ;;  %v6765_v53 = vshll.u32 %v12240_v43, 16 }
 0x383   : > { %9405 = vmatprep.subr.bf16.mxu1 %v9949_v49  ;;  %v6691_v41 = vrot.slane %v6690_v35, 4  ;;  %v6664_v35 = vld [vmem:[#allocation3 + $0x54] sm:$0xf] }
 0x384   : > { %v6727_v39 = vrot.slane %v6725_v2, 5  ;;  %v12246_v2 = vrot.slane %v6779_v13, 5  ;;  %v6794_v18 = vshrl.u32 %v6664_v35, 16  ;;  %v12267_v13 = vld [vmem:[#allocation3 + $0x5c] sm:$0x1] }
 0x386   : > { %9406 = vmatpush3.bf16.msra.mxu1 %v9949_v49  ;;  %v6724_v49 = vrot.slane %v6722_v59, 4  ;;  %v12244_v59 = vld [vmem:[#allocation3 + $0x50] sm:$0x1]  ;;  %v6786_v52 = vor.u32 %v6785_v37, %v12246_v2  ;;  %v12280_v37 = vld [vmem:[#allocation3 + $0x68] sm:$0x1] }
 0x387   : > { %9423 = vmatprep.subr.bf16.mxu1 %v9952_v12 }
 0x389   : > { %9392 = vmatmul.mubr.msk.bf16.gmra.mrb[8].mxu1 %vm1339_vm10, %v8564_v50  ;;  %v12213_v50 = vld [vmem:[#allocation3 + $0x40] sm:$0xf] }
 0x38a   : > { %9395 = vmatprep.mubr.msk.bf16.mxu1 %vm1339_vm10, %v8565_v1  ;;  %v6661_v1 = vld [vmem:[#allocation3 + $0x48] sm:$0xf]  ;;  %v6759_v60 = vshrl.u32 %v12213_v50, 16 }
 0x38b   : > { %v6770_v3 = vshrl.u32 %v6661_v1, 16  ;;  %v6773_v55 = vshll.u32 %v6661_v1, 16  ;;  %v6807_v1 = vshrl.u32 %v12249_v48, 16 }
 0x38d   : > { %v6772_v42 = vrot.slane %v6770_v3, 4  ;;  %v6775_v38 = vrot.slane %v6773_v55, 5 }
 0x391   : > { %9396 = vmatmul.mubr.msk.bf16.gmra.mrb[12].mxu1 %vm1339_vm10, %v8566_v19  ;;  %v6705_v19 = vrot.slane %v6704_v6, 4  ;;  %v6752_v6 = vor.u32 %v6751_v24, %v6748_v16  ;;  %v9963_v16 = vld [vmem:[%s12581_s4 + $0x108] sm:$0xff]   ;;  %v6670_v24 = vld [vmem:[#allocation3 + $0x6c] sm:$0xf] }
 0x392   : > { %9407 = vmatprep.mubr.msk.bf16.mxu1 %vm1339_vm10, %v9950_v51  ;;  %v6715_v51 = vrot.slane %v6714_v40, 4 }
 0x393   : > { %v6710_v58 = vsel %vm10496_vm11, %v6705_v19, %v12194_v30  ;;  %v6753_v61 = vrot.slane %v6752_v6, 4  ;;  %v6767_v19 = vrot.slane %v6765_v53, 5  ;;  %v6845_v53 = vshll.u32 %v6670_v24, 16 }
 0x399   : > { %9408 = vmatmul.mubr.msk.bf16.vlgmr.msra.gmra.mrb[0].mxu1 %vm1339_vm10, %v9951_v34  ;;  %v6719_v34 = vrot.slane %v6717_v62, 5 }
 0x39a   : > { %9424 = vmatpush3.bf16.msra.mxu1 %v9952_v12  ;;  %9411 = vmatprep.mubr.msk.bf16.mxu1 %vm1339_vm10, %v9953_v17  ;;  %v6695_v12 = vrot.slane %v6693_v11, 5  ;;  %v6728_v17 = vor.u32 %v6727_v39, %v6724_v49  ;;  %v6743_v11 = vrot.slane %v6741_v0, 5  ;;  %v6776_v49 = vor.u32 %v6775_v38, %v6772_v42 }
 0x39b   : > { %9425 = vmatprep.subr.bf16.mxu1 %v9955_v9  ;;  %v6720_v23 = vsel %vm10496_vm11, %v6715_v51, %v6719_v34  ;;  %v6789_v39 = vshll.u32 %v12244_v59, 16 }
 0x39c   : > { %v6696_v28 = vsel %vm10496_vm11, %v6691_v41, %v6695_v12  ;;  %v8616_v40 = vcombine.low %v6710_v58, %v6720_v23  ;;  %v6797_v41 = vshll.u32 %v6664_v35, 16  ;;  %v6803_v12 = vshll.u32 %v12249_v48, 16 }
 0x39d   : > { %v8615_v26 = vcombine.low %v6686_v21, %v6696_v28  ;;  %v6777_v3 = vrot.slane %v6776_v49, 4  ;;  %v6791_v55 = vrot.slane %v6789_v39, 5  ;;  %v6796_v21 = vrot.slane %v6794_v18, 4 }
 0x39e   : > { %9426 = vmatpush3.bf16.msra.mxu1 %v9955_v9  ;;  %v6755_v9 = vshll.u32 %v12213_v50, 16  ;;  %v6787_v28 = vrot.slane %v6786_v52, 4  ;;  %v6799_v15 = vrot.slane %v6797_v41, 5  ;;  %v6837_v18 = vshll.u32 %v12280_v37, 16 }
 0x39f   : > { %9427 = vmatprep.subr.bf16.mxu1 %v9958_v4  ;;  %v6782_v35 = vsel %vm10496_vm11, %v6777_v3, %v12246_v2  ;;  %v9964_v2 = vld [vmem:[%s12581_s4 + $0x110] sm:$0xff]  }
 0x3a1   : > { %9412 = vmatmul.mubr.msk.bf16.gmra.mrb[4].mxu1 %vm1339_vm10, %v9954_v14  ;;  %v6729_v14 = vrot.slane %v6728_v17, 4 }
 0x3a2   : > { %9415 = vmatprep.mubr.msk.bf16.mxu1 %vm1339_vm10, %v9956_v27  ;;  %9428 = vmatpush3.bf16.msra.mxu1 %v9958_v4  ;;  %v6738_v4 = vor.u32 %v6737_v46, %v12215_v54  ;;  %v12242_v27 = vrot.slane %v6755_v9, 5 }
 0x3a3   : > { %9429 = vmatprep.subr.bf16.mxu1 %v9961_v56  ;;  %v6734_v46 = vsel %vm10496_vm11, %v6729_v14, %v12215_v54  ;;  %v6805_v54 = vrot.slane %v6803_v12, 5 }
 0x3a4   : > { %v6739_v30 = vrot.slane %v6738_v4, 4  ;;  %v6809_v4 = vrot.slane %v6807_v1, 4  ;;  %v6758_v42 = vsel %vm10496_vm11, %v6753_v61, %v12242_v27 }
 0x3a6   : > { %9430 = vmatpush3.bf16.msra.mxu1 %v9961_v56  ;;  %v6761_v56 = vrot.slane %v6759_v60, 4  ;;  %v6744_v33 = vsel %vm10496_vm11, %v6739_v30, %v6743_v11  ;;  %v6792_v30 = vsel %vm10496_vm11, %v6787_v28, %v6791_v55  ;;  %v6800_v11 = vor.u32 %v6799_v15, %v6796_v21 }
 0x3a7   : > { %9447 = vmatprep.subr.bf16.mxu1 %v12211_v29  ;;  %v8617_v0 = vcombine.low %v6734_v46, %v6744_v33  ;;  %v6810_v6 = vor.u32 %v6809_v4, %v6805_v54  ;;  %v8619_v52 = vcombine.low %v6782_v35, %v6792_v30  ;;  %v6847_v46 = vrot.slane %v6845_v53, 5  ;;  %v7061_v53 = vld [vmem:[#allocation3 + $0x30] sm:$0xe] }
 0x3a8   : > { %v6762_v62 = vor.u32 %v6761_v56, %v12242_v27  ;;  %v12272_v56 = vld [vmem:[#allocation3 + $0x70] sm:$0xf]  ;;  %v6842_v27 = vshrl.u32 %v6670_v24, 16  ;;  %v7100_v30 = vrot.slane %v12176_v63, 5  ;;  %v8637_v25 = vrot.slane %v7061_v53, 9 }
 0x3a9   : > { %9416 = vmatmul.mubr.msk.bf16.gmra.mrb[8].mxu1 %vm1339_vm10, %v9957_v8  ;;  %v6667_v8 = vld [vmem:[#allocation3 + $0x60] sm:$0xf]  ;;  %v6855_v49 = vshrl.u32 %v12272_v56, 16  ;;  %v6811_v41 = vrot.slane %v6810_v6, 4  ;;  %v7110_v63 = vrot.slane %v12220_v57, 5  ;;  %v7121_v57 = vrot.slane %v12217_v44, 5 }
 0x3aa   : > { %9419 = vmatprep.mubr.msk.bf16.mxu1 %vm1339_vm10, %v9959_v22  ;;  %v12253_v22 = vld [vmem:[#allocation3 + $0x64] sm:$0xf]  ;;  %v6818_v51 = vshrl.u32 %v6667_v8, 16  ;;  %v6821_v34 = vshll.u32 %v6667_v8, 16  ;;  %v6763_v60 = vrot.slane %v6762_v62, 4  ;;  %v6851_v62 = vshll.u32 %v12272_v56, 16 }
 0x3ab   : > { %v6827_v17 = vshll.u32 %v12253_v22, 16  ;;  %v6831_v9 = vshrl.u32 %v12253_v22, 16  ;;  %v6844_v1 = vrot.slane %v6842_v27, 4  ;;  %v6857_v61 = vrot.slane %v6855_v49, 4 }
 0x3ac   : > { %v6820_v58 = vrot.slane %v6818_v51, 4  ;;  %v6823_v23 = vrot.slane %v6821_v34, 5  ;;  %v6768_v38 = vsel %vm10496_vm11, %v6763_v60, %v6767_v19  ;;  %v6853_v33 = vrot.slane %v6851_v62, 5 }
 0x3ad   : > { %v6829_v14 = vrot.slane %v6827_v17, 5  ;;  %v8618_v8 = vcombine.low %v6758_v42, %v6768_v38  ;;  %v6839_v34 = vrot.slane %v6837_v18, 5  ;;  %v12296_v17 = vld [vmem:[#allocation3 + $0x74] sm:$0x1]  ;;  %v6848_v55 = vor.u32 %v6847_v46, %v6844_v1 }
 0x3ae   : > { %v6858_v21 = vor.u32 %v6857_v61, %v6853_v33  ;;  %v6861_v28 = vshll.u32 %v12296_v17, 16  ;;  %v7107_v27 = vrot.slane %v12196_v45, 5 }
 0x3b0   : > { %v6863_v42 = vrot.slane %v6861_v28, 5  ;;  %v7109_v18 = vrot.slane %v7107_v27, 4  ;;  %v9968_v28 = vld [vmem:[%s12583_s6 + $0x10] sm:$0xff]  }
 0x3b1   : > { %9420 = vmatmul.mubr.msk.bf16.gmra.mrb[12].mxu1 %vm1339_vm10, %v9960_v20  ;;  %v6833_v20 = vrot.slane %v6831_v9, 4  ;;  %v9965_v9 = vld [vmem:[%s12581_s4 + $0x118] sm:$0xff]  }
 0x3b2   : > { %9431 = vmatprep.mubr.msk.bf16.mxu1 %vm1339_vm10, %v8615_v26  ;;  %v6813_v26 = vshll.u32 %v12267_v13, 16 }
 0x3b3   : > { %v6834_v39 = vor.u32 %v6833_v20, %v6829_v14  ;;  %v6859_v20 = vrot.slane %v6858_v21, 4  ;;  %v7135_v21 = vrot.slane %v12253_v22, 5 }
 0x3b4   : > { %v6815_v12 = vrot.slane %v6813_v26, 5 }
 0x3b5   : > { %v6835_v51 = vrot.slane %v6834_v39, 4  ;;  %v6864_v35 = vsel %vm10496_vm11, %v6859_v20, %v6863_v42  ;;  %v7103_v39 = vrot.slane %v12198_v32, 5  ;;  %v7111_v32 = vsel %vm10735_vm14, %v7109_v18, %v7110_v63 }
 0x3b6   : > { %v6816_v3 = vsel %vm10496_vm11, %v6811_v41, %v6815_v12  ;;  %v7062_v41 = vld [vmem:[#allocation3 + $0x3c] sm:$0xe]  ;;  %v7063_v12 = vld [vmem:[#allocation3 + $0x48] sm:$0xe]  ;;  %v7142_v42 = vrot.slane %v12272_v56, 5 }
 0x3b7   : > { %v6840_v4 = vsel %vm10496_vm11, %v6835_v51, %v6839_v34  ;;  %v8639_v51 = vrot.slane %v7063_v12, 9  ;;  %v7123_v34 = vrot.slane %v7121_v57, 4 }
 0x3b9   : > { %9432 = vmatmul.mubr.msk.bf16.vlgmr.msra.gmra.mrb[0].mxu1 %vm1339_vm10, %v8616_v40  ;;  %v6824_v40 = vor.u32 %v6823_v23, %v6820_v58  ;;  %v6849_v23 = vrot.slane %v6848_v55, 4  ;;  %v7064_v55 = vld [vmem:[#allocation3 + $0x54] sm:$0xe] }
 0x3ba   : > { %9448 = vmatpush3.bf16.msra.mxu1 %v12211_v29  ;;  %9435 = vmatprep.mubr.msk.bf16.mxu1 %vm1339_vm10, %v8617_v0  ;;  %v6801_v29 = vrot.slane %v6800_v11, 4  ;;  %v7093_v0 = vrot.slane %v12171_v36, 5 }
 0x3bb   : > { %9449 = vmatprep.subr.bf16.mxu1 %v9963_v16  ;;  %v6825_v19 = vrot.slane %v6824_v40, 4  ;;  %v6854_v36 = vsel %vm10496_vm11, %v6849_v23, %v6853_v33  ;;  %v7102_v40 = vrot.slane %v7100_v30, 4  ;;  %v8638_v33 = vrot.slane %v7062_v41, 9  ;;  %v12645_v41 = vld [vmem:[#allocation7_spill] sm:$0xff] }
 0x3bc   : > { %v6806_v60 = vsel %vm10496_vm11, %v6801_v29, %v6805_v54  ;;  %v9966_v54 = vld [vmem:[%s12583_s6] sm:$0xff]   ;;  %v7095_v26 = vrot.slane %v7093_v0, 4  ;;  %v8622_v62 = vcombine.low %v6854_v36, %v6864_v35  ;;  %v7108_v29 = vsel %vm10735_vm14, %v8637_v25, %v7107_v27 }
 0x3bd   : > { %v6830_v15 = vsel %vm10496_vm11, %v6825_v19, %v6829_v14  ;;  %v8620_v24 = vcombine.low %v6806_v60, %v6816_v3  ;;  %v7096_v14 = vrot.slane %v12192_v47, 5  ;;  %v7060_v47 = vld [vmem:[#allocation3 + $0x24] sm:$0xe]  ;;  %v7104_v45 = vsel %vm10735_vm14, %v7102_v40, %v7103_v39 }
 0x3be   : > { %9450 = vmatpush3.bf16.msra.mxu1 %v9963_v16  ;;  %v7059_v16 = vld [vmem:[#allocation3 + $0x18] sm:$0xe]  ;;  %v8621_v58 = vcombine.low %v6830_v15, %v6840_v4  ;;  %v8653_v46 = vcombine.low %v7108_v29, %v7111_v32  ;;  %v7117_v19 = vrot.slane %v12240_v43, 5  ;;  %v7128_v43 = vrot.slane %v12249_v48, 5  ;;  %v7065_v15 = vld [vmem:[#allocation3 + $0x60] sm:$0xe] }
 0x3bf   : > { %9451 = vmatprep.subr.bf16.mxu1 %v9964_v2  ;;  %v8635_v38 = vrot.slane %v7059_v16, 9  ;;  %v7097_v6 = vsel %vm10735_vm14, %v7095_v26, %v7096_v14  ;;  %v8640_v16 = vrot.slane %v7064_v55, 9  ;;  %v7138_v23 = vrot.slane %v12280_v37, 5 }
 0x3c0   : > { %v7130_v48 = vrot.slane %v7128_v43, 4  ;;  %v7144_v35 = vrot.slane %v7142_v42, 4 }
 0x3c1   : > { %9436 = vmatmul.mubr.msk.bf16.gmra.mrb[4].mxu1 %vm1339_vm10, %v8618_v8  ;;  %v7094_v11 = vsel %vm10735_vm14, %v8635_v38, %v7093_v0  ;;  %v7129_v22 = vsel %vm10735_vm14, %v8640_v16, %v7128_v43  ;;  %v7066_v38 = vld [vmem:[#allocation3 + $0x6c] sm:$0xe] }
 0x3c2   : > { %9439 = vmatprep.mubr.msk.bf16.mxu1 %vm1339_vm10, %v8619_v52  ;;  %9452 = vmatpush3.bf16.msra.mxu1 %v9964_v2  ;;  %v8651_v49 = vcombine.low %v7094_v11, %v7097_v6  ;;  %v8636_v2 = vrot.slane %v7060_v47, 9  ;;  %v7114_v52 = vrot.slane %v12213_v50, 5  ;;  %v7124_v50 = vrot.slane %v12244_v59, 5  ;;  %v9969_v47 = vld [vmem:[%s12583_s6 + $0x18] sm:$0xff]  }
 0x3c3   : > { %9453 = vmatprep.subr.bf16.mxu1 %v9965_v9  ;;  %v7122_v59 = vsel %vm10735_vm14, %v8639_v51, %v7121_v57  ;;  %v8642_v36 = vrot.slane %v7066_v38, 9 }
 0x3c4   : > { %v7101_v8 = vsel %vm10735_vm14, %v8636_v2, %v7100_v30  ;;  %v7116_v61 = vrot.slane %v7114_v52, 4  ;;  %v7115_v44 = vsel %vm10735_vm14, %v8638_v33, %v7114_v52  ;;  %v7125_v3 = vsel %vm10735_vm14, %v7123_v34, %v7124_v50  ;;  %v9971_v34 = vld [vmem:[%s12585_s8 + $0x8] sm:$0xff]  }
 0x3c5   : > { %v8652_v1 = vcombine.low %v7101_v8, %v7104_v45  ;;  %v8655_v0 = vcombine.low %v7122_v59, %v7125_v3  ;;  %v7145_v30 = vrot.slane %v12296_v17, 5  ;;  %v7143_v56 = vsel %vm10735_vm14, %v8642_v36, %v7142_v42  ;;  %v9970_v17 = vld [vmem:[%s12585_s8] sm:$0xff]   ;;  %v12647_v59 = vld [vmem:[#allocation8_spill] sm:$0xff] }
 0x3c6   : > { %9454 = vmatpush3.bf16.msra.mxu1 %v9965_v9  ;;  %v9967_v9 = vld [vmem:[%s12583_s6 + $0x8] sm:$0xff]   ;;  %v7118_v60 = vsel %vm10735_vm14, %v7116_v61, %v7117_v19 }
 0x3c7   : > { %9471 = vmatprep.subr.bf16.mxu1 %v9966_v54  ;;  %v8654_v4 = vcombine.low %v7115_v44, %v7118_v60  ;;  %v7146_v11 = vsel %vm10735_vm14, %v7144_v35, %v7145_v30  ;;  %v12646_v44 = vld [vmem:[#allocation10_spill] sm:$0xff]  ;;  %v12651_v35 = vld [vmem:[#allocation12_spill] sm:$0xff] }
 0x3c8   : > { %v8658_v6 = vcombine.low %v7143_v56, %v7146_v11  ;;  %v12652_v11 = vld [vmem:[#allocation15_spill] sm:$0xff] }
 0x3c9   : > { %9440 = vmatmul.mubr.msk.bf16.gmra.mrb[8].mxu1 %vm1339_vm10, %v8620_v24  ;;  %v8641_v24 = vrot.slane %v7065_v15, 9  ;;  %v9972_v15 = vld [vmem:[%s12585_s8 + $0x10] sm:$0xff]  }
 0x3ca   : > { %9443 = vmatprep.mubr.msk.bf16.mxu1 %vm1339_vm10, %v8621_v58  ;;  %v7137_v58 = vrot.slane %v7135_v21, 4 }
 0x3cc   : > { %v7139_v37 = vsel %vm10735_vm14, %v7137_v58, %v7138_v23 }
 0x3d1   : > { %9444 = vmatmul.mubr.msk.bf16.gmra.mrb[12].mxu1 %vm1339_vm10, %v8622_v62 }
 0x3d2   : > { %9455 = vmatprep.mubr.msk.bf16.mxu1 %vm1339_vm10, %v8651_v49 }
 0x3d9   : > { %9456 = vmatmul.mubr.msk.bf16.vlgmr.msra.gmra.mrb[0].mxu1 %vm1339_vm10, %v8652_v1 }
 0x3da   : > { %9459 = vmatprep.mubr.msk.bf16.mxu1 %vm1339_vm10, %v8653_v46  ;;  %9472 = vmatpush3.bf16.msra.mxu1 %v9966_v54  ;;  %v7131_v54 = vrot.slane %v12267_v13, 5  ;;  %v7136_v13 = vsel %vm10735_vm14, %v8641_v24, %v7135_v21  ;;  %v12648_v21 = vld [vmem:[#allocation11_spill] sm:$0xff] }
 0x3db   : > { %9473 = vmatprep.subr.bf16.mxu1 %v9967_v9  ;;  %v8657_v14 = vcombine.low %v7136_v13, %v7139_v37 }
 0x3dc   : > { %v7132_v20 = vsel %vm10735_vm14, %v7130_v48, %v7131_v54 }
 0x3dd   : > { %v8656_v26 = vcombine.low %v7129_v22, %v7132_v20 }
 0x3de   : > { %9474 = vmatpush3.bf16.msra.mxu1 %v9967_v9 }
 0x3df   : > { %9475 = vmatprep.subr.bf16.mxu1 %v9968_v28 }
 0x3e1   : > { %9460 = vmatmul.mubr.msk.bf16.gmra.mrb[4].mxu1 %vm1339_vm10, %v8654_v4  ;;  %v12649_v4 = vld [vmem:[#allocation9_spill] sm:$0xff] }
 0x3e2   : > { %9463 = vmatprep.mubr.msk.bf16.mxu1 %vm1339_vm10, %v8655_v0  ;;  %9476 = vmatpush3.bf16.msra.mxu1 %v9968_v28 }
 0x3e3   : > { %9477 = vmatprep.subr.bf16.mxu1 %v9969_v47 }
 0x3e6   : > { %9478 = vmatpush3.bf16.msra.mxu1 %v9969_v47  ;;  %v12653_v47 = vld [vmem:[#allocation13_spill] sm:$0xff] }
 0x3e7   : > { %9495 = vmatprep.subr.bf16.mxu1 %v9970_v17 }
 0x3e9   : > { %9464 = vmatmul.mubr.msk.bf16.gmra.mrb[8].mxu1 %vm1339_vm10, %v8656_v26  ;;  %v12650_v26 = vld [vmem:[#allocation14_spill] sm:$0xff] }
 0x3ea   : > { %9467 = vmatprep.mubr.msk.bf16.mxu1 %vm1339_vm10, %v8657_v14 }
 0x3f1   : > { %9468 = vmatmul.mubr.msk.bf16.gmra.mrb[12].mxu1 %vm1339_vm10, %v8658_v6 }
 0x4ac   : > { %v9457_v27 = vpop.f32.mrb[0].mxu1 }
 0x4ad   : > { %v7350_v53 = vadd.f32 %v9457_v27, %v12393_v31  ;;  %v7262_v62 = vpop.f32.mrb[1].mxu1 }
 0x4ae   : > { %v7348_v49 = vadd.f32 %v12393_v31, %v7262_v62  ;;  %v9458_v2 = vpop.f32.mrb[2].mxu1 }
 0x4af   : > { %v7366_v40 = vmul.f32 0.1, %v7350_v53  ;;  %v7351_v39 = vadd.f32 %v9458_v2, %v12393_v31  ;;  %v7265_v25 = vpop.f32.mrb[3].mxu1 }
 0x4b0   : > { %v7364_v18 = vmul.f32 0.1, %v7348_v49  ;;  %v7349_v63 = vadd.f32 %v12393_v31, %v7265_v25 }
 0x4b1   : > { %v7382_v8 = vadd.f32 %v7366_v40, %v10299_v7  ;;  %v7367_v45 = vmul.f32 0.1, %v7351_v39 }
 0x4b2   : > { %v7380_v52 = vadd.f32 %v7364_v18, %v10293_v5  ;;  %v7365_v29 = vmul.f32 0.1, %v7349_v63 }
 0x4b3   : > { %7750 = vst.msk [vmem:[%s10289_s18 + $0x10] sm:$0xff] %vm1339_vm10, %v7382_v8  ;;  %v7383_v32 = vadd.f32 %v7367_v45, %v10312_v10 }
 0x4b4   : > { %7748 = vst.msk [vmem:[%s10289_s18] sm:$0xff] %vm1339_vm10, %v7380_v52  ;;  %v7381_v57 = vadd.f32 %v7365_v29, %v12645_v41  ;;  %v9461_v12 = vpop.f32.mrb[4].mxu1  ;;  %v12655_v41 = vld [vmem:[#allocation16_spill] sm:$0xff] }
 0x4b5   : > { %v7397_v1 = vpack.c.bf16 %v7383_v32, %v7382_v8  ;;  %7751 = vst.msk [vmem:[%s10289_s18 + $0x18] sm:$0xff] %vm1339_vm10, %v7383_v32  ;;  %v7354_v46 = vadd.f32 %v9461_v12, %v12393_v31  ;;  %v7278_v33 = vpop.f32.mrb[5].mxu1 }
 0x4b6   : > { %v7396_v7 = vpack.c.bf16 %v7381_v57, %v7380_v52  ;;  %7749 = vst.msk [vmem:[%s10289_s18 + $0x8] sm:$0xff] %vm1339_vm10, %v7381_v57  ;;  %v7352_v5 = vadd.f32 %v12393_v31, %v7278_v33  ;;  %v9462_v61 = vpop.f32.mrb[6].mxu1  ;;  %v12654_v52 = vld [vmem:[#allocation18_spill] sm:$0xff]  ;;  %v12657_v33 = vld [vmem:[#allocation17_spill] sm:$0xff] }
 0x4b7   : > { %v7370_v19 = vmul.f32 0.1, %v7354_v46  ;;  %v7355_v10 = vadd.f32 %v9462_v61, %v12393_v31  ;;  %v7281_v51 = vpop.f32.mrb[7].mxu1  ;;  %v9973_v61 = vld [vmem:[%s12585_s8 + $0x18] sm:$0xff]  }
 0x4b8   : > { %v7368_v50 = vmul.f32 0.1, %v7352_v5  ;;  %v7353_v9 = vadd.f32 %v12393_v31, %v7281_v51  ;;  %9479 = vmatprep.mubr.msk.bf16.mxu1 %vm1339_vm10, %v7396_v7 }
 0x4b9   : > { %v7386_v60 = vadd.f32 %v7370_v19, %v12646_v44  ;;  %v7371_v43 = vmul.f32 0.1, %v7355_v10  ;;  %9480 = vmatmul.mubr.msk.bf16.vlgmr.msra.gmra.mrb[16].mxu1 %vm1339_vm10, %v7397_v1  ;;  %v12656_v1 = vld [vmem:[#allocation19_spill] sm:$0xff]  ;;  %v8672_v19 = vld [vmem:[%s12584_s7] ss:$0 sm:$0xff] }
 0x4ba   : > { %v7384_v3 = vadd.f32 %v7368_v50, %v12647_v59  ;;  %v7369_v55 = vmul.f32 0.1, %v7353_v9  ;;  %9496 = vmatpush3.bf16.msra.mxu1 %v9970_v17 }
 0x4bb   : > { %7754 = vst.msk [vmem:[%s10289_s18 + $0x30] sm:$0xff] %vm1339_vm10, %v7386_v60  ;;  %v7387_v28 = vadd.f32 %v7371_v43, %v12648_v21  ;;  %9497 = vmatprep.subr.bf16.mxu1 %v9971_v34 }
 0x4bc   : > { %7752 = vst.msk [vmem:[%s10289_s18 + $0x20] sm:$0xff] %vm1339_vm10, %v7384_v3  ;;  %v7385_v0 = vadd.f32 %v7369_v55, %v12649_v4  ;;  %v9465_v16 = vpop.f32.mrb[8].mxu1 }
 0x4bd   : > { %v7399_v48 = vpack.c.bf16 %v7387_v28, %v7386_v60  ;;  %7755 = vst.msk [vmem:[%s10289_s18 + $0x38] sm:$0xff] %vm1339_vm10, %v7387_v28  ;;  %v7358_v54 = vadd.f32 %v9465_v16, %v12393_v31  ;;  %v7294_v24 = vpop.f32.mrb[9].mxu1 }
 0x4be   : > { %v7398_v58 = vpack.c.bf16 %v7385_v0, %v7384_v3  ;;  %7753 = vst.msk [vmem:[%s10289_s18 + $0x28] sm:$0xff] %vm1339_vm10, %v7385_v0  ;;  %v7356_v23 = vadd.f32 %v12393_v31, %v7294_v24  ;;  %v9466_v22 = vpop.f32.mrb[10].mxu1  ;;  %9498 = vmatpush3.bf16.msra.mxu1 %v9971_v34 }
 0x4bf   : > { %v7374_v20 = vmul.f32 0.1, %v7358_v54  ;;  %v7359_v42 = vadd.f32 %v9466_v22, %v12393_v31  ;;  %v7297_v13 = vpop.f32.mrb[11].mxu1  ;;  %9499 = vmatprep.subr.bf16.mxu1 %v9972_v15 }
 0x4c0   : > { %v7372_v37 = vmul.f32 0.1, %v7356_v23  ;;  %v7357_v38 = vadd.f32 %v12393_v31, %v7297_v13  ;;  %9483 = vmatprep.mubr.msk.bf16.mxu1 %vm1339_vm10, %v7398_v58 }
 0x4c1   : > { %v7390_v14 = vadd.f32 %v7374_v20, %v12650_v26  ;;  %v7375_v36 = vmul.f32 0.1, %v7359_v42  ;;  %9484 = vmatmul.mubr.msk.bf16.gmra.mrb[20].mxu1 %vm1339_vm10, %v7399_v48 }
 0x4c2   : > { %v7388_v30 = vadd.f32 %v7372_v37, %v12651_v35  ;;  %v7373_v56 = vmul.f32 0.1, %v7357_v38  ;;  %9500 = vmatpush3.bf16.msra.mxu1 %v9972_v15 }
 0x4c3   : > { %7758 = vst.msk [vmem:[%s10289_s18 + $0x50] sm:$0xff] %vm1339_vm10, %v7390_v14  ;;  %v7391_v6 = vadd.f32 %v7375_v36, %v12652_v11  ;;  %9501 = vmatprep.subr.bf16.mxu1 %v9973_v61 }
 0x4c4   : > { %7756 = vst.msk [vmem:[%s10289_s18 + $0x40] sm:$0xff] %vm1339_vm10, %v7388_v30  ;;  %v7389_v17 = vadd.f32 %v7373_v56, %v12653_v47  ;;  %v9469_v27 = vpop.f32.mrb[12].mxu1 }
 0x4c5   : > { %v7401_v53 = vpack.c.bf16 %v7391_v6, %v7390_v14  ;;  %7759 = vst.msk [vmem:[%s10289_s18 + $0x58] sm:$0xff] %vm1339_vm10, %v7391_v6  ;;  %v7362_v62 = vadd.f32 %v9469_v27, %v12393_v31  ;;  %v7310_v49 = vpop.f32.mrb[13].mxu1 }
 0x4c6   : > { %v7400_v2 = vpack.c.bf16 %v7389_v17, %v7388_v30  ;;  %7757 = vst.msk [vmem:[%s10289_s18 + $0x48] sm:$0xff] %vm1339_vm10, %v7389_v17  ;;  %v7360_v40 = vadd.f32 %v12393_v31, %v7310_v49  ;;  %v9470_v39 = vpop.f32.mrb[14].mxu1  ;;  %9502 = vmatpush3.bf16.msra.mxu1 %v9973_v61 }
 0x4c7   : > { %v7378_v25 = vmul.f32 0.1, %v7362_v62  ;;  %v7363_v18 = vadd.f32 %v9470_v39, %v12393_v31  ;;  %v7313_v63 = vpop.f32.mrb[15].mxu1 }
 0x4c8   : > { %v7376_v8 = vmul.f32 0.1, %v7360_v40  ;;  %v7361_v45 = vadd.f32 %v12393_v31, %v7313_v63  ;;  %9487 = vmatprep.mubr.msk.bf16.mxu1 %vm1339_vm10, %v7400_v2 }
 0x4c9   : > { %v7394_v29 = vadd.f32 %v7378_v25, %v12654_v52  ;;  %v7379_v32 = vmul.f32 0.1, %v7363_v18  ;;  %9488 = vmatmul.mubr.msk.bf16.gmra.mrb[24].mxu1 %vm1339_vm10, %v7401_v53 }
 0x4ca   : > { %v7392_v57 = vadd.f32 %v7376_v8, %v12655_v41  ;;  %v7377_v12 = vmul.f32 0.1, %v7361_v45 }
 0x4cb   : > { %7762 = vst.msk [vmem:[%s10289_s18 + $0x70] sm:$0xff] %vm1339_vm10, %v7394_v29  ;;  %v7395_v46 = vadd.f32 %v7379_v32, %v12656_v1  ;;  %v12490_v1 = vld [vmem:[%s12586_s9] ss:$0 sm:$0xff] }
 0x4cc   : > { %7760 = vst.msk [vmem:[%s10289_s18 + $0x60] sm:$0xff] %vm1339_vm10, %v7392_v57  ;;  %v7393_v7 = vadd.f32 %v7377_v12, %v12657_v33 }
 0x4cd   : > { %v7403_v5 = vpack.c.bf16 %v7395_v46, %v7394_v29  ;;  %7763 = vst.msk [vmem:[%s10289_s18 + $0x78] sm:$0xff] %vm1339_vm10, %v7395_v46 }
 0x4ce   : > { %v7402_v31 = vpack.c.bf16 %v7393_v7, %v7392_v57  ;;  %7761 = vst.msk [vmem:[%s10289_s18 + $0x68] sm:$0xff] %vm1339_vm10, %v7393_v7 }
 0x4d0   : > { %9491 = vmatprep.mubr.msk.bf16.mxu1 %vm1339_vm10, %v7402_v31 }
 0x4d1   : > { %9492 = vmatmul.mubr.msk.bf16.gmra.mrb[28].mxu1 %vm1339_vm10, %v7403_v5 }
 0x58c   : > { %v9481_v10 = vpop.f32.mrb[16].mxu1 }
 0x58d   : > { %v7510_v51 = vadd.f32 %v9481_v10, %v8672_v19  ;;  %v7501_v34 = vpop.f32.mrb[17].mxu1 }
 0x58e   : > { %v7502_v50 = vadd.f32 %v8672_v19, %v7501_v34  ;;  %v9482_v9 = vpop.f32.mrb[18].mxu1 }
 0x58f   : > { %v7513_v44 = vadd.f32 %v9482_v9, %v8672_v19  ;;  %v7504_v60 = vpop.f32.mrb[19].mxu1  ;;  %v7566_v59 = vmax.f32 %v7510_v51, 0.0 }
 0x590   : > { %v7505_v43 = vadd.f32 %v8672_v19, %v7504_v60  ;;  %v7564_v55 = vmax.f32 %v7502_v50, 0.0 }
 0x591   : > { %v7567_v3 = vmax.f32 %v7513_v44, 0.0 }
 0x592   : > { %v7565_v21 = vmax.f32 %v7505_v43, 0.0 }
 0x593   : > { %v7581_v28 = vpack.c.bf16 %v7567_v3, %v7566_v59 }
 0x594   : > { %v7580_v15 = vpack.c.bf16 %v7565_v21, %v7564_v55  ;;  %v9485_v4 = vpop.f32.mrb[20].mxu1 }
 0x595   : > { %v7526_v0 = vadd.f32 %v9485_v4, %v8672_v19  ;;  %v7517_v16 = vpop.f32.mrb[21].mxu1 }
 0x596   : > { %v7518_v48 = vadd.f32 %v8672_v19, %v7517_v16  ;;  %v9486_v54 = vpop.f32.mrb[22].mxu1  ;;  %9503 = vmatprep.mubr.msk.bf16.mxu1 %vm1339_vm10, %v7580_v15 }
 0x597   : > { %v7529_v24 = vadd.f32 %v9486_v54, %v8672_v19  ;;  %v7520_v58 = vpop.f32.mrb[23].mxu1  ;;  %9504 = vmatmul.mubr.msk.bf16.vlgmr.msra.gmra.mrb[32].mxu1 %vm1339_vm10, %v7581_v28  ;;  %v7570_v22 = vmax.f32 %v7526_v0, 0.0 }
 0x598   : > { %v7521_v23 = vadd.f32 %v8672_v19, %v7520_v58  ;;  %v7568_v42 = vmax.f32 %v7518_v48, 0.0 }
 0x599   : > { %v7571_v20 = vmax.f32 %v7529_v24, 0.0 }
 0x59a   : > { %v7569_v13 = vmax.f32 %v7521_v23, 0.0 }
 0x59b   : > { %v7583_v37 = vpack.c.bf16 %v7571_v20, %v7570_v22 }
 0x59c   : > { %v7582_v38 = vpack.c.bf16 %v7569_v13, %v7568_v42  ;;  %v9489_v26 = vpop.f32.mrb[24].mxu1 }
 0x59d   : > { %v7542_v14 = vadd.f32 %v9489_v26, %v8672_v19  ;;  %v7533_v36 = vpop.f32.mrb[25].mxu1 }
 0x59e   : > { %v7534_v35 = vadd.f32 %v8672_v19, %v7533_v36  ;;  %v9490_v30 = vpop.f32.mrb[26].mxu1  ;;  %9507 = vmatprep.mubr.msk.bf16.mxu1 %vm1339_vm10, %v7582_v38 }
 0x59f   : > { %v7545_v56 = vadd.f32 %v9490_v30, %v8672_v19  ;;  %v7536_v11 = vpop.f32.mrb[27].mxu1  ;;  %9508 = vmatmul.mubr.msk.bf16.gmra.mrb[36].mxu1 %vm1339_vm10, %v7583_v37  ;;  %v7574_v47 = vmax.f32 %v7542_v14, 0.0 }
 0x5a0   : > { %v7537_v6 = vadd.f32 %v8672_v19, %v7536_v11  ;;  %v7572_v27 = vmax.f32 %v7534_v35, 0.0 }
 0x5a1   : > { %v7575_v17 = vmax.f32 %v7545_v56, 0.0 }
 0x5a2   : > { %v7573_v53 = vmax.f32 %v7537_v6, 0.0 }
 0x5a3   : > { %v7585_v62 = vpack.c.bf16 %v7575_v17, %v7574_v47 }
 0x5a4   : > { %v7584_v49 = vpack.c.bf16 %v7573_v53, %v7572_v27  ;;  %v9493_v2 = vpop.f32.mrb[28].mxu1 }
 0x5a5   : > { %v7558_v40 = vadd.f32 %v9493_v2, %v8672_v19  ;;  %v7549_v39 = vpop.f32.mrb[29].mxu1 }
 0x5a6   : > { %v7550_v25 = vadd.f32 %v8672_v19, %v7549_v39  ;;  %v9494_v18 = vpop.f32.mrb[30].mxu1  ;;  %9511 = vmatprep.mubr.msk.bf16.mxu1 %vm1339_vm10, %v7584_v49 }
 0x5a7   : > { %v7561_v63 = vadd.f32 %v9494_v18, %v8672_v19  ;;  %v7552_v8 = vpop.f32.mrb[31].mxu1  ;;  %9512 = vmatmul.mubr.msk.bf16.gmra.mrb[40].mxu1 %vm1339_vm10, %v7585_v62  ;;  %v7578_v52 = vmax.f32 %v7558_v40, 0.0 }
 0x5a8   : > { %v7553_v45 = vadd.f32 %v8672_v19, %v7552_v8  ;;  %v7576_v32 = vmax.f32 %v7550_v25, 0.0 }
 0x5a9   : > { %v7579_v29 = vmax.f32 %v7561_v63, 0.0 }
 0x5aa   : > { %v7577_v41 = vmax.f32 %v7553_v45, 0.0 }
 0x5ab   : > { %v7587_v57 = vpack.c.bf16 %v7579_v29, %v7578_v52 }
 0x5ac   : > { %v7586_v12 = vpack.c.bf16 %v7577_v41, %v7576_v32 }
 0x5ae   : > { %9515 = vmatprep.mubr.msk.bf16.mxu1 %vm1339_vm10, %v7586_v12 }
 0x5af   : > { %9516 = vmatmul.mubr.msk.bf16.gmra.mrb[44].mxu1 %vm1339_vm10, %v7587_v57 }
 0x66a   : > { %v9505_v46 = vpop.f32.mrb[32].mxu1 }
 0x66b   : > { %v7694_v33 = vadd.f32 %v9505_v46, %v12490_v1  ;;  %v7685_v7 = vpop.f32.mrb[33].mxu1 }
 0x66c   : > { %v7686_v5 = vadd.f32 %v12490_v1, %v7685_v7  ;;  %v9506_v31 = vpop.f32.mrb[34].mxu1 }
 0x66d   : > { %7766 = vst.msk [vmem:[%s10305_s24 + $0x10] sm:$0xff] %vm1339_vm10, %v7694_v33  ;;  %v7697_v61 = vadd.f32 %v9506_v31, %v12490_v1  ;;  %v7688_v19 = vpop.f32.mrb[35].mxu1  ;;  %v7783_v9 = vsel %vm1339_vm10, %v7694_v33, 0.0 }
 0x66e   : > { %7764 = vst.msk [vmem:[%s10305_s24] sm:$0xff] %vm1339_vm10, %v7686_v5  ;;  %v7689_v10 = vadd.f32 %v12490_v1, %v7688_v19  ;;  %v7780_v51 = vsel %vm1339_vm10, %v7686_v5, 0.0 }
 0x66f   : > { %7767 = vst.msk [vmem:[%s10305_s24 + $0x18] sm:$0xff] %vm1339_vm10, %v7697_v61  ;;  %v7785_v3 = vsel %vm1339_vm10, %v7697_v61, 0.0  ;;  %v10015_v61 = vmov (!%p8698_p10), 0.0  }
 0x670   : > { %7765 = vst.msk [vmem:[%s10305_s24 + $0x8] sm:$0xff] %vm1339_vm10, %v7689_v10  ;;  %v7781_v34 = vsel %vm1339_vm10, %v7689_v10, 0.0 }
 0x671   : > { %v7782_v50 = vadd.f32 %v7781_v34, %v7780_v51  ;;  %7821 = vst.msk [vmem:[%s10274_s29] sm:$0x1] (!%p8698_p10), %vm554_vm1, %v10015_v61 }
 0x672   : > { %v9509_v44 = vpop.f32.mrb[36].mxu1 }
 0x673   : > { %v7784_v60 = vadd.f32 %v7783_v9, %v7782_v50  ;;  %v7710_v43 = vadd.f32 %v9509_v44, %v12490_v1  ;;  %v7701_v59 = vpop.f32.mrb[37].mxu1 }
 0x674   : > { %v7702_v55 = vadd.f32 %v12490_v1, %v7701_v59  ;;  %v9510_v21 = vpop.f32.mrb[38].mxu1 }
 0x675   : > { %7770 = vst.msk [vmem:[%s10305_s24 + $0x30] sm:$0xff] %vm1339_vm10, %v7710_v43  ;;  %v7786_v28 = vadd.f32 %v7785_v3, %v7784_v60  ;;  %v7713_v15 = vadd.f32 %v9510_v21, %v12490_v1  ;;  %v7704_v4 = vpop.f32.mrb[39].mxu1  ;;  %v7791_v58 = vsel %vm1339_vm10, %v7710_v43, 0.0 }
 0x676   : > { %7768 = vst.msk [vmem:[%s10305_s24 + $0x20] sm:$0xff] %vm1339_vm10, %v7702_v55  ;;  %v7787_v0 = vsel %vm1339_vm10, %v7702_v55, 0.0  ;;  %v7705_v16 = vadd.f32 %v12490_v1, %v7704_v4 }
 0x677   : > { %v7788_v48 = vadd.f32 %v7787_v0, %v7786_v28  ;;  %7771 = vst.msk [vmem:[%s10305_s24 + $0x38] sm:$0xff] %vm1339_vm10, %v7713_v15  ;;  %v7793_v13 = vsel %vm1339_vm10, %v7713_v15, 0.0 }
 0x678   : > { %7769 = vst.msk [vmem:[%s10305_s24 + $0x28] sm:$0xff] %vm1339_vm10, %v7705_v16  ;;  %v7789_v54 = vsel %vm1339_vm10, %v7705_v16, 0.0 }
 0x679   : > { %v7790_v24 = vadd.f32 %v7789_v54, %v7788_v48 }
 0x67a   : > { %v9513_v23 = vpop.f32.mrb[40].mxu1 }
 0x67b   : > { %v7792_v22 = vadd.f32 %v7791_v58, %v7790_v24  ;;  %v7726_v20 = vadd.f32 %v9513_v23, %v12490_v1  ;;  %v7717_v42 = vpop.f32.mrb[41].mxu1 }
 0x67c   : > { %v7718_v37 = vadd.f32 %v12490_v1, %v7717_v42  ;;  %v9514_v38 = vpop.f32.mrb[42].mxu1 }
 0x67d   : > { %7774 = vst.msk [vmem:[%s10305_s24 + $0x50] sm:$0xff] %vm1339_vm10, %v7726_v20  ;;  %v7794_v26 = vadd.f32 %v7793_v13, %v7792_v22  ;;  %v7729_v14 = vadd.f32 %v9514_v38, %v12490_v1  ;;  %v7720_v36 = vpop.f32.mrb[43].mxu1  ;;  %v7799_v47 = vsel %vm1339_vm10, %v7726_v20, 0.0 }
 0x67e   : > { %7772 = vst.msk [vmem:[%s10305_s24 + $0x40] sm:$0xff] %vm1339_vm10, %v7718_v37  ;;  %v7795_v35 = vsel %vm1339_vm10, %v7718_v37, 0.0  ;;  %v7721_v30 = vadd.f32 %v12490_v1, %v7720_v36 }
 0x67f   : > { %v7796_v56 = vadd.f32 %v7795_v35, %v7794_v26  ;;  %7775 = vst.msk [vmem:[%s10305_s24 + $0x58] sm:$0xff] %vm1339_vm10, %v7729_v14  ;;  %v7801_v49 = vsel %vm1339_vm10, %v7729_v14, 0.0 }
 0x680   : > { %7773 = vst.msk [vmem:[%s10305_s24 + $0x48] sm:$0xff] %vm1339_vm10, %v7721_v30  ;;  %v7797_v11 = vsel %vm1339_vm10, %v7721_v30, 0.0 }
 0x681   : > { %v7798_v6 = vadd.f32 %v7797_v11, %v7796_v56 }
 0x682   : > { %v9517_v17 = vpop.f32.mrb[44].mxu1 }
 0x683   : > { %v7800_v27 = vadd.f32 %v7799_v47, %v7798_v6  ;;  %v7742_v53 = vadd.f32 %v9517_v17, %v12490_v1  ;;  %v7733_v62 = vpop.f32.mrb[45].mxu1 }
 0x684   : > { %v7734_v2 = vadd.f32 %v12490_v1, %v7733_v62  ;;  %v9518_v40 = vpop.f32.mrb[46].mxu1 }
 0x685   : > { %7778 = vst.msk [vmem:[%s10305_s24 + $0x70] sm:$0xff] %vm1339_vm10, %v7742_v53  ;;  %v7802_v39 = vadd.f32 %v7801_v49, %v7800_v27  ;;  %v7745_v25 = vadd.f32 %v9518_v40, %v12490_v1  ;;  %v7736_v18 = vpop.f32.mrb[47].mxu1  ;;  %v7807_v32 = vsel %vm1339_vm10, %v7742_v53, 0.0 }
 0x686   : > { %7776 = vst.msk [vmem:[%s10305_s24 + $0x60] sm:$0xff] %vm1339_vm10, %v7734_v2  ;;  %v7803_v63 = vsel %vm1339_vm10, %v7734_v2, 0.0  ;;  %v7737_v8 = vadd.f32 %v12490_v1, %v7736_v18 }
 0x687   : > { %v7804_v45 = vadd.f32 %v7803_v63, %v7802_v39  ;;  %7779 = vst.msk [vmem:[%s10305_s24 + $0x78] sm:$0xff] %vm1339_vm10, %v7745_v25  ;;  %v7809_v57 = vsel %vm1339_vm10, %v7745_v25, 0.0 }
 0x688   : > { %7777 = vst.msk [vmem:[%s10305_s24 + $0x68] sm:$0xff] %vm1339_vm10, %v7737_v8  ;;  %v7805_v52 = vsel %vm1339_vm10, %v7737_v8, 0.0 }
 0x689   : > { %v7806_v29 = vadd.f32 %v7805_v52, %v7804_v45 }
 0x68b   : > { %v7808_v41 = vadd.f32 %v7807_v32, %v7806_v29 }
 0x68d   : > { %v7810_v12 = vadd.f32 %v7809_v57, %v7808_v41 }
 0x68f   : > { %v7811_v46 = vrot.slane %v7810_v12, 4 }
 0x691   : > { %v7812_v33 = vadd.f32 %v7811_v46, %v7810_v12 }
 0x693   : > { %v7813_v7 = vrot.slane %v7812_v33, 2  ;;  %7820 = sbr.rel (%p8698_p10) target bundleno = 1690 (0x69a), region = 72 }
 0x695   : > { %v7814_v5 = vadd.f32 %v7813_v7, %v7812_v33 }
 0x697   : > { %v7815_v31 = vrot.slane %v7814_v5, 1 }
 0x699   : > { %v7816_v1 = vadd.f32 %v7815_v31, %v7814_v5 }
 0x69a PF: > { %v7822_v19 = vld [vmem:[%s10274_s29] sm:$0x1] }
 0x69b   : > { %v7823_v10 = vadd.f32 %v7822_v19, %v7816_v1 }
 0x69d   : > { %7824 = vst.msk [vmem:[%s10274_s29] sm:$0x1] %vm554_vm1, %v7823_v10 }
 0x69e PF: > { %s23_s25 = sadd.s32 1, %s10012_s25   ;;  %s12658_s22 = sld [smem:[#allocation4_spill]] }
 0x69f   : > { %p20_p11 = scmp.ge.s32.totalorder %s23_s25, 6   ;;  %s12659_s24 = sld [smem:[#allocation5_spill]] }
 0x6a0   : > { %s12660_s19 = sld [smem:[#allocation6_spill]]  ;;  %s12661_s21 = smov %s10004_s23 }
 0x6a1   :  { %22 = sbr.rel (!%p20_p11) target bundleno = 3 (0x3), region = 151 }
 0x6a5   : > { %s12662_s23 = smov %s12659_s24 }
 0x6a6   : > { %s12663_s24 = smov %s12660_s19 }

// kernel: sspn_forward.4
= control target key start
LH: loop header
LB: loop body
LE: loop exit
PB: predicated region body
PF: predicated region fallthrough
CT: control target
= control target key end

     0   :  { %s10433_s18 = smov 0   ;;  %s10435_s19 = smov 0   ;;  %s12899_s0 = inlined_call_operand.vmem [shape: f32[2,16,16,64], index: 0, kind: input, shape index: {}]   ;;  %s12900_s1 = inlined_call_operand.vmem [shape: f32[2,16,16,64], index: 1, kind: input, shape index: {}]   ;;  %s12901_s2 = inlined_call_operand.vmem [shape: f32[2,2,4,16,64], index: 2, kind: input, shape index: {}]   ;;  %s12902_s3 = inlined_call_operand.vmem [shape: f32[2,2,4,16,64], index: 3, kind: input, shape index: {}]   ;;  %s12903_s4 = inlined_call_operand.vmem [shape: f32[2,1,64], index: 4, kind: input, shape index: {}]   ;;  %s12904_s5 = inlined_call_operand.vmem [shape: bf16[3,3,64,64], index: 5, kind: input, shape index: {}]   ;;  %s12905_s6 = inlined_call_operand.vmem [shape: f32[1,64], index: 6, kind: input, shape index: {}]   ;;  %s12906_s7 = inlined_call_operand.vmem [shape: bf16[3,3,64,64], index: 7, kind: input, shape index: {}]   ;;  %s12907_s8 = inlined_call_operand.vmem [shape: f32[1,64], index: 8, kind: input, shape index: {}]   ;;  %s12908_s9 = inlined_call_operand.vmem [shape: bf16[64,64], index: 9, kind: input, shape index: {}]   ;;  %s12909_s10 = inlined_call_operand.vmem [shape: f32[1,64], index: 10, kind: input, shape index: {}]   ;;  %s12910_s11 = inlined_call_operand.vmem [shape: bf16[64,64], index: 11, kind: input, shape index: {}]   ;;  %s12911_s12 = inlined_call_operand.vmem [shape: f32[1,64], index: 12, kind: input, shape index: {}]   ;;  %s12912_s13 = inlined_call_operand.vmem [shape: f32[2,16,16,64], index: 13, kind: output, shape index: {0}]   ;;  %s12913_s14 = inlined_call_operand.vmem [shape: f32[2,16,16,64], index: 14, kind: output, shape index: {1}]   ;;  %s12914_s15 = inlined_call_operand.vmem [shape: f32[2,1,64], index: 15, kind: output, shape index: {2}]  }
   0x1   :  { %12928 = sst [smem:[#allocation19_spill]] %s12903_s4  ;;  %s10437_s20 = smov 0  }
   0x2   :  { %12929 = sst [smem:[#allocation20_spill]] %s12911_s12  ;;  %s10439_s21 = smov 0  }
   0x3   :  { %s10441_s22 = smov 0  }
   0x4 LB: > { %12930 = sst [smem:[#allocation4_spill]] %s10341_s20  ;;  %s35_s23 = sadd.s32 1, %s10341_s20  ;;  %s10349_s22 = sphi %s10441_s22, %s26_s22   ;;  %s10345_s21 = sphi %s10439_s21, %s12982_s21   ;;  %s10341_s20 = sphi %s10437_s20, %s12981_s20   ;;  %s10337_s19 = sphi %s10435_s19, %s12980_s19   ;;  %s10333_s18 = sphi %s10433_s18, %s12979_s18  }
   0x5   : > { %12931 = sst [smem:[#allocation5_spill]] %s10345_s21  ;;  %s38_s24 = sadd.s32 1, %s10345_s21 }
   0x6   : > { %12932 = sst [smem:[#allocation6_spill]] %s10349_s22  ;;  %p36_p0 = scmp.ge.s32.totalorder %s35_s23, 2 }
   0x7   : > { %p8352_p1 = scmp.ge.s32.totalorder %s10349_s22, 1  ;;  %p524_p2 = scmp.lt.s32.totalorder %s10349_s22, 5 }
   0x8   : > { %s12984_s23 = smov (%p36_p0, %s35_s23), 0  ;;  %s12986_s24 = smov (!%p36_p0, %s38_s24), %s10345_s21 }
   0x9   : > { %12933 = sst [smem:[#allocation7_spill]] %s12984_s23  ;;  %p525_p3 = pnand %p8352_p1, %p524_p2 }
   0xa   : > { %p40_p4 = scmp.ge.s32.totalorder %s12986_s24, 2 }
   0xb   : > { %528 = sbr.rel (%p525_p3) target bundleno = 1708 (0x6ac), region = 72 }
   0xc   : > { %s12988_s24 = smov (%p40_p4, %s12986_s24), 0 }
   0xd   : > { %12934 = sst [smem:[#allocation8_spill]] %s12988_s24 }
  0x12   : > { %v10179_v0 = vld [vmem:[%s12904_s5 + $0x20] sm:$0xff]   ;;  %s8353_s27 = sshll.u32 %s10333_s18, 3  ;;  %v10472_v1 = vld [vmem:[%s12904_s5 + $0x28] sm:$0xff]   ;;  %p627_p5 = scmp.lt.s32.totalorder %s10337_s19, 1  ;;  %v10480_v2 = vld [vmem:[%s12904_s5 + $0x30] sm:$0xff]   ;;  %vm822_vm0 = vcmask 519168  }
  0x13   : > { %9333 = vmatprep.subr.bf16.mxu0 %v10179_v0  ;;  %p629_p6 = scmp.lt.s32.totalorder %s8353_s27, 15  ;;  %vm825_vm1 = vcmask 516096   ;;  %p650_p7 = scmp.lt.s32.totalorder %s10333_s18, 1  ;;  %v10351_v3 = vmov 0   ;;  %v10182_v4 = vld [vmem:[%s12904_s5 + $0x38] sm:$0xff]   ;;  %v10672_v9 = vld [vmem:[%s12904_s5] sm:$0xff]  }
  0x14   : > { %9334 = vmatpush3.bf16.msra.mxu0 %v10179_v0  ;;  %s12990_s19 = smov (!%p627_p5, %s10337_s19), 1  ;;  %823 = vst.msk [vmem:[#allocation2] sm:$0xf] %vm822_vm0, %v10351_v3  ;;  %824 = vst.msk [vmem:[#allocation2 + $0x4] sm:$0xf] %vm822_vm0, %v10351_v3  ;;  %s12935_s4 = sld [smem:[#allocation19_spill]] }
  0x15   : > { %9335 = vmatprep.subr.bf16.mxu0 %v10472_v1  ;;  %s12992_s27 = smov (!%p629_p6, %s8353_s27), 15  ;;  %s8355_s17 = sshll.u32 %s12990_s19, 5  ;;  %826 = vst.msk [vmem:[#allocation2 + $0x8] sm:$0x1] %vm825_vm1, %v10351_v3  ;;  %4546 = vst.msk [vmem:[#allocation3 + $0x8] sm:$0x1] %vm825_vm1, %v10351_v3 }
  0x16   : > { %4573 = vst.msk [vmem:[#allocation3 + $0x74] sm:$0x1] %vm825_vm1, %v10351_v3  ;;  %829 = vst.msk [vmem:[#allocation2 + $0x14] sm:$0x1] %vm825_vm1, %v10351_v3  ;;  %s8354_s25 = sshll.u32 %s12992_s27, 1  ;;  %s8362_s26 = sshll.u32 %s12990_s19, 4 }
  0x17   : > { %827 = vst.msk [vmem:[#allocation2 + $0xc] sm:$0xf] %vm822_vm0, %v10351_v3  ;;  %828 = vst.msk [vmem:[#allocation2 + $0x10] sm:$0xf] %vm822_vm0, %v10351_v3  ;;  %s633_s28 = sadd.s32 %s8355_s17, %s8354_s25  ;;  %s10637_s22 = scalar_lea.vmem %s12914_s15, %s12990_s19  ;;  %vm872_vm2 = vsmask.f32 256 }
  0x18   : > { %830 = vst.msk [vmem:[#allocation2 + $0x18] sm:$0xf] %vm822_vm0, %v10351_v3  ;;  %831 = vst.msk [vmem:[#allocation2 + $0x1c] sm:$0xf] %vm822_vm0, %v10351_v3  ;;  %9336 = vmatpush3.bf16.msra.mxu0 %v10472_v1  ;;  %s8356_s21 = sshll.u32 %s633_s28, 3  ;;  %vm1610_vm10 = vcmask 523264  }
  0x19   : > { %832 = vst.msk [vmem:[#allocation2 + $0x20] sm:$0x1] %vm825_vm1, %v10351_v3  ;;  %835 = vst.msk [vmem:[#allocation2 + $0x2c] sm:$0x1] %vm825_vm1, %v10351_v3  ;;  %9337 = vmatprep.subr.bf16.mxu0 %v10480_v2  ;;  %s10642_s25 = scalar_lea.vmem %s12899_s0, %s8356_s21  ;;  %s10660_s20 = scalar_lea.vmem %s12912_s13, %s8356_s21  ;;  %vm873_vm3 = vsmask.f32 4368 }
  0x1a   : > { %833 = vst.msk [vmem:[#allocation2 + $0x24] sm:$0xf] %vm822_vm0, %v10351_v3  ;;  %834 = vst.msk [vmem:[#allocation2 + $0x28] sm:$0xf] %vm822_vm0, %v10351_v3  ;;  %s10627_s16 = scalar_lea.vmem %s12935_s4, %s12990_s19  ;;  %s10647_s4 = scalar_lea.vmem %s12900_s1, %s8356_s21  ;;  %v696_v10 = vld [vmem:[%s10642_s25] sm:$0xff]  ;;  %v697_v13 = vld [vmem:[%s10642_s25 + $0x8] sm:$0xff] }
  0x1b   : > { %836 = vst.msk [vmem:[#allocation2 + $0x30] sm:$0xf] %vm822_vm0, %v10351_v3  ;;  %837 = vst.msk [vmem:[#allocation2 + $0x34] sm:$0xf] %vm822_vm0, %v10351_v3  ;;  %s651_s23 = scalar_select %p650_p7, %s10333_s18, 1  ;;  %v712_v6 = vld [vmem:[%s10647_s4] sm:$0xff] }
  0x1c   : > { %838 = vst.msk [vmem:[#allocation2 + $0x38] sm:$0x1] %vm825_vm1, %v10351_v3  ;;  %841 = vst.msk [vmem:[#allocation2 + $0x44] sm:$0x1] %vm825_vm1, %v10351_v3  ;;  %v10653_v5 = vld [vmem:[%s10627_s16] ss:$0 sm:$0xff]  ;;  %9338 = vmatpush3.bf16.msra.mxu0 %v10480_v2  ;;  %s10665_s27 = scalar_lea.vmem %s12913_s14, %s8356_s21 }
  0x1d   : > { %839 = vst.msk [vmem:[#allocation2 + $0x3c] sm:$0xf] %vm822_vm0, %v10351_v3  ;;  %840 = vst.msk [vmem:[#allocation2 + $0x40] sm:$0xf] %vm822_vm0, %v10351_v3  ;;  %v713_v7 = vld [vmem:[%s10647_s4 + $0x8] sm:$0xff]  ;;  %v734_v8 = vmul.f32 %v10653_v5, %v712_v6  ;;  %9339 = vmatprep.subr.bf16.mxu0 %v10182_v4  ;;  %s8361_s17 = sshll.u32 %s651_s23, 3 }
  0x1e   : > { %842 = vst.msk [vmem:[#allocation2 + $0x48] sm:$0xf] %vm822_vm0, %v10351_v3  ;;  %843 = vst.msk [vmem:[#allocation2 + $0x4c] sm:$0xf] %vm822_vm0, %v10351_v3  ;;  %v735_v11 = vmul.f32 %v10653_v5, %v713_v7  ;;  %v714_v12 = vld [vmem:[%s10647_s4 + $0x10] sm:$0xff]  ;;  %s654_s12 = sadd.s32 %s8362_s26, %s8361_s17  ;;  %v715_v17 = vld [vmem:[%s10647_s4 + $0x18] sm:$0xff] }
  0x1f   : > { %844 = vst.msk [vmem:[#allocation2 + $0x50] sm:$0x1] %vm825_vm1, %v10351_v3  ;;  %847 = vst.msk [vmem:[#allocation2 + $0x5c] sm:$0x1] %vm825_vm1, %v10351_v3  ;;  %v750_v14 = vmul.f32 0.1, %v734_v8  ;;  %v736_v15 = vmul.f32 %v10653_v5, %v714_v12  ;;  %v737_v20 = vmul.f32 %v10653_v5, %v715_v17 }
  0x20   : > { %845 = vst.msk [vmem:[#allocation2 + $0x54] sm:$0xf] %vm822_vm0, %v10351_v3  ;;  %846 = vst.msk [vmem:[#allocation2 + $0x58] sm:$0xf] %vm822_vm0, %v10351_v3  ;;  %s8363_s21 = sshll.u32 %s654_s12, 3  ;;  %9340 = vmatpush3.bf16.msra.mxu0 %v10182_v4  ;;  %v698_v19 = vld [vmem:[%s10642_s25 + $0x10] sm:$0xff] }
  0x21   : > { %848 = vst.msk [vmem:[#allocation2 + $0x60] sm:$0xf] %vm822_vm0, %v10351_v3  ;;  %849 = vst.msk [vmem:[#allocation2 + $0x64] sm:$0xf] %vm822_vm0, %v10351_v3  ;;  %v751_v16 = vmul.f32 0.1, %v735_v11  ;;  %s10683_s24 = scalar_lea.vmem %s12901_s2, %s8363_s21  ;;  %s10688_s30 = scalar_lea.vmem %s12902_s3, %s8363_s21  ;;  %v10690_v18 = vadd.f32 %v750_v14, %v696_v10  ;;  %9361 = vmatprep.subr.bf16.mxu0 %v10672_v9 }
  0x22   : > { %850 = vst.msk [vmem:[#allocation2 + $0x68] sm:$0x1] %vm825_vm1, %v10351_v3  ;;  %853 = vst.msk [vmem:[#allocation2 + $0x74] sm:$0x1] %vm825_vm1, %v10351_v3  ;;  %v752_v21 = vmul.f32 0.1, %v736_v15 }
  0x23   : > { %851 = vst.msk [vmem:[#allocation2 + $0x6c] sm:$0xf] %vm822_vm0, %v10351_v3  ;;  %852 = vst.msk [vmem:[#allocation2 + $0x70] sm:$0xf] %vm822_vm0, %v10351_v3  ;;  %v790_v22 = vld [vmem:[%s10688_s30] sm:$0xff]  ;;  %v10696_v23 = vadd.f32 %v751_v16, %v697_v13  ;;  %v791_v24 = vld [vmem:[%s10688_s30 + $0x8] sm:$0xff]  ;;  %v9039_v26 = vpack.c.bf16 %v10690_v18, %v10690_v18 }
  0x24   : > { %854 = vst.msk [vmem:[#allocation2 + $0x78] sm:$0xf] %vm822_vm0, %v10351_v3  ;;  %855 = vst.msk [vmem:[#allocation2 + $0x7c] sm:$0xf] %vm822_vm0, %v10351_v3  ;;  %v798_v25 = vmul.f32 %v10653_v5, %v790_v22  ;;  %vm916_vm4 = vsmask.f32 7938  ;;  %v799_v28 = vmul.f32 %v10653_v5, %v791_v24  ;;  %v10708_v33 = vadd.f32 %v752_v21, %v698_v19 }
  0x25   : > { %856 = vst.msk [vmem:[#allocation2 + $0x80] sm:$0x1] %vm825_vm1, %v10351_v3  ;;  %859 = vst.msk [vmem:[#allocation2 + $0x8c] sm:$0x1] %vm825_vm1, %v10351_v3  ;;  %v782_v27 = vld [vmem:[%s10683_s24] sm:$0xff]  ;;  %v792_v29 = vld [vmem:[%s10688_s30 + $0x10] sm:$0xff]  ;;  %v9040_v31 = vpack.c.bf16 %v10696_v23, %v10696_v23 }
  0x26   : > { %857 = vst.msk [vmem:[#allocation2 + $0x84] sm:$0xf] %vm822_vm0, %v10351_v3  ;;  %858 = vst.msk [vmem:[#allocation2 + $0x88] sm:$0xf] %vm822_vm0, %v10351_v3  ;;  %v793_v30 = vld [vmem:[%s10688_s30 + $0x18] sm:$0xff]  ;;  %v783_v34 = vld [vmem:[%s10683_s24 + $0x8] sm:$0xff]  ;;  %v800_v37 = vmul.f32 %v10653_v5, %v792_v29  ;;  %v10720_v53 = vpack.c.bf16 %v10708_v33, %v10708_v33 }
  0x27   : > { %4544 = vst.msk [vmem:[#allocation3] sm:$0xf] %vm822_vm0, %v10351_v3  ;;  %4545 = vst.msk [vmem:[#allocation3 + $0x4] sm:$0xf] %vm822_vm0, %v10351_v3  ;;  %v753_v32 = vmul.f32 0.1, %v737_v20  ;;  %v801_v38 = vmul.f32 %v10653_v5, %v793_v30 }
  0x28   : > { %4547 = vst.msk [vmem:[#allocation3 + $0xc] sm:$0xf] %vm822_vm0, %v10351_v3  ;;  %4548 = vst.msk [vmem:[#allocation3 + $0x10] sm:$0xf] %vm822_vm0, %v10351_v3  ;;  %v806_v35 = vmul.f32 0.1, %v798_v25 }
  0x29   : > { %4549 = vst.msk [vmem:[#allocation3 + $0x14] sm:$0x1] %vm825_vm1, %v10351_v3  ;;  %4552 = vst.msk [vmem:[#allocation3 + $0x20] sm:$0x1] %vm825_vm1, %v10351_v3  ;;  %v784_v36 = vld [vmem:[%s10683_s24 + $0x10] sm:$0xff]  ;;  %v1050_v39 = vshrl.u32 %v9039_v26, 16 }
  0x2a   : > { %4550 = vst.msk [vmem:[#allocation3 + $0x18] sm:$0xf] %vm822_vm0, %v10351_v3  ;;  %4551 = vst.msk [vmem:[#allocation3 + $0x1c] sm:$0xf] %vm822_vm0, %v10351_v3  ;;  %v699_v40 = vld [vmem:[%s10642_s25 + $0x18] sm:$0xff]  ;;  %v1053_v43 = vshll.u32 %v9039_v26, 16  ;;  %v814_v46 = vadd.f32 %v806_v35, %v782_v27 }
  0x2b   : > { %4553 = vst.msk [vmem:[#allocation3 + $0x24] sm:$0xf] %vm822_vm0, %v10351_v3  ;;  %4554 = vst.msk [vmem:[#allocation3 + $0x28] sm:$0xf] %vm822_vm0, %v10351_v3  ;;  %v807_v41 = vmul.f32 0.1, %v799_v28  ;;  %v10716_v52 = vadd.f32 %v753_v32, %v699_v40 }
  0x2c   : > { %4555 = vst.msk [vmem:[#allocation3 + $0x2c] sm:$0x1] %vm825_vm1, %v10351_v3  ;;  %4558 = vst.msk [vmem:[#allocation3 + $0x38] sm:$0x1] %vm825_vm1, %v10351_v3  ;;  %v785_v42 = vld [vmem:[%s10683_s24 + $0x18] sm:$0xff]  ;;  %v1058_v44 = vshrl.u32 %v9040_v31, 16  ;;  %v9031_v54 = vpack.c.bf16 %v814_v46, %v814_v46 }
  0x2d   : > { %4556 = vst.msk [vmem:[#allocation3 + $0x30] sm:$0xf] %vm822_vm0, %v10351_v3  ;;  %4557 = vst.msk [vmem:[#allocation3 + $0x34] sm:$0xf] %vm822_vm0, %v10351_v3  ;;  %v1061_v45 = vshll.u32 %v9040_v31, 16  ;;  %v1052_v49 = vrot.slane %v1050_v39, 7  ;;  %v815_v50 = vadd.f32 %v807_v41, %v783_v34  ;;  %v9042_v22 = vpack.c.bf16 %v10716_v52, %v10716_v52 }
  0x2e   : > { %4559 = vst.msk [vmem:[#allocation3 + $0x3c] sm:$0xf] %vm822_vm0, %v10351_v3  ;;  %4560 = vst.msk [vmem:[#allocation3 + $0x40] sm:$0xf] %vm822_vm0, %v10351_v3  ;;  %v808_v47 = vmul.f32 0.1, %v800_v37 }
  0x2f   : > { %4561 = vst.msk [vmem:[#allocation3 + $0x44] sm:$0x1] %vm825_vm1, %v10351_v3  ;;  %4564 = vst.msk [vmem:[#allocation3 + $0x50] sm:$0x1] %vm825_vm1, %v10351_v3  ;;  %v809_v48 = vmul.f32 0.1, %v801_v38  ;;  %v1055_v57 = vor.u32 %v1053_v43, %v1052_v49  ;;  %v9032_v59 = vpack.c.bf16 %v815_v50, %v815_v50 }
  0x30   : > { %4562 = vst.msk [vmem:[#allocation3 + $0x48] sm:$0xf] %vm822_vm0, %v10351_v3  ;;  %4563 = vst.msk [vmem:[#allocation3 + $0x4c] sm:$0xf] %vm822_vm0, %v10351_v3  ;;  %v1060_v51 = vrot.slane %v1058_v44, 7  ;;  %v816_v55 = vadd.f32 %v808_v47, %v784_v36  ;;  %v1056_v61 = vrot.slane %v1052_v49, 4 }
  0x31   : > { %4565 = vst.msk [vmem:[#allocation3 + $0x54] sm:$0xf] %vm822_vm0, %v10351_v3  ;;  %4566 = vst.msk [vmem:[#allocation3 + $0x58] sm:$0xf] %vm822_vm0, %v10351_v3  ;;  %v817_v56 = vadd.f32 %v809_v48, %v785_v42  ;;  %v1210_v58 = vld [vmem:[#allocation2 + $0x18] sm:$0xf] }
  0x32   : > { %4567 = vst.msk [vmem:[#allocation3 + $0x5c] sm:$0x1] %vm825_vm1, %v10351_v3  ;;  %4570 = vst.msk [vmem:[#allocation3 + $0x68] sm:$0x1] %vm825_vm1, %v10351_v3  ;;  %v1063_v62 = vor.u32 %v1061_v45, %v1060_v51  ;;  %v1065_v63 = vrot.slane %v1060_v51, 4  ;;  %v876_v0 = vshrl.u32 %v9031_v54, 16 }
  0x33   : > { %4568 = vst.msk [vmem:[#allocation3 + $0x60] sm:$0xf] %vm822_vm0, %v10351_v3  ;;  %4569 = vst.msk [vmem:[#allocation3 + $0x64] sm:$0xf] %vm822_vm0, %v10351_v3  ;;  %v879_v1 = vshll.u32 %v9031_v54, 16  ;;  %v9034_v4 = vpack.c.bf16 %v817_v56, %v817_v56  ;;  %v884_v7 = vshrl.u32 %v9032_v59, 16 }
  0x34   : > { %4571 = vst.msk [vmem:[#allocation3 + $0x6c] sm:$0xf] %vm822_vm0, %v10351_v3  ;;  %4572 = vst.msk [vmem:[#allocation3 + $0x70] sm:$0xf] %vm822_vm0, %v10351_v3  ;;  %v9033_v3 = vpack.c.bf16 %v816_v55, %v816_v55  ;;  %v1214_v6 = vld [vmem:[#allocation2 + $0x20] sm:$0x1] }
  0x35   : > { %vm10724_vm5 = vmor %vm872_vm2, %vm873_vm3  ;;  %v887_v8 = vshll.u32 %v9032_v59, 16  ;;  %v878_v12 = vrot.slane %v876_v0, 7  ;;  %v901_v16 = vshrl.u32 %v9034_v4, 16  ;;  %v886_v17 = vrot.slane %v884_v7, 7  ;;  %v918_v19 = vld [vmem:[#allocation2] sm:$0xf] }
  0x36   : > { %vm10730_vm6 = vmand %vm822_vm0, %vm916_vm4  ;;  %v1064_v10 = vsel %vm10724_vm5, %v1056_v61, %v1063_v62  ;;  %v893_v14 = vshrl.u32 %v9033_v3, 16  ;;  %v896_v15 = vshll.u32 %v9033_v3, 16  ;;  %v904_v20 = vshll.u32 %v9034_v4, 16  ;;  %v924_v26 = vld [vmem:[#allocation2 + $0x8] sm:$0x1]  ;;  %v716_v40 = vld [vmem:[%s10647_s4 + $0x20] sm:$0xff] }
  0x37   : > { %v1211_v11 = vsel %vm10730_vm6, %v1055_v57, %v1210_v58  ;;  %vm10740_vm7 = vmand %vm825_vm1, %vm872_vm2  ;;  %1213 = vst.msk [vmem:[#allocation2 + $0x1c] sm:$0xf] %vm822_vm0, %v1064_v10  ;;  %v881_v24 = vor.u32 %v879_v1, %v878_v12  ;;  %v882_v25 = vrot.slane %v878_v12, 4  ;;  %v903_v28 = vrot.slane %v901_v16, 7  ;;  %v927_v31 = vld [vmem:[#allocation2 + $0xc] sm:$0xf] }
  0x38   : > { %1212 = vst [vmem:[#allocation2 + $0x18] sm:$0xf] %v1211_v11  ;;  %v1215_v21 = vsel %vm10740_vm7, %v1065_v63, %v1214_v6  ;;  %v895_v27 = vrot.slane %v893_v14, 7  ;;  %v889_v29 = vor.u32 %v887_v8, %v886_v17  ;;  %v891_v30 = vrot.slane %v886_v17, 4  ;;  %v931_v39 = vld [vmem:[#allocation2 + $0x14] sm:$0x1] }
  0x39   : > { %1216 = vst [vmem:[#allocation2 + $0x20] sm:$0x1] %v1215_v21  ;;  %v1067_v32 = vshrl.u32 %v10720_v53, 16  ;;  %v1070_v34 = vshll.u32 %v10720_v53, 16  ;;  %v919_v35 = vsel %vm10730_vm6, %v881_v24, %v918_v19  ;;  %v906_v38 = vor.u32 %v904_v20, %v903_v28  ;;  %v1217_v49 = vld [vmem:[#allocation2 + $0x24] sm:$0xf] }
  0x3a   : > { %v898_v36 = vor.u32 %v896_v15, %v895_v27  ;;  %v899_v37 = vrot.slane %v895_v27, 4  ;;  %v890_v41 = vsel %vm10724_vm5, %v882_v25, %v889_v29  ;;  %920 = vst [vmem:[#allocation2] sm:$0xf] %v919_v35  ;;  %v925_v42 = vsel %vm10740_vm7, %v891_v30, %v924_v26  ;;  %v717_v50 = vld [vmem:[%s10647_s4 + $0x28] sm:$0xff]  ;;  %v700_v16 = vld [vmem:[%s10642_s25 + $0x20] sm:$0xff]  ;;  %v718_v19 = vld [vmem:[%s10647_s4 + $0x30] sm:$0xff] }
  0x3b   : > { %v908_v43 = vrot.slane %v903_v28, 4  ;;  %v1069_v44 = vrot.slane %v1067_v32, 7  ;;  %921 = vst.msk [vmem:[#allocation2 + $0x4] sm:$0xf] %vm822_vm0, %v890_v41  ;;  %926 = vst [vmem:[#allocation2 + $0x8] sm:$0x1] %v925_v42  ;;  %v738_v57 = vmul.f32 %v10653_v5, %v716_v40  ;;  %v739_v3 = vmul.f32 %v10653_v5, %v717_v50 }
  0x3c   : > { %v907_v45 = vsel %vm10724_vm5, %v899_v37, %v906_v38  ;;  %v928_v46 = vsel %vm10730_vm6, %v898_v36, %v927_v31  ;;  %v1075_v47 = vshrl.u32 %v9042_v22, 16  ;;  %v1078_v48 = vshll.u32 %v9042_v22, 16  ;;  %v1221_v11 = vld [vmem:[#allocation2 + $0x2c] sm:$0x1]  ;;  %p8727_p8 = scmp.le.s32.totalorder %s10333_s18, 0 }
  0x3d   : > { %vm1304_vm8 = vsmask.f32 3328  ;;  %vm1305_vm9 = vsmask.f32 7440  ;;  %929 = vst [vmem:[#allocation2 + $0xc] sm:$0xf] %v928_v46  ;;  %v932_v51 = vsel %vm10740_vm7, %v908_v43, %v931_v39  ;;  %v1072_v55 = vor.u32 %v1070_v34, %v1069_v44 }
  0x3e   : > { %930 = vst.msk [vmem:[#allocation2 + $0x10] sm:$0xf] %vm822_vm0, %v907_v45  ;;  %v1271_v54 = vld [vmem:[#allocation2 + $0x1c] sm:$0xf]  ;;  %v1073_v56 = vrot.slane %v1069_v44, 4  ;;  %v1077_v0 = vrot.slane %v1075_v47, 7  ;;  %v10805_v41 = vmul.f32 %v10653_v5, %v718_v19  ;;  %vm10813_vm11 = vmor %vm1304_vm8, %vm1305_vm9 }
  0x3f   : > { %v1270_v53 = vld [vmem:[#allocation2 + $0x18] sm:$0xf]  ;;  %933 = vst [vmem:[#allocation2 + $0x14] sm:$0x1] %v932_v51  ;;  %v1365_v61 = vshll.u32 %v1271_v54, 16  ;;  %v1369_v62 = vshrl.u32 %v1271_v54, 16  ;;  %v1218_v1 = vsel %vm10730_vm6, %v1072_v55, %v1217_v49 }
  0x40   : > { %v1356_v58 = vshrl.u32 %v1270_v53, 16  ;;  %v1359_v59 = vshll.u32 %v1270_v53, 16  ;;  %v10768_v63 = vld [vmem:[#allocation2 + $0x20] sm:$0x1]  ;;  %v754_v4 = vmul.f32 0.1, %v738_v57  ;;  %v1080_v14 = vor.u32 %v1078_v48, %v1077_v0 }
  0x41   : > { %v10773_v8 = vrot.slane %v1365_v61, 5  ;;  %v1371_v10 = vrot.slane %v1369_v62, 4  ;;  %1219 = vst [vmem:[#allocation2 + $0x24] sm:$0xf] %v1218_v1  ;;  %v1375_v12 = vshll.u32 %v10768_v63, 16  ;;  %v1082_v15 = vrot.slane %v1077_v0, 4 }
  0x42   : > { %v1358_v6 = vrot.slane %v1356_v58, 4  ;;  %v1361_v7 = vrot.slane %v1359_v59, 5  ;;  %v755_v17 = vmul.f32 0.1, %v739_v3  ;;  %v10778_v20 = vld [vmem:[#allocation2] sm:$0xf]  ;;  %v1081_v27 = vsel %vm10724_vm5, %v1073_v56, %v1080_v14 }
  0x43   : > { %v10780_v22 = vld [vmem:[#allocation2 + $0x4] sm:$0xf]  ;;  %v10782_v24 = vld [vmem:[#allocation2 + $0x8] sm:$0x1]  ;;  %v1308_v25 = vshrl.u32 %v10778_v20, 16  ;;  %v1311_v26 = vshll.u32 %v10778_v20, 16  ;;  %v1222_v28 = vsel %vm10740_vm7, %v1082_v15, %v1221_v11  ;;  %v1372_v34 = vor.u32 %v1371_v10, %v10773_v8 }
  0x44   : > { %v1362_v21 = vor.u32 %v1361_v7, %v1358_v6  ;;  %v1317_v29 = vshll.u32 %v10780_v22, 16  ;;  %v1321_v30 = vshrl.u32 %v10780_v22, 16  ;;  %v1327_v31 = vshll.u32 %v10782_v24, 16  ;;  %v10793_v32 = vld [vmem:[#allocation2 + $0xc] sm:$0xf] }
  0x45   : > { %1220 = vst.msk [vmem:[#allocation2 + $0x28] sm:$0xf] %vm822_vm0, %v1081_v27  ;;  %1223 = vst [vmem:[#allocation2 + $0x2c] sm:$0x1] %v1222_v28  ;;  %v701_v35 = vld [vmem:[%s10642_s25 + $0x28] sm:$0xff]  ;;  %v1310_v36 = vrot.slane %v1308_v25, 4  ;;  %v10802_v40 = vadd.f32 %v754_v4, %v700_v16 }
  0x46   : > { %v1313_v37 = vrot.slane %v1311_v26, 5  ;;  %v10798_v38 = vld [vmem:[#allocation2 + $0x10] sm:$0xf]  ;;  %v10800_v39 = vld [vmem:[#allocation2 + $0x14] sm:$0x1]  ;;  %v1319_v42 = vrot.slane %v1317_v29, 5  ;;  %v10818_v56 = vadd.f32 %v755_v17, %v701_v35 }
  0x47   : > { %v1323_v43 = vrot.slane %v1321_v30, 4  ;;  %v1329_v44 = vrot.slane %v1327_v31, 5  ;;  %v1332_v45 = vshrl.u32 %v10793_v32, 16  ;;  %v1335_v47 = vshll.u32 %v10793_v32, 16  ;;  %v719_v35 = vld [vmem:[%s10647_s4 + $0x38] sm:$0xff] }
  0x48   : > { %v1314_v46 = vor.u32 %v1313_v37, %v1310_v36  ;;  %v1341_v48 = vshll.u32 %v10798_v38, 16  ;;  %v1345_v49 = vshrl.u32 %v10798_v38, 16  ;;  %v1351_v54 = vshll.u32 %v10800_v39, 16  ;;  %v1272_v55 = vld [vmem:[#allocation2 + $0x24] sm:$0xf]  ;;  %12944 = vst [vmem:[#allocation9_spill] sm:$0xff] %v10818_v56 }
  0x49   : > { %v1324_v51 = vor.u32 %v1323_v43, %v1319_v42  ;;  %v1334_v53 = vrot.slane %v1332_v45, 4  ;;  %v1337_v58 = vrot.slane %v1335_v47, 5  ;;  %v1363_v0 = vrot.slane %v1362_v21, 4 }
  0x4a   : > { %v1315_v57 = vrot.slane %v1314_v46, 4  ;;  %v1343_v59 = vrot.slane %v1341_v48, 5  ;;  %v1347_v61 = vrot.slane %v1345_v49, 4  ;;  %v1353_v63 = vrot.slane %v1351_v54, 5  ;;  %v702_v49 = vld [vmem:[%s10642_s25 + $0x30] sm:$0xff] }
  0x4b   : > { %v1325_v62 = vrot.slane %v1324_v51, 4  ;;  %v9043_v1 = vpack.c.bf16 %v10802_v40, %v10802_v40  ;;  %v1338_v4 = vor.u32 %v1337_v58, %v1334_v53  ;;  %v1373_v7 = vrot.slane %v1372_v34, 4  ;;  %v703_v51 = vld [vmem:[%s10642_s25 + $0x38] sm:$0xff]  ;;  %v720_v53 = vld [vmem:[%s10647_s4 + $0x40] sm:$0xff] }
  0x4c   : > { %v1320_v3 = vsel %vm10813_vm11, %v1315_v57, %v1319_v42  ;;  %v1348_v6 = vor.u32 %v1347_v61, %v1343_v59  ;;  %v1273_v10 = vld [vmem:[#allocation2 + $0x28] sm:$0xf]  ;;  %v1297_v11 = vld [vmem:[#allocation2 + $0x2c] sm:$0x1]  ;;  %v1368_v15 = vsel %vm10813_vm11, %v1363_v0, %v10773_v8  ;;  %v1377_v16 = vrot.slane %v1375_v12, 5  ;;  %v10185_v61 = vld [vmem:[%s12904_s5 + $0x10] sm:$0xff]  }
  0x4d   : > { %v1330_v14 = vsel %vm10813_vm11, %v1325_v62, %v1329_v44  ;;  %v1380_v17 = vshrl.u32 %v1272_v55, 16  ;;  %v1339_v21 = vrot.slane %v1338_v4, 4  ;;  %v1383_v26 = vshll.u32 %v1272_v55, 16  ;;  %v10184_v44 = vld [vmem:[%s12904_s5 + $0x8] sm:$0xff]   ;;  %v1224_v57 = vld [vmem:[#allocation2 + $0x30] sm:$0xf] }
  0x4e   : > { %v8408_v19 = vcombine.low %v1320_v3, %v1330_v14  ;;  %v1349_v25 = vrot.slane %v1348_v6, 4  ;;  %v1378_v27 = vsel %vm10813_vm11, %v1373_v7, %v1377_v16  ;;  %v1389_v29 = vshll.u32 %v1273_v10, 16  ;;  %v721_v62 = vld [vmem:[%s10647_s4 + $0x48] sm:$0xff]  ;;  %v1228_v6 = vld [vmem:[#allocation2 + $0x38] sm:$0x1] }
  0x4f   : > { %v1382_v28 = vrot.slane %v1380_v17, 4  ;;  %v1393_v30 = vshrl.u32 %v1273_v10, 16  ;;  %v1344_v8 = vsel %vm10813_vm11, %v1339_v21, %v1343_v59  ;;  %v8410_v31 = vcombine.low %v1368_v15, %v1378_v27  ;;  %v704_v17 = vld [vmem:[%s10642_s25 + $0x40] sm:$0xff] }
  0x50   : > { %9341 = vmatprep.mubr.msk.bf16.mxu0 %vm1610_vm10, %v8408_v19  ;;  %v1354_v12 = vsel %vm10813_vm11, %v1349_v25, %v1353_v63  ;;  %v1385_v34 = vrot.slane %v1383_v26, 5  ;;  %v1391_v37 = vrot.slane %v1389_v29, 5  ;;  %v1399_v43 = vshll.u32 %v1297_v11, 16  ;;  %v722_v11 = vld [vmem:[%s10647_s4 + $0x50] sm:$0xff]  ;;  %v705_v26 = vld [vmem:[%s10642_s25 + $0x48] sm:$0xff] }
  0x51   : > { %v8409_v36 = vcombine.low %v1344_v8, %v1354_v12  ;;  %v1395_v42 = vrot.slane %v1393_v30, 4  ;;  %v9044_v46 = vpack.c.bf16 %v10818_v56, %v10818_v56  ;;  %v1084_v47 = vshrl.u32 %v9043_v1, 16 }
  0x52   : > { %v1386_v45 = vor.u32 %v1385_v34, %v1382_v28  ;;  %v1087_v48 = vshll.u32 %v9043_v1, 16  ;;  %v1401_v55 = vrot.slane %v1399_v43, 5  ;;  %v741_v58 = vmul.f32 %v10653_v5, %v719_v35  ;;  %v723_v28 = vld [vmem:[%s10647_s4 + $0x58] sm:$0xff]  ;;  %v724_v43 = vld [vmem:[%s10647_s4 + $0x60] sm:$0xff] }
  0x53   : > { %9342 = vmatmul.mubr.msk.bf16.vlgmr.msra.gmra.mrb[0].mxu0 %vm1610_vm10, %v8409_v36  ;;  %v1396_v54 = vor.u32 %v1395_v42, %v1391_v37  ;;  %v756_v59 = vmul.f32 0.1, %v10805_v41  ;;  %v1086_v0 = vrot.slane %v1084_v47, 7  ;;  %v1092_v1 = vshrl.u32 %v9044_v46, 16  ;;  %v706_v42 = vld [vmem:[%s10642_s25 + $0x50] sm:$0xff] }
  0x54   : > { %9362 = vmatpush3.bf16.msra.mxu0 %v10672_v9  ;;  %9345 = vmatprep.mubr.msk.bf16.mxu0 %vm1610_vm10, %v8410_v31  ;;  %v1387_v63 = vrot.slane %v1386_v45, 4  ;;  %v1095_v3 = vshll.u32 %v9044_v46, 16  ;;  %v757_v41 = vmul.f32 0.1, %v741_v58  ;;  %v742_v10 = vmul.f32 %v10653_v5, %v720_v53  ;;  %v10186_v31 = vld [vmem:[%s12904_s5 + $0x18] sm:$0xff]   ;;  %v10893_v58 = vld [vmem:[%s12904_s5 + $0x40] sm:$0xff]  }
  0x55   : > { %v1397_v4 = vrot.slane %v1396_v54, 4  ;;  %9363 = vmatprep.subr.bf16.mxu0 %v10184_v44  ;;  %v10854_v7 = vadd.f32 %v756_v59, %v702_v49  ;;  %v1089_v14 = vor.u32 %v1087_v48, %v1086_v0  ;;  %v1090_v15 = vrot.slane %v1086_v0, 4  ;;  %v1231_v47 = vld [vmem:[#allocation2 + $0x3c] sm:$0xf]  ;;  %v1235_v59 = vld [vmem:[#allocation2 + $0x44] sm:$0x1] }
  0x56   : > { %v1392_v9 = vsel %vm10813_vm11, %v1387_v63, %v1391_v37  ;;  %v1094_v16 = vrot.slane %v1092_v1, 7  ;;  %v10863_v21 = vadd.f32 %v757_v41, %v703_v51  ;;  %v743_v27 = vmul.f32 %v10653_v5, %v721_v62 }
  0x57   : > { %v1402_v19 = vsel %vm10813_vm11, %v1397_v4, %v1401_v55  ;;  %v9045_v25 = vpack.c.bf16 %v10854_v7, %v10854_v7  ;;  %v1225_v12 = vsel %vm10730_vm6, %v1089_v14, %v1224_v57  ;;  %v758_v37 = vmul.f32 0.1, %v742_v10  ;;  %v707_v57 = vld [vmem:[%s10642_s25 + $0x58] sm:$0xff] }
  0x58   : > { %12945 = vst [vmem:[#allocation10_spill] sm:$0xff] %v10863_v21  ;;  %v8411_v29 = vcombine.low %v1392_v9, %v1402_v19  ;;  %9364 = vmatpush3.bf16.msra.mxu0 %v10184_v44  ;;  %v1097_v30 = vor.u32 %v1095_v3, %v1094_v16  ;;  %v1099_v8 = vrot.slane %v1094_v16, 4  ;;  %1226 = vst [vmem:[#allocation2 + $0x30] sm:$0xf] %v1225_v12  ;;  %v725_v44 = vld [vmem:[%s10647_s4 + $0x68] sm:$0xff]  ;;  %vm2001_vm12 = vcmask 1042432  }
  0x59   : > { %v9046_v34 = vpack.c.bf16 %v10863_v21, %v10863_v21  ;;  %v1101_v35 = vshrl.u32 %v9045_v25, 16  ;;  %v1104_v36 = vshll.u32 %v9045_v25, 16  ;;  %9365 = vmatprep.subr.bf16.mxu0 %v10185_v61  ;;  %v759_v48 = vmul.f32 0.1, %v743_v27 }
  0x5a   : > { %v1098_v45 = vsel %vm10724_vm5, %v1090_v15, %v1097_v30  ;;  %v1229_v46 = vsel %vm10740_vm7, %v1099_v8, %v1228_v6  ;;  %v744_v49 = vmul.f32 %v10653_v5, %v722_v11  ;;  %v10887_v55 = vadd.f32 %v758_v37, %v704_v17 }
  0x5b   : > { %9346 = vmatmul.mubr.msk.bf16.gmra.mrb[4].mxu0 %vm1610_vm10, %v8411_v29  ;;  %1227 = vst.msk [vmem:[#allocation2 + $0x34] sm:$0xf] %vm822_vm0, %v1098_v45  ;;  %1230 = vst [vmem:[#allocation2 + $0x38] sm:$0x1] %v1229_v46  ;;  %v1103_v51 = vrot.slane %v1101_v35, 7  ;;  %v1109_v53 = vshrl.u32 %v9046_v34, 16  ;;  %v10895_v62 = vadd.f32 %v759_v48, %v705_v26  ;;  %v745_v63 = vmul.f32 %v10653_v5, %v723_v28 }
  0x5c   : > { %v1112_v54 = vshll.u32 %v9046_v34, 16  ;;  %12946 = vst [vmem:[#allocation11_spill] sm:$0xff] %v10887_v55  ;;  %9366 = vmatpush3.bf16.msra.mxu0 %v10185_v61  ;;  %v760_v0 = vmul.f32 0.1, %v744_v49  ;;  %v10899_v1 = vmul.f32 %v10653_v5, %v724_v43  ;;  %v9047_v41 = vpack.c.bf16 %v10887_v55, %v10887_v55  ;;  %v1238_v34 = vld [vmem:[#allocation2 + $0x48] sm:$0xf] }
  0x5d   : > { %12947 = vst [vmem:[#allocation12_spill] sm:$0xff] %v10895_v62  ;;  %v1106_v3 = vor.u32 %v1104_v36, %v1103_v51  ;;  %v1107_v4 = vrot.slane %v1103_v51, 4  ;;  %v1111_v6 = vrot.slane %v1109_v53, 7  ;;  %9367 = vmatprep.subr.bf16.mxu0 %v10186_v31  ;;  %v9048_v10 = vpack.c.bf16 %v10895_v62, %v10895_v62 }
  0x5e   : > { %v761_v11 = vmul.f32 0.1, %v745_v63  ;;  %v10905_v61 = vadd.f32 %v760_v0, %v706_v42  ;;  %v10908_v9 = vmul.f32 %v10653_v5, %v725_v44  ;;  %v1118_v17 = vshrl.u32 %v9047_v41, 16  ;;  %v1242_v42 = vld [vmem:[#allocation2 + $0x50] sm:$0x1] }
  0x5f   : > { %v1114_v14 = vor.u32 %v1112_v54, %v1111_v6  ;;  %v1116_v15 = vrot.slane %v1111_v6, 4  ;;  %v1232_v16 = vsel %vm10730_vm6, %v1106_v3, %v1231_v47  ;;  %v10912_v19 = vld [vmem:[#allocation2 + $0x30] sm:$0xf]  ;;  %v1121_v25 = vshll.u32 %v9047_v41, 16 }
  0x60   : > { %12948 = vst [vmem:[#allocation13_spill] sm:$0xff] %v10905_v61  ;;  %1233 = vst [vmem:[#allocation2 + $0x3c] sm:$0xf] %v1232_v16  ;;  %v1126_v26 = vshrl.u32 %v9048_v10, 16  ;;  %v1129_v27 = vshll.u32 %v9048_v10, 16  ;;  %v10914_v28 = vadd.f32 %v761_v11, %v707_v57  ;;  %9368 = vmatpush3.bf16.msra.mxu0 %v10186_v31  ;;  %v1404_v29 = vshrl.u32 %v10912_v19, 16 }
  0x61   : > { %v1407_v30 = vshll.u32 %v10912_v19, 16  ;;  %v1115_v8 = vsel %vm10724_vm5, %v1107_v4, %v1114_v14  ;;  %v1236_v12 = vsel %vm10740_vm7, %v1116_v15, %v1235_v59  ;;  %9389 = vmatprep.subr.bf16.mxu0 %v10893_v58  ;;  %v1120_v31 = vrot.slane %v1118_v17, 7  ;;  %v726_v3 = vld [vmem:[%s10647_s4 + $0x70] sm:$0xff] }
  0x62   : > { %12949 = vst [vmem:[#allocation14_spill] sm:$0xff] %v10914_v28  ;;  %v10923_v35 = vld [vmem:[#allocation2 + $0x34] sm:$0xf]  ;;  %v10925_v36 = vld [vmem:[#allocation2 + $0x38] sm:$0x1]  ;;  %v1128_v37 = vrot.slane %v1126_v26, 7  ;;  %v9049_v43 = vpack.c.bf16 %v10905_v61, %v10905_v61  ;;  %v10932_v44 = vpack.c.bf16 %v10914_v28, %v10914_v28 }
  0x63   : > { %1234 = vst.msk [vmem:[#allocation2 + $0x40] sm:$0xf] %vm822_vm0, %v1115_v8  ;;  %1237 = vst [vmem:[#allocation2 + $0x44] sm:$0x1] %v1236_v12  ;;  %v1406_v45 = vrot.slane %v1404_v29, 4  ;;  %v1409_v46 = vrot.slane %v1407_v30, 5  ;;  %v1123_v51 = vor.u32 %v1121_v25, %v1120_v31 }
  0x64   : > { %v1413_v47 = vshll.u32 %v10923_v35, 16  ;;  %v1417_v48 = vshrl.u32 %v10923_v35, 16  ;;  %v1423_v49 = vshll.u32 %v10925_v36, 16  ;;  %v1124_v53 = vrot.slane %v1120_v31, 4 }
  0x65   : > { %v1131_v54 = vor.u32 %v1129_v27, %v1128_v37  ;;  %v1410_v57 = vor.u32 %v1409_v46, %v1406_v45  ;;  %v1133_v0 = vrot.slane %v1128_v37, 4  ;;  %v1239_v41 = vsel %vm10730_vm6, %v1123_v51, %v1238_v34 }
  0x66   : > { %v1415_v59 = vrot.slane %v1413_v47, 5  ;;  %v1419_v63 = vrot.slane %v1417_v48, 4  ;;  %v1425_v4 = vrot.slane %v1423_v49, 5  ;;  %v1135_v10 = vshrl.u32 %v9049_v43, 16  ;;  %1240 = vst [vmem:[#allocation2 + $0x48] sm:$0xf] %v1239_v41 }
  0x67   : > { %v1132_v6 = vsel %vm10724_vm5, %v1124_v53, %v1131_v54  ;;  %v1411_v11 = vrot.slane %v1410_v57, 4  ;;  %v10942_v15 = vld [vmem:[#allocation2 + $0x3c] sm:$0xf]  ;;  %v1243_v16 = vsel %vm10740_vm7, %v1133_v0, %v1242_v42  ;;  %v1138_v17 = vshll.u32 %v9049_v43, 16  ;;  %v1245_v47 = vld [vmem:[#allocation2 + $0x54] sm:$0xf] }
  0x68   : > { %v1420_v14 = vor.u32 %v1419_v63, %v1415_v59  ;;  %1241 = vst.msk [vmem:[#allocation2 + $0x4c] sm:$0xf] %vm822_vm0, %v1132_v6  ;;  %v1428_v25 = vshrl.u32 %v10942_v15, 16  ;;  %v1431_v26 = vshll.u32 %v10942_v15, 16  ;;  %1244 = vst [vmem:[#allocation2 + $0x50] sm:$0x1] %v1243_v16  ;;  %v748_v37 = vmul.f32 %v10653_v5, %v726_v3 }
  0x69   : > { %v1137_v27 = vrot.slane %v1135_v10, 7  ;;  %v1143_v29 = vshrl.u32 %v10932_v44, 16  ;;  %v1416_v30 = vsel %vm10813_vm11, %v1411_v11, %v1415_v59  ;;  %v1146_v31 = vshll.u32 %v10932_v44, 16  ;;  %v727_v54 = vld [vmem:[%s10647_s4 + $0x78] sm:$0xff] }
  0x6a   : > { %v1421_v8 = vrot.slane %v1420_v14, 4  ;;  %v10952_v12 = vld [vmem:[#allocation2 + $0x40] sm:$0xf]  ;;  %v10954_v34 = vld [vmem:[#allocation2 + $0x44] sm:$0x1]  ;;  %v1430_v42 = vrot.slane %v1428_v25, 4  ;;  %v749_v16 = vmul.f32 %v10653_v5, %v727_v54 }
  0x6b   : > { %v1433_v43 = vrot.slane %v1431_v26, 5  ;;  %v1437_v45 = vshll.u32 %v10952_v12, 16  ;;  %v1441_v46 = vshrl.u32 %v10952_v12, 16  ;;  %v1447_v49 = vshll.u32 %v10954_v34, 16 }
  0x6c   : > { %v1426_v48 = vsel %vm10813_vm11, %v1421_v8, %v1425_v4  ;;  %v1140_v51 = vor.u32 %v1138_v17, %v1137_v27  ;;  %v1141_v53 = vrot.slane %v1137_v27, 4  ;;  %v1145_v3 = vrot.slane %v1143_v29, 7 }
  0x6d   : > { %v8412_v57 = vcombine.low %v1416_v30, %v1426_v48  ;;  %v1434_v59 = vor.u32 %v1433_v43, %v1430_v42  ;;  %v1439_v44 = vrot.slane %v1437_v45, 5  ;;  %v1443_v63 = vrot.slane %v1441_v46, 4  ;;  %v10968_v11 = vld [vmem:[#allocation2 + $0x48] sm:$0xf]  ;;  %v1249_v30 = vld [vmem:[#allocation2 + $0x5c] sm:$0x1] }
  0x6e   : > { %v1449_v0 = vrot.slane %v1447_v49, 5  ;;  %v1246_v6 = vsel %vm10730_vm6, %v1140_v51, %v1245_v47  ;;  %v762_v41 = vmul.f32 0.1, %v10899_v1  ;;  %v1452_v1 = vshrl.u32 %v10968_v11, 16  ;;  %v708_v45 = vld [vmem:[%s10642_s25 + $0x60] sm:$0xff]  ;;  %v709_v46 = vld [vmem:[%s10642_s25 + $0x68] sm:$0xff] }
  0x6f   : > { %9349 = vmatprep.mubr.msk.bf16.mxu0 %vm1610_vm10, %v8412_v57  ;;  %v1435_v10 = vrot.slane %v1434_v59, 4  ;;  %v1444_v4 = vor.u32 %v1443_v63, %v1439_v44  ;;  %v10970_v14 = vld [vmem:[#allocation2 + $0x4c] sm:$0xf]  ;;  %1247 = vst [vmem:[#allocation2 + $0x54] sm:$0xf] %v1246_v6  ;;  %v1455_v26 = vshll.u32 %v10968_v11, 16  ;;  %v1148_v43 = vor.u32 %v1146_v31, %v1145_v3 }
  0x70   : > { %v10975_v25 = vld [vmem:[#allocation2 + $0x50] sm:$0x1]  ;;  %v1461_v27 = vshll.u32 %v10970_v14, 16  ;;  %v1465_v29 = vshrl.u32 %v10970_v14, 16  ;;  %v1454_v47 = vrot.slane %v1452_v1, 4  ;;  %v1150_v63 = vrot.slane %v1145_v3, 4 }
  0x71   : > { %v1440_v8 = vsel %vm10813_vm11, %v1435_v10, %v1439_v44  ;;  %v1445_v5 = vrot.slane %v1444_v4, 4  ;;  %v1471_v42 = vshll.u32 %v10975_v25, 16  ;;  %v1457_v48 = vrot.slane %v1455_v26, 5  ;;  %v710_v6 = vld [vmem:[%s10642_s25 + $0x70] sm:$0xff]  ;;  %v711_v44 = vld [vmem:[%s10642_s25 + $0x78] sm:$0xff] }
  0x72   : > { %v1463_v49 = vrot.slane %v1461_v27, 5  ;;  %v1467_v51 = vrot.slane %v1465_v29, 4  ;;  %v1149_v59 = vsel %vm10724_vm5, %v1141_v53, %v1148_v43  ;;  %v763_v31 = vmul.f32 0.1, %v10908_v9  ;;  %v1977_v61 = vld [vmem:[#allocation2 + $0x48] sm:$0xe] }
  0x73   : > { %v1450_v54 = vsel %vm10813_vm11, %v1445_v5, %v1449_v0  ;;  %v1473_v57 = vrot.slane %v1471_v42, 5  ;;  %v1458_v4 = vor.u32 %v1457_v48, %v1454_v47  ;;  %1248 = vst.msk [vmem:[#allocation2 + $0x58] sm:$0xf] %vm822_vm0, %v1149_v59  ;;  %v1250_v1 = vsel %vm10740_vm7, %v1150_v63, %v1249_v30  ;;  %v1252_v63 = vld [vmem:[#allocation2 + $0x60] sm:$0xf] }
  0x74   : > { %v8413_v10 = vcombine.low %v1440_v8, %v1450_v54  ;;  %v1468_v17 = vor.u32 %v1467_v51, %v1463_v49  ;;  %v10996_v26 = vadd.f32 %v762_v41, %v708_v45  ;;  %v764_v0 = vmul.f32 0.1, %v748_v37  ;;  %1251 = vst [vmem:[#allocation2 + $0x5c] sm:$0x1] %v1250_v1 }
  0x75   : > { %v765_v27 = vmul.f32 0.1, %v749_v16  ;;  %v1459_v53 = vrot.slane %v1458_v4, 4  ;;  %v11001_v8 = vadd.f32 %v763_v31, %v709_v46  ;;  %vm2002_vm13 = vcmask 1046532  }
  0x76   : > { %12950 = vst [vmem:[#allocation15_spill] sm:$0xff] %v10996_v26  ;;  %9350 = vmatmul.mubr.msk.bf16.gmra.mrb[8].mxu0 %vm1610_vm10, %v8413_v10  ;;  %v1469_v3 = vrot.slane %v1468_v17, 4  ;;  %v10999_v29 = vld [vmem:[#allocation2 + $0x54] sm:$0xf]  ;;  %v9051_v37 = vpack.c.bf16 %v10996_v26, %v10996_v26  ;;  %v11009_v41 = vadd.f32 %v764_v0, %v710_v6  ;;  %v1256_v0 = vld [vmem:[#allocation2 + $0x68] sm:$0x1]  ;;  %vm11056_vm14 = vmor %vm2001_vm12, %vm2002_vm13 }
  0x77   : > { %12951 = vst [vmem:[#allocation16_spill] sm:$0xff] %v11001_v8  ;;  %v1476_v9 = vshrl.u32 %v10999_v29, 16  ;;  %v1479_v30 = vshll.u32 %v10999_v29, 16  ;;  %v1464_v16 = vsel %vm10813_vm11, %v1459_v53, %v1463_v49  ;;  %v9052_v42 = vpack.c.bf16 %v11001_v8, %v11001_v8 }
  0x78   : > { %12952 = vst [vmem:[#allocation17_spill] sm:$0xff] %v11009_v41  ;;  %v1474_v17 = vsel %vm10813_vm11, %v1469_v3, %v1473_v57  ;;  %v11017_v43 = vadd.f32 %v765_v27, %v711_v44  ;;  %v1152_v48 = vshrl.u32 %v9051_v37, 16  ;;  %v1155_v51 = vshll.u32 %v9051_v37, 16 }
  0x79   : > { %v8414_v45 = vcombine.low %v1464_v16, %v1474_v17  ;;  %v1478_v46 = vrot.slane %v1476_v9, 4  ;;  %v1481_v47 = vrot.slane %v1479_v30, 5  ;;  %v1160_v54 = vshrl.u32 %v9052_v42, 16 }
  0x7a   : > { %12953 = vst [vmem:[#allocation18_spill] sm:$0xff] %v11017_v43  ;;  %v1163_v59 = vshll.u32 %v9052_v42, 16  ;;  %v9053_v6 = vpack.c.bf16 %v11009_v41, %v11009_v41  ;;  %v11022_v49 = vld [vmem:[#allocation2 + $0x58] sm:$0xf]  ;;  %v1154_v10 = vrot.slane %v1152_v48, 7  ;;  %v9054_v44 = vpack.c.bf16 %v11017_v43, %v11017_v43 }
  0x7b   : > { %9353 = vmatprep.mubr.msk.bf16.mxu0 %vm1610_vm10, %v8414_v45  ;;  %v1482_v57 = vor.u32 %v1481_v47, %v1478_v46  ;;  %v1485_v4 = vshll.u32 %v11022_v49, 16  ;;  %v1489_v31 = vshrl.u32 %v11022_v49, 16  ;;  %v1162_v1 = vrot.slane %v1160_v54, 7  ;;  %v11028_v53 = vld [vmem:[#allocation2 + $0x5c] sm:$0x1] }
  0x7c   : > { %v1169_v27 = vshrl.u32 %v9053_v6, 16  ;;  %v1157_v9 = vor.u32 %v1155_v51, %v1154_v10  ;;  %v1158_v30 = vrot.slane %v1154_v10, 4  ;;  %v1172_v37 = vshll.u32 %v9053_v6, 16  ;;  %v1259_v46 = vld [vmem:[#allocation2 + $0x6c] sm:$0xf] }
  0x7d   : > { %v1483_v3 = vrot.slane %v1482_v57, 4  ;;  %v1487_v16 = vrot.slane %v1485_v4, 5  ;;  %v1491_v17 = vrot.slane %v1489_v31, 4  ;;  %v1495_v42 = vshll.u32 %v11028_v53, 16  ;;  %v1263_v6 = vld [vmem:[#allocation2 + $0x74] sm:$0x1] }
  0x7e   : > { %v1165_v45 = vor.u32 %v1163_v59, %v1162_v1  ;;  %v1167_v47 = vrot.slane %v1162_v1, 4  ;;  %v1253_v48 = vsel %vm10730_vm6, %v1157_v9, %v1252_v63  ;;  %v1171_v5 = vrot.slane %v1169_v27, 7  ;;  %v1971_v57 = vld [vmem:[#allocation2] sm:$0xe]  ;;  %v1972_v31 = vld [vmem:[#allocation2 + $0xc] sm:$0xe] }
  0x7f   : > { %v1177_v54 = vshrl.u32 %v9054_v44, 16  ;;  %v2013_v8 = vrot.slane %v10798_v38, 5  ;;  %v1492_v43 = vor.u32 %v1491_v17, %v1487_v16  ;;  %v1497_v26 = vrot.slane %v1495_v42, 5  ;;  %1254 = vst [vmem:[#allocation2 + $0x60] sm:$0xf] %v1253_v48 }
  0x80   : > { %v1166_v51 = vsel %vm10724_vm5, %v1158_v30, %v1165_v45  ;;  %v1488_v59 = vsel %vm10813_vm11, %v1483_v3, %v1487_v16  ;;  %v1257_v63 = vsel %vm10740_vm7, %v1167_v47, %v1256_v0  ;;  %v1174_v10 = vor.u32 %v1172_v37, %v1171_v5  ;;  %v1975_v0 = vld [vmem:[#allocation2 + $0x30] sm:$0xe]  ;;  %v1976_v30 = vld [vmem:[#allocation2 + $0x3c] sm:$0xe] }
  0x81   : > { %1255 = vst.msk [vmem:[#allocation2 + $0x64] sm:$0xf] %vm822_vm0, %v1166_v51  ;;  %v1179_v4 = vrot.slane %v1177_v54, 7  ;;  %v1493_v1 = vrot.slane %v1492_v43, 4  ;;  %1258 = vst [vmem:[#allocation2 + $0x68] sm:$0x1] %v1257_v63 }
  0x82   : > { %v1175_v27 = vrot.slane %v1171_v5, 4  ;;  %v1180_v9 = vshll.u32 %v9054_v44, 16  ;;  %v1260_v42 = vsel %vm10730_vm6, %v1174_v10, %v1259_v46  ;;  %v8456_v16 = vrot.slane %v1971_v57, 9 }
  0x83   : > { %v1184_v17 = vrot.slane %v1179_v4, 4  ;;  %v1498_v37 = vsel %vm10813_vm11, %v1493_v1, %v1497_v26  ;;  %1261 = vst [vmem:[#allocation2 + $0x6c] sm:$0xf] %v1260_v42  ;;  %v2009_v45 = vrot.slane %v10782_v24, 5  ;;  %v2006_v26 = vrot.slane %v10780_v22, 5 }
  0x84   : > { %v1182_v43 = vor.u32 %v1180_v9, %v1179_v4  ;;  %v8415_v5 = vcombine.low %v1488_v59, %v1498_v37  ;;  %v8457_v48 = vrot.slane %v1972_v31, 9  ;;  %v2016_v54 = vrot.slane %v10800_v39, 5 }
  0x85   : > { %v1264_v44 = vsel %vm10740_vm7, %v1184_v17, %v1263_v6  ;;  %v2015_v24 = vrot.slane %v2013_v8, 4  ;;  %v11072_v63 = vsel %vm11056_vm14, %v8456_v16, %v2006_v26  ;;  %v2008_v10 = vrot.slane %v2006_v26, 4 }
  0x86   : > { %v1183_v46 = vsel %vm10724_vm5, %v1175_v27, %v1182_v43  ;;  %1265 = vst [vmem:[#allocation2 + $0x74] sm:$0x1] %v1264_v44  ;;  %9354 = vmatmul.mubr.msk.bf16.gmra.mrb[12].mxu0 %vm1610_vm10, %v8415_v5  ;;  %v11063_v51 = vld [vmem:[#allocation2 + $0x60] sm:$0xf]  ;;  %v11080_v1 = vsel %vm11056_vm14, %v8457_v48, %v2013_v8  ;;  %v2034_v28 = vrot.slane %v10923_v35, 5  ;;  %v2037_v55 = vrot.slane %v10925_v36, 5 }
  0x87   : > { %1262 = vst.msk [vmem:[#allocation2 + $0x70] sm:$0xf] %vm822_vm0, %v1183_v46  ;;  %v1500_v57 = vshrl.u32 %v11063_v51, 16  ;;  %v1503_v59 = vshll.u32 %v11063_v51, 16  ;;  %v11085_v42 = vsel %vm11056_vm14, %v2008_v10, %v2009_v45  ;;  %v11093_v16 = vsel %vm11056_vm14, %v2015_v24, %v2016_v54 }
  0x88   : > { %v11066_v6 = vld [vmem:[#allocation2 + $0x64] sm:$0xf]  ;;  %v11074_v4 = vld [vmem:[#allocation2 + $0x68] sm:$0x1]  ;;  %v2048_v36 = vrot.slane %v10970_v14, 5 }
  0x89   : > { %v1509_v39 = vshll.u32 %v11066_v6, 16  ;;  %v1513_v31 = vshrl.u32 %v11066_v6, 16  ;;  %v1502_v27 = vrot.slane %v1500_v57, 4  ;;  %v1505_v9 = vrot.slane %v1503_v59, 5 }
  0x8a   : > { %v1519_v17 = vshll.u32 %v11074_v4, 16  ;;  %v11087_v5 = vld [vmem:[#allocation2 + $0x6c] sm:$0xf] }
  0x8b   : > { %v1511_v37 = vrot.slane %v1509_v39, 5  ;;  %v1515_v43 = vrot.slane %v1513_v31, 4  ;;  %v1506_v8 = vor.u32 %v1505_v9, %v1502_v27  ;;  %v1524_v46 = vshrl.u32 %v11087_v5, 16 }
  0x8c   : > { %v1527_v26 = vshll.u32 %v11087_v5, 16  ;;  %v1521_v57 = vrot.slane %v1519_v17, 5 }
  0x8d   : > { %v1516_v48 = vor.u32 %v1515_v43, %v1511_v37  ;;  %v11097_v45 = vld [vmem:[#allocation2 + $0x74] sm:$0x1]  ;;  %v1507_v10 = vrot.slane %v1506_v8, 4  ;;  %v1526_v31 = vrot.slane %v1524_v46, 4 }
  0x8e   : > { %v11101_v39 = vld [vmem:[#allocation2 + $0x70] sm:$0xf]  ;;  %v1529_v44 = vrot.slane %v1527_v26, 5  ;;  %v1543_v54 = vshll.u32 %v11097_v45, 16 }
  0x8f   : > { %v1517_v24 = vrot.slane %v1516_v48, 4  ;;  %v1533_v27 = vshll.u32 %v11101_v39, 16  ;;  %v1537_v9 = vshrl.u32 %v11101_v39, 16  ;;  %v1512_v17 = vsel %vm10813_vm11, %v1507_v10, %v1511_v37 }
  0x90   : > { %v1530_v43 = vor.u32 %v1529_v44, %v1526_v31  ;;  %v1545_v41 = vrot.slane %v1543_v54, 5  ;;  %v8460_v48 = vrot.slane %v1975_v0, 9  ;;  %v8461_v44 = vrot.slane %v1976_v30, 9  ;;  %v1978_v54 = vld [vmem:[#allocation2 + $0x54] sm:$0xe] }
  0x91   : > { %v1522_v59 = vsel %vm10813_vm11, %v1517_v24, %v1521_v57  ;;  %v1535_v8 = vrot.slane %v1533_v27, 5  ;;  %v1539_v3 = vrot.slane %v1537_v9, 4  ;;  %v2044_v0 = vrot.slane %v10954_v34, 5 }
  0x92   : > { %v8416_v46 = vcombine.low %v1512_v17, %v1522_v59  ;;  %v1531_v26 = vrot.slane %v1530_v43, 4  ;;  %v11117_v10 = vsel %vm11056_vm14, %v8460_v48, %v2034_v28  ;;  %v2036_v59 = vrot.slane %v2034_v28, 4  ;;  %v1979_v28 = vld [vmem:[#allocation2 + $0x60] sm:$0xe] }
  0x93   : > { %v1540_v62 = vor.u32 %v1539_v3, %v1535_v8  ;;  %v2041_v3 = vrot.slane %v10952_v12, 5  ;;  %v8462_v31 = vrot.slane %v1977_v61, 9  ;;  %v8463_v17 = vrot.slane %v1978_v54, 9 }
  0x94   : > { %9357 = vmatprep.mubr.msk.bf16.mxu0 %vm1610_vm10, %v8416_v46  ;;  %v1536_v37 = vsel %vm10813_vm11, %v1531_v26, %v1535_v8  ;;  %v11126_v30 = vsel %vm11056_vm14, %v2036_v59, %v2037_v55  ;;  %v2051_v55 = vrot.slane %v10975_v25, 5  ;;  %v2055_v43 = vrot.slane %v11022_v49, 5 }
  0x95   : > { %v1541_v57 = vrot.slane %v1540_v62, 4  ;;  %v11130_v62 = vsel %vm11056_vm14, %v8461_v44, %v2041_v3  ;;  %v8478_v61 = vcombine.low %v11117_v10, %v11126_v30  ;;  %v2043_v34 = vrot.slane %v2041_v3, 4  ;;  %v794_v44 = vld [vmem:[%s10688_s30 + $0x20] sm:$0xff] }
  0x96   : > { %v11136_v9 = vsel %vm11056_vm14, %v8462_v31, %v2048_v36  ;;  %v2058_v46 = vrot.slane %v11028_v53, 5  ;;  %v8464_v26 = vrot.slane %v1979_v28, 9  ;;  %v2062_v48 = vrot.slane %v11066_v6, 5 }
  0x97   : > { %v1546_v24 = vsel %vm10813_vm11, %v1541_v57, %v1545_v41  ;;  %v2050_v41 = vrot.slane %v2048_v36, 4  ;;  %v11143_v8 = vsel %vm11056_vm14, %v2043_v34, %v2044_v0  ;;  %v12956_v57 = vcombine.low %v10778_v20, %v10780_v22  ;;  %v795_v0 = vld [vmem:[%s10688_s30 + $0x28] sm:$0xff] }
  0x98   : > { %v8417_v27 = vcombine.low %v1536_v37, %v1546_v24  ;;  %v1980_v37 = vld [vmem:[#allocation2 + $0x6c] sm:$0xe]  ;;  %v8479_v25 = vcombine.low %v11130_v62, %v11143_v8  ;;  %v11160_v53 = vsel %vm11056_vm14, %v8463_v17, %v2055_v43  ;;  %v2057_v3 = vrot.slane %v2055_v43, 4  ;;  %v11184_v17 = vld [vmem:[%s10627_s16] ss:$0 sm:$0xff]  ;;  %v10199_v8 = vld [vmem:[#allocation2 + $0x24] sm:$0xff]  }
  0x99   : > { %v11156_v59 = vsel %vm11056_vm14, %v2050_v41, %v2051_v55  ;;  %v11167_v22 = vsel %vm11056_vm14, %v8464_v26, %v2062_v48  ;;  %v2064_v31 = vrot.slane %v2062_v48, 4  ;;  %v2065_v36 = vrot.slane %v11074_v4, 5  ;;  %v786_v55 = vld [vmem:[%s10683_s24 + $0x20] sm:$0xff]  ;;  %v11188_v26 = vld [vmem:[#allocation2 + $0x1c] sm:$0xf] }
  0x9a   : > { %9358 = vmatmul.mubr.msk.bf16.gmra.mrb[16].mxu0 %vm1610_vm10, %v8417_v27  ;;  %v11172_v54 = vsel %vm11056_vm14, %v2057_v3, %v2058_v46  ;;  %v8465_v24 = vrot.slane %v1980_v37, 9  ;;  %v2069_v28 = vrot.slane %v11101_v39, 5  ;;  %v2072_v27 = vrot.slane %v11097_v45, 5  ;;  %v10237_v46 = vld [vmem:[#allocation2 + $0x18] sm:$0xf]  ;;  %v787_v3 = vld [vmem:[%s10683_s24 + $0x28] sm:$0xff] }
  0x9b   : > { %9369 = vmatprep.mubr.msk.bf16.mxu0 %vm1610_vm10, %v12956_v57  ;;  %v11180_v41 = vsel %vm11056_vm14, %v2064_v31, %v2065_v36  ;;  %v802_v4 = vmul.f32 %v11184_v17, %v794_v44  ;;  %v803_v43 = vmul.f32 %v11184_v17, %v795_v0  ;;  %v8434_v48 = vcombine.low %v10237_v46, %v11188_v26  ;;  %v10188_v44 = vld [vmem:[%s12904_s5 + $0x48] sm:$0xff]  }
  0x9c   : > { %v11195_v37 = vsel %vm11056_vm14, %v8465_v24, %v2069_v28  ;;  %v2071_v57 = vrot.slane %v2069_v28, 4  ;;  %v12957_v46 = vcombine.low %v10793_v32, %v10798_v38  ;;  %v10240_v32 = vld [vmem:[#allocation2 + $0x28] sm:$0xf]  ;;  %v12963_v10 = vcombine.low %v11136_v9, %v11156_v59  ;;  %v10198_v9 = vld [vmem:[#allocation2 + $0x18] sm:$0xff]   ;;  %v796_v59 = vld [vmem:[%s10688_s30 + $0x30] sm:$0xff] }
  0x9d   : > { %v810_v31 = vmul.f32 0.1, %v802_v4  ;;  %v811_v0 = vmul.f32 0.1, %v803_v43  ;;  %v12964_v30 = vcombine.low %v11160_v53, %v11172_v54  ;;  %v797_v53 = vld [vmem:[%s10688_s30 + $0x38] sm:$0xff] }
  0x9e   : > { %v11203_v36 = vsel %vm11056_vm14, %v2071_v57, %v2072_v27  ;;  %v10189_v27 = vld [vmem:[%s12904_s5 + $0x50] sm:$0xff]   ;;  %v10239_v57 = vld [vmem:[#allocation2 + $0x24] sm:$0xf]  ;;  %v805_v54 = vmul.f32 %v11184_v17, %v797_v53 }
  0x9f   : > { %v818_v28 = vadd.f32 %v810_v31, %v786_v55  ;;  %v819_v45 = vadd.f32 %v811_v0, %v787_v3  ;;  %v8435_v38 = vcombine.low %v10239_v57, %v10240_v32  ;;  %v987_v3 = vld [vmem:[#allocation2 + $0x78] sm:$0xf]  ;;  %v8440_v57 = vcombine.low %v11063_v51, %v11066_v6 }
  0xa0   : > { %v12966_v62 = vcombine.low %v11195_v37, %v11203_v36  ;;  %v2567_v37 = vld [vmem:[#allocation2 + $0xc] sm:$0xf]  ;;  %v11319_v36 = vld [vmem:[#allocation2 + $0x10] sm:$0xf] }
  0xa1   : > { %v9035_v4 = vpack.c.bf16 %v818_v28, %v818_v28  ;;  %v9036_v43 = vpack.c.bf16 %v819_v45, %v819_v45  ;;  %v12958_v28 = vcombine.low %v10912_v19, %v10923_v35  ;;  %v991_v35 = vld [vmem:[#allocation2 + $0x80] sm:$0x1] }
  0xa2   : > { %9370 = vmatmul.mubr.msk.bf16.vlgmr.msra.gmra.mrb[0].mxu0 %vm1610_vm10, %v12957_v46 }
  0xa3   : > { %9390 = vmatpush3.bf16.msra.mxu0 %v10893_v58  ;;  %9373 = vmatprep.mubr.msk.bf16.mxu0 %vm1610_vm10, %v8434_v48  ;;  %v947_v46 = vshrl.u32 %v9035_v4, 16  ;;  %v950_v34 = vshll.u32 %v9035_v4, 16  ;;  %v955_v20 = vshrl.u32 %v9036_v43, 16  ;;  %v958_v24 = vshll.u32 %v9036_v43, 16  ;;  %v10190_v58 = vld [vmem:[%s12904_s5 + $0x58] sm:$0xff]  }
  0xa4   : > { %9391 = vmatprep.subr.bf16.mxu0 %v10188_v44  ;;  %v8439_v43 = vcombine.low %v10999_v29, %v11022_v49  ;;  %v12961_v29 = vcombine.low %v11072_v63, %v11085_v42  ;;  %v2027_v49 = vrot.slane %v10240_v32, 5  ;;  %v12962_v63 = vcombine.low %v11080_v1, %v11093_v16  ;;  %v10195_v1 = vld [vmem:[%s12904_s5 + $0x78] sm:$0xff]   ;;  %v10197_v16 = vld [vmem:[%s12904_s5 + $0x80] sm:$0xff]  }
  0xa5   : > { %v949_v55 = vrot.slane %v947_v46, 7  ;;  %v957_v48 = vrot.slane %v955_v20, 7  ;;  %v10241_v46 = vld [vmem:[#allocation2 + $0x20] sm:$0x1] }
  0xa7   : > { %9392 = vmatpush3.bf16.msra.mxu0 %v10188_v44  ;;  %v952_v31 = vor.u32 %v950_v34, %v949_v55  ;;  %v953_v45 = vrot.slane %v949_v55, 4  ;;  %v960_v0 = vor.u32 %v958_v24, %v957_v48  ;;  %v10192_v44 = vld [vmem:[%s12904_s5 + $0x60] sm:$0xff]   ;;  %v962_v19 = vrot.slane %v957_v48, 4  ;;  %v10242_v48 = vld [vmem:[#allocation2 + $0x2c] sm:$0x1] }
  0xa8   : > { %9393 = vmatprep.subr.bf16.mxu0 %v10189_v27  ;;  %v12959_v34 = vcombine.low %v10942_v15, %v10952_v12  ;;  %v12960_v24 = vcombine.low %v10968_v11, %v10970_v14  ;;  %v2020_v15 = vrot.slane %v11188_v26, 5  ;;  %v1973_v12 = vld [vmem:[#allocation2 + $0x18] sm:$0xe]  ;;  %v8441_v11 = vcombine.low %v11087_v5, %v11101_v39  ;;  %v1974_v26 = vld [vmem:[#allocation2 + $0x24] sm:$0xe] }
  0xa9   : > { %v961_v20 = vsel %vm10724_vm5, %v953_v45, %v960_v0  ;;  %v988_v4 = vsel %vm10730_vm6, %v952_v31, %v987_v3  ;;  %v8458_v14 = vrot.slane %v1973_v12, 9  ;;  %v8459_v39 = vrot.slane %v1974_v26, 9  ;;  %v10193_v31 = vld [vmem:[%s12904_s5 + $0x68] sm:$0xff]   ;;  %v10194_v45 = vld [vmem:[%s12904_s5 + $0x70] sm:$0xff]   ;;  %v10207_v12 = vld [vmem:[%s12904_s5 + $0x98] sm:$0xff]  }
  0xaa   : > { %9374 = vmatmul.mubr.msk.bf16.gmra.mrb[4].mxu0 %vm1610_vm10, %v8435_v38  ;;  %989 = vst [vmem:[#allocation2 + $0x78] sm:$0xf] %v988_v4  ;;  %990 = vst.msk [vmem:[#allocation2 + $0x7c] sm:$0xf] %vm822_vm0, %v961_v20  ;;  %v2022_v38 = vrot.slane %v2020_v15, 4  ;;  %v2029_v55 = vrot.slane %v2027_v49, 4 }
  0xab   : > { %9377 = vmatprep.mubr.msk.bf16.mxu0 %vm1610_vm10, %v12958_v28  ;;  %9394 = vmatpush3.bf16.msra.mxu0 %v10189_v27  ;;  %v992_v27 = vsel %vm10740_vm7, %v962_v19, %v991_v35  ;;  %v2021_v51 = vsel %vm11056_vm14, %v8458_v14, %v2020_v15  ;;  %v2030_v3 = vrot.slane %v10242_v48, 5  ;;  %v2028_v42 = vsel %vm11056_vm14, %v8459_v39, %v2027_v49  ;;  %v10196_v28 = vld [vmem:[#allocation2 + $0xc] sm:$0xff]   ;;  %v789_v19 = vld [vmem:[%s10683_s24 + $0x38] sm:$0xff] }
  0xac   : > { %9395 = vmatprep.subr.bf16.mxu0 %v10190_v58  ;;  %993 = vst [vmem:[#allocation2 + $0x80] sm:$0x1] %v992_v27  ;;  %v813_v20 = vmul.f32 0.1, %v805_v54  ;;  %v788_v4 = vld [vmem:[%s10683_s24 + $0x30] sm:$0xff]  ;;  %v2598_v27 = vshrl.u32 %v2567_v37, 16 }
  0xad   : > { %v2031_v32 = vsel %vm11056_vm14, %v2029_v55, %v2030_v3  ;;  %v10200_v35 = vld [vmem:[#allocation2 + $0x30] sm:$0xff]   ;;  %v2611_v15 = vshrl.u32 %v11319_v36, 16 }
  0xae   : > { %v8477_v0 = vcombine.low %v2028_v42, %v2031_v32  ;;  %v2600_v49 = vrot.slane %v2598_v27, 4  ;;  %v10203_v42 = vld [vmem:[#allocation2 + $0x48] sm:$0xff]   ;;  %v11341_v32 = vld [vmem:[#allocation2 + $0x1c] sm:$0xf]  ;;  %v11362_v27 = vld [vmem:[#allocation2 + $0x20] sm:$0x1] }
  0xaf   : > { %9396 = vmatpush3.bf16.msra.mxu0 %v10190_v58  ;;  %v2023_v58 = vrot.slane %v10241_v46, 5  ;;  %v2613_v26 = vrot.slane %v2611_v15, 4  ;;  %v2631_v54 = vshll.u32 %v11341_v32, 16  ;;  %v10206_v15 = vld [vmem:[#allocation2 + $0x60] sm:$0xff]  }
  0xb0   : > { %9417 = vmatprep.subr.bf16.mxu0 %v10192_v44 }
  0xb1   : > { %v2024_v6 = vsel %vm11056_vm14, %v2022_v38, %v2023_v58  ;;  %v2570_v38 = vld [vmem:[#allocation2 + $0x18] sm:$0xf]  ;;  %v11465_v21 = vld [vmem:[#allocation2 + $0x7c] sm:$0xf] }
  0xb2   : > { %9378 = vmatmul.mubr.msk.bf16.gmra.mrb[8].mxu0 %vm1610_vm10, %v12959_v34  ;;  %v8476_v5 = vcombine.low %v2021_v51, %v2024_v6  ;;  %v2594_v56 = vld [vmem:[#allocation2 + $0x78] sm:$0xf] }
  0xb3   : > { %9381 = vmatprep.mubr.msk.bf16.mxu0 %vm1610_vm10, %v12960_v24  ;;  %v821_v24 = vadd.f32 %v813_v20, %v789_v19 }
  0xb5   : > { %v9038_v14 = vpack.c.bf16 %v821_v24, %v821_v24 }
  0xb7   : > { %v972_v58 = vshrl.u32 %v9038_v14, 16  ;;  %v975_v3 = vshll.u32 %v9038_v14, 16  ;;  %v11366_v14 = vrot.slane %v2631_v54, 5 }
  0xb9   : > { %v11339_v48 = vrot.slane %v972_v58, 7  ;;  %v11370_v58 = vld [vmem:[#allocation2 + $0x38] sm:$0x1] }
  0xba   : > { %9382 = vmatmul.mubr.msk.bf16.gmra.mrb[12].mxu0 %vm1610_vm10, %v8439_v43  ;;  %v2601_v43 = vshll.u32 %v2567_v37, 16  ;;  %v11355_v37 = vld [vmem:[#allocation2 + $0x34] sm:$0xf] }
  0xbb   : > { %9385 = vmatprep.mubr.msk.bf16.mxu0 %vm1610_vm10, %v8440_v57  ;;  %v2607_v57 = vshll.u32 %v11319_v36, 16 }
  0xbc   : > { %v2603_v51 = vrot.slane %v2601_v43, 5  ;;  %v2679_v43 = vshll.u32 %v11355_v37, 16 }
  0xbd   : > { %v11332_v6 = vrot.slane %v2607_v57, 5  ;;  %v2683_v57 = vshrl.u32 %v11355_v37, 16 }
  0xc2   : > { %9386 = vmatmul.mubr.msk.bf16.gmra.mrb[16].mxu0 %vm1610_vm10, %v8441_v11 }
  0xc3   : > { %9397 = vmatprep.mubr.msk.bf16.mxu0 %vm1610_vm10, %v12961_v29  ;;  %v11330_v29 = vld [vmem:[#allocation2 + $0x14] sm:$0x1] }
  0xca   : > { %9398 = vmatmul.mubr.msk.bf16.vlgmr.msra.gmra.mrb[0].mxu0 %vm1610_vm10, %v12962_v63  ;;  %v2625_v63 = vshll.u32 %v2570_v38, 16 }
  0xcb   : > { %9418 = vmatpush3.bf16.msra.mxu0 %v10192_v44  ;;  %9401 = vmatprep.mubr.msk.bf16.mxu0 %vm1610_vm10, %v8476_v5  ;;  %v11337_v5 = vld [vmem:[%s12904_s5 + $0xa0] sm:$0xff]  }
  0xcc   : > { %9419 = vmatprep.subr.bf16.mxu0 %v10193_v31 }
  0xcf   : > { %9420 = vmatpush3.bf16.msra.mxu0 %v10193_v31  ;;  %v2622_v31 = vshrl.u32 %v2570_v38, 16 }
  0xd0   : > { %9421 = vmatprep.subr.bf16.mxu0 %v10194_v45 }
  0xd1   : > { %v2624_v53 = vrot.slane %v2622_v31, 4  ;;  %v2641_v31 = vshll.u32 %v11362_v27, 16 }
  0xd2   : > { %9402 = vmatmul.mubr.msk.bf16.gmra.mrb[4].mxu0 %vm1610_vm10, %v8477_v0 }
  0xd3   : > { %9405 = vmatprep.mubr.msk.bf16.mxu0 %vm1610_vm10, %v8478_v61  ;;  %9422 = vmatpush3.bf16.msra.mxu0 %v10194_v45  ;;  %v12965_v61 = vcombine.low %v11167_v22, %v11180_v41  ;;  %v804_v22 = vmul.f32 %v11184_v17, %v796_v59  ;;  %v10204_v41 = vld [vmem:[%s12904_s5 + $0x90] sm:$0xff]   ;;  %v10202_v17 = vld [vmem:[#allocation2 + $0x3c] sm:$0xff]   ;;  %v2573_v45 = vld [vmem:[#allocation2 + $0x24] sm:$0xf] }
  0xd4   : > { %9423 = vmatprep.subr.bf16.mxu0 %v10195_v1  ;;  %v2649_v20 = vshll.u32 %v2573_v45, 16 }
  0xd5   : > { %v812_v44 = vmul.f32 0.1, %v804_v22  ;;  %v2627_v22 = vrot.slane %v2625_v63, 5 }
  0xd7   : > { %9424 = vmatpush3.bf16.msra.mxu0 %v10195_v1  ;;  %v820_v34 = vadd.f32 %v812_v44, %v788_v4  ;;  %v2646_v44 = vshrl.u32 %v2573_v45, 16  ;;  %v11375_v45 = vld [vmem:[#allocation2 + $0x40] sm:$0xf] }
  0xd8   : > { %9445 = vmatprep.subr.bf16.mxu0 %v10197_v16 }
  0xd9   : > { %v9037_v11 = vpack.c.bf16 %v820_v34, %v820_v34 }
  0xda   : > { %9406 = vmatmul.mubr.msk.bf16.gmra.mrb[8].mxu0 %vm1610_vm10, %v8479_v25  ;;  %v10201_v25 = vld [vmem:[%s12904_s5 + $0x88] sm:$0xff]  }
  0xdb   : > { %9409 = vmatprep.mubr.msk.bf16.mxu0 %vm1610_vm10, %v12963_v10  ;;  %v964_v46 = vshrl.u32 %v9037_v11, 16  ;;  %v967_v55 = vshll.u32 %v9037_v11, 16  ;;  %v10205_v10 = vld [vmem:[#allocation2 + $0x54] sm:$0xff]   ;;  %v2628_v11 = vor.u32 %v2627_v22, %v2624_v53  ;;  %v2707_v22 = vshrl.u32 %v11375_v45, 16 }
  0xdd   : > { %v966_v39 = vrot.slane %v964_v46, 7  ;;  %v11368_v46 = vld [vmem:[#allocation2 + $0x2c] sm:$0x1] }
  0xdf   : > { %v969_v0 = vor.u32 %v967_v55, %v966_v39  ;;  %v970_v1 = vrot.slane %v966_v39, 4  ;;  %v2579_v55 = vld [vmem:[#allocation2 + $0x3c] sm:$0xf] }
  0xe0   : > { %v2697_v53 = vshll.u32 %v2579_v55, 16 }
  0xe2   : > { %9410 = vmatmul.mubr.msk.bf16.gmra.mrb[12].mxu0 %vm1610_vm10, %v12964_v30  ;;  %v2617_v30 = vshll.u32 %v11330_v29, 16 }
  0xe3   : > { %9413 = vmatprep.mubr.msk.bf16.mxu0 %vm1610_vm10, %v12965_v61  ;;  %v11345_v61 = vld [vmem:[#allocation2 + $0x28] sm:$0xf] }
  0xe4   : > { %v2655_v4 = vshll.u32 %v11345_v61, 16  ;;  %v2659_v19 = vshrl.u32 %v11345_v61, 16 }
  0xe6   : > { %v2661_v39 = vrot.slane %v2659_v19, 4 }
  0xea   : > { %9414 = vmatmul.mubr.msk.bf16.gmra.mrb[16].mxu0 %vm1610_vm10, %v12966_v62  ;;  %v2604_v62 = vor.u32 %v2603_v51, %v2600_v49  ;;  %v2648_v49 = vrot.slane %v2646_v44, 4  ;;  %v2651_v51 = vrot.slane %v2649_v20, 5  ;;  %v2582_v44 = vld [vmem:[#allocation2 + $0x48] sm:$0xf] }
  0xeb   : > { %9425 = vmatprep.mubr.msk.bf16.mxu0 %vm1610_vm10, %v10196_v28  ;;  %v994_v28 = vld [vmem:[#allocation2 + $0x84] sm:$0xf] }
  0xec   : > { %v995_v59 = vsel %vm10730_vm6, %v969_v0, %v994_v28  ;;  %v2605_v24 = vrot.slane %v2604_v62, 4  ;;  %v11377_v0 = vrot.slane %v2679_v43, 5  ;;  %v2652_v62 = vor.u32 %v2651_v51, %v2648_v49 }
  0xed   : > { %996 = vst [vmem:[#allocation2 + $0x84] sm:$0xf] %v995_v59  ;;  %v2694_v59 = vshrl.u32 %v2579_v55, 16  ;;  %v2699_v49 = vrot.slane %v2697_v53, 5 }
  0xee   : > { %v2653_v43 = vrot.slane %v2652_v62, 4 }
  0xf2   : > { %9426 = vmatmul.mubr.msk.bf16.vlgmr.msra.gmra.mrb[0].mxu0 %vm1610_vm10, %v10198_v9  ;;  %v2614_v9 = vor.u32 %v2613_v26, %v11332_v6  ;;  %v11372_v26 = vrot.slane %v2655_v4, 5 }
  0xf3   : > { %9446 = vmatpush3.bf16.msra.mxu0 %v10197_v16  ;;  %9429 = vmatprep.mubr.msk.bf16.mxu0 %vm1610_vm10, %v10199_v8  ;;  %v977_v16 = vor.u32 %v975_v3, %v11339_v48  ;;  %v2576_v8 = vld [vmem:[#allocation2 + $0x30] sm:$0xf] }
  0xf4   : > { %9447 = vmatprep.subr.bf16.mxu0 %v10201_v25  ;;  %v2673_v34 = vshll.u32 %v2576_v8, 16  ;;  %v10208_v3 = vld [vmem:[#allocation2 + $0x6c] sm:$0xff]  }
  0xf7   : > { %9448 = vmatpush3.bf16.msra.mxu0 %v10201_v25  ;;  %v978_v25 = vsel %vm10724_vm5, %v970_v1, %v977_v16  ;;  %v2685_v1 = vrot.slane %v2683_v57, 4  ;;  %v2610_v16 = vsel %vm10813_vm11, %v2605_v24, %v11332_v6  ;;  %v2703_v6 = vshll.u32 %v11375_v45, 16  ;;  %v2585_v24 = vld [vmem:[#allocation2 + $0x54] sm:$0xf] }
  0xf8   : > { %9449 = vmatprep.subr.bf16.mxu0 %v10204_v41  ;;  %997 = vst.msk [vmem:[#allocation2 + $0x88] sm:$0xf] %vm822_vm0, %v978_v25  ;;  %v2689_v25 = vshll.u32 %v11370_v58, 16 }
  0xf9   : > { %v11400_v51 = vrot.slane %v2703_v6, 5 }
  0xfa   : > { %9430 = vmatmul.mubr.msk.bf16.gmra.mrb[4].mxu0 %vm1610_vm10, %v10200_v35  ;;  %v2670_v35 = vshrl.u32 %v2576_v8, 16  ;;  %v2665_v8 = vshll.u32 %v11368_v46, 16 }
  0xfb   : > { %9433 = vmatprep.mubr.msk.bf16.mxu0 %vm1610_vm10, %v10202_v17  ;;  %9450 = vmatpush3.bf16.msra.mxu0 %v10204_v41  ;;  %v2635_v41 = vshrl.u32 %v11341_v32, 16  ;;  %v2619_v17 = vrot.slane %v2617_v30, 5  ;;  %v2629_v30 = vrot.slane %v2628_v11, 4  ;;  %v11398_v11 = vld [vmem:[#allocation2 + $0x44] sm:$0x1] }
  0xfc   : > { %9451 = vmatprep.subr.bf16.mxu0 %v10207_v12  ;;  %v2672_v63 = vrot.slane %v2670_v35, 4  ;;  %v2643_v35 = vrot.slane %v2641_v31, 5  ;;  %v11402_v31 = vld [vmem:[#allocation2 + $0x58] sm:$0xf] }
  0xfd   : > { %v2637_v38 = vrot.slane %v2635_v41, 4  ;;  %v2686_v41 = vor.u32 %v2685_v1, %v11377_v0  ;;  %v2634_v4 = vsel %vm10813_vm11, %v2629_v30, %v11366_v14  ;;  %v2755_v53 = vshrl.u32 %v11402_v31, 16 }
  0xff   : > { %9452 = vmatpush3.bf16.msra.mxu0 %v10207_v12  ;;  %v2615_v12 = vrot.slane %v2614_v9, 4  ;;  %v2638_v28 = vor.u32 %v2637_v38, %v11366_v14  ;;  %v2662_v9 = vor.u32 %v2661_v39, %v11372_v26  ;;  %v2696_v38 = vrot.slane %v2694_v59, 4 }
 0x100   : > { %9473 = vmatprep.subr.bf16.mxu0 %v11337_v5  ;;  %v2709_v39 = vrot.slane %v2707_v22, 4  ;;  %v2718_v14 = vshrl.u32 %v2582_v44, 16  ;;  %v2751_v59 = vshll.u32 %v11402_v31, 16 }
 0x101   : > { %v2639_v19 = vrot.slane %v2638_v28, 4  ;;  %v2663_v57 = vrot.slane %v2662_v9, 4  ;;  %v2658_v28 = vsel %vm10813_vm11, %v2653_v43, %v11372_v26  ;;  %v2713_v9 = vshll.u32 %v11398_v11, 16  ;;  %v11426_v43 = vld [vmem:[#allocation2 + $0x50] sm:$0x1] }
 0x102   : > { %9434 = vmatmul.mubr.msk.bf16.gmra.mrb[8].mxu0 %vm1610_vm10, %v10203_v42  ;;  %v2675_v42 = vrot.slane %v2673_v34, 5  ;;  %v11396_v34 = vld [vmem:[#allocation2 + $0x4c] sm:$0xf]  ;;  %v2720_v22 = vrot.slane %v2718_v14, 4 }
 0x103   : > { %9437 = vmatprep.mubr.msk.bf16.mxu0 %vm1610_vm10, %v10205_v10  ;;  %v2620_v10 = vsel %vm10813_vm11, %v2615_v12, %v2619_v17  ;;  %v10209_v17 = vld [vmem:[#allocation2 + $0x78] sm:$0xff]   ;;  %v2691_v12 = vrot.slane %v2689_v25, 5  ;;  %v2731_v1 = vshrl.u32 %v11396_v34, 16  ;;  %v2644_v30 = vsel %vm10813_vm11, %v2639_v19, %v2643_v35 }
 0x104   : > { %v2676_v54 = vor.u32 %v2675_v42, %v2672_v63  ;;  %v8538_v20 = vcombine.low %v2610_v16, %v2620_v10  ;;  %v2721_v63 = vshll.u32 %v2582_v44, 16  ;;  %v2727_v42 = vshll.u32 %v11396_v34, 16 }
 0x105   : > { %v2742_v16 = vshrl.u32 %v2585_v24, 16  ;;  %v2745_v10 = vshll.u32 %v2585_v24, 16  ;;  %v2710_v25 = vor.u32 %v2709_v39, %v11400_v51  ;;  %v2733_v44 = vrot.slane %v2731_v1, 4  ;;  %v11430_v39 = vld [vmem:[#allocation2 + $0x64] sm:$0xf] }
 0x106   : > { %v2677_v55 = vrot.slane %v2676_v54, 4  ;;  %v2723_v54 = vrot.slane %v2721_v63, 5  ;;  %v8539_v35 = vcombine.low %v2634_v4, %v2644_v30  ;;  %v2737_v63 = vshll.u32 %v11426_v43, 16  ;;  %v2591_v1 = vld [vmem:[#allocation2 + $0x6c] sm:$0xf] }
 0x107   : > { %v2747_v19 = vrot.slane %v2745_v10, 5 }
 0x108   : > { %v2682_v6 = vsel %vm10813_vm11, %v2677_v55, %v11377_v0  ;;  %v2757_v0 = vrot.slane %v2755_v53, 4  ;;  %v10211_v55 = vld [vmem:[%s12904_s5 + $0xa8] sm:$0xff]   ;;  %v2724_v4 = vor.u32 %v2723_v54, %v2720_v22  ;;  %v10212_v53 = vld [vmem:[%s12904_s5 + $0xb0] sm:$0xff]  }
 0x10a   : > { %9438 = vmatmul.mubr.msk.bf16.gmra.mrb[12].mxu0 %vm1610_vm10, %v10206_v15  ;;  %v2667_v15 = vrot.slane %v2665_v8, 5  ;;  %v2700_v8 = vor.u32 %v2699_v49, %v2696_v38  ;;  %v2711_v38 = vrot.slane %v2710_v25, 4  ;;  %v11428_v49 = vrot.slane %v2751_v59, 5 }
 0x10b   : > { %9441 = vmatprep.mubr.msk.bf16.mxu0 %vm1610_vm10, %v10208_v3  ;;  %v2687_v3 = vrot.slane %v2686_v41, 4  ;;  %v11424_v41 = vrot.slane %v2727_v42, 5  ;;  %v2725_v54 = vrot.slane %v2724_v4, 4 }
 0x10c   : > { %v2668_v62 = vsel %vm10813_vm11, %v2663_v57, %v2667_v15  ;;  %v2588_v57 = vld [vmem:[#allocation2 + $0x60] sm:$0xf]  ;;  %v2701_v15 = vrot.slane %v2700_v8, 4  ;;  %v2758_v25 = vor.u32 %v2757_v0, %v11428_v49 }
 0x10d   : > { %v2692_v26 = vsel %vm10813_vm11, %v2687_v3, %v2691_v12  ;;  %v8540_v24 = vcombine.low %v2658_v28, %v2668_v62  ;;  %v11435_v3 = vld [vmem:[#allocation2 + $0x5c] sm:$0x1]  ;;  %v2734_v14 = vor.u32 %v2733_v44, %v11424_v41  ;;  %v2766_v10 = vshrl.u32 %v2588_v57, 16 }
 0x10e   : > { %v8541_v12 = vcombine.low %v2682_v6, %v2692_v26  ;;  %v2769_v30 = vshll.u32 %v2588_v57, 16  ;;  %v2775_v28 = vshll.u32 %v11430_v39, 16  ;;  %v2779_v62 = vshrl.u32 %v11430_v39, 16 }
 0x10f   : > { %v2761_v59 = vshll.u32 %v11435_v3, 16  ;;  %v2790_v6 = vshrl.u32 %v2591_v1, 16  ;;  %v2739_v44 = vrot.slane %v2737_v63, 5 }
 0x110   : > { %v2781_v57 = vrot.slane %v2779_v62, 4 }
 0x111   : > { %v2763_v0 = vrot.slane %v2761_v59, 5  ;;  %v2792_v4 = vrot.slane %v2790_v6, 4  ;;  %v2817_v59 = vshll.u32 %v2594_v56, 16  ;;  %v2823_v6 = vshll.u32 %v11465_v21, 16 }
 0x112   : > { %9442 = vmatmul.mubr.msk.bf16.gmra.mrb[16].mxu0 %vm1610_vm10, %v10209_v17  ;;  %v2715_v17 = vrot.slane %v2713_v9, 5  ;;  %v2706_v9 = vsel %vm10813_vm11, %v2701_v15, %v11400_v51  ;;  %v2735_v51 = vrot.slane %v2734_v14, 4 }
 0x113   : > { %9453 = vmatprep.mubr.msk.bf16.mxu0 %vm1610_vm10, %v8538_v20  ;;  %v2744_v20 = vrot.slane %v2742_v16, 4  ;;  %v11439_v16 = vld [vmem:[#allocation2 + $0x70] sm:$0xf] }
 0x114   : > { %v2716_v8 = vsel %vm10813_vm11, %v2711_v38, %v2715_v17  ;;  %v2799_v26 = vshll.u32 %v11439_v16, 16  ;;  %v2803_v22 = vshrl.u32 %v11439_v16, 16  ;;  %v11460_v17 = vrot.slane %v2775_v28, 5  ;;  %v11473_v28 = vld [vmem:[#allocation2 + $0x74] sm:$0x1] }
 0x115   : > { %v2748_v42 = vor.u32 %v2747_v19, %v2744_v20  ;;  %v11458_v19 = vld [vmem:[#allocation2 + $0x68] sm:$0x1]  ;;  %v8542_v15 = vcombine.low %v2706_v9, %v2716_v8  ;;  %v2759_v38 = vrot.slane %v2758_v25, 4  ;;  %v2814_v25 = vshrl.u32 %v2594_v56, 16 }
 0x116   : > { %v2801_v63 = vrot.slane %v2799_v26, 5  ;;  %v2782_v8 = vor.u32 %v2781_v57, %v11460_v17  ;;  %v2825_v57 = vrot.slane %v2823_v6, 5 }
 0x117   : > { %v2749_v20 = vrot.slane %v2748_v42, 4  ;;  %v2805_v42 = vrot.slane %v2803_v22, 4  ;;  %v11489_v22 = vld [vmem:[%s12904_s5 + $0xc0] sm:$0xff]   ;;  %v2816_v56 = vrot.slane %v2814_v25, 4  ;;  %v3063_v25 = vld [vmem:[#allocation2 + $0xc] sm:$0xe] }
 0x119   : > { %v2754_v62 = vsel %vm10813_vm11, %v2749_v20, %v11428_v49  ;;  %v2806_v26 = vor.u32 %v2805_v42, %v2801_v63  ;;  %v2809_v49 = vshll.u32 %v11473_v28, 16  ;;  %v2783_v20 = vrot.slane %v2782_v8, 4  ;;  %v998_v42 = vld [vmem:[#allocation2 + $0x8c] sm:$0x1] }
 0x11a   : > { %9454 = vmatmul.mubr.msk.bf16.vlgmr.msra.gmra.mrb[0].mxu0 %vm1610_vm10, %v8539_v35  ;;  %v2768_v35 = vrot.slane %v2766_v10, 4  ;;  %v2730_v10 = vsel %vm10813_vm11, %v2725_v54, %v11424_v41  ;;  %v2764_v41 = vsel %vm10813_vm11, %v2759_v38, %v2763_v0  ;;  %v979_v38 = vrot.slane %v11339_v48, 4 }
 0x11b   : > { %9474 = vmatpush3.bf16.msra.mxu0 %v11337_v5  ;;  %9457 = vmatprep.mubr.msk.bf16.mxu0 %vm1610_vm10, %v8540_v24  ;;  %v2793_v5 = vshll.u32 %v2591_v1, 16  ;;  %v2771_v24 = vrot.slane %v2769_v30, 5  ;;  %v10213_v1 = vld [vmem:[%s12904_s5 + $0xb8] sm:$0xff]   ;;  %v2785_v30 = vshll.u32 %v11458_v19, 16 }
 0x11c   : > { %9475 = vmatprep.subr.bf16.mxu0 %v10211_v55 }
 0x11d   : > { %v2795_v14 = vrot.slane %v2793_v5, 5  ;;  %v2772_v9 = vor.u32 %v2771_v24, %v2768_v35  ;;  %v2827_v5 = vshrl.u32 %v11465_v21, 16  ;;  %v11491_v35 = vld [vmem:[#allocation2 + $0x80] sm:$0x1]  ;;  %v2819_v24 = vrot.slane %v2817_v59, 5 }
 0x11e   : > { %v2833_v48 = vshll.u32 %v11491_v35, 16 }
 0x11f   : > { %9476 = vmatpush3.bf16.msra.mxu0 %v10211_v55  ;;  %v2740_v55 = vsel %vm10813_vm11, %v2735_v51, %v2739_v44  ;;  %v8544_v51 = vcombine.low %v2754_v62, %v2764_v41  ;;  %v2773_v44 = vrot.slane %v2772_v9, 4  ;;  %v999_v62 = vsel %vm10740_vm7, %v979_v38, %v998_v42 }
 0x120   : > { %9477 = vmatprep.subr.bf16.mxu0 %v10212_v53  ;;  %v8543_v54 = vcombine.low %v2730_v10, %v2740_v55  ;;  %v2820_v55 = vor.u32 %v2819_v24, %v2816_v56  ;;  %1000 = vst [vmem:[#allocation2 + $0x8c] sm:$0x1] %v999_v62  ;;  %v3065_v56 = vld [vmem:[#allocation2 + $0x24] sm:$0xe] }
 0x121   : > { %v2778_v10 = vsel %vm10813_vm11, %v2773_v44, %v11460_v17  ;;  %v3105_v17 = vrot.slane %v11319_v36, 5 }
 0x122   : > { %9458 = vmatmul.mubr.msk.bf16.gmra.mrb[4].mxu0 %vm1610_vm10, %v8541_v12  ;;  %v2796_v12 = vor.u32 %v2795_v14, %v2792_v4  ;;  %v2807_v4 = vrot.slane %v2806_v26, 4  ;;  %v2811_v14 = vrot.slane %v2809_v49, 5  ;;  %v2821_v6 = vrot.slane %v2820_v55, 4  ;;  %v3066_v55 = vld [vmem:[#allocation2 + $0x30] sm:$0xe] }
 0x123   : > { %9461 = vmatprep.mubr.msk.bf16.mxu0 %vm1610_vm10, %v8542_v15  ;;  %9478 = vmatpush3.bf16.msra.mxu0 %v10212_v53  ;;  %v2787_v53 = vrot.slane %v2785_v30, 5  ;;  %v2829_v15 = vrot.slane %v2827_v5, 4  ;;  %v8562_v26 = vrot.slane %v3063_v25, 9  ;;  %v3107_v49 = vrot.slane %v3105_v17, 4 }
 0x124   : > { %9479 = vmatprep.subr.bf16.mxu0 %v10213_v1  ;;  %v2797_v0 = vrot.slane %v2796_v12, 4  ;;  %v2812_v8 = vsel %vm10813_vm11, %v2807_v4, %v2811_v14  ;;  %v2835_v12 = vrot.slane %v2833_v48, 5  ;;  %v8564_v4 = vrot.slane %v3065_v56, 9 }
 0x125   : > { %v2830_v30 = vor.u32 %v2829_v15, %v2825_v57 }
 0x126   : > { %v2802_v9 = vsel %vm10813_vm11, %v2797_v0, %v2801_v63  ;;  %v2826_v63 = vsel %vm10813_vm11, %v2821_v6, %v2825_v57  ;;  %v3115_v57 = vrot.slane %v11362_v27, 5  ;;  %v3140_v6 = vrot.slane %v11396_v34, 5 }
 0x127   : > { %9480 = vmatpush3.bf16.msra.mxu0 %v10213_v1  ;;  %v2788_v1 = vsel %vm10813_vm11, %v2783_v20, %v2787_v53  ;;  %v8546_v59 = vcombine.low %v2802_v9, %v2812_v8  ;;  %v2831_v5 = vrot.slane %v2830_v30, 4  ;;  %v3112_v53 = vrot.slane %v11341_v32, 5  ;;  %v3064_v20 = vld [vmem:[#allocation2 + $0x18] sm:$0xe]  ;;  %v3067_v30 = vld [vmem:[#allocation2 + $0x3c] sm:$0xe] }
 0x128   : > { %9501 = vmatprep.subr.bf16.mxu0 %v11489_v22  ;;  %v8545_v41 = vcombine.low %v2778_v10, %v2788_v1  ;;  %v8563_v38 = vrot.slane %v3064_v20, 9  ;;  %v3122_v32 = vrot.slane %v11368_v46, 5  ;;  %v3126_v10 = vrot.slane %v11355_v37, 5  ;;  %v10215_v37 = vld [vmem:[%s12904_s5 + $0xc8] sm:$0xff]  }
 0x129   : > { %v2836_v36 = vsel %vm10813_vm11, %v2831_v5, %v2835_v12  ;;  %v3114_v0 = vrot.slane %v3112_v53, 4  ;;  %v3133_v46 = vrot.slane %v11375_v45, 5  ;;  %v8565_v9 = vrot.slane %v3066_v55, 9  ;;  %v3068_v12 = vld [vmem:[#allocation2 + $0x48] sm:$0xe] }
 0x12a   : > { %9462 = vmatmul.mubr.msk.bf16.gmra.mrb[8].mxu0 %vm1610_vm10, %v8543_v54  ;;  %v3108_v54 = vrot.slane %v11330_v29, 5  ;;  %v3119_v29 = vrot.slane %v11345_v61, 5  ;;  %v8547_v24 = vcombine.low %v2826_v63, %v2836_v36  ;;  %v3113_v42 = vsel %vm11056_vm14, %v8563_v38, %v3112_v53 }
 0x12b   : > { %9465 = vmatprep.mubr.msk.bf16.mxu0 %vm1610_vm10, %v8544_v51  ;;  %v3106_v51 = vsel %vm11056_vm14, %v8562_v26, %v3105_v17  ;;  %v3116_v61 = vsel %vm11056_vm14, %v3114_v0, %v3115_v57  ;;  %v3128_v8 = vrot.slane %v3126_v10, 4  ;;  %v3129_v17 = vrot.slane %v11370_v58, 5  ;;  %v10219_v0 = vld [vmem:[%s12904_s5 + $0xe0] sm:$0xff]   ;;  %v3071_v57 = vld [vmem:[#allocation2 + $0x6c] sm:$0xe] }
 0x12c   : > { %v3109_v44 = vsel %vm11056_vm14, %v3107_v49, %v3108_v54  ;;  %v3121_v14 = vrot.slane %v3119_v29, 4  ;;  %v3120_v1 = vsel %vm11056_vm14, %v8564_v4, %v3119_v29  ;;  %v8581_v48 = vcombine.low %v3113_v42, %v3116_v61  ;;  %v3069_v49 = vld [vmem:[#allocation2 + $0x54] sm:$0xe]  ;;  %v10217_v29 = vld [vmem:[%s12904_s5 + $0xd8] sm:$0xff]  }
 0x12d   : > { %v8580_v15 = vcombine.low %v3106_v51, %v3109_v44  ;;  %v8566_v25 = vrot.slane %v3067_v30, 9  ;;  %v3127_v45 = vsel %vm11056_vm14, %v8565_v9, %v3126_v10  ;;  %v3130_v58 = vsel %vm11056_vm14, %v3128_v8, %v3129_v17 }
 0x12e   : > { %v3123_v27 = vsel %vm11056_vm14, %v3121_v14, %v3122_v32  ;;  %v3147_v26 = vrot.slane %v11402_v31, 5  ;;  %v8583_v54 = vcombine.low %v3127_v45, %v3130_v58  ;;  %v8567_v36 = vrot.slane %v3068_v12, 9  ;;  %v10226_v45 = vld [vmem:[%s12904_s5 + $0xf0] sm:$0xff]   ;;  %v3665_v58 = vld [vmem:[#allocation2 + $0x18] sm:$0xf] }
 0x12f   : > { %v8582_v62 = vcombine.low %v3120_v1, %v3123_v27  ;;  %v3134_v5 = vsel %vm11056_vm14, %v8566_v25, %v3133_v46  ;;  %v3142_v34 = vrot.slane %v3140_v6, 4  ;;  %v3143_v53 = vrot.slane %v11426_v43, 5  ;;  %v10218_v25 = vld [vmem:[#allocation2 + $0x18] sm:$0xff]  }
 0x130   : > { %v8568_v51 = vrot.slane %v3069_v49, 9  ;;  %v3149_v44 = vrot.slane %v3147_v26, 4  ;;  %v3150_v20 = vrot.slane %v11435_v3, 5  ;;  %v3141_v31 = vsel %vm11056_vm14, %v8567_v36, %v3140_v6  ;;  %v10222_v6 = vld [vmem:[#allocation2 + $0x3c] sm:$0xff]   ;;  %v3668_v49 = vld [vmem:[#allocation2 + $0x24] sm:$0xf] }
 0x131   : > { %v3144_v56 = vsel %vm11056_vm14, %v3142_v34, %v3143_v53  ;;  %v3154_v43 = vrot.slane %v11430_v39, 5  ;;  %v3161_v38 = vrot.slane %v11439_v16, 5  ;;  %v3157_v39 = vrot.slane %v11458_v19, 5  ;;  %v11617_v53 = vld [vmem:[#allocation2 + $0x28] sm:$0xf] }
 0x132   : > { %9466 = vmatmul.mubr.msk.bf16.gmra.mrb[12].mxu0 %vm1610_vm10, %v8545_v41  ;;  %v3135_v41 = vrot.slane %v3133_v46, 4  ;;  %v3148_v3 = vsel %vm11056_vm14, %v8568_v51, %v3147_v26  ;;  %v8585_v4 = vcombine.low %v3141_v31, %v3144_v56  ;;  %v8570_v61 = vrot.slane %v3071_v57, 9  ;;  %v10229_v26 = vld [vmem:[%s12904_s5 + $0xf8] sm:$0xff]   ;;  %v3671_v31 = vld [vmem:[#allocation2 + $0x30] sm:$0xf] }
 0x133   : > { %9469 = vmatprep.mubr.msk.bf16.mxu0 %vm1610_vm10, %v8546_v59  ;;  %v3136_v59 = vrot.slane %v11398_v11, 5  ;;  %v3156_v42 = vrot.slane %v3154_v43, 4  ;;  %v3163_v10 = vrot.slane %v3161_v38, 4  ;;  %v3164_v1 = vrot.slane %v11473_v28, 5  ;;  %v3072_v28 = vld [vmem:[#allocation2 + $0x78] sm:$0xe] }
 0x134   : > { %v3168_v55 = vrot.slane %v11465_v21, 5  ;;  %v3162_v19 = vsel %vm11056_vm14, %v8570_v61, %v3161_v38  ;;  %v3171_v8 = vrot.slane %v11491_v35, 5  ;;  %v10223_v35 = vld [vmem:[%s12904_s5 + $0xe8] sm:$0xff]   ;;  %v3696_v12 = vshrl.u32 %v3665_v58, 16  ;;  %v10227_v38 = vld [vmem:[#allocation2 + $0x60] sm:$0xff]  }
 0x135   : > { %v3137_v11 = vsel %vm11056_vm14, %v3135_v41, %v3136_v59  ;;  %v3158_v27 = vsel %vm11056_vm14, %v3156_v42, %v3157_v39  ;;  %v3165_v46 = vsel %vm11056_vm14, %v3163_v10, %v3164_v1  ;;  %v10220_v41 = vld [vmem:[#allocation2 + $0x24] sm:$0xff]   ;;  %v10221_v59 = vld [vmem:[#allocation2 + $0x30] sm:$0xff]   ;;  %v3720_v51 = vshrl.u32 %v3668_v49, 16  ;;  %v3674_v1 = vld [vmem:[#allocation2 + $0x3c] sm:$0xf] }
 0x136   : > { %v8584_v63 = vcombine.low %v3134_v5, %v3137_v11  ;;  %v3170_v9 = vrot.slane %v3168_v55, 4  ;;  %v10224_v5 = vld [vmem:[#allocation2 + $0x48] sm:$0xff]   ;;  %v11608_v11 = vld [vmem:[#allocation2 + $0x1c] sm:$0xf]  ;;  %v3698_v36 = vrot.slane %v3696_v12, 4  ;;  %v3744_v42 = vshrl.u32 %v3671_v31, 16 }
 0x137   : > { %v3747_v39 = vshll.u32 %v3671_v31, 16 }
 0x138   : > { %v3172_v17 = vsel %vm11056_vm14, %v3170_v9, %v3171_v8  ;;  %v3771_v9 = vshll.u32 %v3674_v1, 16 }
 0x13a   : > { %9470 = vmatmul.mubr.msk.bf16.gmra.mrb[16].mxu0 %vm1610_vm10, %v8547_v24  ;;  %v3151_v24 = vsel %vm11056_vm14, %v3149_v44, %v3150_v20  ;;  %v3723_v44 = vshll.u32 %v3668_v49, 16  ;;  %v11622_v20 = vld [vmem:[%s12904_s5 + $0x100] sm:$0xff]  }
 0x13b   : > { %9481 = vmatprep.mubr.msk.bf16.mxu0 %vm1610_vm10, %v8580_v15  ;;  %v3070_v15 = vld [vmem:[#allocation2 + $0x60] sm:$0xe]  ;;  %v8586_v14 = vcombine.low %v3148_v3, %v3151_v24  ;;  %v3729_v3 = vshll.u32 %v11617_v53, 16  ;;  %v3733_v24 = vshrl.u32 %v11617_v53, 16 }
 0x13c   : > { %v8569_v32 = vrot.slane %v3070_v15, 9  ;;  %v11628_v15 = vld [vmem:[#allocation2 + $0x34] sm:$0xf] }
 0x13d   : > { %v3753_v61 = vshll.u32 %v11628_v15, 16  ;;  %v3757_v10 = vshrl.u32 %v11628_v15, 16 }
 0x13e   : > { %v3155_v16 = vsel %vm11056_vm14, %v8569_v32, %v3154_v43  ;;  %v11633_v32 = vld [vmem:[#allocation2 + $0x2c] sm:$0x1] }
 0x13f   : > { %v8587_v30 = vcombine.low %v3155_v16, %v3158_v27  ;;  %v11637_v16 = vld [vmem:[#allocation2 + $0x40] sm:$0xf] }
 0x140   : > { %v3777_v8 = vshll.u32 %v11637_v16, 16 }
 0x142   : > { %9482 = vmatmul.mubr.msk.bf16.vlgmr.msra.gmra.mrb[0].mxu0 %vm1610_vm10, %v8581_v48  ;;  %v8588_v48 = vcombine.low %v3162_v19, %v3165_v46  ;;  %v11642_v19 = vrot.slane %v3729_v3, 5  ;;  %v3735_v46 = vrot.slane %v3733_v24, 4 }
 0x143   : > { %9502 = vmatpush3.bf16.msra.mxu0 %v11489_v22  ;;  %9485 = vmatprep.mubr.msk.bf16.mxu0 %vm1610_vm10, %v8582_v62  ;;  %v10216_v22 = vld [vmem:[%s12904_s5 + $0xd0] sm:$0xff]   ;;  %v8571_v62 = vrot.slane %v3072_v28, 9 }
 0x144   : > { %9503 = vmatprep.subr.bf16.mxu0 %v10215_v37 }
 0x145   : > { %v3169_v21 = vsel %vm11056_vm14, %v8571_v62, %v3168_v55  ;;  %v3768_v62 = vshrl.u32 %v3674_v1, 16 }
 0x147   : > { %9504 = vmatpush3.bf16.msra.mxu0 %v10215_v37  ;;  %v8589_v37 = vcombine.low %v3169_v21, %v3172_v17  ;;  %v3781_v21 = vshrl.u32 %v11637_v16, 16  ;;  %v3746_v17 = vrot.slane %v3744_v42, 4  ;;  %v3770_v49 = vrot.slane %v3768_v62, 4 }
 0x148   : > { %9505 = vmatprep.subr.bf16.mxu0 %v10216_v22 }
 0x14a   : > { %9486 = vmatmul.mubr.msk.bf16.gmra.mrb[4].mxu0 %vm1610_vm10, %v8583_v54  ;;  %v3705_v54 = vshll.u32 %v11608_v11, 16 }
 0x14b   : > { %9489 = vmatprep.mubr.msk.bf16.mxu0 %vm1610_vm10, %v8584_v63  ;;  %9506 = vmatpush3.bf16.msra.mxu0 %v10216_v22  ;;  %v3699_v22 = vshll.u32 %v3665_v58, 16  ;;  %v3709_v63 = vshrl.u32 %v11608_v11, 16  ;;  %v3736_v58 = vor.u32 %v3735_v46, %v11642_v19 }
 0x14c   : > { %9507 = vmatprep.subr.bf16.mxu0 %v10217_v29  ;;  %v11624_v56 = vrot.slane %v3705_v54, 5  ;;  %v3773_v54 = vrot.slane %v3771_v9, 5 }
 0x14d   : > { %v3701_v34 = vrot.slane %v3699_v22, 5  ;;  %v3711_v43 = vrot.slane %v3709_v63, 4  ;;  %v11657_v63 = vrot.slane %v3777_v8, 5  ;;  %v3737_v24 = vrot.slane %v3736_v58, 4  ;;  %v11685_v8 = vld [vmem:[#allocation2 + $0x58] sm:$0xf] }
 0x14f   : > { %9508 = vmatpush3.bf16.msra.mxu0 %v10217_v29  ;;  %v10225_v29 = vld [vmem:[#allocation2 + $0x54] sm:$0xff]   ;;  %v3702_v57 = vor.u32 %v3701_v34, %v3698_v36  ;;  %v3712_v27 = vor.u32 %v3711_v43, %v11624_v56  ;;  %v3783_v36 = vrot.slane %v3781_v21, 4  ;;  %v11659_v34 = vld [vmem:[#allocation2 + $0x4c] sm:$0xf]  ;;  %v11666_v43 = vld [vmem:[#allocation2 + $0x44] sm:$0x1] }
 0x150   : > { %9529 = vmatprep.subr.bf16.mxu0 %v10219_v0  ;;  %v3683_v21 = vld [vmem:[#allocation2 + $0x60] sm:$0xf] }
 0x151   : > { %v3703_v28 = vrot.slane %v3702_v57, 4  ;;  %v3784_v42 = vor.u32 %v3783_v36, %v11657_v63 }
 0x152   : > { %9490 = vmatmul.mubr.msk.bf16.gmra.mrb[8].mxu0 %vm1610_vm10, %v8585_v4  ;;  %v3722_v4 = vrot.slane %v3720_v51, 4 }
 0x153   : > { %9493 = vmatprep.mubr.msk.bf16.mxu0 %vm1610_vm10, %v8586_v14  ;;  %v3725_v14 = vrot.slane %v3723_v44, 5  ;;  %v3708_v51 = vsel %vm10813_vm11, %v3703_v28, %v11624_v56  ;;  %v3805_v56 = vshrl.u32 %v11659_v34, 16  ;;  %v11676_v28 = vld [vmem:[#allocation2 + $0x50] sm:$0x1]  ;;  %v3785_v58 = vrot.slane %v3784_v42, 4 }
 0x15a   : > { %9494 = vmatmul.mubr.msk.bf16.gmra.mrb[12].mxu0 %vm1610_vm10, %v8587_v30  ;;  %v3726_v30 = vor.u32 %v3725_v14, %v3722_v4  ;;  %v3801_v4 = vshll.u32 %v11659_v34, 16  ;;  %v3774_v14 = vor.u32 %v3773_v54, %v3770_v49  ;;  %v3843_v49 = vshll.u32 %v3683_v21, 16 }
 0x15b   : > { %9497 = vmatprep.mubr.msk.bf16.mxu0 %vm1610_vm10, %v8588_v48  ;;  %v3739_v48 = vshll.u32 %v11633_v32, 16 }
 0x15c   : > { %v11653_v12 = vrot.slane %v3726_v30, 4 }
 0x15d   : > { %v11655_v22 = vrot.slane %v3739_v48, 5 }
 0x15e   : > { %v3732_v30 = vsel %vm10813_vm11, %v11653_v12, %v11642_v19  ;;  %v3811_v19 = vshll.u32 %v11676_v28, 16  ;;  %v3825_v12 = vshll.u32 %v11685_v8, 16 }
 0x15f   : > { %v3742_v48 = vsel %vm10813_vm11, %v3737_v24, %v11655_v22  ;;  %v3829_v22 = vshrl.u32 %v11685_v8, 16 }
 0x162   : > { %9498 = vmatmul.mubr.msk.bf16.gmra.mrb[16].mxu0 %vm1610_vm10, %v8589_v37  ;;  %v3749_v37 = vrot.slane %v3747_v39, 5  ;;  %v3787_v39 = vshll.u32 %v11666_v43, 16 }
 0x163   : > { %9509 = vmatprep.mubr.msk.bf16.mxu0 %vm1610_vm10, %v10218_v25  ;;  %v11648_v25 = vrot.slane %v3753_v61, 5  ;;  %v3680_v61 = vld [vmem:[#allocation2 + $0x54] sm:$0xf] }
 0x164   : > { %v3750_v44 = vor.u32 %v3749_v37, %v3746_v17  ;;  %v11687_v17 = vrot.slane %v3801_v4, 5  ;;  %v3807_v37 = vrot.slane %v3805_v56, 4  ;;  %v11709_v4 = vld [vmem:[#allocation2 + $0x5c] sm:$0x1]  ;;  %v11711_v56 = vrot.slane %v3825_v12, 5 }
 0x16a   : > { %9510 = vmatmul.mubr.msk.bf16.vlgmr.msra.gmra.mrb[0].mxu0 %vm1610_vm10, %v10220_v41  ;;  %v3759_v41 = vrot.slane %v3757_v10, 4  ;;  %v10231_v10 = vld [vmem:[#allocation2 + $0x84] sm:$0xff]  }
 0x16b   : > { %9530 = vmatpush3.bf16.msra.mxu0 %v10219_v0  ;;  %9513 = vmatprep.mubr.msk.bf16.mxu0 %vm1610_vm10, %v10221_v59  ;;  %v11630_v0 = vld [vmem:[#allocation2 + $0x20] sm:$0x1]  ;;  %v10228_v59 = vld [vmem:[#allocation2 + $0x6c] sm:$0xff]  }
 0x16c   : > { %9531 = vmatprep.subr.bf16.mxu0 %v10223_v35  ;;  %v3715_v55 = vshll.u32 %v11630_v0, 16 }
 0x16f   : > { %9532 = vmatpush3.bf16.msra.mxu0 %v10223_v35  ;;  %v3713_v35 = vrot.slane %v3712_v27, 4  ;;  %v3751_v27 = vrot.slane %v3750_v44, 4 }
 0x170   : > { %9533 = vmatprep.subr.bf16.mxu0 %v10226_v45 }
 0x171   : > { %v3756_v54 = vsel %vm10813_vm11, %v3751_v27, %v11648_v25 }
 0x172   : > { %9514 = vmatmul.mubr.msk.bf16.gmra.mrb[4].mxu0 %vm1610_vm10, %v10222_v6  ;;  %v11651_v6 = vld [vmem:[#allocation2 + $0x38] sm:$0x1] }
 0x173   : > { %9517 = vmatprep.mubr.msk.bf16.mxu0 %vm1610_vm10, %v10224_v5  ;;  %9534 = vmatpush3.bf16.msra.mxu0 %v10226_v45  ;;  %v3717_v45 = vrot.slane %v3715_v55, 5  ;;  %v10230_v5 = vld [vmem:[#allocation2 + $0x78] sm:$0xff]   ;;  %v3763_v31 = vshll.u32 %v11651_v6, 16 }
 0x174   : > { %9535 = vmatprep.subr.bf16.mxu0 %v10229_v26 }
 0x175   : > { %v3718_v3 = vsel %vm10813_vm11, %v3713_v35, %v3717_v45  ;;  %v3765_v46 = vrot.slane %v3763_v31, 5  ;;  %v11689_v35 = vld [vmem:[#allocation2 + $0x64] sm:$0xf]  ;;  %v3775_v45 = vrot.slane %v3774_v14, 4  ;;  %v3808_v31 = vor.u32 %v3807_v37, %v11687_v17  ;;  %v11718_v37 = vld [vmem:[#allocation2 + $0x70] sm:$0xf] }
 0x176   : > { %v8644_v1 = vcombine.low %v3708_v51, %v3718_v3  ;;  %v3849_v51 = vshll.u32 %v11689_v35, 16  ;;  %v3853_v44 = vshrl.u32 %v11689_v35, 16  ;;  %v3831_v14 = vrot.slane %v3829_v22, 4 }
 0x177   : > { %9536 = vmatpush3.bf16.msra.mxu0 %v10229_v26  ;;  %v3677_v26 = vld [vmem:[#allocation2 + $0x48] sm:$0xf] }
 0x178   : > { %9557 = vmatprep.subr.bf16.mxu0 %v11622_v20  ;;  %v3795_v57 = vshll.u32 %v3677_v26, 16  ;;  %v11715_v27 = vrot.slane %v3849_v51, 5 }
 0x17a   : > { %9518 = vmatmul.mubr.msk.bf16.gmra.mrb[8].mxu0 %vm1610_vm10, %v10225_v29  ;;  %v3760_v29 = vor.u32 %v3759_v41, %v11648_v25  ;;  %v3797_v9 = vrot.slane %v3795_v57, 5  ;;  %v3816_v41 = vshrl.u32 %v3680_v61, 16  ;;  %v3813_v57 = vrot.slane %v3811_v19, 5  ;;  %v11725_v19 = vld [vmem:[#allocation2 + $0x7c] sm:$0xf] }
 0x17b   : > { %9521 = vmatprep.mubr.msk.bf16.mxu0 %vm1610_vm10, %v10227_v38  ;;  %v3792_v38 = vshrl.u32 %v3677_v26, 16  ;;  %v3840_v26 = vshrl.u32 %v3683_v21, 16  ;;  %v3835_v21 = vshll.u32 %v11709_v4, 16 }
 0x17c   : > { %v3761_v55 = vrot.slane %v3760_v29, 4  ;;  %v3818_v3 = vrot.slane %v3816_v41, 4 }
 0x17d   : > { %v3794_v62 = vrot.slane %v3792_v38, 4  ;;  %v3780_v38 = vsel %vm10813_vm11, %v3775_v45, %v11657_v63  ;;  %v3842_v42 = vrot.slane %v3840_v26, 4  ;;  %v3873_v26 = vshll.u32 %v11718_v37, 16 }
 0x17e   : > { %v3766_v36 = vsel %vm10813_vm11, %v3761_v55, %v3765_v46  ;;  %v3855_v55 = vrot.slane %v3853_v44, 4  ;;  %v3686_v46 = vld [vmem:[#allocation2 + $0x6c] sm:$0xf]  ;;  %v3837_v44 = vrot.slane %v3835_v21, 5 }
 0x17f   : > { %v3798_v29 = vor.u32 %v3797_v9, %v3794_v62  ;;  %v3809_v62 = vrot.slane %v3808_v31, 4  ;;  %v3867_v22 = vshll.u32 %v3686_v46, 16 }
 0x180   : > { %v3856_v12 = vor.u32 %v3855_v55, %v11715_v27 }
 0x181   : > { %v3799_v63 = vrot.slane %v3798_v29, 4  ;;  %v10234_v29 = vld [vmem:[%s12904_s5 + $0x110] sm:$0xff]  }
 0x182   : > { %9522 = vmatmul.mubr.msk.bf16.gmra.mrb[12].mxu0 %vm1610_vm10, %v10228_v59  ;;  %v3819_v59 = vshll.u32 %v3680_v61, 16  ;;  %v8645_v61 = vcombine.low %v3732_v30, %v3742_v48  ;;  %v3832_v30 = vor.u32 %v3831_v14, %v11711_v56 }
 0x183   : > { %9525 = vmatprep.mubr.msk.bf16.mxu0 %vm1610_vm10, %v10230_v5  ;;  %v3789_v5 = vrot.slane %v3787_v39, 5  ;;  %v3845_v39 = vrot.slane %v3843_v49, 5  ;;  %v3877_v49 = vshrl.u32 %v11718_v37, 16 }
 0x184   : > { %v3821_v24 = vrot.slane %v3819_v59, 5  ;;  %v10233_v59 = vld [vmem:[%s12904_s5 + $0x108] sm:$0xff]  }
 0x185   : > { %v3790_v25 = vsel %vm10813_vm11, %v3785_v58, %v3789_v5  ;;  %v3846_v48 = vor.u32 %v3845_v39, %v3842_v42  ;;  %v3864_v58 = vshrl.u32 %v3686_v46, 16  ;;  %v3689_v5 = vld [vmem:[#allocation2 + $0x78] sm:$0xf]  ;;  %v3857_v42 = vrot.slane %v3856_v12, 4  ;;  %v11743_v39 = vld [vmem:[#allocation2 + $0x74] sm:$0x1] }
 0x186   : > { %v3822_v9 = vor.u32 %v3821_v24, %v3818_v3  ;;  %v8647_v41 = vcombine.low %v3780_v38, %v3790_v25  ;;  %v3888_v31 = vshrl.u32 %v3689_v5, 16  ;;  %v3891_v3 = vshll.u32 %v3689_v5, 16  ;;  %v3692_v46 = vld [vmem:[#allocation2 + $0x84] sm:$0xf]  ;;  %v11756_v5 = vld [vmem:[#allocation2 + $0x80] sm:$0x1] }
 0x187   : > { %v3901_v24 = vshrl.u32 %v11725_v19, 16  ;;  %v3833_v38 = vrot.slane %v3832_v30, 4  ;;  %v3847_v25 = vrot.slane %v3846_v48, 4 }
 0x188   : > { %v3823_v51 = vrot.slane %v3822_v9, 4  ;;  %v3890_v9 = vrot.slane %v3888_v31, 4  ;;  %v3893_v21 = vrot.slane %v3891_v3, 5  ;;  %v3907_v31 = vshll.u32 %v11756_v5, 16 }
 0x189   : > { %v3903_v48 = vrot.slane %v3901_v24, 4  ;;  %v3852_v12 = vsel %vm10813_vm11, %v3847_v25, %v11715_v27 }
 0x18a   : > { %9526 = vmatmul.mubr.msk.bf16.gmra.mrb[16].mxu0 %vm1610_vm10, %v10231_v10  ;;  %v8646_v10 = vcombine.low %v3756_v54, %v3766_v36  ;;  %v3804_v54 = vsel %vm10813_vm11, %v3799_v63, %v11687_v17  ;;  %v3814_v36 = vsel %vm10813_vm11, %v3809_v62, %v3813_v57  ;;  %v3866_v17 = vrot.slane %v3864_v58, 4  ;;  %v11745_v63 = vld [vmem:[#allocation2 + $0x88] sm:$0xf]  ;;  %v10235_v62 = vld [vmem:[%s12904_s5 + $0x118] sm:$0xff]  }
 0x18b   : > { %9537 = vmatprep.mubr.msk.bf16.mxu0 %vm1610_vm10, %v8644_v1  ;;  %v11713_v1 = vld [vmem:[#allocation2 + $0x68] sm:$0x1]  ;;  %v3869_v57 = vrot.slane %v3867_v22, 5  ;;  %v8648_v55 = vcombine.low %v3804_v54, %v3814_v36  ;;  %v3883_v58 = vshll.u32 %v11743_v39, 16  ;;  %v3915_v54 = vshll.u32 %v3692_v46, 16 }
 0x18c   : > { %v3859_v45 = vshll.u32 %v11713_v1, 16  ;;  %v3921_v36 = vshll.u32 %v11745_v63, 16 }
 0x18e   : > { %v3861_v14 = vrot.slane %v3859_v45, 5  ;;  %v3828_v45 = vsel %vm10813_vm11, %v3823_v51, %v11711_v56  ;;  %v3912_v56 = vshrl.u32 %v3692_v46, 16  ;;  %v3925_v51 = vshrl.u32 %v11745_v63, 16 }
 0x190   : > { %v3862_v22 = vsel %vm10813_vm11, %v3857_v42, %v3861_v14  ;;  %v3914_v25 = vrot.slane %v3912_v56, 4  ;;  %v3917_v14 = vrot.slane %v3915_v54, 5 }
 0x191   : > { %v8650_v3 = vcombine.low %v3852_v12, %v3862_v22  ;;  %v4161_v12 = vld [vmem:[#allocation2 + $0x18] sm:$0xe] }
 0x192   : > { %9538 = vmatmul.mubr.msk.bf16.vlgmr.msra.gmra.mrb[0].mxu0 %vm1610_vm10, %v8645_v61  ;;  %v3875_v61 = vrot.slane %v3873_v26, 5  ;;  %v3870_v26 = vor.u32 %v3869_v57, %v3866_v17  ;;  %v3927_v17 = vrot.slane %v3925_v51, 4  ;;  %v8668_v54 = vrot.slane %v4161_v12, 9 }
 0x193   : > { %9558 = vmatpush3.bf16.msra.mxu0 %v11622_v20  ;;  %9541 = vmatprep.mubr.msk.bf16.mxu0 %vm1610_vm10, %v8646_v10  ;;  %v3897_v20 = vshll.u32 %v11725_v19, 16  ;;  %v3879_v10 = vrot.slane %v3877_v49, 4  ;;  %v4206_v51 = vrot.slane %v11630_v0, 5  ;;  %v4217_v0 = vrot.slane %v11628_v15, 5 }
 0x194   : > { %9559 = vmatprep.subr.bf16.mxu0 %v10233_v59 }
 0x195   : > { %v3899_v30 = vrot.slane %v3897_v20, 5  ;;  %v3880_v49 = vor.u32 %v3879_v10, %v3875_v61  ;;  %v3871_v20 = vrot.slane %v3870_v26, 4  ;;  %v3909_v10 = vrot.slane %v3907_v31, 5 }
 0x197   : > { %9560 = vmatpush3.bf16.msra.mxu0 %v10233_v59  ;;  %v3838_v59 = vsel %vm10813_vm11, %v3833_v38, %v3837_v44  ;;  %v3904_v44 = vor.u32 %v3903_v48, %v3899_v30  ;;  %v3881_v24 = vrot.slane %v3880_v49, 4  ;;  %v3885_v38 = vrot.slane %v3883_v58, 5 }
 0x198   : > { %9561 = vmatprep.subr.bf16.mxu0 %v10234_v29  ;;  %v8649_v27 = vcombine.low %v3828_v45, %v3838_v59  ;;  %v3876_v46 = vsel %vm10813_vm11, %v3871_v20, %v3875_v61  ;;  %v4203_v58 = vrot.slane %v11608_v11, 5 }
 0x199   : > { %v3905_v57 = vrot.slane %v3904_v44, 4 }
 0x19a   : > { %9542 = vmatmul.mubr.msk.bf16.gmra.mrb[4].mxu0 %vm1610_vm10, %v8647_v41  ;;  %v3894_v41 = vor.u32 %v3893_v21, %v3890_v9  ;;  %v3886_v9 = vsel %vm10813_vm11, %v3881_v24, %v3885_v38  ;;  %v4204_v44 = vsel %vm11056_vm14, %v8668_v54, %v4203_v58 }
 0x19b   : > { %9545 = vmatprep.mubr.msk.bf16.mxu0 %vm1610_vm10, %v8648_v55  ;;  %9562 = vmatpush3.bf16.msra.mxu0 %v10234_v29  ;;  %v3923_v29 = vrot.slane %v3921_v36, 5  ;;  %v11768_v55 = vld [vmem:[#allocation2 + $0x8c] sm:$0x1]  ;;  %v3910_v59 = vsel %vm10813_vm11, %v3905_v57, %v3909_v10  ;;  %v8651_v22 = vcombine.low %v3876_v46, %v3886_v9  ;;  %v4205_v36 = vrot.slane %v4203_v58, 4  ;;  %v4164_v46 = vld [vmem:[#allocation2 + $0x3c] sm:$0xe] }
 0x19c   : > { %9563 = vmatprep.subr.bf16.mxu0 %v10235_v62  ;;  %v3895_v42 = vrot.slane %v3894_v41, 4  ;;  %v3931_v48 = vshll.u32 %v11768_v55, 16  ;;  %v4210_v41 = vrot.slane %v11617_v53, 5  ;;  %v4220_v53 = vrot.slane %v11651_v6, 5  ;;  %v4165_v9 = vld [vmem:[#allocation2 + $0x48] sm:$0xe] }
 0x19d   : > { %v3928_v21 = vor.u32 %v3927_v17, %v3923_v29  ;;  %v4207_v31 = vsel %vm11056_vm14, %v4205_v36, %v4206_v51  ;;  %v4219_v17 = vrot.slane %v4217_v0, 4  ;;  %v4224_v57 = vrot.slane %v11637_v16, 5 }
 0x19e   : > { %v3900_v45 = vsel %vm10813_vm11, %v3895_v42, %v3899_v30  ;;  %v3933_v56 = vrot.slane %v3931_v48, 5  ;;  %v8686_v24 = vcombine.low %v4204_v44, %v4207_v31  ;;  %v4231_v6 = vrot.slane %v11659_v34, 5 }
 0x19f   : > { %9564 = vmatpush3.bf16.msra.mxu0 %v10235_v62  ;;  %v3918_v62 = vor.u32 %v3917_v14, %v3914_v25  ;;  %v8652_v61 = vcombine.low %v3900_v45, %v3910_v59  ;;  %v3929_v49 = vrot.slane %v3928_v21, 4  ;;  %v4212_v25 = vrot.slane %v4210_v41, 4 }
 0x1a0   : > { %v4213_v14 = vrot.slane %v11633_v32, 5  ;;  %v4221_v32 = vsel %vm11056_vm14, %v4219_v17, %v4220_v53  ;;  %v8671_v48 = vrot.slane %v4164_v46, 9  ;;  %v4226_v45 = vrot.slane %v4224_v57, 4 }
 0x1a1   : > { %v3919_v26 = vrot.slane %v3918_v62, 4  ;;  %v3934_v11 = vsel %vm10813_vm11, %v3929_v49, %v3933_v56  ;;  %v4227_v59 = vrot.slane %v11666_v43, 5  ;;  %v8672_v58 = vrot.slane %v4165_v9, 9  ;;  %v4166_v49 = vld [vmem:[#allocation2 + $0x54] sm:$0xe] }
 0x1a2   : > { %9546 = vmatmul.mubr.msk.bf16.gmra.mrb[8].mxu0 %vm1610_vm10, %v8649_v27  ;;  %v4162_v27 = vld [vmem:[#allocation2 + $0x24] sm:$0xe]  ;;  %v4214_v15 = vsel %vm11056_vm14, %v4212_v25, %v4213_v14  ;;  %v4233_v12 = vrot.slane %v4231_v6, 4  ;;  %v4234_v16 = vrot.slane %v11676_v28, 5  ;;  %v4245_v28 = vrot.slane %v11689_v35, 5 }
 0x1a3   : > { %9549 = vmatprep.mubr.msk.bf16.mxu0 %vm1610_vm10, %v8650_v3  ;;  %v3924_v30 = vsel %vm10813_vm11, %v3919_v26, %v3923_v29  ;;  %v4163_v3 = vld [vmem:[#allocation2 + $0x30] sm:$0xe]  ;;  %v8669_v38 = vrot.slane %v4162_v27, 9  ;;  %v4228_v34 = vsel %vm11056_vm14, %v4226_v45, %v4227_v59  ;;  %v4232_v26 = vsel %vm11056_vm14, %v8672_v58, %v4231_v6  ;;  %v4167_v56 = vld [vmem:[#allocation2 + $0x60] sm:$0xe] }
 0x1a4   : > { %v8653_v20 = vcombine.low %v3924_v30, %v3934_v11  ;;  %v8670_v29 = vrot.slane %v4163_v3, 9  ;;  %v4235_v43 = vsel %vm11056_vm14, %v4233_v12, %v4234_v16  ;;  %v8673_v51 = vrot.slane %v4166_v49, 9  ;;  %v4168_v3 = vld [vmem:[#allocation2 + $0x6c] sm:$0xe] }
 0x1a5   : > { %v4211_v42 = vsel %vm11056_vm14, %v8669_v38, %v4210_v41  ;;  %v8690_v36 = vcombine.low %v4232_v26, %v4235_v43  ;;  %v4241_v11 = vrot.slane %v11709_v4, 5  ;;  %v8674_v41 = vrot.slane %v4167_v56, 9 }
 0x1a6   : > { %v4218_v10 = vsel %vm11056_vm14, %v8670_v29, %v4217_v0  ;;  %v8687_v62 = vcombine.low %v4211_v42, %v4214_v15  ;;  %v4247_v44 = vrot.slane %v4245_v28, 4  ;;  %v4252_v27 = vrot.slane %v11718_v37, 5 }
 0x1a7   : > { %v8688_v21 = vcombine.low %v4218_v10, %v4221_v32  ;;  %v4246_v0 = vsel %vm11056_vm14, %v8674_v41, %v4245_v28  ;;  %v8675_v25 = vrot.slane %v4168_v3, 9  ;;  %v4255_v29 = vrot.slane %v11743_v39, 5  ;;  %v4170_v10 = vld [vmem:[#allocation2 + $0x84] sm:$0xe] }
 0x1a8   : > { %v4254_v14 = vrot.slane %v4252_v27, 4  ;;  %v4262_v37 = vrot.slane %v11756_v5, 5  ;;  %v4266_v15 = vrot.slane %v11745_v63, 5  ;;  %v8677_v46 = vrot.slane %v4170_v10, 9 }
 0x1a9   : > { %v4253_v42 = vsel %vm11056_vm14, %v8675_v25, %v4252_v27  ;;  %v4269_v9 = vrot.slane %v11768_v55, 5 }
 0x1aa   : > { %9550 = vmatmul.mubr.msk.bf16.gmra.mrb[12].mxu0 %vm1610_vm10, %v8651_v22  ;;  %v4225_v22 = vsel %vm11056_vm14, %v8671_v48, %v4224_v57  ;;  %v4268_v6 = vrot.slane %v4266_v15, 4  ;;  %v4267_v63 = vsel %vm11056_vm14, %v8677_v46, %v4266_v15  ;;  %v11861_v48 = vld [vmem:[%s12905_s6] ss:$0 sm:$0xff] }
 0x1ab   : > { %9553 = vmatprep.mubr.msk.bf16.mxu0 %vm1610_vm10, %v8652_v61  ;;  %v4238_v61 = vrot.slane %v11685_v8, 5  ;;  %v8689_v54 = vcombine.low %v4225_v22, %v4228_v34  ;;  %v4248_v8 = vrot.slane %v11713_v1, 5  ;;  %v4259_v1 = vrot.slane %v11725_v19, 5 }
 0x1ac   : > { %v4256_v19 = vsel %vm11056_vm14, %v4254_v14, %v4255_v29 }
 0x1ad   : > { %v4240_v30 = vrot.slane %v4238_v61, 4  ;;  %v4239_v31 = vsel %vm11056_vm14, %v8673_v51, %v4238_v61  ;;  %v4249_v4 = vsel %vm11056_vm14, %v4247_v44, %v4248_v8  ;;  %v4261_v53 = vrot.slane %v4259_v1, 4  ;;  %v4783_v8 = vld [vmem:[#allocation3 + $0xc] sm:$0xf] }
 0x1ae   : > { %v8692_v38 = vcombine.low %v4246_v0, %v4249_v4  ;;  %v8693_v5 = vcombine.low %v4253_v42, %v4256_v19 }
 0x1af   : > { %v4242_v35 = vsel %vm11056_vm14, %v4240_v30, %v4241_v11  ;;  %v4263_v39 = vsel %vm11056_vm14, %v4261_v53, %v4262_v37 }
 0x1b2   : > { %9554 = vmatmul.mubr.msk.bf16.gmra.mrb[16].mxu0 %vm1610_vm10, %v8653_v20  ;;  %v4169_v20 = vld [vmem:[#allocation2 + $0x78] sm:$0xe] }
 0x1b3   : > { %9565 = vmatprep.mubr.msk.bf16.mxu0 %vm1610_vm10, %v8686_v24  ;;  %v8691_v24 = vcombine.low %v4239_v31, %v4242_v35  ;;  %v8676_v17 = vrot.slane %v4169_v20, 9 }
 0x1b5   : > { %v4260_v57 = vsel %vm11056_vm14, %v8676_v17, %v4259_v1 }
 0x1b6   : > { %v8694_v32 = vcombine.low %v4260_v57, %v4263_v39 }
 0x1ba   : > { %9566 = vmatmul.mubr.msk.bf16.vlgmr.msra.gmra.mrb[0].mxu0 %vm1610_vm10, %v8687_v62  ;;  %v4270_v62 = vsel %vm11056_vm14, %v4268_v6, %v4269_v9 }
 0x1bb   : > { %9569 = vmatprep.mubr.msk.bf16.mxu0 %vm1610_vm10, %v8688_v21  ;;  %v8695_v21 = vcombine.low %v4267_v63, %v4270_v62  ;;  %v4797_v62 = vld [vmem:[#allocation3 + $0x24] sm:$0xf] }
 0x1c2   : > { %9570 = vmatmul.mubr.msk.bf16.gmra.mrb[4].mxu0 %vm1610_vm10, %v8689_v54 }
 0x1c3   : > { %9573 = vmatprep.mubr.msk.bf16.mxu0 %vm1610_vm10, %v8690_v36 }
 0x1ca   : > { %9574 = vmatmul.mubr.msk.bf16.gmra.mrb[8].mxu0 %vm1610_vm10, %v8691_v24  ;;  %v4787_v24 = vld [vmem:[#allocation3 + $0x14] sm:$0x1] }
 0x1cb   : > { %9577 = vmatprep.mubr.msk.bf16.mxu0 %vm1610_vm10, %v8692_v38 }
 0x1d2   : > { %9578 = vmatmul.mubr.msk.bf16.gmra.mrb[12].mxu0 %vm1610_vm10, %v8693_v5 }
 0x1d3   : > { %9581 = vmatprep.mubr.msk.bf16.mxu0 %vm1610_vm10, %v8694_v32 }
 0x1da   : > { %9582 = vmatmul.mubr.msk.bf16.gmra.mrb[16].mxu0 %vm1610_vm10, %v8695_v21 }
 0x28d   : > { %v9567_v45 = vpop.f32.mrb[0].mxu0 }
 0x28e   : > { %v4506_v55 = vadd.f32 %v9567_v45, %v11861_v48  ;;  %v4398_v59 = vpop.f32.mrb[1].mxu0 }
 0x28f   : > { %v11865_v58 = vadd.f32 %v11861_v48, %v4398_v59  ;;  %v9568_v12 = vpop.f32.mrb[2].mxu0 }
 0x290   : > { %v4526_v16 = vmax.f32 %v4506_v55, 0.0  ;;  %v4507_v22 = vadd.f32 %v9568_v12, %v11861_v48  ;;  %v4401_v34 = vpop.f32.mrb[3].mxu0 }
 0x291   : > { %v4524_v61 = vmax.f32 %v11865_v58, 0.0  ;;  %v11870_v26 = vadd.f32 %v11861_v48, %v4401_v34 }
 0x292   : > { %v9055_v43 = vpack.c.bf16 %v4526_v16, %v4526_v16  ;;  %v4527_v49 = vmax.f32 %v4507_v22, 0.0 }
 0x293   : > { %v4525_v28 = vmax.f32 %v11870_v26, 0.0 }
 0x294   : > { %v4623_v56 = vshrl.u32 %v9055_v43, 16  ;;  %v9056_v54 = vpack.c.bf16 %v4527_v49, %v4527_v49  ;;  %v4626_v30 = vshll.u32 %v9055_v43, 16 }
 0x295   : > { %v9571_v36 = vpop.f32.mrb[4].mxu0 }
 0x296   : > { %v4625_v51 = vrot.slane %v4623_v56, 7  ;;  %v4631_v11 = vshrl.u32 %v9056_v54, 16  ;;  %v4510_v41 = vadd.f32 %v9571_v36, %v11861_v48  ;;  %v4414_v44 = vpop.f32.mrb[5].mxu0  ;;  %v4634_v4 = vshll.u32 %v9056_v54, 16  ;;  %v4790_v56 = vld [vmem:[#allocation3 + $0x18] sm:$0xf] }
 0x297   : > { %v4508_v31 = vadd.f32 %v11861_v48, %v4414_v44  ;;  %v9572_v35 = vpop.f32.mrb[6].mxu0 }
 0x298   : > { %v4628_v27 = vor.u32 %v4626_v30, %v4625_v51  ;;  %v4633_v0 = vrot.slane %v4631_v11, 7  ;;  %v4530_v3 = vmax.f32 %v4510_v41, 0.0  ;;  %v4417_v1 = vpop.f32.mrb[7].mxu0  ;;  %v4629_v20 = vrot.slane %v4625_v51, 4 }
 0x299   : > { %v4528_v38 = vmax.f32 %v4508_v31, 0.0  ;;  %v4511_v25 = vadd.f32 %v9572_v35, %v11861_v48  ;;  %v4509_v14 = vadd.f32 %v11861_v48, %v4417_v1  ;;  %v4801_v31 = vld [vmem:[#allocation3 + $0x2c] sm:$0x1] }
 0x29a   : > { %v4784_v29 = vsel %vm10730_vm6, %v4628_v27, %v4783_v8  ;;  %v4636_v17 = vor.u32 %v4634_v4, %v4633_v0  ;;  %v4638_v53 = vrot.slane %v4633_v0, 4  ;;  %v9059_v37 = vpack.c.bf16 %v4530_v3, %v4530_v3 }
 0x29b   : > { %4785 = vst [vmem:[#allocation3 + $0xc] sm:$0xf] %v4784_v29  ;;  %v9057_v42 = vpack.c.bf16 %v4528_v38, %v4528_v38  ;;  %v4531_v19 = vmax.f32 %v4511_v25, 0.0  ;;  %v4529_v15 = vmax.f32 %v4509_v14, 0.0 }
 0x29c   : > { %v4637_v57 = vsel %vm10724_vm5, %v4629_v20, %v4636_v17  ;;  %v4788_v39 = vsel %vm10740_vm7, %v4638_v53, %v4787_v24  ;;  %v4657_v10 = vshrl.u32 %v9059_v37, 16  ;;  %v4660_v63 = vshll.u32 %v9059_v37, 16  ;;  %v4794_v24 = vld [vmem:[#allocation3 + $0x20] sm:$0x1] }
 0x29d   : > { %4786 = vst.msk [vmem:[#allocation3 + $0x10] sm:$0xf] %vm822_vm0, %v4637_v57  ;;  %4789 = vst [vmem:[#allocation3 + $0x14] sm:$0x1] %v4788_v39  ;;  %v4640_v5 = vshrl.u32 %v9057_v42, 16  ;;  %v9060_v32 = vpack.c.bf16 %v4531_v19, %v4531_v19  ;;  %v9058_v46 = vpack.c.bf16 %v4529_v15, %v4529_v15  ;;  %v9575_v6 = vpop.f32.mrb[8].mxu0 }
 0x29e   : > { %v4659_v9 = vrot.slane %v4657_v10, 7  ;;  %v4643_v21 = vshll.u32 %v9057_v42, 16  ;;  %v4514_v45 = vadd.f32 %v9575_v6, %v11861_v48  ;;  %v4430_v55 = vpop.f32.mrb[9].mxu0 }
 0x29f   : > { %v4642_v59 = vrot.slane %v4640_v5, 7  ;;  %v4665_v12 = vshrl.u32 %v9060_v32, 16  ;;  %v4668_v16 = vshll.u32 %v9060_v32, 16  ;;  %v4648_v22 = vshrl.u32 %v9058_v46, 16  ;;  %v9576_v34 = vpop.f32.mrb[10].mxu0 }
 0x2a0   : > { %v4662_v43 = vor.u32 %v4660_v63, %v4659_v9  ;;  %v4663_v49 = vrot.slane %v4659_v9, 4  ;;  %v4651_v54 = vshll.u32 %v9058_v46, 16  ;;  %v4534_v36 = vmax.f32 %v4514_v45, 0.0  ;;  %v4433_v51 = vpop.f32.mrb[11].mxu0  ;;  %v4811_v32 = vld [vmem:[#allocation3 + $0x3c] sm:$0xf] }
 0x2a1   : > { %v4645_v30 = vor.u32 %v4643_v21, %v4642_v59  ;;  %v4646_v11 = vrot.slane %v4642_v59, 4  ;;  %v4667_v41 = vrot.slane %v4665_v12, 7  ;;  %v4650_v44 = vrot.slane %v4648_v22, 7 }
 0x2a2   : > { %v4798_v8 = vsel %vm10730_vm6, %v4662_v43, %v4797_v62  ;;  %v9063_v35 = vpack.c.bf16 %v4534_v36, %v4534_v36  ;;  %v4512_v27 = vadd.f32 %v11861_v48, %v4430_v55  ;;  %v4515_v0 = vadd.f32 %v9576_v34, %v11861_v48  ;;  %v4804_v36 = vld [vmem:[#allocation3 + $0x30] sm:$0xf] }
 0x2a3   : > { %4799 = vst [vmem:[#allocation3 + $0x24] sm:$0xf] %v4798_v8  ;;  %v4791_v4 = vsel %vm10730_vm6, %v4645_v30, %v4790_v56  ;;  %v4670_v3 = vor.u32 %v4668_v16, %v4667_v41  ;;  %v4672_v1 = vrot.slane %v4667_v41, 4  ;;  %v4653_v20 = vor.u32 %v4651_v54, %v4650_v44 }
 0x2a4   : > { %4792 = vst [vmem:[#allocation3 + $0x18] sm:$0xf] %v4791_v4  ;;  %v4655_v38 = vrot.slane %v4650_v44, 4  ;;  %v4691_v25 = vshrl.u32 %v9063_v35, 16  ;;  %v4694_v14 = vshll.u32 %v9063_v35, 16  ;;  %v4532_v29 = vmax.f32 %v4512_v27, 0.0 }
 0x2a5   : > { %v4671_v17 = vsel %vm10724_vm5, %v4663_v49, %v4670_v3  ;;  %v4802_v53 = vsel %vm10740_vm7, %v4672_v1, %v4801_v31  ;;  %v4654_v37 = vsel %vm10724_vm5, %v4646_v11, %v4653_v20  ;;  %v4535_v42 = vmax.f32 %v4515_v0, 0.0  ;;  %v9579_v19 = vpop.f32.mrb[12].mxu0  ;;  %v4815_v31 = vld [vmem:[#allocation3 + $0x44] sm:$0x1] }
 0x2a6   : > { %4800 = vst.msk [vmem:[#allocation3 + $0x28] sm:$0xf] %vm822_vm0, %v4671_v17  ;;  %4803 = vst [vmem:[#allocation3 + $0x2c] sm:$0x1] %v4802_v53  ;;  %v4795_v15 = vsel %vm10740_vm7, %v4655_v38, %v4794_v24  ;;  %v4693_v57 = vrot.slane %v4691_v25, 7  ;;  %v9061_v39 = vpack.c.bf16 %v4532_v29, %v4532_v29  ;;  %v4513_v10 = vadd.f32 %v11861_v48, %v4433_v51  ;;  %v4446_v5 = vpop.f32.mrb[13].mxu0 }
 0x2a7   : > { %4793 = vst.msk [vmem:[#allocation3 + $0x1c] sm:$0xf] %vm822_vm0, %v4654_v37  ;;  %4796 = vst [vmem:[#allocation3 + $0x20] sm:$0x1] %v4795_v15  ;;  %v9064_v46 = vpack.c.bf16 %v4535_v42, %v4535_v42  ;;  %v4518_v6 = vadd.f32 %v9579_v19, %v11861_v48  ;;  %v4516_v9 = vadd.f32 %v11861_v48, %v4446_v5  ;;  %v9580_v63 = vpop.f32.mrb[14].mxu0 }
 0x2a8   : > { %v4696_v62 = vor.u32 %v4694_v14, %v4693_v57  ;;  %v4697_v21 = vrot.slane %v4693_v57, 4  ;;  %v4674_v45 = vshrl.u32 %v9061_v39, 16  ;;  %v4677_v55 = vshll.u32 %v9061_v39, 16  ;;  %v4449_v59 = vpop.f32.mrb[15].mxu0  ;;  %v4808_v15 = vld [vmem:[#allocation3 + $0x38] sm:$0x1] }
 0x2a9   : > { %v4699_v12 = vshrl.u32 %v9064_v46, 16  ;;  %v4702_v16 = vshll.u32 %v9064_v46, 16  ;;  %v4533_v22 = vmax.f32 %v4513_v10, 0.0  ;;  %v4538_v34 = vmax.f32 %v4518_v6, 0.0 }
 0x2aa   : > { %v4812_v43 = vsel %vm10730_vm6, %v4696_v62, %v4811_v32  ;;  %v4676_v49 = vrot.slane %v4674_v45, 7  ;;  %v4536_v56 = vmax.f32 %v4516_v9, 0.0  ;;  %v4519_v54 = vadd.f32 %v9580_v63, %v11861_v48  ;;  %v4825_v9 = vld [vmem:[#allocation3 + $0x54] sm:$0xf]  ;;  %v4818_v63 = vld [vmem:[#allocation3 + $0x48] sm:$0xf] }
 0x2ab   : > { %4813 = vst [vmem:[#allocation3 + $0x3c] sm:$0xf] %v4812_v43  ;;  %v4701_v51 = vrot.slane %v4699_v12, 7  ;;  %v9062_v30 = vpack.c.bf16 %v4533_v22, %v4533_v22  ;;  %v9067_v11 = vpack.c.bf16 %v4538_v34, %v4538_v34  ;;  %v4517_v41 = vadd.f32 %v11861_v48, %v4449_v59 }
 0x2ac   : > { %v4679_v44 = vor.u32 %v4677_v55, %v4676_v49  ;;  %v4680_v8 = vrot.slane %v4676_v49, 4  ;;  %v9065_v35 = vpack.c.bf16 %v4536_v56, %v4536_v56  ;;  %v4539_v27 = vmax.f32 %v4519_v54, 0.0 }
 0x2ad   : > { %v4704_v0 = vor.u32 %v4702_v16, %v4701_v51  ;;  %v4706_v4 = vrot.slane %v4701_v51, 4  ;;  %v4682_v3 = vshrl.u32 %v9062_v30, 16  ;;  %v4685_v1 = vshll.u32 %v9062_v30, 16  ;;  %v9583_v20 = vpop.f32.mrb[16].mxu0 }
 0x2ae   : > { %v4805_v24 = vsel %vm10730_vm6, %v4679_v44, %v4804_v36  ;;  %v4725_v38 = vshrl.u32 %v9067_v11, 16  ;;  %v4728_v25 = vshll.u32 %v9067_v11, 16  ;;  %v4708_v14 = vshrl.u32 %v9065_v35, 16  ;;  %v4462_v29 = vpop.f32.mrb[17].mxu0 }
 0x2af   : > { %4806 = vst [vmem:[#allocation3 + $0x30] sm:$0xf] %v4805_v24  ;;  %v4705_v17 = vsel %vm10724_vm5, %v4697_v21, %v4704_v0  ;;  %v4816_v53 = vsel %vm10740_vm7, %v4706_v4, %v4815_v31  ;;  %v4684_v37 = vrot.slane %v4682_v3, 7  ;;  %v4711_v42 = vshll.u32 %v9065_v35, 16  ;;  %v9584_v19 = vpop.f32.mrb[18].mxu0 }
 0x2b0   : > { %4814 = vst.msk [vmem:[#allocation3 + $0x40] sm:$0xf] %vm822_vm0, %v4705_v17  ;;  %4817 = vst [vmem:[#allocation3 + $0x44] sm:$0x1] %v4816_v53  ;;  %v4727_v57 = vrot.slane %v4725_v38, 7  ;;  %v4710_v39 = vrot.slane %v4708_v14, 7  ;;  %v9068_v10 = vpack.c.bf16 %v4539_v27, %v4539_v27  ;;  %v11916_v62 = vadd.f32 %v9583_v20, %v11861_v48 }
 0x2b1   : > { %v4537_v5 = vmax.f32 %v4517_v41, 0.0  ;;  %v4465_v32 = vpop.f32.mrb[19].mxu0  ;;  %v4687_v46 = vor.u32 %v4685_v1, %v4684_v37  ;;  %v4689_v6 = vrot.slane %v4684_v37, 4  ;;  %v4520_v21 = vadd.f32 %v11861_v48, %v4462_v29  ;;  %v4829_v41 = vld [vmem:[#allocation3 + $0x5c] sm:$0x1] }
 0x2b2   : > { %v4730_v45 = vor.u32 %v4728_v25, %v4727_v57  ;;  %v4713_v55 = vor.u32 %v4711_v42, %v4710_v39  ;;  %v4733_v16 = vshrl.u32 %v9068_v10, 16  ;;  %v4736_v22 = vshll.u32 %v9068_v10, 16  ;;  %v4822_v24 = vld [vmem:[#allocation3 + $0x50] sm:$0x1] }
 0x2b3   : > { %v4688_v59 = vsel %vm10724_vm5, %v4680_v8, %v4687_v46  ;;  %v4809_v12 = vsel %vm10740_vm7, %v4689_v6, %v4808_v15  ;;  %v9066_v49 = vpack.c.bf16 %v4537_v5, %v4537_v5  ;;  %v4542_v56 = vmax.f32 %v11916_v62, 0.0 }
 0x2b4   : > { %4807 = vst.msk [vmem:[#allocation3 + $0x34] sm:$0xf] %vm822_vm0, %v4688_v59  ;;  %4810 = vst [vmem:[#allocation3 + $0x38] sm:$0x1] %v4809_v12  ;;  %v4826_v34 = vsel %vm10730_vm6, %v4730_v45, %v4825_v9  ;;  %v4819_v43 = vsel %vm10730_vm6, %v4713_v55, %v4818_v63  ;;  %v4735_v54 = vrot.slane %v4733_v16, 7  ;;  %v4540_v36 = vmax.f32 %v4520_v21, 0.0 }
 0x2b5   : > { %4827 = vst [vmem:[#allocation3 + $0x54] sm:$0xf] %v4826_v34  ;;  %4820 = vst [vmem:[#allocation3 + $0x48] sm:$0xf] %v4819_v43  ;;  %v11930_v51 = vadd.f32 %v9584_v19, %v11861_v48  ;;  %v4521_v30 = vadd.f32 %v11861_v48, %v4465_v32  ;;  %v4731_v11 = vrot.slane %v4727_v57, 4  ;;  %v4716_v44 = vshrl.u32 %v9066_v49, 16 }
 0x2b6   : > { %v4738_v8 = vor.u32 %v4736_v22, %v4735_v54  ;;  %v4740_v31 = vrot.slane %v4735_v54, 4  ;;  %v9069_v35 = vpack.c.bf16 %v4540_v36, %v4540_v36  ;;  %v4719_v4 = vshll.u32 %v9066_v49, 16  ;;  %v4832_v19 = vld [vmem:[#allocation3 + $0x60] sm:$0xf]  ;;  %v4836_v32 = vld [vmem:[#allocation3 + $0x68] sm:$0x1] }
 0x2b7   : > { %v4543_v27 = vmax.f32 %v11930_v51, 0.0  ;;  %v4718_v0 = vrot.slane %v4716_v44, 7  ;;  %v4541_v3 = vmax.f32 %v4521_v30, 0.0  ;;  %v4714_v48 = vrot.slane %v4710_v39, 4  ;;  %v4869_v49 = vld [vmem:[#allocation3] sm:$0xf] (!%p8727_p8) }
 0x2b8   : > { %v4739_v1 = vsel %vm10724_vm5, %v4731_v11, %v4738_v8  ;;  %v4830_v20 = vsel %vm10740_vm7, %v4740_v31, %v4829_v41  ;;  %v4742_v38 = vshrl.u32 %v9069_v35, 16  ;;  %v4745_v53 = vshll.u32 %v9069_v35, 16  ;;  %v4873_v54 = vld [vmem:[#allocation3 + $0x8] sm:$0x1] (!%p8727_p8) }
 0x2b9   : > { %4828 = vst.msk [vmem:[#allocation3 + $0x58] sm:$0xf] %vm822_vm0, %v4739_v1  ;;  %4831 = vst [vmem:[#allocation3 + $0x5c] sm:$0x1] %v4830_v20  ;;  %v4721_v25 = vor.u32 %v4719_v4, %v4718_v0  ;;  %v4723_v14 = vrot.slane %v4718_v0, 4  ;;  %v9070_v29 = vpack.c.bf16 %v4541_v3, %v4541_v3  ;;  %v9071_v45 = vpack.c.bf16 (!%p8727_p8), %v4524_v61, %v4524_v61 }
 0x2ba   : > { %v4744_v17 = vrot.slane %v4742_v38, 7  ;;  %v9072_v55 = vpack.c.bf16 (!%p8727_p8), %v4525_v28, %v4525_v28 }
 0x2bb   : > { %v4722_v37 = vsel %vm10724_vm5, %v4714_v48, %v4721_v25  ;;  %v4823_v42 = vsel %vm10740_vm7, %v4723_v14, %v4822_v24  ;;  %v4750_v15 = vshrl.u32 %v9070_v29, 16  ;;  %v4753_v10 = vshll.u32 %v9070_v29, 16 }
 0x2bc   : > { %4821 = vst.msk [vmem:[#allocation3 + $0x4c] sm:$0xf] %vm822_vm0, %v4722_v37  ;;  %4824 = vst [vmem:[#allocation3 + $0x50] sm:$0x1] %v4823_v42  ;;  %v4747_v57 = vor.u32 %v4745_v53, %v4744_v17  ;;  %v4748_v46 = vrot.slane %v4744_v17, 4  ;;  %4842 = sbr.rel (%p8727_p8) target bundleno = 710 (0x2c6), region = 76 }
 0x2bd   : > { %v4752_v39 = vrot.slane %v4750_v15, 7  ;;  %v4850_v59 = vshrl.u32 (!%p8727_p8), %v9071_v45, 16  ;;  %v4853_v12 = vshll.u32 (!%p8727_p8), %v9071_v45, 16  ;;  %v4858_v16 = vshrl.u32 (!%p8727_p8), %v9072_v55, 16 }
 0x2be   : > { %v4833_v5 = vsel %vm10730_vm6, %v4747_v57, %v4832_v19  ;;  %v4861_v22 = vshll.u32 (!%p8727_p8), %v9072_v55, 16 }
 0x2bf   : > { %4834 = vst [vmem:[#allocation3 + $0x60] sm:$0xf] %v4833_v5  ;;  %v4755_v6 = vor.u32 %v4753_v10, %v4752_v39  ;;  %v4757_v9 = vrot.slane %v4752_v39, 4  ;;  %v4852_v34 = vrot.slane (!%p8727_p8), %v4850_v59, 7  ;;  %v4860_v43 = vrot.slane (!%p8727_p8), %v4858_v16, 7 }
 0x2c1   : > { %v4756_v63 = vsel %vm10724_vm5, %v4748_v46, %v4755_v6  ;;  %v4837_v21 = vsel %vm10740_vm7, %v4757_v9, %v4836_v32  ;;  %v4855_v36 = vor.u32 (!%p8727_p8), %v4853_v12, %v4852_v34  ;;  %v4856_v51 = vrot.slane (!%p8727_p8), %v4852_v34, 4 }
 0x2c2   : > { %4835 = vst.msk [vmem:[#allocation3 + $0x64] sm:$0xf] %vm822_vm0, %v4756_v63  ;;  %4838 = vst [vmem:[#allocation3 + $0x68] sm:$0x1] %v4837_v21  ;;  %v4863_v30 = vor.u32 (!%p8727_p8), %v4861_v22, %v4860_v43  ;;  %v4865_v11 = vrot.slane (!%p8727_p8), %v4860_v43, 4 }
 0x2c3   : > { %v4870_v58 = vsel %vm10730_vm6, %v4855_v36, %v4869_v49 }
 0x2c4   : > { %v4864_v61 = vsel %vm10724_vm5, %v4856_v51, %v4863_v30  ;;  %v4874_v26 = vsel %vm10740_vm7, %v4865_v11, %v4873_v54  ;;  %4871 = vst [vmem:[#allocation3] sm:$0xf] %v4870_v58 }
 0x2c5   : > { %4872 = vst.msk [vmem:[#allocation3 + $0x4] sm:$0xf] %vm822_vm0, %v4864_v61  ;;  %4875 = vst [vmem:[#allocation3 + $0x8] sm:$0x1] %v4874_v26 }
 0x2c6 PF: > { %p8730_p9 = scmp.ge.s32.totalorder %s10333_s18, 1 }
 0x2c7   : > { %v9073_v28 = vpack.c.bf16 (!%p8730_p9), %v4542_v56, %v4542_v56  ;;  %v9074_v41 = vpack.c.bf16 (!%p8730_p9), %v4543_v27, %v4543_v27  ;;  %v4907_v3 = vld [vmem:[#allocation3 + $0x6c] sm:$0xf] (!%p8730_p9)  ;;  %v4911_v1 = vld [vmem:[#allocation3 + $0x74] sm:$0x1] (!%p8730_p9) }
 0x2c8   : > { %4879 = sbr.rel (%p8730_p9) target bundleno = 722 (0x2d2), region = 80 }
 0x2c9   : > { %v4887_v44 = vshrl.u32 (!%p8730_p9), %v9073_v28, 16  ;;  %v4890_v8 = vshll.u32 (!%p8730_p9), %v9073_v28, 16  ;;  %v4895_v31 = vshrl.u32 (!%p8730_p9), %v9074_v41, 16  ;;  %v4898_v35 = vshll.u32 (!%p8730_p9), %v9074_v41, 16 }
 0x2cb   : > { %v4889_v0 = vrot.slane (!%p8730_p9), %v4887_v44, 7  ;;  %v4897_v4 = vrot.slane (!%p8730_p9), %v4895_v31, 7 }
 0x2cd   : > { %v4892_v20 = vor.u32 (!%p8730_p9), %v4890_v8, %v4889_v0  ;;  %v4893_v24 = vrot.slane (!%p8730_p9), %v4889_v0, 4  ;;  %v4900_v38 = vor.u32 (!%p8730_p9), %v4898_v35, %v4897_v4  ;;  %v4902_v48 = vrot.slane (!%p8730_p9), %v4897_v4, 4 }
 0x2cf   : > { %v4908_v25 = vsel %vm10730_vm6, %v4892_v20, %v4907_v3  ;;  %v4901_v62 = vsel %vm10724_vm5, %v4893_v24, %v4900_v38  ;;  %v4912_v56 = vsel %vm10740_vm7, %v4902_v48, %v4911_v1 }
 0x2d0   : > { %4909 = vst [vmem:[#allocation3 + $0x6c] sm:$0xf] %v4908_v25  ;;  %4910 = vst.msk [vmem:[#allocation3 + $0x70] sm:$0xf] %vm822_vm0, %v4901_v62 }
 0x2d1   : > { %4913 = vst [vmem:[#allocation3 + $0x74] sm:$0x1] %v4912_v56 }
 0x2d2 PF: > { %v10243_v27 = vld [vmem:[%s12906_s7 + $0x20] sm:$0xff]   ;;  %v10244_v2 = vld [vmem:[%s12906_s7 + $0x28] sm:$0xff]   ;;  %v10245_v60 = vld [vmem:[%s12906_s7 + $0x30] sm:$0xff]   ;;  %s12977_s19 = sld [smem:[#allocation20_spill]]  ;;  %p9028_p10 = scmp.ne.s32.totalorder %s10333_s18, 0 }
 0x2d3   : > { %9585 = vmatprep.subr.bf16.mxu1 %v10243_v27  ;;  %v11985_v13 = vld [vmem:[#allocation3] sm:$0xf]  ;;  %v11987_v14 = vld [vmem:[#allocation3 + $0x4] sm:$0xf]  ;;  %v11989_v29 = vld [vmem:[#allocation3 + $0x8] sm:$0x1] }
 0x2d4   : > { %9586 = vmatpush3.bf16.msra.mxu1 %v10243_v27  ;;  %v4947_v17 = vshrl.u32 %v11985_v13, 16  ;;  %v4950_v53 = vshll.u32 %v11985_v13, 16  ;;  %v4956_v37 = vshll.u32 %v11987_v14, 16  ;;  %v4960_v42 = vshrl.u32 %v11987_v14, 16  ;;  %v11995_v19 = vld [vmem:[#allocation3 + $0xc] sm:$0xf] }
 0x2d5   : > { %9587 = vmatprep.subr.bf16.mxu1 %v10244_v2  ;;  %v10246_v15 = vld [vmem:[%s12906_s7 + $0x38] sm:$0xff]   ;;  %v4966_v57 = vshll.u32 %v11989_v29, 16  ;;  %v12001_v39 = vld [vmem:[#allocation3 + $0x10] sm:$0xf]  ;;  %v4939_v10 = vld [vmem:[#allocation3 + $0x14] sm:$0x1] }
 0x2d6   : > { %v4949_v5 = vrot.slane %v4947_v17, 4  ;;  %v4952_v32 = vrot.slane %v4950_v53, 5  ;;  %v4958_v46 = vrot.slane %v4956_v37, 5  ;;  %v4962_v6 = vrot.slane %v4960_v42, 4  ;;  %v12007_v22 = vld [vmem:[#allocation3 + $0x18] sm:$0xf] }
 0x2d7   : > { %v4968_v9 = vrot.slane %v4966_v57, 5  ;;  %v4971_v63 = vshrl.u32 %v11995_v19, 16  ;;  %v4974_v21 = vshll.u32 %v11995_v19, 16  ;;  %v4980_v45 = vshll.u32 %v12001_v39, 16  ;;  %v10247_v28 = vld [vmem:[%s12906_s7] sm:$0xff]  }
 0x2d8   : > { %9588 = vmatpush3.bf16.msra.mxu1 %v10244_v2  ;;  %v4953_v55 = vor.u32 %v4952_v32, %v4949_v5  ;;  %v4963_v59 = vor.u32 %v4962_v6, %v4958_v46  ;;  %v4984_v12 = vshrl.u32 %v12001_v39, 16  ;;  %v4990_v16 = vshll.u32 %v4939_v10, 16  ;;  %v12015_v41 = vld [vmem:[#allocation3 + $0x1c] sm:$0xf]  ;;  %v12022_v0 = vld [vmem:[#allocation3 + $0x20] sm:$0x1] }
 0x2d9   : > { %9589 = vmatprep.subr.bf16.mxu1 %v10245_v60  ;;  %v4973_v34 = vrot.slane %v4971_v63, 4  ;;  %v4976_v43 = vrot.slane %v4974_v21, 5  ;;  %v4982_v49 = vrot.slane %v4980_v45, 5  ;;  %v5534_v54 = vrot.slane %v12001_v39, 5  ;;  %v12025_v3 = vld [vmem:[#allocation3 + $0x24] sm:$0xf] }
 0x2da   : > { %v4954_v36 = vrot.slane %v4953_v55, 4  ;;  %v4964_v51 = vrot.slane %v4963_v59, 4  ;;  %v4986_v30 = vrot.slane %v4984_v12, 4  ;;  %v4992_v11 = vrot.slane %v4990_v16, 5  ;;  %v12045_v5 = vld [vmem:[#allocation3 + $0x30] sm:$0xf] }
 0x2db   : > { %v4977_v58 = vor.u32 %v4976_v43, %v4973_v34  ;;  %v5536_v61 = vrot.slane %v5534_v54, 4  ;;  %v5537_v26 = vrot.slane %v4939_v10, 5  ;;  %v4995_v44 = vshrl.u32 %v12007_v22, 16  ;;  %v12043_v10 = vld [vmem:[#allocation3 + $0x2c] sm:$0x1]  ;;  %v10248_v63 = vld [vmem:[%s12906_s7 + $0x8] sm:$0xff]  }
 0x2dc   : > { %9590 = vmatpush3.bf16.msra.mxu1 %v10245_v60  ;;  %v4959_v8 = vsel %vm10813_vm11, %v4954_v36, %v4958_v46  ;;  %v4969_v31 = vsel %vm10813_vm11, %v4964_v51, %v4968_v9  ;;  %v4987_v35 = vor.u32 %v4986_v30, %v4982_v49  ;;  %v4998_v4 = vshll.u32 %v12007_v22, 16  ;;  %v12037_v60 = vld [vmem:[#allocation3 + $0x28] sm:$0xf]  ;;  %v12050_v21 = vld [vmem:[#allocation3 + $0x34] sm:$0xf] }
 0x2dd   : > { %9591 = vmatprep.subr.bf16.mxu1 %v10246_v15  ;;  %v8741_v1 = vcombine.low %v4959_v8, %v4969_v31  ;;  %v4978_v20 = vrot.slane %v4977_v58, 4  ;;  %v12029_v24 = vsel %vm11056_vm14, %v5536_v61, %v5537_v26  ;;  %v4997_v38 = vrot.slane %v4995_v44, 4  ;;  %v12054_v16 = vld [vmem:[#allocation3 + $0x38] sm:$0x1]  ;;  %v10249_v61 = vld [vmem:[%s12906_s7 + $0x10] sm:$0xff]  }
 0x2de   : > { %v4988_v48 = vrot.slane %v4987_v35, 4  ;;  %v5000_v25 = vrot.slane %v4998_v4, 5  ;;  %v5004_v62 = vshll.u32 %v12015_v41, 16  ;;  %v5008_v56 = vshrl.u32 %v12015_v41, 16  ;;  %v12065_v35 = vld [vmem:[#allocation3 + $0x3c] sm:$0xf] }
 0x2df   : > { %9593 = vmatprep.mubr.msk.bf16.mxu1 %vm1610_vm10, %v8741_v1  ;;  %v4983_v27 = vsel %vm10813_vm11, %v4978_v20, %v4982_v49  ;;  %v5014_v2 = vshll.u32 %v12022_v0, 16  ;;  %v5019_v17 = vshrl.u32 %v12025_v3, 16  ;;  %v5022_v53 = vshll.u32 %v12025_v3, 16  ;;  %v12715_v47 = vld [vmem:[%s12907_s8] ss:$0 sm:$0xff] }
 0x2e0   : > { %9592 = vmatpush3.bf16.msra.mxu1 %v10246_v15  ;;  %v4993_v37 = vsel %vm10813_vm11, %v4988_v48, %v4992_v11  ;;  %v5001_v42 = vor.u32 %v5000_v25, %v4997_v38  ;;  %v5006_v15 = vrot.slane %v5004_v62, 5  ;;  %v5010_v57 = vrot.slane %v5008_v56, 4  ;;  %v12071_v38 = vld [vmem:[#allocation3 + $0x40] sm:$0xf] }
 0x2e1   : > { %9609 = vmatprep.subr.bf16.mxu1 %v10247_v28  ;;  %v8742_v32 = vcombine.low %v4983_v27, %v4993_v37  ;;  %v5016_v46 = vrot.slane %v5014_v2, 5  ;;  %v5021_v6 = vrot.slane %v5019_v17, 4  ;;  %v5024_v9 = vrot.slane %v5022_v53, 5  ;;  %v12076_v27 = vld [vmem:[#allocation3 + $0x44] sm:$0x1]  ;;  %v10250_v17 = vld [vmem:[%s12906_s7 + $0x18] sm:$0xff]  }
 0x2e2   : > { %v5002_v45 = vrot.slane %v5001_v42, 4  ;;  %v5011_v55 = vor.u32 %v5010_v57, %v5006_v15  ;;  %v5028_v59 = vshll.u32 %v12037_v60, 16  ;;  %v5032_v12 = vshrl.u32 %v12037_v60, 16  ;;  %v12078_v2 = vld [vmem:[#allocation3 + $0x48] sm:$0xf] }
 0x2e3   : > { %9594 = vmatmul.mubr.msk.bf16.vlgmr.msra.gmra.mrb[0].mxu1 %vm1610_vm10, %v8742_v32  ;;  %v5025_v34 = vor.u32 %v5024_v9, %v5021_v6  ;;  %v5038_v43 = vshll.u32 %v12043_v10, 16  ;;  %v5043_v49 = vshrl.u32 %v12045_v5, 16  ;;  %v5046_v36 = vshll.u32 %v12045_v5, 16  ;;  %v12084_v57 = vld [vmem:[#allocation3 + $0x4c] sm:$0xf] }
 0x2e4   : > { %9610 = vmatpush3.bf16.msra.mxu1 %v10247_v28  ;;  %v5007_v51 = vsel %vm10813_vm11, %v5002_v45, %v5006_v15  ;;  %v5012_v30 = vrot.slane %v5011_v55, 4  ;;  %v5030_v11 = vrot.slane %v5028_v59, 5  ;;  %v5034_v58 = vrot.slane %v5032_v12, 4 }
 0x2e5   : > { %v5026_v26 = vrot.slane %v5025_v34, 4  ;;  %v5040_v44 = vrot.slane %v5038_v43, 5  ;;  %9611 = vmatprep.subr.bf16.mxu1 %v10248_v63  ;;  %v5045_v8 = vrot.slane %v5043_v49, 4  ;;  %v5048_v31 = vrot.slane %v5046_v36, 5  ;;  %v12094_v36 = vld [vmem:[#allocation3 + $0x50] sm:$0x1] }
 0x2e6   : > { %v5017_v28 = vsel %vm10813_vm11, %v5012_v30, %v5016_v46  ;;  %v5035_v4 = vor.u32 %v5034_v58, %v5030_v11  ;;  %v5052_v1 = vshll.u32 %v12050_v21, 16  ;;  %v5056_v20 = vshrl.u32 %v12050_v21, 16 }
 0x2e7   : > { %v8743_v48 = vcombine.low %v5007_v51, %v5017_v28  ;;  %v5031_v25 = vsel %vm10813_vm11, %v5026_v26, %v5030_v11  ;;  %v5049_v62 = vor.u32 %v5048_v31, %v5045_v8  ;;  %v5062_v56 = vshll.u32 %v12054_v16, 16  ;;  %v12096_v51 = vld [vmem:[#allocation3 + $0x54] sm:$0xf] }
 0x2e8   : > { %v5036_v53 = vrot.slane %v5035_v4, 4  ;;  %9612 = vmatpush3.bf16.msra.mxu1 %v10248_v63  ;;  %v5054_v37 = vrot.slane %v5052_v1, 5  ;;  %v5058_v42 = vrot.slane %v5056_v20, 4  ;;  %v5067_v15 = vshrl.u32 %v12065_v35, 16  ;;  %v12109_v1 = vld [vmem:[%s12906_s7 + $0x40] sm:$0xff]  }
 0x2e9   : > { %9597 = vmatprep.mubr.msk.bf16.mxu1 %vm1610_vm10, %v8743_v48  ;;  %v5050_v32 = vrot.slane %v5049_v62, 4  ;;  %v5064_v46 = vrot.slane %v5062_v56, 5  ;;  %v5070_v6 = vshll.u32 %v12065_v35, 16  ;;  %v5076_v9 = vshll.u32 %v12071_v38, 16  ;;  %9613 = vmatprep.subr.bf16.mxu1 %v10249_v61 }
 0x2ea   : > { %v5041_v45 = vsel %vm10813_vm11, %v5036_v53, %v5040_v44  ;;  %v5059_v55 = vor.u32 %v5058_v42, %v5054_v37  ;;  %v5069_v63 = vrot.slane %v5067_v15, 4  ;;  %v5080_v59 = vshrl.u32 %v12071_v38, 16  ;;  %v12100_v44 = vld [vmem:[#allocation3 + $0x58] sm:$0xf] }
 0x2eb   : > { %v8744_v12 = vcombine.low %v5031_v25, %v5041_v45  ;;  %v5055_v34 = vsel %vm10813_vm11, %v5050_v32, %v5054_v37  ;;  %v5072_v43 = vrot.slane %v5070_v6, 5  ;;  %v5078_v49 = vrot.slane %v5076_v9, 5  ;;  %v12118_v45 = vld [vmem:[#allocation3 + $0x5c] sm:$0x1] }
 0x2ec   : > { %v5060_v30 = vrot.slane %v5059_v55, 4  ;;  %v5082_v11 = vrot.slane %v5080_v59, 4  ;;  %v5086_v58 = vshll.u32 %v12076_v27, 16  ;;  %9614 = vmatpush3.bf16.msra.mxu1 %v10249_v61  ;;  %v5091_v26 = vshrl.u32 %v12078_v2, 16 }
 0x2ed   : > { %9598 = vmatmul.mubr.msk.bf16.gmra.mrb[4].mxu1 %vm1610_vm10, %v8744_v12  ;;  %v5073_v8 = vor.u32 %v5072_v43, %v5069_v63  ;;  %v5094_v31 = vshll.u32 %v12078_v2, 16  ;;  %v5100_v28 = vshll.u32 %v12084_v57, 16  ;;  %v5104_v4 = vshrl.u32 %v12084_v57, 16  ;;  %9615 = vmatprep.subr.bf16.mxu1 %v10250_v17 }
 0x2ee   : > { %v5065_v61 = vsel %vm10813_vm11, %v5060_v30, %v5064_v46  ;;  %v5083_v20 = vor.u32 %v5082_v11, %v5078_v49  ;;  %v5088_v48 = vrot.slane %v5086_v58, 5  ;;  %v5093_v25 = vrot.slane %v5091_v26, 4  ;;  %v5501_v58 = vld [vmem:[#allocation3] sm:$0xe] }
 0x2ef   : > { %v8745_v62 = vcombine.low %v5055_v34, %v5065_v61  ;;  %v5074_v56 = vrot.slane %v5073_v8, 4  ;;  %v5096_v53 = vrot.slane %v5094_v31, 5  ;;  %v5102_v37 = vrot.slane %v5100_v28, 5  ;;  %v5502_v61 = vld [vmem:[#allocation3 + $0xc] sm:$0xe] }
 0x2f0   : > { %v5084_v42 = vrot.slane %v5083_v20, 4  ;;  %v5106_v15 = vrot.slane %v5104_v4, 4  ;;  %v5110_v32 = vshll.u32 %v12094_v36, 16  ;;  %v5115_v6 = vshrl.u32 %v12096_v51, 16  ;;  %9616 = vmatpush3.bf16.msra.mxu1 %v10250_v17  ;;  %v5503_v20 = vld [vmem:[#allocation3 + $0x18] sm:$0xe] }
 0x2f1   : > { %9601 = vmatprep.mubr.msk.bf16.mxu1 %vm1610_vm10, %v8745_v62  ;;  %v5079_v9 = vsel %vm10813_vm11, %v5074_v56, %v5078_v49  ;;  %v5097_v46 = vor.u32 %v5096_v53, %v5093_v25  ;;  %v5118_v55 = vshll.u32 %v12096_v51, 16  ;;  %v5124_v63 = vshll.u32 %v12100_v44, 16  ;;  %9633 = vmatprep.subr.bf16.mxu1 %v12109_v1 }
 0x2f2   : > { %v5089_v59 = vsel %vm10813_vm11, %v5084_v42, %v5088_v48  ;;  %v5107_v12 = vor.u32 %v5106_v15, %v5102_v37  ;;  %v5112_v34 = vrot.slane %v5110_v32, 5  ;;  %v5117_v17 = vrot.slane %v5115_v6, 4  ;;  %v5504_v32 = vld [vmem:[#allocation3 + $0x24] sm:$0xe] }
 0x2f3   : > { %v8746_v43 = vcombine.low %v5079_v9, %v5089_v59  ;;  %v5098_v30 = vrot.slane %v5097_v46, 4  ;;  %v5120_v11 = vrot.slane %v5118_v55, 5  ;;  %v5126_v26 = vrot.slane %v5124_v63, 5 }
 0x2f4   : > { %v5108_v49 = vrot.slane %v5107_v12, 4  ;;  %v5128_v8 = vshrl.u32 %v12100_v44, 16  ;;  %v5134_v31 = vshll.u32 %v12118_v45, 16  ;;  %v5530_v48 = vrot.slane %v11989_v29, 5  ;;  %v5505_v12 = vld [vmem:[#allocation3 + $0x30] sm:$0xe] }
 0x2f5   : > { %9602 = vmatmul.mubr.msk.bf16.gmra.mrb[8].mxu1 %vm1610_vm10, %v8746_v43  ;;  %v5103_v28 = vsel %vm10813_vm11, %v5098_v30, %v5102_v37  ;;  %v5121_v4 = vor.u32 %v5120_v11, %v5117_v17  ;;  %v8761_v15 = vcombine.low %v11985_v13, %v11987_v14  ;;  %v8762_v37 = vcombine.low %v11995_v19, %v12001_v39  ;;  %v5506_v30 = vld [vmem:[#allocation3 + $0x3c] sm:$0xe]  ;;  %v10262_v39 = vld [vmem:[%s12906_s7 + $0x58] sm:$0xff]  }
 0x2f6   : > { %v5113_v25 = vsel %vm10813_vm11, %v5108_v49, %v5112_v34  ;;  %v5130_v62 = vrot.slane %v5128_v8, 4  ;;  %v5136_v42 = vrot.slane %v5134_v31, 5  ;;  %v8781_v9 = vrot.slane %v5501_v58, 9 }
 0x2f7   : > { %v8747_v56 = vcombine.low %v5103_v28, %v5113_v25  ;;  %v5122_v53 = vrot.slane %v5121_v4, 4  ;;  %v5527_v46 = vrot.slane %v11987_v14, 5  ;;  %v8782_v55 = vrot.slane %v5502_v61, 9 }
 0x2f8   : > { %v5131_v6 = vor.u32 %v5130_v62, %v5126_v26  ;;  %v8783_v63 = vrot.slane %v5503_v20, 9  ;;  %v5541_v59 = vrot.slane %v12015_v41, 5  ;;  %v5544_v43 = vrot.slane %v12022_v0, 5 }
 0x2f9   : > { %9605 = vmatprep.mubr.msk.bf16.mxu1 %vm1610_vm10, %v8747_v56  ;;  %v5127_v29 = vsel %vm10813_vm11, %v5122_v53, %v5126_v26  ;;  %v12144_v13 = vsel %vm11056_vm14, %v8781_v9, %v5527_v46  ;;  %v5529_v17 = vrot.slane %v5527_v46, 4  ;;  %v12151_v14 = vsel %vm11056_vm14, %v8782_v55, %v5534_v54  ;;  %v5507_v26 = vld [vmem:[#allocation3 + $0x48] sm:$0xe]  ;;  %v5508_v53 = vld [vmem:[#allocation3 + $0x54] sm:$0xe] }
 0x2fa   : > { %v5132_v34 = vrot.slane %v5131_v6, 4  ;;  %v12155_v11 = vsel %vm11056_vm14, %v8783_v63, %v5541_v59  ;;  %v5543_v58 = vrot.slane %v5541_v59, 4  ;;  %v8784_v49 = vrot.slane %v5504_v32, 9 }
 0x2fb   : > { %v12161_v0 = vsel %vm11056_vm14, %v5529_v17, %v5530_v48  ;;  %v8798_v31 = vcombine.low %v12151_v14, %v12029_v24  ;;  %v5548_v54 = vrot.slane %v12037_v60, 5  ;;  %v5551_v20 = vrot.slane %v12043_v10, 5  ;;  %v10269_v24 = vld [vmem:[%s12906_s7 + $0x80] sm:$0xff]   ;;  %v10270_v14 = vld [vmem:[#allocation3 + $0x24] sm:$0xff]  }
 0x2fc   : > { %v5137_v8 = vsel %vm10813_vm11, %v5132_v34, %v5136_v42  ;;  %v8797_v4 = vcombine.low %v12144_v13, %v12161_v0  ;;  %v12170_v61 = vsel %vm11056_vm14, %v5543_v58, %v5544_v43  ;;  %v8785_v56 = vrot.slane %v5505_v12, 9  ;;  %v6004_v0 = vld [vmem:[#allocation3 + $0x18] sm:$0xf] }
 0x2fd   : > { %v8748_v28 = vcombine.low %v5127_v29, %v5137_v8  ;;  %v8799_v25 = vcombine.low %v12155_v11, %v12170_v61  ;;  %v12177_v48 = vsel %vm11056_vm14, %v8784_v49, %v5548_v54  ;;  %v5550_v62 = vrot.slane %v5548_v54, 4  ;;  %v10272_v11 = vld [vmem:[%s12906_s7 + $0x88] sm:$0xff]  }
 0x2fe   : > { %v5555_v42 = vrot.slane %v12050_v21, 5  ;;  %v5558_v32 = vrot.slane %v12054_v16, 5  ;;  %v8786_v6 = vrot.slane %v5506_v30, 9  ;;  %v5562_v9 = vrot.slane %v12071_v38, 5  ;;  %v12280_v61 = vld [vmem:[#allocation3 + $0x1c] sm:$0xf] }
 0x2ff   : > { %9606 = vmatmul.mubr.msk.bf16.gmra.mrb[12].mxu1 %vm1610_vm10, %v8748_v28  ;;  %v5552_v10 = vsel %vm11056_vm14, %v5550_v62, %v5551_v20  ;;  %v5565_v46 = vrot.slane %v12076_v27, 5  ;;  %v8787_v29 = vrot.slane %v5507_v26, 9  ;;  %v5569_v55 = vrot.slane %v12084_v57, 5 }
 0x300   : > { %9617 = vmatprep.mubr.msk.bf16.mxu1 %vm1610_vm10, %v8761_v15  ;;  %v8800_v63 = vcombine.low %v12177_v48, %v5552_v10  ;;  %v5556_v59 = vsel %vm11056_vm14, %v8785_v56, %v5555_v42  ;;  %v5557_v12 = vrot.slane %v5555_v42, 4  ;;  %v5563_v16 = vsel %vm11056_vm14, %v8786_v6, %v5562_v9  ;;  %v10259_v56 = vld [vmem:[%s12906_s7 + $0x50] sm:$0xff]  }
 0x301   : > { %v5564_v34 = vrot.slane %v5562_v9, 4  ;;  %v5570_v15 = vsel %vm11056_vm14, %v8787_v29, %v5569_v55  ;;  %v5571_v17 = vrot.slane %v5569_v55, 4  ;;  %v5572_v43 = vrot.slane %v12094_v36, 5  ;;  %v10256_v36 = vld [vmem:[%s12906_s7 + $0x48] sm:$0xff]   ;;  %v10275_v9 = vld [vmem:[%s12906_s7 + $0x90] sm:$0xff]   ;;  %v10271_v29 = vld [vmem:[#allocation3 + $0x30] sm:$0xff]  }
 0x302   : > { %v5559_v27 = vsel %vm11056_vm14, %v5557_v12, %v5558_v32  ;;  %v8788_v30 = vrot.slane %v5508_v53, 9  ;;  %v5576_v58 = vrot.slane %v12100_v44, 5  ;;  %v5579_v49 = vrot.slane %v12118_v45, 5  ;;  %v10278_v12 = vld [vmem:[%s12906_s7 + $0x98] sm:$0xff]  }
 0x303   : > { %v8763_v26 = vcombine.low %v12007_v22, %v12015_v41  ;;  %v8801_v8 = vcombine.low %v5556_v59, %v5559_v27  ;;  %v5566_v54 = vsel %vm11056_vm14, %v5564_v34, %v5565_v46  ;;  %v5573_v28 = vsel %vm11056_vm14, %v5571_v17, %v5572_v43  ;;  %v10273_v59 = vld [vmem:[#allocation3 + $0x3c] sm:$0xff]   ;;  %v6007_v27 = vld [vmem:[#allocation3 + $0x24] sm:$0xf] }
 0x304   : > { %v8802_v20 = vcombine.low %v5563_v16, %v5566_v54  ;;  %v8803_v48 = vcombine.low %v5570_v15, %v5573_v28  ;;  %v5577_v62 = vsel %vm11056_vm14, %v8788_v30, %v5576_v58  ;;  %v5578_v45 = vrot.slane %v5576_v58, 4  ;;  %v12294_v16 = vld [vmem:[#allocation3 + $0x14] sm:$0x1]  ;;  %v12296_v15 = vld [vmem:[#allocation3 + $0x20] sm:$0x1] }
 0x305   : > { %v8764_v53 = vcombine.low %v12025_v3, %v12037_v60  ;;  %v8765_v19 = vcombine.low %v12045_v5, %v12050_v21  ;;  %v8766_v3 = vcombine.low %v12065_v35, %v12071_v38  ;;  %v8767_v60 = vcombine.low %v12078_v2, %v12084_v57  ;;  %v10264_v21 = vld [vmem:[%s12906_s7 + $0x68] sm:$0xff]   ;;  %v10265_v35 = vld [vmem:[%s12906_s7 + $0x70] sm:$0xff]   ;;  %v10266_v38 = vld [vmem:[%s12906_s7 + $0x78] sm:$0xff]  }
 0x306   : > { %v5580_v22 = vsel %vm11056_vm14, %v5578_v45, %v5579_v49  ;;  %v8768_v5 = vcombine.low %v12096_v51, %v12100_v44  ;;  %v10267_v2 = vld [vmem:[#allocation3 + $0xc] sm:$0xff]   ;;  %v10268_v51 = vld [vmem:[#allocation3 + $0x18] sm:$0xff]   ;;  %v6050_v32 = vshrl.u32 %v6004_v0, 16  ;;  %v6053_v6 = vshll.u32 %v6004_v0, 16  ;;  %v12300_v49 = vld [vmem:[#allocation3 + $0x28] sm:$0xf] }
 0x307   : > { %9618 = vmatmul.mubr.msk.bf16.vlgmr.msra.gmra.mrb[0].mxu1 %vm1610_vm10, %v8762_v37  ;;  %v8804_v41 = vcombine.low %v5577_v62, %v5580_v22  ;;  %v6001_v57 = vld [vmem:[#allocation3 + $0xc] sm:$0xf]  ;;  %v12273_v44 = vld [vmem:[#allocation3 + $0x10] sm:$0xf]  ;;  %v6059_v10 = vshll.u32 %v12280_v61, 16  ;;  %v6063_v46 = vshrl.u32 %v12280_v61, 16 }
 0x308   : > { %9634 = vmatpush3.bf16.msra.mxu1 %v12109_v1  ;;  %9621 = vmatprep.mubr.msk.bf16.mxu1 %vm1610_vm10, %v8763_v26  ;;  %v10263_v1 = vld [vmem:[%s12906_s7 + $0x60] sm:$0xff]   ;;  %v6026_v37 = vshrl.u32 %v6001_v57, 16  ;;  %v6029_v13 = vshll.u32 %v6001_v57, 16  ;;  %v6052_v17 = vrot.slane %v6050_v32, 4  ;;  %v6055_v43 = vrot.slane %v6053_v6, 5 }
 0x309   : > { %9635 = vmatprep.subr.bf16.mxu1 %v10256_v36  ;;  %v12298_v30 = vrot.slane %v6059_v10, 5  ;;  %v6065_v58 = vrot.slane %v6063_v46, 4  ;;  %v6069_v28 = vshll.u32 %v12296_v15, 16  ;;  %v6083_v62 = vshll.u32 %v12300_v49, 16 }
 0x30a   : > { %v6031_v42 = vrot.slane %v6029_v13, 5  ;;  %v6087_v45 = vshrl.u32 %v12300_v49, 16  ;;  %v6056_v22 = vor.u32 %v6055_v43, %v6052_v17  ;;  %v12346_v43 = vld [vmem:[#allocation3 + $0x44] sm:$0x1] }
 0x30c   : > { %9636 = vmatpush3.bf16.msra.mxu1 %v10256_v36  ;;  %v12309_v36 = vld [vmem:[%s12906_s7 + $0xa0] sm:$0xff]   ;;  %v6057_v13 = vrot.slane %v6056_v22, 4 }
 0x30d   : > { %9637 = vmatprep.subr.bf16.mxu1 %v10259_v56 }
 0x30f   : > { %9622 = vmatmul.mubr.msk.bf16.gmra.mrb[4].mxu1 %vm1610_vm10, %v8764_v53  ;;  %v10274_v53 = vld [vmem:[#allocation3 + $0x48] sm:$0xff]  }
 0x310   : > { %9625 = vmatprep.mubr.msk.bf16.mxu1 %vm1610_vm10, %v8765_v19  ;;  %9638 = vmatpush3.bf16.msra.mxu1 %v10259_v56  ;;  %v6010_v56 = vld [vmem:[#allocation3 + $0x30] sm:$0xf]  ;;  %v10276_v19 = vld [vmem:[#allocation3 + $0x54] sm:$0xff]  }
 0x311   : > { %9639 = vmatprep.subr.bf16.mxu1 %v10262_v39  ;;  %v6101_v57 = vshll.u32 %v6010_v56, 16 }
 0x314   : > { %9640 = vmatpush3.bf16.msra.mxu1 %v10262_v39 }
 0x315   : > { %9657 = vmatprep.subr.bf16.mxu1 %v10263_v1 }
 0x317   : > { %9626 = vmatmul.mubr.msk.bf16.gmra.mrb[8].mxu1 %vm1610_vm10, %v8766_v3  ;;  %v12315_v3 = vld [vmem:[#allocation3 + $0x2c] sm:$0x1] }
 0x318   : > { %9629 = vmatprep.mubr.msk.bf16.mxu1 %vm1610_vm10, %v8767_v60  ;;  %v6093_v32 = vshll.u32 %v12315_v3, 16 }
 0x31f   : > { %9630 = vmatmul.mubr.msk.bf16.gmra.mrb[12].mxu1 %vm1610_vm10, %v8768_v5 }
 0x320   : > { %9641 = vmatprep.mubr.msk.bf16.mxu1 %vm1610_vm10, %v8797_v4  ;;  %v6039_v4 = vshrl.u32 %v12273_v44, 16 }
 0x327   : > { %9642 = vmatmul.mubr.msk.bf16.vlgmr.msra.gmra.mrb[0].mxu1 %vm1610_vm10, %v8798_v31  ;;  %v6035_v31 = vshll.u32 %v12273_v44, 16 }
 0x328   : > { %9658 = vmatpush3.bf16.msra.mxu1 %v10263_v1  ;;  %9645 = vmatprep.mubr.msk.bf16.mxu1 %vm1610_vm10, %v8799_v25  ;;  %v6028_v25 = vrot.slane %v6026_v37, 4 }
 0x329   : > { %9659 = vmatprep.subr.bf16.mxu1 %v10264_v21  ;;  %v12289_v55 = vrot.slane %v6035_v31, 5 }
 0x32a   : > { %v6032_v34 = vor.u32 %v6031_v42, %v6028_v25 }
 0x32c   : > { %9660 = vmatpush3.bf16.msra.mxu1 %v10264_v21  ;;  %v6033_v54 = vrot.slane %v6032_v34, 4  ;;  %v12317_v21 = vld [vmem:[#allocation3 + $0x34] sm:$0xf] }
 0x32d   : > { %9661 = vmatprep.subr.bf16.mxu1 %v10265_v35  ;;  %v6107_v0 = vshll.u32 %v12317_v21, 16  ;;  %v6111_v31 = vshrl.u32 %v12317_v21, 16 }
 0x32e   : > { %v6038_v37 = vsel %vm10813_vm11, %v6033_v54, %v12289_v55  ;;  %v6095_v54 = vrot.slane %v6093_v32, 5 }
 0x32f   : > { %9646 = vmatmul.mubr.msk.bf16.gmra.mrb[4].mxu1 %vm1610_vm10, %v8800_v63  ;;  %v6041_v63 = vrot.slane %v6039_v4, 4  ;;  %v12344_v34 = vrot.slane %v6107_v0, 5  ;;  %v6113_v17 = vrot.slane %v6111_v31, 4 }
 0x330   : > { %9649 = vmatprep.mubr.msk.bf16.mxu1 %vm1610_vm10, %v8801_v8  ;;  %9662 = vmatpush3.bf16.msra.mxu1 %v10265_v35  ;;  %v6045_v8 = vshll.u32 %v12294_v16, 16  ;;  %v6013_v35 = vld [vmem:[#allocation3 + $0x3c] sm:$0xf] }
 0x331   : > { %9663 = vmatprep.subr.bf16.mxu1 %v10266_v38  ;;  %v6042_v26 = vor.u32 %v6041_v63, %v12289_v55  ;;  %v6122_v4 = vshrl.u32 %v6013_v35, 16  ;;  %v6125_v25 = vshll.u32 %v6013_v35, 16  ;;  %v6103_v55 = vrot.slane %v6101_v57, 5 }
 0x332   : > { %v6047_v1 = vrot.slane %v6045_v8, 5  ;;  %v6062_v63 = vsel %vm10813_vm11, %v6057_v13, %v12298_v30 }
 0x333   : > { %v6043_v39 = vrot.slane %v6042_v26, 4  ;;  %v10277_v26 = vld [vmem:[#allocation3 + $0x60] sm:$0xff]  }
 0x334   : > { %9664 = vmatpush3.bf16.msra.mxu1 %v10266_v38  ;;  %v12319_v38 = vrot.slane %v6083_v62, 5 }
 0x335   : > { %9681 = vmatprep.subr.bf16.mxu1 %v10269_v24  ;;  %v6048_v42 = vsel %vm10813_vm11, %v6043_v39, %v6047_v1  ;;  %v6141_v39 = vshll.u32 %v12346_v43, 16 }
 0x336   : > { %v8853_v8 = vcombine.low %v6038_v37, %v6048_v42 }
 0x337   : > { %9650 = vmatmul.mubr.msk.bf16.gmra.mrb[8].mxu1 %vm1610_vm10, %v8802_v20  ;;  %v6074_v20 = vshrl.u32 %v6007_v27, 16 }
 0x338   : > { %9653 = vmatprep.mubr.msk.bf16.mxu1 %vm1610_vm10, %v8803_v48  ;;  %v6077_v48 = vshll.u32 %v6007_v27, 16  ;;  %v6124_v27 = vrot.slane %v6122_v4, 4 }
 0x339   : > { %v6076_v60 = vrot.slane %v6074_v20, 4 }
 0x33a   : > { %v6079_v5 = vrot.slane %v6077_v48, 5  ;;  %v6016_v48 = vld [vmem:[#allocation3 + $0x48] sm:$0xf] }
 0x33b   : > { %v6146_v1 = vshrl.u32 %v6016_v48, 16 }
 0x33c   : > { %v6080_v10 = vor.u32 %v6079_v5, %v6076_v60  ;;  %v6019_v60 = vld [vmem:[#allocation3 + $0x54] sm:$0xf]  ;;  %v12355_v5 = vld [vmem:[#allocation3 + $0x58] sm:$0xf] }
 0x33d   : > { %v6170_v0 = vshrl.u32 %v6019_v60, 16  ;;  %v6173_v31 = vshll.u32 %v6019_v60, 16  ;;  %v6179_v4 = vshll.u32 %v12355_v5, 16 }
 0x33f   : > { %9654 = vmatmul.mubr.msk.bf16.gmra.mrb[12].mxu1 %vm1610_vm10, %v8804_v41  ;;  %v6066_v41 = vor.u32 %v6065_v58, %v12298_v30  ;;  %v6127_v58 = vrot.slane %v6125_v25, 5  ;;  %v6081_v30 = vrot.slane %v6080_v10, 4  ;;  %v6183_v25 = vshrl.u32 %v12355_v5, 16 }
 0x340   : > { %9665 = vmatprep.mubr.msk.bf16.mxu1 %vm1610_vm10, %v10267_v2  ;;  %v6098_v2 = vshrl.u32 %v6010_v56, 16 }
 0x341   : > { %v6086_v37 = vsel %vm10813_vm11, %v6081_v30, %v12319_v38 }
 0x347   : > { %9666 = vmatmul.mubr.msk.bf16.vlgmr.msra.gmra.mrb[0].mxu1 %vm1610_vm10, %v10268_v51  ;;  %v12321_v51 = vld [vmem:[#allocation3 + $0x40] sm:$0xf] }
 0x348   : > { %9682 = vmatpush3.bf16.msra.mxu1 %v10269_v24  ;;  %9669 = vmatprep.mubr.msk.bf16.mxu1 %vm1610_vm10, %v10270_v14  ;;  %v6089_v24 = vrot.slane %v6087_v45, 4  ;;  %v6067_v14 = vrot.slane %v6066_v41, 4  ;;  %v6131_v6 = vshll.u32 %v12321_v51, 16  ;;  %v12351_v41 = vld [vmem:[#allocation3 + $0x4c] sm:$0xf] }
 0x349   : > { %9683 = vmatprep.subr.bf16.mxu1 %v10272_v11  ;;  %v6159_v57 = vshrl.u32 %v12351_v41, 16 }
 0x34a   : > { %v6090_v46 = vor.u32 %v6089_v24, %v12319_v38  ;;  %v6149_v24 = vshll.u32 %v6016_v48, 16 }
 0x34c   : > { %9684 = vmatpush3.bf16.msra.mxu1 %v10272_v11  ;;  %v6071_v11 = vrot.slane %v6069_v28, 5  ;;  %v12348_v28 = vrot.slane %v6131_v6, 5  ;;  %v6091_v62 = vrot.slane %v6090_v46, 4  ;;  %v6143_v6 = vrot.slane %v6141_v39, 5  ;;  %v12369_v46 = vld [vmem:[#allocation3 + $0x50] sm:$0x1] }
 0x34d   : > { %9685 = vmatprep.subr.bf16.mxu1 %v10275_v9  ;;  %v6165_v30 = vshll.u32 %v12369_v46, 16 }
 0x34e   : > { %v6096_v13 = vsel %vm10813_vm11, %v6091_v62, %v6095_v54  ;;  %v12374_v54 = vld [vmem:[#allocation3 + $0x64] sm:$0xf]  ;;  %v12382_v62 = vld [vmem:[#allocation3 + $0x5c] sm:$0x1] }
 0x34f   : > { %9670 = vmatmul.mubr.msk.bf16.gmra.mrb[4].mxu1 %vm1610_vm10, %v10271_v29  ;;  %v6100_v29 = vrot.slane %v6098_v2, 4  ;;  %v6155_v2 = vshll.u32 %v12351_v41, 16  ;;  %v6207_v60 = vshrl.u32 %v12374_v54, 16 }
 0x350   : > { %9673 = vmatprep.mubr.msk.bf16.mxu1 %vm1610_vm10, %v10273_v59  ;;  %9686 = vmatpush3.bf16.msra.mxu1 %v10275_v9  ;;  %v6135_v9 = vshrl.u32 %v12321_v51, 16  ;;  %v6072_v59 = vsel %vm10813_vm11, %v6067_v14, %v6071_v11 }
 0x351   : > { %9687 = vmatprep.subr.bf16.mxu1 %v10278_v12  ;;  %v6104_v45 = vor.u32 %v6103_v55, %v6100_v29  ;;  %v8854_v56 = vcombine.low %v6062_v63, %v6072_v59  ;;  %v6151_v29 = vrot.slane %v6149_v24, 5  ;;  %v6157_v38 = vrot.slane %v6155_v2, 5  ;;  %v10280_v59 = vld [vmem:[%s12906_s7 + $0xa8] sm:$0xff]  }
 0x352   : > { %v6137_v20 = vrot.slane %v6135_v9, 4  ;;  %v6148_v9 = vrot.slane %v6146_v1, 4  ;;  %v6161_v55 = vrot.slane %v6159_v57, 4  ;;  %v8855_v63 = vcombine.low %v6086_v37, %v6096_v13 }
 0x353   : > { %v6105_v14 = vrot.slane %v6104_v45, 4  ;;  %v6203_v1 = vshll.u32 %v12374_v54, 16  ;;  %v6189_v24 = vshll.u32 %v12382_v62, 16  ;;  %v6167_v13 = vrot.slane %v6165_v30, 5 }
 0x354   : > { %9688 = vmatpush3.bf16.msra.mxu1 %v10278_v12  ;;  %v12342_v12 = vld [vmem:[#allocation3 + $0x38] sm:$0x1]  ;;  %v6138_v35 = vor.u32 %v6137_v20, %v12348_v28 }
 0x355   : > { %9705 = vmatprep.subr.bf16.mxu1 %v12309_v36  ;;  %v6117_v22 = vshll.u32 %v12342_v12, 16  ;;  %v6110_v20 = vsel %vm10813_vm11, %v6105_v14, %v12344_v34 }
 0x356   : > { %v6139_v10 = vrot.slane %v6138_v35, 4 }
 0x357   : > { %9674 = vmatmul.mubr.msk.bf16.gmra.mrb[8].mxu1 %vm1610_vm10, %v10274_v53  ;;  %v6114_v53 = vor.u32 %v6113_v17, %v12344_v34  ;;  %v6119_v11 = vrot.slane %v6117_v22, 5  ;;  %v6022_v17 = vld [vmem:[#allocation3 + $0x60] sm:$0xf] }
 0x358   : > { %9677 = vmatprep.mubr.msk.bf16.mxu1 %vm1610_vm10, %v10276_v19  ;;  %v6128_v19 = vor.u32 %v6127_v58, %v6124_v27  ;;  %v6172_v27 = vrot.slane %v6170_v0, 4  ;;  %v6175_v58 = vrot.slane %v6173_v31, 5  ;;  %v6144_v22 = vsel %vm10813_vm11, %v6139_v10, %v6143_v6  ;;  %v10282_v6 = vld [vmem:[%s12906_s7 + $0xb8] sm:$0xff]  }
 0x359   : > { %v6115_v42 = vrot.slane %v6114_v53, 4  ;;  %v6152_v53 = vor.u32 %v6151_v29, %v6148_v9  ;;  %v6194_v34 = vshrl.u32 %v6022_v17, 16  ;;  %v6197_v39 = vshll.u32 %v6022_v17, 16 }
 0x35a   : > { %v6129_v32 = vrot.slane %v6128_v19, 4  ;;  %v6162_v19 = vor.u32 %v6161_v55, %v6157_v38  ;;  %v6205_v0 = vrot.slane %v6203_v1, 5  ;;  %v6209_v31 = vrot.slane %v6207_v60, 4 }
 0x35b   : > { %v6120_v48 = vsel %vm10813_vm11, %v6115_v42, %v6119_v11  ;;  %v6196_v14 = vrot.slane %v6194_v34, 4  ;;  %v6199_v11 = vrot.slane %v6197_v39, 5  ;;  %v6191_v42 = vrot.slane %v6189_v24, 5 }
 0x35c   : > { %v6134_v45 = vsel %vm10813_vm11, %v6129_v32, %v12348_v28  ;;  %v10281_v28 = vld [vmem:[%s12906_s7 + $0xb0] sm:$0xff]   ;;  %v8856_v2 = vcombine.low %v6110_v20, %v6120_v48  ;;  %v6163_v37 = vrot.slane %v6162_v19, 4  ;;  %v12398_v32 = vld [vmem:[#allocation3 + $0x68] sm:$0x1]  ;;  %v6210_v55 = vor.u32 %v6209_v31, %v6205_v0  ;;  %v6415_v31 = vld [vmem:[#allocation3 + $0x3c] sm:$0xe] }
 0x35d   : > { %v8857_v57 = vcombine.low %v6134_v45, %v6144_v22  ;;  %v6200_v29 = vor.u32 %v6199_v11, %v6196_v14  ;;  %v6452_v34 = vrot.slane %v12280_v61, 5  ;;  %v6459_v60 = vrot.slane %v12300_v49, 5 }
 0x35e   : > { %v6168_v10 = vsel %vm10813_vm11, %v6163_v37, %v6167_v13  ;;  %v6211_v30 = vrot.slane %v6210_v55, 4  ;;  %v6462_v61 = vrot.slane %v12315_v3, 5  ;;  %v6466_v14 = vrot.slane %v12317_v21, 5  ;;  %v10284_v21 = vld [vmem:[%s12906_s7 + $0xc8] sm:$0xff]  }
 0x35f   : > { %9678 = vmatmul.mubr.msk.bf16.gmra.mrb[12].mxu1 %vm1610_vm10, %v10277_v26  ;;  %v6181_v26 = vrot.slane %v6179_v4, 5  ;;  %v6201_v48 = vrot.slane %v6200_v29, 4  ;;  %v6461_v37 = vrot.slane %v6459_v60, 4  ;;  %v6473_v3 = vrot.slane %v12321_v51, 5 }
 0x360   : > { %9689 = vmatprep.mubr.msk.bf16.mxu1 %vm1610_vm10, %v8853_v8  ;;  %v6185_v8 = vrot.slane %v6183_v25, 4  ;;  %v6476_v55 = vrot.slane %v12346_v43, 5 }
 0x361   : > { %v6475_v29 = vrot.slane %v6473_v3, 4 }
 0x362   : > { %v6186_v35 = vor.u32 %v6185_v8, %v6181_v26 }
 0x363   : > { %v6477_v43 = vsel %vm11056_vm14, %v6475_v29, %v6476_v55 }
 0x364   : > { %v6187_v25 = vrot.slane %v6186_v35, 4 }
 0x366   : > { %v6192_v17 = vsel %vm10813_vm11, %v6187_v25, %v6191_v42 }
 0x367   : > { %9690 = vmatmul.mubr.msk.bf16.vlgmr.msra.gmra.mrb[0].mxu1 %vm1610_vm10, %v8854_v56  ;;  %v6176_v56 = vor.u32 %v6175_v58, %v6172_v27  ;;  %v6445_v27 = vrot.slane %v12273_v44, 5  ;;  %v6411_v58 = vld [vmem:[#allocation3 + $0xc] sm:$0xe]  ;;  %v6206_v44 = vsel %vm10813_vm11, %v6201_v48, %v6205_v0  ;;  %v6414_v0 = vld [vmem:[#allocation3 + $0x30] sm:$0xe] }
 0x368   : > { %9706 = vmatpush3.bf16.msra.mxu1 %v12309_v36  ;;  %9693 = vmatprep.mubr.msk.bf16.mxu1 %vm1610_vm10, %v8855_v63  ;;  %v6153_v36 = vrot.slane %v6152_v53, 4  ;;  %v6213_v63 = vshll.u32 %v12398_v32, 16  ;;  %v8873_v22 = vrot.slane %v6411_v58, 9  ;;  %v8876_v42 = vrot.slane %v6414_v0, 9  ;;  %v6417_v58 = vld [vmem:[#allocation3 + $0x54] sm:$0xe] }
 0x369   : > { %9707 = vmatprep.subr.bf16.mxu1 %v10280_v59  ;;  %v6177_v4 = vrot.slane %v6176_v56, 4  ;;  %v6447_v53 = vrot.slane %v6445_v27, 4 }
 0x36a   : > { %v6158_v9 = vsel %vm10813_vm11, %v6153_v36, %v6157_v38  ;;  %v10283_v38 = vld [vmem:[%s12906_s7 + $0xc0] sm:$0xff]   ;;  %v6215_v45 = vrot.slane %v6213_v63, 5  ;;  %v6446_v39 = vsel %vm11056_vm14, %v8873_v22, %v6445_v27  ;;  %v6467_v51 = vsel %vm11056_vm14, %v8876_v42, %v6466_v14  ;;  %v10285_v27 = vld [vmem:[%s12906_s7 + $0xd0] sm:$0xff]  }
 0x36b   : > { %v8858_v8 = vcombine.low %v6158_v9, %v6168_v10  ;;  %v6469_v9 = vrot.slane %v12342_v12, 5  ;;  %v8877_v10 = vrot.slane %v6415_v31, 9  ;;  %v6480_v12 = vrot.slane %v12351_v41, 5 }
 0x36c   : > { %9708 = vmatpush3.bf16.msra.mxu1 %v10280_v59  ;;  %v6182_v59 = vsel %vm10813_vm11, %v6177_v4, %v6181_v26  ;;  %v6448_v26 = vrot.slane %v12294_v16, 5  ;;  %v6216_v19 = vsel %vm10813_vm11, %v6211_v30, %v6215_v45  ;;  %v6412_v16 = vld [vmem:[#allocation3 + $0x18] sm:$0xe]  ;;  %v6483_v30 = vrot.slane %v12369_v46, 5 }
 0x36d   : > { %9709 = vmatprep.subr.bf16.mxu1 %v10281_v28  ;;  %v8859_v20 = vcombine.low %v6182_v59, %v6192_v17  ;;  %v8860_v56 = vcombine.low %v6206_v44, %v6216_v19  ;;  %v8874_v24 = vrot.slane %v6412_v16, 9  ;;  %v6474_v59 = vsel %vm11056_vm14, %v8877_v10, %v6473_v3  ;;  %v6416_v17 = vld [vmem:[#allocation3 + $0x48] sm:$0xe]  ;;  %v10291_v10 = vld [vmem:[#allocation3 + $0x3c] sm:$0xff]  }
 0x36e   : > { %v6449_v1 = vsel %vm11056_vm14, %v6447_v53, %v6448_v26  ;;  %v8878_v48 = vrot.slane %v6416_v17, 9  ;;  %v6482_v41 = vrot.slane %v6480_v12, 4  ;;  %v8879_v45 = vrot.slane %v6417_v58, 9  ;;  %v10286_v26 = vld [vmem:[%s12906_s7 + $0xd8] sm:$0xff]  }
 0x36f   : > { %9694 = vmatmul.mubr.msk.bf16.gmra.mrb[4].mxu1 %vm1610_vm10, %v8856_v2  ;;  %v8889_v35 = vcombine.low %v6446_v39, %v6449_v1  ;;  %v6454_v2 = vrot.slane %v6452_v34, 4  ;;  %v6453_v13 = vsel %vm11056_vm14, %v8874_v24, %v6452_v34  ;;  %v6490_v53 = vrot.slane %v12382_v62, 5  ;;  %v6418_v34 = vld [vmem:[#allocation3 + $0x60] sm:$0xe]  ;;  %v10289_v39 = vld [vmem:[%s12906_s7 + $0xe0] sm:$0xff]  }
 0x370   : > { %9697 = vmatprep.mubr.msk.bf16.mxu1 %vm1610_vm10, %v8857_v57  ;;  %9710 = vmatpush3.bf16.msra.mxu1 %v10281_v28  ;;  %v6413_v28 = vld [vmem:[#allocation3 + $0x24] sm:$0xe]  ;;  %v6455_v57 = vrot.slane %v12296_v15, 5  ;;  %v6463_v15 = vsel %vm11056_vm14, %v6461_v37, %v6462_v61  ;;  %v6484_v44 = vsel %vm11056_vm14, %v6482_v41, %v6483_v30  ;;  %v6494_v46 = vrot.slane %v12374_v54, 5  ;;  %v12493_v37 = vld [vmem:[#allocation3 + $0x1c] sm:$0xf] }
 0x371   : > { %9711 = vmatprep.subr.bf16.mxu1 %v10282_v6  ;;  %v8875_v36 = vrot.slane %v6413_v28, 9  ;;  %v10292_v61 = vld [vmem:[%s12906_s7 + $0xe8] sm:$0xff]   ;;  %v6958_v0 = vshrl.u32 %v12493_v37, 16 }
 0x372   : > { %v6456_v49 = vsel %vm11056_vm14, %v6454_v2, %v6455_v57  ;;  %v6496_v28 = vrot.slane %v6494_v46, 4  ;;  %v10287_v2 = vld [vmem:[#allocation3 + $0x18] sm:$0xff]   ;;  %v10288_v57 = vld [vmem:[#allocation3 + $0x24] sm:$0xff]  }
 0x373   : > { %v6460_v11 = vsel %vm11056_vm14, %v8875_v36, %v6459_v60  ;;  %v8890_v4 = vcombine.low %v6453_v13, %v6456_v49  ;;  %v8880_v60 = vrot.slane %v6418_v34, 9  ;;  %v10290_v36 = vld [vmem:[#allocation3 + $0x30] sm:$0xff]   ;;  %v6923_v13 = vld [vmem:[#allocation3 + $0x24] sm:$0xf]  ;;  %v6960_v55 = vrot.slane %v6958_v0, 4 }
 0x374   : > { %9712 = vmatpush3.bf16.msra.mxu1 %v10282_v6  ;;  %v8891_v25 = vcombine.low %v6460_v11, %v6463_v15  ;;  %v6468_v6 = vrot.slane %v6466_v14, 4  ;;  %v12498_v11 = vld [vmem:[#allocation3 + $0x28] sm:$0xf]  ;;  %v6954_v15 = vshll.u32 %v12493_v37, 16  ;;  %v6969_v3 = vshrl.u32 %v6923_v13, 16  ;;  %v10294_v34 = vld [vmem:[#allocation3 + $0x54] sm:$0xff]  }
 0x375   : > { %9729 = vmatprep.subr.bf16.mxu1 %v10283_v38  ;;  %v6495_v54 = vsel %vm11056_vm14, %v8880_v60, %v6494_v46  ;;  %v6972_v31 = vshll.u32 %v6923_v13, 16  ;;  %v6982_v42 = vshrl.u32 %v12498_v11, 16  ;;  %v12542_v13 = vld [vmem:[#allocation3 + $0x38] sm:$0x1] }
 0x376   : > { %v6470_v63 = vsel %vm11056_vm14, %v6468_v6, %v6469_v9  ;;  %v12509_v29 = vrot.slane %v6954_v15, 5 }
 0x377   : > { %9698 = vmatmul.mubr.msk.bf16.gmra.mrb[8].mxu1 %vm1610_vm10, %v8858_v8  ;;  %v8892_v8 = vcombine.low %v6467_v51, %v6470_v63  ;;  %v10293_v51 = vld [vmem:[#allocation3 + $0x48] sm:$0xff]  }
 0x378   : > { %9701 = vmatprep.mubr.msk.bf16.mxu1 %vm1610_vm10, %v8859_v20  ;;  %v8893_v20 = vcombine.low %v6474_v59, %v6477_v43  ;;  %v10298_v63 = vld [vmem:[%s12906_s7 + $0xf8] sm:$0xff]   ;;  %v6971_v59 = vrot.slane %v6969_v3, 4  ;;  %v6974_v43 = vrot.slane %v6972_v31, 5  ;;  %v6961_v41 = vor.u32 %v6960_v55, %v12509_v29 }
 0x37f   : > { %9702 = vmatmul.mubr.msk.bf16.gmra.mrb[12].mxu1 %vm1610_vm10, %v8860_v56  ;;  %v6497_v56 = vrot.slane %v12398_v32, 5  ;;  %v6920_v32 = vld [vmem:[#allocation3 + $0x18] sm:$0xf] }
 0x380   : > { %9713 = vmatprep.mubr.msk.bf16.mxu1 %vm1610_vm10, %v8889_v35  ;;  %v6945_v49 = vshrl.u32 %v6920_v32, 16  ;;  %v6948_v14 = vshll.u32 %v6920_v32, 16 }
 0x381   : > { %v6498_v35 = vsel %vm11056_vm14, %v6496_v28, %v6497_v56  ;;  %v12535_v28 = vld [vmem:[#allocation3 + $0x40] sm:$0xf]  ;;  %v6932_v56 = vld [vmem:[#allocation3 + $0x48] sm:$0xf] }
 0x382   : > { %v8896_v24 = vcombine.low %v6495_v54, %v6498_v35  ;;  %v6947_v6 = vrot.slane %v6945_v49, 4  ;;  %v6950_v9 = vrot.slane %v6948_v14, 5  ;;  %v7026_v14 = vshll.u32 %v12535_v28, 16 }
 0x383   : > { %v7030_v15 = vshrl.u32 %v12535_v28, 16  ;;  %v7041_v0 = vshrl.u32 %v6932_v56, 16  ;;  %v7044_v3 = vshll.u32 %v6932_v56, 16 }
 0x387   : > { %9714 = vmatmul.mubr.msk.bf16.vlgmr.msra.gmra.mrb[0].mxu1 %vm1610_vm10, %v8890_v4  ;;  %v10295_v4 = vld [vmem:[%s12906_s7 + $0xf0] sm:$0xff]  }
 0x388   : > { %9730 = vmatpush3.bf16.msra.mxu1 %v10283_v38  ;;  %9717 = vmatprep.mubr.msk.bf16.mxu1 %vm1610_vm10, %v8891_v25  ;;  %v6487_v38 = vrot.slane %v12355_v5, 5  ;;  %v6481_v5 = vsel %vm11056_vm14, %v8878_v48, %v6480_v12  ;;  %v6978_v25 = vshll.u32 %v12498_v11, 16  ;;  %v12514_v12 = vld [vmem:[#allocation3 + $0x20] sm:$0x1]  ;;  %v12520_v48 = vld [vmem:[#allocation3 + $0x2c] sm:$0x1] }
 0x389   : > { %9731 = vmatprep.subr.bf16.mxu1 %v10284_v21  ;;  %v8894_v1 = vcombine.low %v6481_v5, %v6484_v44  ;;  %v6964_v30 = vshll.u32 %v12514_v12, 16  ;;  %v6988_v5 = vshll.u32 %v12520_v48, 16  ;;  %v12533_v44 = vld [vmem:[%s12906_s7 + $0x100] sm:$0xff]  }
 0x38a   : > { %v6489_v22 = vrot.slane %v6487_v38, 4  ;;  %v6488_v62 = vsel %vm11056_vm14, %v8879_v45, %v6487_v38  ;;  %v12516_v17 = vrot.slane %v6978_v25, 5  ;;  %v12518_v38 = vld [vmem:[#allocation3 + $0x34] sm:$0xf]  ;;  %v6975_v45 = vor.u32 %v6974_v43, %v6971_v59  ;;  %v10297_v59 = vld [vmem:[#allocation3 + $0x6c] sm:$0xff]  }
 0x38b   : > { %v6966_v60 = vrot.slane %v6964_v30, 5  ;;  %v12564_v43 = vrot.slane %v7026_v14, 5 }
 0x38c   : > { %9732 = vmatpush3.bf16.msra.mxu1 %v10284_v21  ;;  %v6491_v19 = vsel %vm11056_vm14, %v6489_v22, %v6490_v53  ;;  %v6926_v21 = vld [vmem:[#allocation3 + $0x30] sm:$0xf]  ;;  %v7002_v22 = vshll.u32 %v12518_v38, 16  ;;  %v7006_v53 = vshrl.u32 %v12518_v38, 16  ;;  %v6976_v32 = vrot.slane %v6975_v45, 4 }
 0x38d   : > { %9733 = vmatprep.subr.bf16.mxu1 %v10285_v27  ;;  %v8895_v16 = vcombine.low %v6488_v62, %v6491_v19  ;;  %v6993_v58 = vshrl.u32 %v6926_v21, 16  ;;  %v6929_v19 = vld [vmem:[#allocation3 + $0x3c] sm:$0xf] }
 0x38e   : > { %v12537_v54 = vrot.slane %v7002_v22, 5  ;;  %v7008_v35 = vrot.slane %v7006_v53, 4  ;;  %v6981_v55 = vsel %vm10813_vm11, %v6976_v32, %v12516_v17  ;;  %v6935_v22 = vld [vmem:[#allocation3 + $0x54] sm:$0xf] }
 0x38f   : > { %9718 = vmatmul.mubr.msk.bf16.gmra.mrb[4].mxu1 %vm1610_vm10, %v8892_v8  ;;  %v6996_v8 = vshll.u32 %v6926_v21, 16  ;;  %v6995_v46 = vrot.slane %v6993_v58, 4  ;;  %v7043_v58 = vrot.slane %v7041_v0, 4 }
 0x390   : > { %9721 = vmatprep.mubr.msk.bf16.mxu1 %vm1610_vm10, %v8893_v20  ;;  %9734 = vmatpush3.bf16.msra.mxu1 %v10285_v27  ;;  %v6984_v27 = vrot.slane %v6982_v42, 4  ;;  %v6951_v20 = vor.u32 %v6950_v9, %v6947_v6  ;;  %v7009_v6 = vor.u32 %v7008_v35, %v12537_v54  ;;  %v7012_v9 = vshll.u32 %v12542_v13, 16 }
 0x391   : > { %9735 = vmatprep.subr.bf16.mxu1 %v10286_v26  ;;  %v6998_v62 = vrot.slane %v6996_v8, 5  ;;  %v7046_v8 = vrot.slane %v7044_v3, 5  ;;  %v7068_v35 = vshll.u32 %v6935_v22, 16 }
 0x392   : > { %v7014_v53 = vrot.slane %v7012_v9, 5  ;;  %v12589_v9 = vld [vmem:[#allocation3 + $0x5c] sm:$0x1] }
 0x393   : > { %v6999_v49 = vor.u32 %v6998_v62, %v6995_v46  ;;  %v12571_v46 = vld [vmem:[#allocation3 + $0x58] sm:$0xf] }
 0x394   : > { %9736 = vmatpush3.bf16.msra.mxu1 %v10286_v26  ;;  %v6985_v26 = vor.u32 %v6984_v27, %v12516_v17  ;;  %v7032_v27 = vrot.slane %v7030_v15, 4  ;;  %v7010_v17 = vrot.slane %v7009_v6, 4 }
 0x395   : > { %9753 = vmatprep.subr.bf16.mxu1 %v10289_v39 }
 0x397   : > { %9722 = vmatmul.mubr.msk.bf16.gmra.mrb[8].mxu1 %vm1610_vm10, %v8894_v1  ;;  %v6952_v1 = vrot.slane %v6951_v20, 4 }
 0x398   : > { %9725 = vmatprep.mubr.msk.bf16.mxu1 %vm1610_vm10, %v8895_v16  ;;  %v6962_v16 = vrot.slane %v6961_v41, 4  ;;  %v12566_v41 = vld [vmem:[#allocation3 + $0x50] sm:$0x1] }
 0x399   : > { %v6957_v31 = vsel %vm10813_vm11, %v6952_v1, %v12509_v29  ;;  %v7065_v1 = vshrl.u32 %v6935_v22, 16 }
 0x39f   : > { %9726 = vmatmul.mubr.msk.bf16.gmra.mrb[12].mxu1 %vm1610_vm10, %v8896_v24  ;;  %v7017_v24 = vshrl.u32 %v6929_v19, 16 }
 0x3a0   : > { %9737 = vmatprep.mubr.msk.bf16.mxu1 %vm1610_vm10, %v10287_v2  ;;  %v7020_v2 = vshll.u32 %v6929_v19, 16  ;;  %v7033_v19 = vor.u32 %v7032_v27, %v12564_v43 }
 0x3a1   : > { %v7019_v21 = vrot.slane %v7017_v24, 4  ;;  %v7074_v24 = vshll.u32 %v12571_v46, 16 }
 0x3a7   : > { %9738 = vmatmul.mubr.msk.bf16.vlgmr.msra.gmra.mrb[0].mxu1 %vm1610_vm10, %v10288_v57  ;;  %v12539_v57 = vld [vmem:[#allocation3 + $0x4c] sm:$0xf] }
 0x3a8   : > { %9754 = vmatpush3.bf16.msra.mxu1 %v10289_v39  ;;  %9741 = vmatprep.mubr.msk.bf16.mxu1 %vm1610_vm10, %v10290_v36  ;;  %v10296_v39 = vld [vmem:[#allocation3 + $0x60] sm:$0xff]   ;;  %v6986_v36 = vrot.slane %v6985_v26, 4  ;;  %v7050_v25 = vshll.u32 %v12539_v57, 16  ;;  %v7054_v42 = vshrl.u32 %v12539_v57, 16 }
 0x3a9   : > { %9755 = vmatprep.subr.bf16.mxu1 %v10292_v61 }
 0x3aa   : > { %v12568_v30 = vrot.slane %v7050_v25, 5  ;;  %v7056_v45 = vrot.slane %v7054_v42, 4  ;;  %v7067_v42 = vrot.slane %v7065_v1, 4 }
 0x3ac   : > { %9756 = vmatpush3.bf16.msra.mxu1 %v10292_v61  ;;  %v6990_v61 = vrot.slane %v6988_v5, 5  ;;  %v7057_v56 = vor.u32 %v7056_v45, %v12568_v30 }
 0x3ad   : > { %9757 = vmatprep.subr.bf16.mxu1 %v10295_v4 }
 0x3ae   : > { %v6991_v29 = vsel %vm10813_vm11, %v6986_v36, %v6990_v61  ;;  %v7015_v36 = vsel %vm10813_vm11, %v7010_v17, %v7014_v53  ;;  %v7058_v6 = vrot.slane %v7057_v56, 4  ;;  %v7084_v17 = vshll.u32 %v12589_v9, 16  ;;  %v12602_v53 = vld [vmem:[#allocation3 + $0x68] sm:$0x1] }
 0x3af   : > { %9742 = vmatmul.mubr.msk.bf16.gmra.mrb[4].mxu1 %vm1610_vm10, %v10291_v10  ;;  %v7022_v10 = vrot.slane %v7020_v2, 5  ;;  %v8946_v62 = vcombine.low %v6981_v55, %v6991_v29  ;;  %v7078_v2 = vshrl.u32 %v12571_v46, 16  ;;  %v10300_v29 = vld [vmem:[%s12906_s7 + $0x108] sm:$0xff]  }
 0x3b0   : > { %9745 = vmatprep.mubr.msk.bf16.mxu1 %vm1610_vm10, %v10293_v51  ;;  %9758 = vmatpush3.bf16.msra.mxu1 %v10295_v4  ;;  %v6967_v4 = vsel %vm10813_vm11, %v6962_v16, %v6966_v60  ;;  %v7000_v51 = vrot.slane %v6999_v49, 4  ;;  %v6938_v16 = vld [vmem:[#allocation3 + $0x60] sm:$0xf]  ;;  %v12575_v60 = vld [vmem:[#allocation3 + $0x64] sm:$0xf] }
 0x3b1   : > { %9759 = vmatprep.subr.bf16.mxu1 %v10298_v63  ;;  %v8945_v20 = vcombine.low %v6957_v31, %v6967_v4  ;;  %v7023_v26 = vor.u32 %v7022_v10, %v7019_v21  ;;  %v7089_v14 = vshrl.u32 %v6938_v16, 16  ;;  %v7092_v15 = vshll.u32 %v6938_v16, 16 }
 0x3b2   : > { %v7005_v32 = vsel %vm10813_vm11, %v7000_v51, %v12537_v54  ;;  %v7098_v0 = vshll.u32 %v12575_v60, 16  ;;  %v7102_v3 = vshrl.u32 %v12575_v60, 16  ;;  %v7034_v31 = vrot.slane %v7033_v19, 4  ;;  %v6941_v51 = vld [vmem:[#allocation3 + $0x6c] sm:$0xf] }
 0x3b3   : > { %v7024_v61 = vrot.slane %v7023_v26, 4  ;;  %v7070_v21 = vrot.slane %v7068_v35, 5  ;;  %v7076_v54 = vrot.slane %v7074_v24, 5  ;;  %v7080_v10 = vrot.slane %v7078_v2, 4 }
 0x3b4   : > { %9760 = vmatpush3.bf16.msra.mxu1 %v10298_v63  ;;  %v12562_v63 = vld [vmem:[#allocation3 + $0x44] sm:$0x1]  ;;  %v8947_v55 = vcombine.low %v7005_v32, %v7015_v36  ;;  %v7094_v27 = vrot.slane %v7092_v15, 5  ;;  %v7108_v35 = vshll.u32 %v12602_v53, 16  ;;  %v7086_v36 = vrot.slane %v7084_v17, 5 }
 0x3b5   : > { %9777 = vmatprep.subr.bf16.mxu1 %v12533_v44  ;;  %v7036_v5 = vshll.u32 %v12562_v63, 16  ;;  %v7029_v45 = vsel %vm10813_vm11, %v7024_v61, %v12564_v43  ;;  %v7071_v19 = vor.u32 %v7070_v21, %v7067_v42  ;;  %v7113_v43 = vshrl.u32 %v6941_v51, 16 }
 0x3b7   : > { %9746 = vmatmul.mubr.msk.bf16.gmra.mrb[8].mxu1 %vm1610_vm10, %v10294_v34  ;;  %v7047_v34 = vor.u32 %v7046_v8, %v7043_v58  ;;  %v7038_v49 = vrot.slane %v7036_v5, 5  ;;  %v7100_v58 = vrot.slane %v7098_v0, 5  ;;  %v7104_v8 = vrot.slane %v7102_v3, 4 }
 0x3b8   : > { %9749 = vmatprep.mubr.msk.bf16.mxu1 %vm1610_vm10, %v10296_v39  ;;  %v7060_v39 = vshll.u32 %v12566_v41, 16  ;;  %v7115_v61 = vrot.slane %v7113_v43, 4  ;;  %v7371_v43 = vrot.slane %v12498_v11, 5  ;;  %v7381_v11 = vrot.slane %v12542_v13, 5 }
 0x3b9   : > { %v7048_v4 = vrot.slane %v7047_v34, 4  ;;  %v7039_v22 = vsel %vm10813_vm11, %v7034_v31, %v7038_v49  ;;  %v7081_v34 = vor.u32 %v7080_v10, %v7076_v54  ;;  %v7105_v56 = vor.u32 %v7104_v8, %v7100_v58 }
 0x3ba   : > { %v7062_v25 = vrot.slane %v7060_v39, 5  ;;  %v7116_v39 = vshll.u32 %v6941_v51, 16  ;;  %v8948_v24 = vcombine.low %v7029_v45, %v7039_v22  ;;  %v7110_v31 = vrot.slane %v7108_v35, 5 }
 0x3bb   : > { %v7053_v26 = vsel %vm10813_vm11, %v7048_v4, %v12568_v30  ;;  %v10301_v30 = vld [vmem:[%s12906_s7 + $0x110] sm:$0xff]   ;;  %v7082_v32 = vrot.slane %v7081_v34, 4  ;;  %v7106_v3 = vrot.slane %v7105_v56, 4  ;;  %v12618_v4 = vld [vmem:[#allocation3 + $0x74] sm:$0x1]  ;;  %v7392_v13 = vrot.slane %v12539_v57, 5 }
 0x3bc   : > { %v7063_v5 = vsel %vm10813_vm11, %v7058_v6, %v7062_v25  ;;  %v7118_v49 = vrot.slane %v7116_v39, 5  ;;  %v10302_v25 = vld [vmem:[%s12906_s7 + $0x118] sm:$0xff]  }
 0x3bd   : > { %v8949_v2 = vcombine.low %v7053_v26, %v7063_v5  ;;  %v7087_v6 = vsel %vm10813_vm11, %v7082_v32, %v7086_v36  ;;  %v7111_v51 = vsel %vm10813_vm11, %v7106_v3, %v7110_v31  ;;  %v7385_v36 = vrot.slane %v12535_v28, 5 }
 0x3be   : > { %v7119_v21 = vor.u32 %v7118_v49, %v7115_v61  ;;  %v7333_v49 = vld [vmem:[#allocation3 + $0x3c] sm:$0xe]  ;;  %v7395_v28 = vrot.slane %v12566_v41, 5 }
 0x3bf   : > { %9750 = vmatmul.mubr.msk.bf16.gmra.mrb[12].mxu1 %vm1610_vm10, %v10297_v59  ;;  %v7091_v59 = vrot.slane %v7089_v14, 4  ;;  %v8968_v3 = vrot.slane %v7333_v49, 9  ;;  %v7387_v31 = vrot.slane %v7385_v36, 4 }
 0x3c0   : > { %9761 = vmatprep.mubr.msk.bf16.mxu1 %vm1610_vm10, %v8945_v20  ;;  %v12594_v20 = vld [vmem:[#allocation3 + $0x70] sm:$0xf]  ;;  %v7120_v22 = vrot.slane %v7119_v21, 4  ;;  %v10304_v21 = vld [vmem:[%s12908_s9 + $0x8] sm:$0xff]  }
 0x3c1   : > { %v7122_v1 = vshll.u32 %v12594_v20, 16  ;;  %v7126_v16 = vshrl.u32 %v12594_v20, 16  ;;  %v7386_v57 = vsel %vm11056_vm14, %v8968_v3, %v7385_v36 }
 0x3c3   : > { %v7124_v14 = vrot.slane %v7122_v1, 5  ;;  %v7128_v15 = vrot.slane %v7126_v16, 4  ;;  %v7378_v16 = vrot.slane %v12518_v38, 5 }
 0x3c5   : > { %v7129_v10 = vor.u32 %v7128_v15, %v7124_v14 }
 0x3c7   : > { %9762 = vmatmul.mubr.msk.bf16.vlgmr.msra.gmra.mrb[0].mxu1 %vm1610_vm10, %v8946_v62  ;;  %v7095_v62 = vor.u32 %v7094_v27, %v7091_v59  ;;  %v7364_v59 = vrot.slane %v12493_v37, 5  ;;  %v7330_v27 = vld [vmem:[#allocation3 + $0x18] sm:$0xe]  ;;  %v7130_v17 = vrot.slane %v7129_v10, 4  ;;  %v7125_v37 = vsel %vm10813_vm11, %v7120_v22, %v7124_v14  ;;  %v7334_v14 = vld [vmem:[#allocation3 + $0x48] sm:$0xe] }
 0x3c8   : > { %9778 = vmatpush3.bf16.msra.mxu1 %v12533_v44  ;;  %9765 = vmatprep.mubr.msk.bf16.mxu1 %vm1610_vm10, %v8947_v55  ;;  %v7072_v44 = vrot.slane %v7071_v19, 4  ;;  %v7132_v55 = vshll.u32 %v12618_v4, 16  ;;  %v8965_v5 = vrot.slane %v7330_v27, 9  ;;  %v7336_v27 = vld [vmem:[#allocation3 + $0x60] sm:$0xe] }
 0x3c9   : > { %9779 = vmatprep.subr.bf16.mxu1 %v10300_v29  ;;  %v7096_v0 = vrot.slane %v7095_v62, 4  ;;  %v7366_v19 = vrot.slane %v7364_v59, 4 }
 0x3ca   : > { %v7077_v42 = vsel %vm10813_vm11, %v7072_v44, %v7076_v54  ;;  %v10303_v54 = vld [vmem:[%s12908_s9] sm:$0xff]   ;;  %v7134_v26 = vrot.slane %v7132_v55, 5  ;;  %v7365_v39 = vsel %vm11056_vm14, %v8965_v5, %v7364_v59  ;;  %v7380_v44 = vrot.slane %v7378_v16, 4  ;;  %v10305_v59 = vld [vmem:[%s12908_s9 + $0x10] sm:$0xff]  }
 0x3cb   : > { %v8950_v8 = vcombine.low %v7077_v42, %v7087_v6  ;;  %v8969_v42 = vrot.slane %v7334_v14, 9  ;;  %v7394_v6 = vrot.slane %v7392_v13, 4  ;;  %v7409_v5 = vrot.slane %v12602_v53, 5 }
 0x3cc   : > { %9780 = vmatpush3.bf16.msra.mxu1 %v10300_v29  ;;  %v7101_v29 = vsel %vm10813_vm11, %v7096_v0, %v7100_v58  ;;  %v7367_v58 = vrot.slane %v12514_v12, 5  ;;  %v7135_v34 = vsel %vm10813_vm11, %v7130_v17, %v7134_v26  ;;  %v7331_v12 = vld [vmem:[#allocation3 + $0x24] sm:$0xe]  ;;  %v8971_v17 = vrot.slane %v7336_v27, 9 }
 0x3cd   : > { %9781 = vmatprep.subr.bf16.mxu1 %v10301_v30  ;;  %v8951_v45 = vcombine.low %v7101_v29, %v7111_v51  ;;  %v8952_v62 = vcombine.low %v7125_v37, %v7135_v34  ;;  %v8966_v35 = vrot.slane %v7331_v12, 9  ;;  %v7393_v41 = vsel %vm11056_vm14, %v8969_v42, %v7392_v13  ;;  %v7335_v29 = vld [vmem:[#allocation3 + $0x54] sm:$0xe]  ;;  %v7337_v37 = vld [vmem:[#allocation3 + $0x6c] sm:$0xe] }
 0x3ce   : > { %v7368_v1 = vsel %vm11056_vm14, %v7366_v19, %v7367_v58  ;;  %v7396_v55 = vsel %vm11056_vm14, %v7394_v6, %v7395_v28  ;;  %v7406_v51 = vrot.slane %v12575_v60, 5  ;;  %v8970_v22 = vrot.slane %v7335_v29, 9  ;;  %v12967_v29 = vld [vmem:[#allocation10_spill] sm:$0xff] }
 0x3cf   : > { %9766 = vmatmul.mubr.msk.bf16.gmra.mrb[4].mxu1 %vm1610_vm10, %v8948_v24  ;;  %v8981_v56 = vcombine.low %v7365_v39, %v7368_v1  ;;  %v7373_v24 = vrot.slane %v7371_v43, 4  ;;  %v7372_v32 = vsel %vm11056_vm14, %v8966_v35, %v7371_v43  ;;  %v7413_v58 = vrot.slane %v12594_v20, 5 }
 0x3d0   : > { %9769 = vmatprep.mubr.msk.bf16.mxu1 %vm1610_vm10, %v8949_v2  ;;  %9782 = vmatpush3.bf16.msra.mxu1 %v10301_v30  ;;  %v7332_v30 = vld [vmem:[#allocation3 + $0x30] sm:$0xe]  ;;  %v7374_v2 = vrot.slane %v12520_v48, 5  ;;  %v7382_v48 = vsel %vm11056_vm14, %v7380_v44, %v7381_v11  ;;  %v7408_v26 = vrot.slane %v7406_v51, 4  ;;  %v8972_v39 = vrot.slane %v7337_v37, 9 }
 0x3d1   : > { %9783 = vmatprep.subr.bf16.mxu1 %v10302_v25  ;;  %v8967_v50 = vrot.slane %v7332_v30, 9  ;;  %v7415_v1 = vrot.slane %v7413_v58, 4  ;;  %v7416_v12 = vrot.slane %v12618_v4, 5  ;;  %v10307_v4 = vld [vmem:[%s12910_s11] sm:$0xff]  }
 0x3d2   : > { %v7375_v38 = vsel %vm11056_vm14, %v7373_v24, %v7374_v2  ;;  %v7410_v53 = vsel %vm11056_vm14, %v7408_v26, %v7409_v5  ;;  %v7414_v20 = vsel %vm11056_vm14, %v8972_v39, %v7413_v58 }
 0x3d3   : > { %v7379_v61 = vsel %vm11056_vm14, %v8967_v50, %v7378_v16  ;;  %v8982_v15 = vcombine.low %v7372_v32, %v7375_v38  ;;  %v7417_v16 = vsel %vm11056_vm14, %v7415_v1, %v7416_v12  ;;  %v12971_v1 = vld [vmem:[#allocation14_spill] sm:$0xff] }
 0x3d4   : > { %9784 = vmatpush3.bf16.msra.mxu1 %v10302_v25  ;;  %v8983_v0 = vcombine.low %v7379_v61, %v7382_v48  ;;  %v7388_v25 = vrot.slane %v12562_v63, 5  ;;  %v7399_v63 = vrot.slane %v12571_v46, 5  ;;  %v8988_v30 = vcombine.low %v7414_v20, %v7417_v16  ;;  %v12972_v20 = vld [vmem:[#allocation12_spill] sm:$0xff] }
 0x3d5   : > { %9801 = vmatprep.subr.bf16.mxu1 %v10303_v54 }
 0x3d6   : > { %v7389_v10 = vsel %vm11056_vm14, %v7387_v31, %v7388_v25  ;;  %v7401_v46 = vrot.slane %v7399_v63, 4  ;;  %v7400_v60 = vsel %vm11056_vm14, %v8970_v22, %v7399_v63 }
 0x3d7   : > { %9770 = vmatmul.mubr.msk.bf16.gmra.mrb[8].mxu1 %vm1610_vm10, %v8950_v8  ;;  %v8984_v8 = vcombine.low %v7386_v57, %v7389_v10 }
 0x3d8   : > { %9773 = vmatprep.mubr.msk.bf16.mxu1 %vm1610_vm10, %v8951_v45  ;;  %v8985_v45 = vcombine.low %v7393_v41, %v7396_v55 }
 0x3df   : > { %9774 = vmatmul.mubr.msk.bf16.gmra.mrb[12].mxu1 %vm1610_vm10, %v8952_v62  ;;  %v10306_v62 = vld [vmem:[%s12908_s9 + $0x18] sm:$0xff]  }
 0x3e0   : > { %9785 = vmatprep.mubr.msk.bf16.mxu1 %vm1610_vm10, %v8981_v56 }
 0x3e7   : > { %9786 = vmatmul.mubr.msk.bf16.vlgmr.msra.gmra.mrb[0].mxu1 %vm1610_vm10, %v8982_v15 }
 0x3e8   : > { %9789 = vmatprep.mubr.msk.bf16.mxu1 %vm1610_vm10, %v8983_v0  ;;  %9802 = vmatpush3.bf16.msra.mxu1 %v10303_v54  ;;  %v7402_v54 = vrot.slane %v12589_v9, 5  ;;  %v7407_v9 = vsel %vm11056_vm14, %v8971_v17, %v7406_v51 }
 0x3e9   : > { %9803 = vmatprep.subr.bf16.mxu1 %v10304_v21  ;;  %v8987_v43 = vcombine.low %v7407_v9, %v7410_v53  ;;  %v12969_v9 = vld [vmem:[#allocation13_spill] sm:$0xff] }
 0x3ea   : > { %v7403_v19 = vsel %vm11056_vm14, %v7401_v46, %v7402_v54 }
 0x3eb   : > { %v8986_v34 = vcombine.low %v7400_v60, %v7403_v19 }
 0x3ec   : > { %9804 = vmatpush3.bf16.msra.mxu1 %v10304_v21 }
 0x3ed   : > { %9805 = vmatprep.subr.bf16.mxu1 %v10305_v59 }
 0x3ef   : > { %9790 = vmatmul.mubr.msk.bf16.gmra.mrb[4].mxu1 %vm1610_vm10, %v8984_v8 }
 0x3f0   : > { %9793 = vmatprep.mubr.msk.bf16.mxu1 %vm1610_vm10, %v8985_v45  ;;  %9806 = vmatpush3.bf16.msra.mxu1 %v10305_v59  ;;  %v10309_v59 = vld [vmem:[%s12910_s11 + $0x10] sm:$0xff]  }
 0x3f1   : > { %9807 = vmatprep.subr.bf16.mxu1 %v10306_v62 }
 0x3f4   : > { %9808 = vmatpush3.bf16.msra.mxu1 %v10306_v62 }
 0x3f5   : > { %9825 = vmatprep.subr.bf16.mxu1 %v10307_v4 }
 0x3f7   : > { %9794 = vmatmul.mubr.msk.bf16.gmra.mrb[8].mxu1 %vm1610_vm10, %v8986_v34  ;;  %v12970_v34 = vld [vmem:[#allocation11_spill] sm:$0xff] }
 0x3f8   : > { %9797 = vmatprep.mubr.msk.bf16.mxu1 %vm1610_vm10, %v8987_v43 }
 0x3ff   : > { %9798 = vmatmul.mubr.msk.bf16.gmra.mrb[12].mxu1 %vm1610_vm10, %v8988_v30 }
 0x4ba   : > { %v9787_v56 = vpop.f32.mrb[0].mxu1 }
 0x4bb   : > { %v7621_v35 = vadd.f32 %v9787_v56, %v12715_v47  ;;  %v7533_v24 = vpop.f32.mrb[1].mxu1 }
 0x4bc   : > { %v7619_v2 = vadd.f32 %v12715_v47, %v7533_v24  ;;  %v9788_v50 = vpop.f32.mrb[2].mxu1 }
 0x4bd   : > { %v7637_v44 = vmul.f32 0.1, %v7621_v35  ;;  %v7622_v11 = vadd.f32 %v9788_v50, %v12715_v47  ;;  %v7536_v32 = vpop.f32.mrb[3].mxu1 }
 0x4be   : > { %v7635_v38 = vmul.f32 0.1, %v7619_v2  ;;  %v7620_v36 = vadd.f32 %v12715_v47, %v7536_v32 }
 0x4bf   : > { %v7653_v61 = vadd.f32 %v7637_v44, %v10708_v33  ;;  %v7638_v48 = vmul.f32 0.1, %v7622_v11 }
 0x4c0   : > { %v7651_v49 = vadd.f32 %v7635_v38, %v10690_v18  ;;  %v7636_v13 = vmul.f32 0.1, %v7620_v36  ;;  %v12973_v36 = vld [vmem:[#allocation17_spill] sm:$0xff] }
 0x4c1   : > { %8021 = vst.msk [vmem:[%s10660_s20 + $0x10] sm:$0xff] %vm1610_vm10, %v7653_v61  ;;  %v7654_v14 = vadd.f32 %v7638_v48, %v10716_v52 }
 0x4c2   : > { %8019 = vst.msk [vmem:[%s10660_s20] sm:$0xff] %vm1610_vm10, %v7651_v49  ;;  %v7652_v15 = vadd.f32 %v7636_v13, %v10696_v23  ;;  %v9791_v0 = vpop.f32.mrb[4].mxu1  ;;  %v10308_v23 = vld [vmem:[%s12910_s11 + $0x8] sm:$0xff]  }
 0x4c3   : > { %v7668_v3 = vpack.c.bf16 %v7654_v14, %v7653_v61  ;;  %8022 = vst.msk [vmem:[%s10660_s20 + $0x18] sm:$0xff] %vm1610_vm10, %v7654_v14  ;;  %v7625_v31 = vadd.f32 %v9791_v0, %v12715_v47  ;;  %v7549_v25 = vpop.f32.mrb[5].mxu1 }
 0x4c4   : > { %v7667_v33 = vpack.c.bf16 %v7652_v15, %v7651_v49  ;;  %8020 = vst.msk [vmem:[%s10660_s20 + $0x8] sm:$0xff] %vm1610_vm10, %v7652_v15  ;;  %v7623_v18 = vadd.f32 %v12715_v47, %v7549_v25  ;;  %v9792_v42 = vpop.f32.mrb[6].mxu1  ;;  %v12974_v49 = vld [vmem:[#allocation15_spill] sm:$0xff]  ;;  %v12975_v15 = vld [vmem:[#allocation18_spill] sm:$0xff] }
 0x4c5   : > { %v7641_v6 = vmul.f32 0.1, %v7625_v31  ;;  %v7626_v52 = vadd.f32 %v9792_v42, %v12715_v47  ;;  %v7552_v28 = vpop.f32.mrb[7].mxu1 }
 0x4c6   : > { %v7639_v21 = vmul.f32 0.1, %v7623_v18  ;;  %v7624_v57 = vadd.f32 %v12715_v47, %v7552_v28  ;;  %9809 = vmatprep.mubr.msk.bf16.mxu1 %vm1610_vm10, %v7667_v33  ;;  %v10310_v33 = vld [vmem:[%s12910_s11 + $0x18] sm:$0xff]   ;;  %v9002_v18 = vld [vmem:[%s12909_s10] ss:$0 sm:$0xff] }
 0x4c7   : > { %v7657_v10 = vadd.f32 %v7641_v6, %v10854_v7  ;;  %v7642_v63 = vmul.f32 0.1, %v7626_v52  ;;  %9810 = vmatmul.mubr.msk.bf16.vlgmr.msra.gmra.mrb[16].mxu1 %vm1610_vm10, %v7668_v3  ;;  %v12968_v7 = vld [vmem:[#allocation9_spill] sm:$0xff]  ;;  %v12976_v3 = vld [vmem:[#allocation16_spill] sm:$0xff] }
 0x4c8   : > { %v7655_v41 = vadd.f32 %v7639_v21, %v10802_v40  ;;  %v7640_v55 = vmul.f32 0.1, %v7624_v57  ;;  %9826 = vmatpush3.bf16.msra.mxu1 %v10307_v4 }
 0x4c9   : > { %8025 = vst.msk [vmem:[%s10660_s20 + $0x30] sm:$0xff] %vm1610_vm10, %v7657_v10  ;;  %v7658_v51 = vadd.f32 %v7642_v63, %v12967_v29  ;;  %9827 = vmatprep.subr.bf16.mxu1 %v10308_v23 }
 0x4ca   : > { %8023 = vst.msk [vmem:[%s10660_s20 + $0x20] sm:$0xff] %vm1610_vm10, %v7655_v41  ;;  %v7656_v27 = vadd.f32 %v7640_v55, %v12968_v7  ;;  %v9795_v8 = vpop.f32.mrb[8].mxu1 }
 0x4cb   : > { %v7670_v45 = vpack.c.bf16 %v7658_v51, %v7657_v10  ;;  %8026 = vst.msk [vmem:[%s10660_s20 + $0x38] sm:$0xff] %vm1610_vm10, %v7658_v51  ;;  %v7629_v40 = vadd.f32 %v9795_v8, %v12715_v47  ;;  %v7565_v22 = vpop.f32.mrb[9].mxu1 }
 0x4cc   : > { %v7669_v46 = vpack.c.bf16 %v7656_v27, %v7655_v41  ;;  %8024 = vst.msk [vmem:[%s10660_s20 + $0x28] sm:$0xff] %vm1610_vm10, %v7656_v27  ;;  %v7627_v54 = vadd.f32 %v12715_v47, %v7565_v22  ;;  %v9796_v17 = vpop.f32.mrb[10].mxu1  ;;  %9828 = vmatpush3.bf16.msra.mxu1 %v10308_v23 }
 0x4cd   : > { %v7645_v26 = vmul.f32 0.1, %v7629_v40  ;;  %v7630_v5 = vadd.f32 %v9796_v17, %v12715_v47  ;;  %v7568_v60 = vpop.f32.mrb[11].mxu1  ;;  %9829 = vmatprep.subr.bf16.mxu1 %v10309_v59 }
 0x4ce   : > { %v7643_v19 = vmul.f32 0.1, %v7627_v54  ;;  %v7628_v58 = vadd.f32 %v12715_v47, %v7568_v60  ;;  %9813 = vmatprep.mubr.msk.bf16.mxu1 %vm1610_vm10, %v7669_v46 }
 0x4cf   : > { %v7661_v53 = vadd.f32 %v7645_v26, %v12969_v9  ;;  %v7646_v37 = vmul.f32 0.1, %v7630_v5  ;;  %9814 = vmatmul.mubr.msk.bf16.gmra.mrb[20].mxu1 %vm1610_vm10, %v7670_v45 }
 0x4d0   : > { %v7659_v43 = vadd.f32 %v7643_v19, %v12970_v34  ;;  %v7644_v39 = vmul.f32 0.1, %v7628_v58  ;;  %9830 = vmatpush3.bf16.msra.mxu1 %v10309_v59 }
 0x4d1   : > { %8029 = vst.msk [vmem:[%s10660_s20 + $0x50] sm:$0xff] %vm1610_vm10, %v7661_v53  ;;  %v7662_v12 = vadd.f32 %v7646_v37, %v12971_v1  ;;  %9831 = vmatprep.subr.bf16.mxu1 %v10310_v33 }
 0x4d2   : > { %8027 = vst.msk [vmem:[%s10660_s20 + $0x40] sm:$0xff] %vm1610_vm10, %v7659_v43  ;;  %v7660_v16 = vadd.f32 %v7644_v39, %v12972_v20  ;;  %v9799_v30 = vpop.f32.mrb[12].mxu1 }
 0x4d3   : > { %v7672_v62 = vpack.c.bf16 %v7662_v12, %v7661_v53  ;;  %8030 = vst.msk [vmem:[%s10660_s20 + $0x58] sm:$0xff] %vm1610_vm10, %v7662_v12  ;;  %v7633_v4 = vadd.f32 %v9799_v30, %v12715_v47  ;;  %v7581_v56 = vpop.f32.mrb[13].mxu1 }
 0x4d4   : > { %v7671_v35 = vpack.c.bf16 %v7660_v16, %v7659_v43  ;;  %8028 = vst.msk [vmem:[%s10660_s20 + $0x48] sm:$0xff] %vm1610_vm10, %v7660_v16  ;;  %v7631_v24 = vadd.f32 %v12715_v47, %v7581_v56  ;;  %v9800_v2 = vpop.f32.mrb[14].mxu1  ;;  %9832 = vmatpush3.bf16.msra.mxu1 %v10310_v33 }
 0x4d5   : > { %v7649_v50 = vmul.f32 0.1, %v7633_v4  ;;  %v7634_v44 = vadd.f32 %v9800_v2, %v12715_v47  ;;  %v7584_v11 = vpop.f32.mrb[15].mxu1 }
 0x4d6   : > { %v7647_v32 = vmul.f32 0.1, %v7631_v24  ;;  %v7632_v38 = vadd.f32 %v12715_v47, %v7584_v11  ;;  %9817 = vmatprep.mubr.msk.bf16.mxu1 %vm1610_vm10, %v7671_v35 }
 0x4d7   : > { %v7665_v61 = vadd.f32 %v7649_v50, %v12973_v36  ;;  %v7650_v48 = vmul.f32 0.1, %v7634_v44  ;;  %9818 = vmatmul.mubr.msk.bf16.gmra.mrb[24].mxu1 %vm1610_vm10, %v7672_v62 }
 0x4d8   : > { %v7663_v13 = vadd.f32 %v7647_v32, %v12974_v49  ;;  %v7648_v14 = vmul.f32 0.1, %v7632_v38 }
 0x4d9   : > { %8033 = vst.msk [vmem:[%s10660_s20 + $0x70] sm:$0xff] %vm1610_vm10, %v7665_v61  ;;  %v7666_v0 = vadd.f32 %v7650_v48, %v12975_v15  ;;  %v12812_v15 = vld [vmem:[%s12977_s19] ss:$0 sm:$0xff] }
 0x4da   : > { %8031 = vst.msk [vmem:[%s10660_s20 + $0x60] sm:$0xff] %vm1610_vm10, %v7663_v13  ;;  %v7664_v31 = vadd.f32 %v7648_v14, %v12976_v3 }
 0x4db   : > { %v7674_v25 = vpack.c.bf16 %v7666_v0, %v7665_v61  ;;  %8034 = vst.msk [vmem:[%s10660_s20 + $0x78] sm:$0xff] %vm1610_vm10, %v7666_v0 }
 0x4dc   : > { %v7673_v47 = vpack.c.bf16 %v7664_v31, %v7663_v13  ;;  %8032 = vst.msk [vmem:[%s10660_s20 + $0x68] sm:$0xff] %vm1610_vm10, %v7664_v31 }
 0x4de   : > { %9821 = vmatprep.mubr.msk.bf16.mxu1 %vm1610_vm10, %v7673_v47 }
 0x4df   : > { %9822 = vmatmul.mubr.msk.bf16.gmra.mrb[28].mxu1 %vm1610_vm10, %v7674_v25 }
 0x59a   : > { %v9811_v42 = vpop.f32.mrb[16].mxu1 }
 0x59b   : > { %v7781_v6 = vadd.f32 %v9811_v42, %v9002_v18  ;;  %v7772_v52 = vpop.f32.mrb[17].mxu1 }
 0x59c   : > { %v7773_v28 = vadd.f32 %v9002_v18, %v7772_v52  ;;  %v9812_v23 = vpop.f32.mrb[18].mxu1 }
 0x59d   : > { %v7784_v21 = vadd.f32 %v9812_v23, %v9002_v18  ;;  %v7775_v57 = vpop.f32.mrb[19].mxu1  ;;  %v7837_v63 = vmax.f32 %v7781_v6, 0.0 }
 0x59e   : > { %v7776_v10 = vadd.f32 %v9002_v18, %v7775_v57  ;;  %v7835_v55 = vmax.f32 %v7773_v28, 0.0 }
 0x59f   : > { %v7838_v41 = vmax.f32 %v7784_v21, 0.0 }
 0x5a0   : > { %v7836_v29 = vmax.f32 %v7776_v10, 0.0 }
 0x5a1   : > { %v7852_v51 = vpack.c.bf16 %v7838_v41, %v7837_v63 }
 0x5a2   : > { %v7851_v59 = vpack.c.bf16 %v7836_v29, %v7835_v55  ;;  %v9815_v7 = vpop.f32.mrb[20].mxu1 }
 0x5a3   : > { %v7797_v27 = vadd.f32 %v9815_v7, %v9002_v18  ;;  %v7788_v8 = vpop.f32.mrb[21].mxu1 }
 0x5a4   : > { %v7789_v45 = vadd.f32 %v9002_v18, %v7788_v8  ;;  %v9816_v40 = vpop.f32.mrb[22].mxu1  ;;  %9833 = vmatprep.mubr.msk.bf16.mxu1 %vm1610_vm10, %v7851_v59 }
 0x5a5   : > { %v7800_v22 = vadd.f32 %v9816_v40, %v9002_v18  ;;  %v7791_v46 = vpop.f32.mrb[23].mxu1  ;;  %9834 = vmatmul.mubr.msk.bf16.vlgmr.msra.gmra.mrb[32].mxu1 %vm1610_vm10, %v7852_v51  ;;  %v7841_v17 = vmax.f32 %v7797_v27, 0.0 }
 0x5a6   : > { %v7792_v54 = vadd.f32 %v9002_v18, %v7791_v46  ;;  %v7839_v5 = vmax.f32 %v7789_v45, 0.0 }
 0x5a7   : > { %v7842_v26 = vmax.f32 %v7800_v22, 0.0 }
 0x5a8   : > { %v7840_v60 = vmax.f32 %v7792_v54, 0.0 }
 0x5a9   : > { %v7854_v19 = vpack.c.bf16 %v7842_v26, %v7841_v17 }
 0x5aa   : > { %v7853_v58 = vpack.c.bf16 %v7840_v60, %v7839_v5  ;;  %v9819_v9 = vpop.f32.mrb[24].mxu1 }
 0x5ab   : > { %v7813_v53 = vadd.f32 %v9819_v9, %v9002_v18  ;;  %v7804_v37 = vpop.f32.mrb[25].mxu1 }
 0x5ac   : > { %v7805_v34 = vadd.f32 %v9002_v18, %v7804_v37  ;;  %v9820_v43 = vpop.f32.mrb[26].mxu1  ;;  %9837 = vmatprep.mubr.msk.bf16.mxu1 %vm1610_vm10, %v7853_v58 }
 0x5ad   : > { %v7816_v39 = vadd.f32 %v9820_v43, %v9002_v18  ;;  %v7807_v1 = vpop.f32.mrb[27].mxu1  ;;  %9838 = vmatmul.mubr.msk.bf16.gmra.mrb[36].mxu1 %vm1610_vm10, %v7854_v19  ;;  %v7845_v20 = vmax.f32 %v7813_v53, 0.0 }
 0x5ae   : > { %v7808_v12 = vadd.f32 %v9002_v18, %v7807_v1  ;;  %v7843_v30 = vmax.f32 %v7805_v34, 0.0 }
 0x5af   : > { %v7846_v16 = vmax.f32 %v7816_v39, 0.0 }
 0x5b0   : > { %v7844_v62 = vmax.f32 %v7808_v12, 0.0 }
 0x5b1   : > { %v7856_v4 = vpack.c.bf16 %v7846_v16, %v7845_v20 }
 0x5b2   : > { %v7855_v56 = vpack.c.bf16 %v7844_v62, %v7843_v30  ;;  %v9823_v35 = vpop.f32.mrb[28].mxu1 }
 0x5b3   : > { %v7829_v24 = vadd.f32 %v9823_v35, %v9002_v18  ;;  %v7820_v2 = vpop.f32.mrb[29].mxu1 }
 0x5b4   : > { %v7821_v50 = vadd.f32 %v9002_v18, %v7820_v2  ;;  %v9824_v44 = vpop.f32.mrb[30].mxu1  ;;  %9841 = vmatprep.mubr.msk.bf16.mxu1 %vm1610_vm10, %v7855_v56 }
 0x5b5   : > { %v7832_v11 = vadd.f32 %v9824_v44, %v9002_v18  ;;  %v7823_v32 = vpop.f32.mrb[31].mxu1  ;;  %9842 = vmatmul.mubr.msk.bf16.gmra.mrb[40].mxu1 %vm1610_vm10, %v7856_v4  ;;  %v7849_v36 = vmax.f32 %v7829_v24, 0.0 }
 0x5b6   : > { %v7824_v38 = vadd.f32 %v9002_v18, %v7823_v32  ;;  %v7847_v48 = vmax.f32 %v7821_v50, 0.0 }
 0x5b7   : > { %v7850_v61 = vmax.f32 %v7832_v11, 0.0 }
 0x5b8   : > { %v7848_v49 = vmax.f32 %v7824_v38, 0.0 }
 0x5b9   : > { %v7858_v13 = vpack.c.bf16 %v7850_v61, %v7849_v36 }
 0x5ba   : > { %v7857_v14 = vpack.c.bf16 %v7848_v49, %v7847_v48 }
 0x5bc   : > { %9845 = vmatprep.mubr.msk.bf16.mxu1 %vm1610_vm10, %v7857_v14 }
 0x5bd   : > { %9846 = vmatmul.mubr.msk.bf16.gmra.mrb[44].mxu1 %vm1610_vm10, %v7858_v13 }
 0x678   : > { %v9835_v0 = vpop.f32.mrb[32].mxu1 }
 0x679   : > { %v7965_v3 = vadd.f32 %v9835_v0, %v12812_v15  ;;  %v7956_v31 = vpop.f32.mrb[33].mxu1 }
 0x67a   : > { %v7957_v25 = vadd.f32 %v12812_v15, %v7956_v31  ;;  %v9836_v47 = vpop.f32.mrb[34].mxu1 }
 0x67b   : > { %8037 = vst.msk [vmem:[%s10665_s27 + $0x10] sm:$0xff] %vm1610_vm10, %v7965_v3  ;;  %v7968_v33 = vadd.f32 %v9836_v47, %v12812_v15  ;;  %v7959_v18 = vpop.f32.mrb[35].mxu1  ;;  %v8054_v23 = vsel %vm1610_vm10, %v7965_v3, 0.0 }
 0x67c   : > { %8035 = vst.msk [vmem:[%s10665_s27] sm:$0xff] %vm1610_vm10, %v7957_v25  ;;  %v7960_v42 = vadd.f32 %v12812_v15, %v7959_v18  ;;  %v8051_v6 = vsel %vm1610_vm10, %v7957_v25, 0.0 }
 0x67d   : > { %8038 = vst.msk [vmem:[%s10665_s27 + $0x18] sm:$0xff] %vm1610_vm10, %v7968_v33  ;;  %v8056_v41 = vsel %vm1610_vm10, %v7968_v33, 0.0  ;;  %v10352_v33 = vmov (!%p9028_p10), 0.0  }
 0x67e   : > { %8036 = vst.msk [vmem:[%s10665_s27 + $0x8] sm:$0xff] %vm1610_vm10, %v7960_v42  ;;  %v8052_v52 = vsel %vm1610_vm10, %v7960_v42, 0.0 }
 0x67f   : > { %v8053_v28 = vadd.f32 %v8052_v52, %v8051_v6  ;;  %8092 = vst.msk [vmem:[%s10637_s22] sm:$0x1] (!%p9028_p10), %vm825_vm1, %v10352_v33 }
 0x680   : > { %v9839_v21 = vpop.f32.mrb[36].mxu1 }
 0x681   : > { %v8055_v57 = vadd.f32 %v8054_v23, %v8053_v28  ;;  %v7981_v10 = vadd.f32 %v9839_v21, %v12812_v15  ;;  %v7972_v63 = vpop.f32.mrb[37].mxu1 }
 0x682   : > { %v7973_v55 = vadd.f32 %v12812_v15, %v7972_v63  ;;  %v9840_v29 = vpop.f32.mrb[38].mxu1 }
 0x683   : > { %8041 = vst.msk [vmem:[%s10665_s27 + $0x30] sm:$0xff] %vm1610_vm10, %v7981_v10  ;;  %v8057_v51 = vadd.f32 %v8056_v41, %v8055_v57  ;;  %v7984_v59 = vadd.f32 %v9840_v29, %v12812_v15  ;;  %v7975_v7 = vpop.f32.mrb[39].mxu1  ;;  %v8062_v46 = vsel %vm1610_vm10, %v7981_v10, 0.0 }
 0x684   : > { %8039 = vst.msk [vmem:[%s10665_s27 + $0x20] sm:$0xff] %vm1610_vm10, %v7973_v55  ;;  %v8058_v27 = vsel %vm1610_vm10, %v7973_v55, 0.0  ;;  %v7976_v8 = vadd.f32 %v12812_v15, %v7975_v7 }
 0x685   : > { %v8059_v45 = vadd.f32 %v8058_v27, %v8057_v51  ;;  %8042 = vst.msk [vmem:[%s10665_s27 + $0x38] sm:$0xff] %vm1610_vm10, %v7984_v59  ;;  %v8064_v60 = vsel %vm1610_vm10, %v7984_v59, 0.0 }
 0x686   : > { %8040 = vst.msk [vmem:[%s10665_s27 + $0x28] sm:$0xff] %vm1610_vm10, %v7976_v8  ;;  %v8060_v40 = vsel %vm1610_vm10, %v7976_v8, 0.0 }
 0x687   : > { %v8061_v22 = vadd.f32 %v8060_v40, %v8059_v45 }
 0x688   : > { %v9843_v54 = vpop.f32.mrb[40].mxu1 }
 0x689   : > { %v8063_v17 = vadd.f32 %v8062_v46, %v8061_v22  ;;  %v7997_v26 = vadd.f32 %v9843_v54, %v12812_v15  ;;  %v7988_v5 = vpop.f32.mrb[41].mxu1 }
 0x68a   : > { %v7989_v19 = vadd.f32 %v12812_v15, %v7988_v5  ;;  %v9844_v58 = vpop.f32.mrb[42].mxu1 }
 0x68b   : > { %8045 = vst.msk [vmem:[%s10665_s27 + $0x50] sm:$0xff] %vm1610_vm10, %v7997_v26  ;;  %v8065_v9 = vadd.f32 %v8064_v60, %v8063_v17  ;;  %v8000_v53 = vadd.f32 %v9844_v58, %v12812_v15  ;;  %v7991_v37 = vpop.f32.mrb[43].mxu1  ;;  %v8070_v20 = vsel %vm1610_vm10, %v7997_v26, 0.0 }
 0x68c   : > { %8043 = vst.msk [vmem:[%s10665_s27 + $0x40] sm:$0xff] %vm1610_vm10, %v7989_v19  ;;  %v8066_v34 = vsel %vm1610_vm10, %v7989_v19, 0.0  ;;  %v7992_v43 = vadd.f32 %v12812_v15, %v7991_v37 }
 0x68d   : > { %v8067_v39 = vadd.f32 %v8066_v34, %v8065_v9  ;;  %8046 = vst.msk [vmem:[%s10665_s27 + $0x58] sm:$0xff] %vm1610_vm10, %v8000_v53  ;;  %v8072_v56 = vsel %vm1610_vm10, %v8000_v53, 0.0 }
 0x68e   : > { %8044 = vst.msk [vmem:[%s10665_s27 + $0x48] sm:$0xff] %vm1610_vm10, %v7992_v43  ;;  %v8068_v1 = vsel %vm1610_vm10, %v7992_v43, 0.0 }
 0x68f   : > { %v8069_v12 = vadd.f32 %v8068_v1, %v8067_v39 }
 0x690   : > { %v9847_v16 = vpop.f32.mrb[44].mxu1 }
 0x691   : > { %v8071_v30 = vadd.f32 %v8070_v20, %v8069_v12  ;;  %v8013_v62 = vadd.f32 %v9847_v16, %v12812_v15  ;;  %v8004_v4 = vpop.f32.mrb[45].mxu1 }
 0x692   : > { %v8005_v35 = vadd.f32 %v12812_v15, %v8004_v4  ;;  %v9848_v24 = vpop.f32.mrb[46].mxu1 }
 0x693   : > { %8049 = vst.msk [vmem:[%s10665_s27 + $0x70] sm:$0xff] %vm1610_vm10, %v8013_v62  ;;  %v8073_v2 = vadd.f32 %v8072_v56, %v8071_v30  ;;  %v8016_v50 = vadd.f32 %v9848_v24, %v12812_v15  ;;  %v8007_v44 = vpop.f32.mrb[47].mxu1  ;;  %v8078_v48 = vsel %vm1610_vm10, %v8013_v62, 0.0 }
 0x694   : > { %8047 = vst.msk [vmem:[%s10665_s27 + $0x60] sm:$0xff] %vm1610_vm10, %v8005_v35  ;;  %v8074_v11 = vsel %vm1610_vm10, %v8005_v35, 0.0  ;;  %v8008_v32 = vadd.f32 %v12812_v15, %v8007_v44 }
 0x695   : > { %v8075_v38 = vadd.f32 %v8074_v11, %v8073_v2  ;;  %8050 = vst.msk [vmem:[%s10665_s27 + $0x78] sm:$0xff] %vm1610_vm10, %v8016_v50  ;;  %v8080_v13 = vsel %vm1610_vm10, %v8016_v50, 0.0 }
 0x696   : > { %8048 = vst.msk [vmem:[%s10665_s27 + $0x68] sm:$0xff] %vm1610_vm10, %v8008_v32  ;;  %v8076_v36 = vsel %vm1610_vm10, %v8008_v32, 0.0 }
 0x697   : > { %v8077_v61 = vadd.f32 %v8076_v36, %v8075_v38 }
 0x699   : > { %v8079_v49 = vadd.f32 %v8078_v48, %v8077_v61 }
 0x69b   : > { %v8081_v14 = vadd.f32 %v8080_v13, %v8079_v49 }
 0x69d   : > { %v8082_v0 = vrot.slane %v8081_v14, 4 }
 0x69f   : > { %v8083_v3 = vadd.f32 %v8082_v0, %v8081_v14 }
 0x6a1   : > { %v8084_v31 = vrot.slane %v8083_v3, 2  ;;  %8091 = sbr.rel (%p9028_p10) target bundleno = 1704 (0x6a8), region = 84 }
 0x6a3   : > { %v8085_v25 = vadd.f32 %v8084_v31, %v8083_v3 }
 0x6a5   : > { %v8086_v47 = vrot.slane %v8085_v25, 1 }
 0x6a7   : > { %v8087_v15 = vadd.f32 %v8086_v47, %v8085_v25 }
 0x6a8 PF: > { %v8093_v18 = vld [vmem:[%s10637_s22] sm:$0x1] }
 0x6a9   : > { %v8094_v42 = vadd.f32 %v8093_v18, %v8087_v15 }
 0x6ab   : > { %8095 = vst.msk [vmem:[%s10637_s22] sm:$0x1] %vm825_vm1, %v8094_v42 }
 0x6ac PF: > { %s12978_s27 = sld [smem:[#allocation6_spill]]  ;;  %s12979_s18 = sld [smem:[#allocation4_spill]] }
 0x6ad   : > { %s12980_s19 = sld [smem:[#allocation5_spill]]  ;;  %s12981_s20 = sld [smem:[#allocation7_spill]] }
 0x6ae   : > { %s12982_s21 = sld [smem:[#allocation8_spill]] }
 0x6b2   : > { %s26_s22 = sadd.s32 1, %s12978_s27  }
 0x6b3   : > { %p23_p11 = scmp.ge.s32.totalorder %s26_s22, 6  }
 0x6b5   :  { %25 = sbr.rel (!%p23_p11) target bundleno = 4 (0x4), region = 172 }

</bundles_post_ra>
